<compile_context>
chip_gen: v6e
topology: v6e:2x2x1
jax: 0.10.0
libtpu: 0.0.40
codegen_flags: <defaults>
</compile_context>

<pallas_src>
import functools

import jax
import jax.numpy as jnp
from jax.experimental import pallas as pl
from jax.experimental.pallas import tpu as pltpu


# ----------------------------- in-kernel helpers -----------------------------


def _layer_norm(x, g, b, eps=1e-5):
    # LayerNorm over the last dim (x already contains the residual sum).
    mean = jnp.mean(x, axis=-1, keepdims=True)
    c = x - mean
    var = jnp.mean(c * c, axis=-1, keepdims=True)
    return c * jax.lax.rsqrt(var + eps) * g + b


def _mm(x, w, b=None):
    # (..., K) @ (K, N): leading dims collapsed into one row slab so the MXU
    # sees a single full-K matmul; bf16 operands, f32 accumulation.
    lead = x.shape[:-1]
    r = jnp.dot(x.reshape(-1, x.shape[-1]).astype(jnp.bfloat16), w,
                preferred_element_type=jnp.float32)
    if b is not None:
        r = r + b
    return r.reshape(*lead, w.shape[-1])


def _attention(q, k, v, wo, bo, nhead):
    # q: (B, Sq, D) f32 -- scale already folded into the Q projection weights.
    # k, v: (B, Sk, D) f32.  wo: (D, D) bf16.  bo: (1, D) f32.
    D = q.shape[-1]
    dh = D // nhead
    heads = []
    for h in range(nhead):  # static unroll; per-head score matmuls are tiny here
        sl = slice(h * dh, (h + 1) * dh)
        s = jnp.einsum("bqd,bkd->bqk",
                       q[..., sl].astype(jnp.bfloat16),
                       k[..., sl].astype(jnp.bfloat16),
                       preferred_element_type=jnp.float32)
        s = s - jnp.max(s, axis=-1, keepdims=True)
        p = jnp.exp(s)
        p = p / jnp.sum(p, axis=-1, keepdims=True)   # exact divide for accuracy
        heads.append(jnp.einsum("bqk,bkd->bqd",
                                p.astype(jnp.bfloat16),
                                v[..., sl].astype(jnp.bfloat16),
                                preferred_element_type=jnp.float32))
    o = jnp.concatenate(heads, axis=-1)              # (B, Sq, D), head order
    return _mm(o, wo, bo)                            # single fused out-projection


# ------------------------------- layer bodies --------------------------------

_ENC_KEYS = ("wqkv", "bqkv", "wo", "bo", "ln1_g", "ln1_b",
             "w1", "b1", "w2", "b2", "ln2_g", "ln2_b")

_DEC_KEYS = ("self_wqkv", "self_bqkv", "self_wo", "self_bo", "ln1_g", "ln1_b",
             "cross_wq", "cross_bq", "cross_wkv", "cross_bkv", "cross_wo",
             "cross_bo", "ln2_g", "ln2_b",
             "w1", "b1", "w2", "b2", "ln3_g", "ln3_b")


def _encoder_layer(x, wqkv, bqkv, wo, bo, ln1_g, ln1_b,
                   w1, b1, w2, b2, ln2_g, ln2_b, *, nhead):
    D = x.shape[-1]
    qkv = _mm(x, wqkv, bqkv)                                   # fused QKV (B,S,3D)
    attn = _attention(qkv[..., :D], qkv[..., D:2 * D], qkv[..., 2 * D:],
                      wo, bo, nhead)
    x = _layer_norm(x + attn, ln1_g, ln1_b)                    # residual fused in
    ffn = _mm(jnp.maximum(_mm(x, w1, b1), 0.0), w2, b2)
    return _layer_norm(x + ffn, ln2_g, ln2_b)


def _decoder_layer(x, mem, self_wqkv, self_bqkv, self_wo, self_bo, ln1_g, ln1_b,
                   cross_wq, cross_bq, cross_wkv, cross_bkv, cross_wo, cross_bo,
                   ln2_g, ln2_b, w1, b1, w2, b2, ln3_g, ln3_b, *, nhead):
    D = x.shape[-1]
    # self attention (unmasked, matching the reference's default all-ones masks)
    qkv = _mm(x, self_wqkv, self_bqkv)
    attn = _attention(qkv[..., :D], qkv[..., D:2 * D], qkv[..., 2 * D:],
                      self_wo, self_bo, nhead)
    x = _layer_norm(x + attn, ln1_g, ln1_b)
    # cross attention -- memory K/V projected exactly once per layer
    q = _mm(x, cross_wq, cross_bq)
    kv = _mm(mem, cross_wkv, cross_bkv)
    cross = _attention(q, kv[..., :D], kv[..., D:], cross_wo, cross_bo, nhead)
    x = _layer_norm(x + cross, ln2_g, ln2_b)
    # feed-forward
    ffn = _mm(jnp.maximum(_mm(x, w1, b1), 0.0), w2, b2)
    return _layer_norm(x + ffn, ln3_g, ln3_b)


# ------------------------------ fused stack kernel ----------------------------


def _transformer_kernel(src_ref, tgt_ref, *refs, nhead, n_enc, n_dec):
    o_ref = refs[-1]
    w_refs = refs[:-1]
    ne, nd = len(_ENC_KEYS), len(_DEC_KEYS)

    # TODO(synk): explicit user-supplied attn / key-padding masks are not wired
    # in; the reference builds all-ones attn masks and all-zero padding masks
    # by default (no masking), and dropout is identity in eval mode.
    x = src_ref[...].astype(jnp.float32)
    off = 0
    for _ in range(n_enc):
        ws = [r[...] for r in w_refs[off:off + ne]]   # hoisted single ref reads
        off += ne
        x = _encoder_layer(x, *ws, nhead=nhead)
    mem = x          # encoder output never leaves VMEM/vregs (no HBM roundtrip)

    y = tgt_ref[...].astype(jnp.float32)
    for _ in range(n_dec):
        ws = [r[...] for r in w_refs[off:off + nd]]
        off += nd
        y = _decoder_layer(y, mem, *ws, nhead=nhead)

    # TODO(synk): D=32 < 128 lanes -> masked stores; at scale, present a
    # lane-dense (B, S*D) output slab or pad d_model to a multiple of 128.
    o_ref[...] = y.astype(o_ref.dtype)


# ------------------------------ pallas_call wrapper ---------------------------


def _cost_estimate(B, Ss, St, D, F, nhead, n_enc, n_dec, bytes_accessed):
    def attn(sq, sk):                                 # QK^T + PV + out-projection
        return 4 * B * sq * sk * D + 2 * B * sq * D * D
    enc = n_enc * (6 * B * Ss * D * D + attn(Ss, Ss) + 4 * B * Ss * D * F)
    dec = n_dec * (6 * B * St * D * D + attn(St, St)
                   + 2 * B * St * D * D + 4 * B * Ss * D * D + attn(St, Ss)
                   + 4 * B * St * D * F)
    trans = B * nhead * (n_enc * Ss * Ss + n_dec * (St * St + St * Ss))
    return pl.CostEstimate(flops=int(enc + dec), transcendentals=int(trans),
                           bytes_accessed=int(bytes_accessed))


def transformer_forward(src, tgt, params, *, nhead):
    # src: (B, Ss, D), tgt: (B, St, D) -> (B, St, D)
    B, Ss, D = src.shape
    St = tgt.shape[1]
    enc_layers = params["encoder_layers"]
    dec_layers = params["decoder_layers"]
    F = enc_layers[0]["w1"].shape[1]

    flat = ([p[k] for p in enc_layers for k in _ENC_KEYS]
            + [p[k] for p in dec_layers for k in _DEC_KEYS])

    n_bytes = sum(a.size * a.dtype.itemsize for a in (src, tgt, *flat))
    n_bytes += B * St * D * tgt.dtype.itemsize

    kern = functools.partial(_transformer_kernel, nhead=nhead,
                             n_enc=len(enc_layers), n_dec=len(dec_layers))
    return pl.pallas_call(
        kern,
        out_shape=jax.ShapeDtypeStruct((B, St, D), tgt.dtype),
        compiler_params=pltpu.CompilerParams(vmem_limit_bytes=32 * 1024 * 1024),
        cost_estimate=_cost_estimate(B, Ss, St, D, F, nhead,
                                     len(enc_layers), len(dec_layers), n_bytes),
    )(src, tgt, *flat)


# ------------------------------ parameter init --------------------------------


def _init_self_attn(key, D, nhead):
    ks = jax.random.split(key, 4)
    s = 0.02
    scale = 1.0 / float(D // nhead) ** 0.5
    # 1/sqrt(dh) folded into the Q projection -> no runtime score scaling.
    wq = jax.random.normal(ks[0], (D, D), jnp.float32) * s * scale
    wk = jax.random.normal(ks[1], (D, D), jnp.float32) * s
    wv = jax.random.normal(ks[2], (D, D), jnp.float32) * s
    wo = jax.random.normal(ks[3], (D, D), jnp.float32) * s
    return {
        "wqkv": jnp.concatenate([wq, wk, wv], axis=1).astype(jnp.bfloat16),
        "bqkv": jnp.zeros((1, 3 * D), jnp.float32),   # Q-bias would need `scale` if nonzero
        "wo": wo.astype(jnp.bfloat16),
        "bo": jnp.zeros((1, D), jnp.float32),
    }


def _init_cross_attn(key, D, nhead):
    ks = jax.random.split(key, 4)
    s = 0.02
    scale = 1.0 / float(D // nhead) ** 0.5
    wq = jax.random.normal(ks[0], (D, D), jnp.float32) * s * scale
    wk = jax.random.normal(ks[1], (D, D), jnp.float32) * s
    wv = jax.random.normal(ks[2], (D, D), jnp.float32) * s
    wo = jax.random.normal(ks[3], (D, D), jnp.float32) * s
    return {
        "wq": wq.astype(jnp.bfloat16),
        "bq": jnp.zeros((1, D), jnp.float32),
        "wkv": jnp.concatenate([wk, wv], axis=1).astype(jnp.bfloat16),
        "bkv": jnp.zeros((1, 2 * D), jnp.float32),
        "wo": wo.astype(jnp.bfloat16),
        "bo": jnp.zeros((1, D), jnp.float32),
    }


def _init_ffn(key, D, F):
    k1, k2 = jax.random.split(key, 2)
    s = 0.02
    return {
        "w1": (jax.random.normal(k1, (D, F), jnp.float32) * s).astype(jnp.bfloat16),
        "b1": jnp.zeros((1, F), jnp.float32),
        "w2": (jax.random.normal(k2, (F, D), jnp.float32) * s).astype(jnp.bfloat16),
        "b2": jnp.zeros((1, D), jnp.float32),
    }


def _ln_params(D):
    return jnp.ones((1, D), jnp.float32), jnp.zeros((1, D), jnp.float32)


def _init_encoder_layer(key, D, F, nhead):
    k_attn, k_ffn = jax.random.split(key, 2)
    attn = _init_self_attn(k_attn, D, nhead)
    ffn = _init_ffn(k_ffn, D, F)
    g1, b1 = _ln_params(D)
    g2, b2 = _ln_params(D)
    return {
        "wqkv": attn["wqkv"], "bqkv": attn["bqkv"], "wo": attn["wo"], "bo": attn["bo"],
        "w1": ffn["w1"], "b1": ffn["b1"], "w2": ffn["w2"], "b2": ffn["b2"],
        "ln1_g": g1, "ln1_b": b1, "ln2_g": g2, "ln2_b": b2,
    }


def _init_decoder_layer(key, D, F, nhead):
    k_self, k_cross, k_ffn = jax.random.split(key, 3)
    sa = _init_self_attn(k_self, D, nhead)
    ca = _init_cross_attn(k_cross, D, nhead)
    ffn = _init_ffn(k_ffn, D, F)
    g1, b1 = _ln_params(D)
    g2, b2 = _ln_params(D)
    g3, b3 = _ln_params(D)
    return {
        "self_wqkv": sa["wqkv"], "self_bqkv": sa["bqkv"],
        "self_wo": sa["wo"], "self_bo": sa["bo"],
        "cross_wq": ca["wq"], "cross_bq": ca["bq"],
        "cross_wkv": ca["wkv"], "cross_bkv": ca["bkv"],
        "cross_wo": ca["wo"], "cross_bo": ca["bo"],
        "w1": ffn["w1"], "b1": ffn["b1"], "w2": ffn["w2"], "b2": ffn["b2"],
        "ln1_g": g1, "ln1_b": b1, "ln2_g": g2, "ln2_b": b2, "ln3_g": g3, "ln3_b": b3,
    }


def init_transformer_params(key, d_model, nhead, dim_feedforward, n_enc, n_dec):
    keys = jax.random.split(key, n_enc + n_dec)
    enc = [_init_encoder_layer(keys[i], d_model, dim_feedforward, nhead)
           for i in range(n_enc)]
    dec = [_init_decoder_layer(keys[n_enc + i], d_model, dim_feedforward, nhead)
           for i in range(n_dec)]
    return {"encoder_layers": enc, "decoder_layers": dec}


# ---------------------------------- main --------------------------------------

if __name__ == "__main__":
    d_model = 32
    nhead = 4
    num_encoder_layers = 2
    num_decoder_layers = 2
    dim_feedforward = 64
    B, S_src, S_tgt = 2, 8, 8

    root = jax.random.PRNGKey(0)
    k_params, k_src, k_tgt = jax.random.split(root, 3)

    params = init_transformer_params(
        k_params, d_model, nhead, dim_feedforward,
        num_encoder_layers, num_decoder_layers)
    src = jax.random.normal(k_src, (B, S_src, d_model), jnp.float32)
    tgt = jax.random.normal(k_tgt, (B, S_tgt, d_model), jnp.float32)

    fwd = jax.jit(functools.partial(transformer_forward, nhead=nhead))
    out = fwd(src, tgt, params)
    jax.block_until_ready(out)

    assert out.shape == (B, S_tgt, d_model)
    assert bool(jnp.all(jnp.isfinite(out)))
    print("KERNEL_OK")
</pallas_src>

<mosaic_0001>
module attributes {stable_mosaic.version = 11 : i64} {
  func.func @_transformer_kernel(%arg0: memref<2x8x32xf32, #tpu.memory_space<vmem>>, %arg1: memref<2x8x32xf32, #tpu.memory_space<vmem>>, %arg2: memref<32x96xbf16, #tpu.memory_space<vmem>>, %arg3: memref<1x96xf32, #tpu.memory_space<vmem>>, %arg4: memref<32x32xbf16, #tpu.memory_space<vmem>>, %arg5: memref<1x32xf32, #tpu.memory_space<vmem>>, %arg6: memref<1x32xf32, #tpu.memory_space<vmem>>, %arg7: memref<1x32xf32, #tpu.memory_space<vmem>>, %arg8: memref<32x64xbf16, #tpu.memory_space<vmem>>, %arg9: memref<1x64xf32, #tpu.memory_space<vmem>>, %arg10: memref<64x32xbf16, #tpu.memory_space<vmem>>, %arg11: memref<1x32xf32, #tpu.memory_space<vmem>>, %arg12: memref<1x32xf32, #tpu.memory_space<vmem>>, %arg13: memref<1x32xf32, #tpu.memory_space<vmem>>, %arg14: memref<32x96xbf16, #tpu.memory_space<vmem>>, %arg15: memref<1x96xf32, #tpu.memory_space<vmem>>, %arg16: memref<32x32xbf16, #tpu.memory_space<vmem>>, %arg17: memref<1x32xf32, #tpu.memory_space<vmem>>, %arg18: memref<1x32xf32, #tpu.memory_space<vmem>>, %arg19: memref<1x32xf32, #tpu.memory_space<vmem>>, %arg20: memref<32x64xbf16, #tpu.memory_space<vmem>>, %arg21: memref<1x64xf32, #tpu.memory_space<vmem>>, %arg22: memref<64x32xbf16, #tpu.memory_space<vmem>>, %arg23: memref<1x32xf32, #tpu.memory_space<vmem>>, %arg24: memref<1x32xf32, #tpu.memory_space<vmem>>, %arg25: memref<1x32xf32, #tpu.memory_space<vmem>>, %arg26: memref<32x96xbf16, #tpu.memory_space<vmem>>, %arg27: memref<1x96xf32, #tpu.memory_space<vmem>>, %arg28: memref<32x32xbf16, #tpu.memory_space<vmem>>, %arg29: memref<1x32xf32, #tpu.memory_space<vmem>>, %arg30: memref<1x32xf32, #tpu.memory_space<vmem>>, %arg31: memref<1x32xf32, #tpu.memory_space<vmem>>, %arg32: memref<32x32xbf16, #tpu.memory_space<vmem>>, %arg33: memref<1x32xf32, #tpu.memory_space<vmem>>, %arg34: memref<32x64xbf16, #tpu.memory_space<vmem>>, %arg35: memref<1x64xf32, #tpu.memory_space<vmem>>, %arg36: memref<32x32xbf16, #tpu.memory_space<vmem>>, %arg37: memref<1x32xf32, #tpu.memory_space<vmem>>, %arg38: memref<1x32xf32, #tpu.memory_space<vmem>>, %arg39: memref<1x32xf32, #tpu.memory_space<vmem>>, %arg40: memref<32x64xbf16, #tpu.memory_space<vmem>>, %arg41: memref<1x64xf32, #tpu.memory_space<vmem>>, %arg42: memref<64x32xbf16, #tpu.memory_space<vmem>>, %arg43: memref<1x32xf32, #tpu.memory_space<vmem>>, %arg44: memref<1x32xf32, #tpu.memory_space<vmem>>, %arg45: memref<1x32xf32, #tpu.memory_space<vmem>>, %arg46: memref<32x96xbf16, #tpu.memory_space<vmem>>, %arg47: memref<1x96xf32, #tpu.memory_space<vmem>>, %arg48: memref<32x32xbf16, #tpu.memory_space<vmem>>, %arg49: memref<1x32xf32, #tpu.memory_space<vmem>>, %arg50: memref<1x32xf32, #tpu.memory_space<vmem>>, %arg51: memref<1x32xf32, #tpu.memory_space<vmem>>, %arg52: memref<32x32xbf16, #tpu.memory_space<vmem>>, %arg53: memref<1x32xf32, #tpu.memory_space<vmem>>, %arg54: memref<32x64xbf16, #tpu.memory_space<vmem>>, %arg55: memref<1x64xf32, #tpu.memory_space<vmem>>, %arg56: memref<32x32xbf16, #tpu.memory_space<vmem>>, %arg57: memref<1x32xf32, #tpu.memory_space<vmem>>, %arg58: memref<1x32xf32, #tpu.memory_space<vmem>>, %arg59: memref<1x32xf32, #tpu.memory_space<vmem>>, %arg60: memref<32x64xbf16, #tpu.memory_space<vmem>>, %arg61: memref<1x64xf32, #tpu.memory_space<vmem>>, %arg62: memref<64x32xbf16, #tpu.memory_space<vmem>>, %arg63: memref<1x32xf32, #tpu.memory_space<vmem>>, %arg64: memref<1x32xf32, #tpu.memory_space<vmem>>, %arg65: memref<1x32xf32, #tpu.memory_space<vmem>>, %arg66: memref<2x8x32xf32, #tpu.memory_space<vmem>>) attributes {dimension_semantics = [], scalar_prefetch = 0 : i64, scratch_operands = 0 : i64, tpu.core_type = #tpu.core_type<tc>} {
    %c0 = arith.constant 0 : index
    %c0_0 = arith.constant 0 : index
    %c0_1 = arith.constant 0 : index
    %0 = vector.load %arg0[%c0, %c0_0, %c0_1] : memref<2x8x32xf32, #tpu.memory_space<vmem>>, vector<2x8x32xf32>
    %c0_2 = arith.constant 0 : index
    %c0_3 = arith.constant 0 : index
    %1 = vector.load %arg2[%c0_2, %c0_3] : memref<32x96xbf16, #tpu.memory_space<vmem>>, vector<32x96xbf16>
    %c0_4 = arith.constant 0 : index
    %c0_5 = arith.constant 0 : index
    %2 = vector.load %arg3[%c0_4, %c0_5] : memref<1x96xf32, #tpu.memory_space<vmem>>, vector<1x96xf32>
    %c0_6 = arith.constant 0 : index
    %c0_7 = arith.constant 0 : index
    %3 = vector.load %arg4[%c0_6, %c0_7] : memref<32x32xbf16, #tpu.memory_space<vmem>>, vector<32x32xbf16>
    %c0_8 = arith.constant 0 : index
    %c0_9 = arith.constant 0 : index
    %4 = vector.load %arg5[%c0_8, %c0_9] : memref<1x32xf32, #tpu.memory_space<vmem>>, vector<1x32xf32>
    %c0_10 = arith.constant 0 : index
    %c0_11 = arith.constant 0 : index
    %5 = vector.load %arg6[%c0_10, %c0_11] : memref<1x32xf32, #tpu.memory_space<vmem>>, vector<1x32xf32>
    %c0_12 = arith.constant 0 : index
    %c0_13 = arith.constant 0 : index
    %6 = vector.load %arg7[%c0_12, %c0_13] : memref<1x32xf32, #tpu.memory_space<vmem>>, vector<1x32xf32>
    %c0_14 = arith.constant 0 : index
    %c0_15 = arith.constant 0 : index
    %7 = vector.load %arg8[%c0_14, %c0_15] : memref<32x64xbf16, #tpu.memory_space<vmem>>, vector<32x64xbf16>
    %c0_16 = arith.constant 0 : index
    %c0_17 = arith.constant 0 : index
    %8 = vector.load %arg9[%c0_16, %c0_17] : memref<1x64xf32, #tpu.memory_space<vmem>>, vector<1x64xf32>
    %c0_18 = arith.constant 0 : index
    %c0_19 = arith.constant 0 : index
    %9 = vector.load %arg10[%c0_18, %c0_19] : memref<64x32xbf16, #tpu.memory_space<vmem>>, vector<64x32xbf16>
    %c0_20 = arith.constant 0 : index
    %c0_21 = arith.constant 0 : index
    %10 = vector.load %arg11[%c0_20, %c0_21] : memref<1x32xf32, #tpu.memory_space<vmem>>, vector<1x32xf32>
    %c0_22 = arith.constant 0 : index
    %c0_23 = arith.constant 0 : index
    %11 = vector.load %arg12[%c0_22, %c0_23] : memref<1x32xf32, #tpu.memory_space<vmem>>, vector<1x32xf32>
    %c0_24 = arith.constant 0 : index
    %c0_25 = arith.constant 0 : index
    %12 = vector.load %arg13[%c0_24, %c0_25] : memref<1x32xf32, #tpu.memory_space<vmem>>, vector<1x32xf32>
    %13 = vector.shape_cast %0 : vector<2x8x32xf32> to vector<16x32xf32>
    %14 = arith.truncf %13 : vector<16x32xf32> to vector<16x32xbf16>
    %cst = arith.constant dense<0.000000e+00> : vector<16x96xf32>
    %15 = tpu.matmul %14, %1, %cst {dimension_numbers = #tpu.dot_dimension_numbers<[1], [0], [0], [1], [0, 0, 1, 1], [], []>} : vector<16x32xbf16>, vector<32x96xbf16>, vector<16x96xf32> -> vector<16x96xf32>
    %16 = vector.broadcast %2 : vector<1x96xf32> to vector<16x96xf32>
    %17 = arith.addf %15, %16 : vector<16x96xf32>
    %18 = vector.shape_cast %17 : vector<16x96xf32> to vector<2x8x96xf32>
    %19 = vector.extract_strided_slice %18 {offsets = [0, 0, 0], sizes = [2, 8, 32], strides = [1, 1, 1]} : vector<2x8x96xf32> to vector<2x8x32xf32>
    %20 = vector.extract_strided_slice %18 {offsets = [0, 0, 32], sizes = [2, 8, 32], strides = [1, 1, 1]} : vector<2x8x96xf32> to vector<2x8x32xf32>
    %21 = vector.extract_strided_slice %18 {offsets = [0, 0, 64], sizes = [2, 8, 32], strides = [1, 1, 1]} : vector<2x8x96xf32> to vector<2x8x32xf32>
    %22 = vector.extract_strided_slice %19 {offsets = [0, 0, 0], sizes = [2, 8, 8], strides = [1, 1, 1]} : vector<2x8x32xf32> to vector<2x8x8xf32>
    %23 = arith.truncf %22 : vector<2x8x8xf32> to vector<2x8x8xbf16>
    %24 = vector.extract_strided_slice %20 {offsets = [0, 0, 0], sizes = [2, 8, 8], strides = [1, 1, 1]} : vector<2x8x32xf32> to vector<2x8x8xf32>
    %25 = arith.truncf %24 : vector<2x8x8xf32> to vector<2x8x8xbf16>
    "tpu.trace_start"() <{level = 10 : i32, message = "bqd,bkd->bqk"}> : () -> ()
    %cst_26 = arith.constant dense<0.000000e+00> : vector<2x8x8xf32>
    %26 = tpu.matmul %23, %25, %cst_26 {dimension_numbers = #tpu.dot_dimension_numbers<[2], [2], [1], [1], [0, 0, 0, 1, 1, 1], [0], [0]>} : vector<2x8x8xbf16>, vector<2x8x8xbf16>, vector<2x8x8xf32> -> vector<2x8x8xf32>
    "tpu.trace_stop"() : () -> ()
    %cst_27 = arith.constant dense<0xFF800000> : vector<2x8xf32>
    %27 = vector.multi_reduction <maximumf>, %26, %cst_27 [2] : vector<2x8x8xf32> to vector<2x8xf32>
    %28 = vector.shape_cast %27 : vector<2x8xf32> to vector<2x8x1xf32>
    %29 = vector.broadcast %28 : vector<2x8x1xf32> to vector<2x8x8xf32>
    %30 = arith.subf %26, %29 : vector<2x8x8xf32>
    %31 = math.exp %30 : vector<2x8x8xf32>
    %cst_28 = arith.constant dense<0.000000e+00> : vector<2x8xf32>
    %32 = vector.multi_reduction <add>, %31, %cst_28 [2] : vector<2x8x8xf32> to vector<2x8xf32>
    %33 = vector.shape_cast %32 : vector<2x8xf32> to vector<2x8x1xf32>
    %34 = vector.broadcast %33 : vector<2x8x1xf32> to vector<2x8x8xf32>
    %35 = arith.divf %31, %34 : vector<2x8x8xf32>
    %36 = arith.truncf %35 : vector<2x8x8xf32> to vector<2x8x8xbf16>
    %37 = vector.extract_strided_slice %21 {offsets = [0, 0, 0], sizes = [2, 8, 8], strides = [1, 1, 1]} : vector<2x8x32xf32> to vector<2x8x8xf32>
    %38 = arith.truncf %37 : vector<2x8x8xf32> to vector<2x8x8xbf16>
    "tpu.trace_start"() <{level = 10 : i32, message = "bqk,bkd->bqd"}> : () -> ()
    %cst_29 = arith.constant dense<0.000000e+00> : vector<2x8x8xf32>
    %39 = tpu.matmul %36, %38, %cst_29 {dimension_numbers = #tpu.dot_dimension_numbers<[2], [1], [1], [2], [0, 0, 0, 1, 1, 2], [0], [0]>} : vector<2x8x8xbf16>, vector<2x8x8xbf16>, vector<2x8x8xf32> -> vector<2x8x8xf32>
    "tpu.trace_stop"() : () -> ()
    %40 = vector.extract_strided_slice %19 {offsets = [0, 0, 8], sizes = [2, 8, 8], strides = [1, 1, 1]} : vector<2x8x32xf32> to vector<2x8x8xf32>
    %41 = arith.truncf %40 : vector<2x8x8xf32> to vector<2x8x8xbf16>
    %42 = vector.extract_strided_slice %20 {offsets = [0, 0, 8], sizes = [2, 8, 8], strides = [1, 1, 1]} : vector<2x8x32xf32> to vector<2x8x8xf32>
    %43 = arith.truncf %42 : vector<2x8x8xf32> to vector<2x8x8xbf16>
    "tpu.trace_start"() <{level = 10 : i32, message = "bqd,bkd->bqk"}> : () -> ()
    %cst_30 = arith.constant dense<0.000000e+00> : vector<2x8x8xf32>
    %44 = tpu.matmul %41, %43, %cst_30 {dimension_numbers = #tpu.dot_dimension_numbers<[2], [2], [1], [1], [0, 0, 0, 1, 1, 1], [0], [0]>} : vector<2x8x8xbf16>, vector<2x8x8xbf16>, vector<2x8x8xf32> -> vector<2x8x8xf32>
    "tpu.trace_stop"() : () -> ()
    %cst_31 = arith.constant dense<0xFF800000> : vector<2x8xf32>
    %45 = vector.multi_reduction <maximumf>, %44, %cst_31 [2] : vector<2x8x8xf32> to vector<2x8xf32>
    %46 = vector.shape_cast %45 : vector<2x8xf32> to vector<2x8x1xf32>
    %47 = vector.broadcast %46 : vector<2x8x1xf32> to vector<2x8x8xf32>
    %48 = arith.subf %44, %47 : vector<2x8x8xf32>
    %49 = math.exp %48 : vector<2x8x8xf32>
    %cst_32 = arith.constant dense<0.000000e+00> : vector<2x8xf32>
    %50 = vector.multi_reduction <add>, %49, %cst_32 [2] : vector<2x8x8xf32> to vector<2x8xf32>
    %51 = vector.shape_cast %50 : vector<2x8xf32> to vector<2x8x1xf32>
    %52 = vector.broadcast %51 : vector<2x8x1xf32> to vector<2x8x8xf32>
    %53 = arith.divf %49, %52 : vector<2x8x8xf32>
    %54 = arith.truncf %53 : vector<2x8x8xf32> to vector<2x8x8xbf16>
    %55 = vector.extract_strided_slice %21 {offsets = [0, 0, 8], sizes = [2, 8, 8], strides = [1, 1, 1]} : vector<2x8x32xf32> to vector<2x8x8xf32>
    %56 = arith.truncf %55 : vector<2x8x8xf32> to vector<2x8x8xbf16>
    "tpu.trace_start"() <{level = 10 : i32, message = "bqk,bkd->bqd"}> : () -> ()
    %cst_33 = arith.constant dense<0.000000e+00> : vector<2x8x8xf32>
    %57 = tpu.matmul %54, %56, %cst_33 {dimension_numbers = #tpu.dot_dimension_numbers<[2], [1], [1], [2], [0, 0, 0, 1, 1, 2], [0], [0]>} : vector<2x8x8xbf16>, vector<2x8x8xbf16>, vector<2x8x8xf32> -> vector<2x8x8xf32>
    "tpu.trace_stop"() : () -> ()
    %58 = vector.extract_strided_slice %19 {offsets = [0, 0, 16], sizes = [2, 8, 8], strides = [1, 1, 1]} : vector<2x8x32xf32> to vector<2x8x8xf32>
    %59 = arith.truncf %58 : vector<2x8x8xf32> to vector<2x8x8xbf16>
    %60 = vector.extract_strided_slice %20 {offsets = [0, 0, 16], sizes = [2, 8, 8], strides = [1, 1, 1]} : vector<2x8x32xf32> to vector<2x8x8xf32>
    %61 = arith.truncf %60 : vector<2x8x8xf32> to vector<2x8x8xbf16>
    "tpu.trace_start"() <{level = 10 : i32, message = "bqd,bkd->bqk"}> : () -> ()
    %cst_34 = arith.constant dense<0.000000e+00> : vector<2x8x8xf32>
    %62 = tpu.matmul %59, %61, %cst_34 {dimension_numbers = #tpu.dot_dimension_numbers<[2], [2], [1], [1], [0, 0, 0, 1, 1, 1], [0], [0]>} : vector<2x8x8xbf16>, vector<2x8x8xbf16>, vector<2x8x8xf32> -> vector<2x8x8xf32>
    "tpu.trace_stop"() : () -> ()
    %cst_35 = arith.constant dense<0xFF800000> : vector<2x8xf32>
    %63 = vector.multi_reduction <maximumf>, %62, %cst_35 [2] : vector<2x8x8xf32> to vector<2x8xf32>
    %64 = vector.shape_cast %63 : vector<2x8xf32> to vector<2x8x1xf32>
    %65 = vector.broadcast %64 : vector<2x8x1xf32> to vector<2x8x8xf32>
    %66 = arith.subf %62, %65 : vector<2x8x8xf32>
    %67 = math.exp %66 : vector<2x8x8xf32>
    %cst_36 = arith.constant dense<0.000000e+00> : vector<2x8xf32>
    %68 = vector.multi_reduction <add>, %67, %cst_36 [2] : vector<2x8x8xf32> to vector<2x8xf32>
    %69 = vector.shape_cast %68 : vector<2x8xf32> to vector<2x8x1xf32>
    %70 = vector.broadcast %69 : vector<2x8x1xf32> to vector<2x8x8xf32>
    %71 = arith.divf %67, %70 : vector<2x8x8xf32>
    %72 = arith.truncf %71 : vector<2x8x8xf32> to vector<2x8x8xbf16>
    %73 = vector.extract_strided_slice %21 {offsets = [0, 0, 16], sizes = [2, 8, 8], strides = [1, 1, 1]} : vector<2x8x32xf32> to vector<2x8x8xf32>
    %74 = arith.truncf %73 : vector<2x8x8xf32> to vector<2x8x8xbf16>
    "tpu.trace_start"() <{level = 10 : i32, message = "bqk,bkd->bqd"}> : () -> ()
    %cst_37 = arith.constant dense<0.000000e+00> : vector<2x8x8xf32>
    %75 = tpu.matmul %72, %74, %cst_37 {dimension_numbers = #tpu.dot_dimension_numbers<[2], [1], [1], [2], [0, 0, 0, 1, 1, 2], [0], [0]>} : vector<2x8x8xbf16>, vector<2x8x8xbf16>, vector<2x8x8xf32> -> vector<2x8x8xf32>
    "tpu.trace_stop"() : () -> ()
    %76 = vector.extract_strided_slice %19 {offsets = [0, 0, 24], sizes = [2, 8, 8], strides = [1, 1, 1]} : vector<2x8x32xf32> to vector<2x8x8xf32>
    %77 = arith.truncf %76 : vector<2x8x8xf32> to vector<2x8x8xbf16>
    %78 = vector.extract_strided_slice %20 {offsets = [0, 0, 24], sizes = [2, 8, 8], strides = [1, 1, 1]} : vector<2x8x32xf32> to vector<2x8x8xf32>
    %79 = arith.truncf %78 : vector<2x8x8xf32> to vector<2x8x8xbf16>
    "tpu.trace_start"() <{level = 10 : i32, message = "bqd,bkd->bqk"}> : () -> ()
    %cst_38 = arith.constant dense<0.000000e+00> : vector<2x8x8xf32>
    %80 = tpu.matmul %77, %79, %cst_38 {dimension_numbers = #tpu.dot_dimension_numbers<[2], [2], [1], [1], [0, 0, 0, 1, 1, 1], [0], [0]>} : vector<2x8x8xbf16>, vector<2x8x8xbf16>, vector<2x8x8xf32> -> vector<2x8x8xf32>
    "tpu.trace_stop"() : () -> ()
    %cst_39 = arith.constant dense<0xFF800000> : vector<2x8xf32>
    %81 = vector.multi_reduction <maximumf>, %80, %cst_39 [2] : vector<2x8x8xf32> to vector<2x8xf32>
    %82 = vector.shape_cast %81 : vector<2x8xf32> to vector<2x8x1xf32>
    %83 = vector.broadcast %82 : vector<2x8x1xf32> to vector<2x8x8xf32>
    %84 = arith.subf %80, %83 : vector<2x8x8xf32>
    %85 = math.exp %84 : vector<2x8x8xf32>
    %cst_40 = arith.constant dense<0.000000e+00> : vector<2x8xf32>
    %86 = vector.multi_reduction <add>, %85, %cst_40 [2] : vector<2x8x8xf32> to vector<2x8xf32>
    %87 = vector.shape_cast %86 : vector<2x8xf32> to vector<2x8x1xf32>
    %88 = vector.broadcast %87 : vector<2x8x1xf32> to vector<2x8x8xf32>
    %89 = arith.divf %85, %88 : vector<2x8x8xf32>
    %90 = arith.truncf %89 : vector<2x8x8xf32> to vector<2x8x8xbf16>
    %91 = vector.extract_strided_slice %21 {offsets = [0, 0, 24], sizes = [2, 8, 8], strides = [1, 1, 1]} : vector<2x8x32xf32> to vector<2x8x8xf32>
    %92 = arith.truncf %91 : vector<2x8x8xf32> to vector<2x8x8xbf16>
    "tpu.trace_start"() <{level = 10 : i32, message = "bqk,bkd->bqd"}> : () -> ()
    %cst_41 = arith.constant dense<0.000000e+00> : vector<2x8x8xf32>
    %93 = tpu.matmul %90, %92, %cst_41 {dimension_numbers = #tpu.dot_dimension_numbers<[2], [1], [1], [2], [0, 0, 0, 1, 1, 2], [0], [0]>} : vector<2x8x8xbf16>, vector<2x8x8xbf16>, vector<2x8x8xf32> -> vector<2x8x8xf32>
    "tpu.trace_stop"() : () -> ()
    %94 = tpu.concatenate %39, %57, %75, %93 in 2 : vector<2x8x8xf32>, vector<2x8x8xf32>, vector<2x8x8xf32>, vector<2x8x8xf32> -> vector<2x8x32xf32>
    %95 = vector.shape_cast %94 : vector<2x8x32xf32> to vector<16x32xf32>
    %96 = arith.truncf %95 : vector<16x32xf32> to vector<16x32xbf16>
    %cst_42 = arith.constant dense<0.000000e+00> : vector<16x32xf32>
    %97 = tpu.matmul %96, %3, %cst_42 {dimension_numbers = #tpu.dot_dimension_numbers<[1], [0], [0], [1], [0, 0, 1, 1], [], []>} : vector<16x32xbf16>, vector<32x32xbf16>, vector<16x32xf32> -> vector<16x32xf32>
    %98 = vector.broadcast %4 : vector<1x32xf32> to vector<16x32xf32>
    %99 = arith.addf %97, %98 : vector<16x32xf32>
    %100 = vector.shape_cast %99 : vector<16x32xf32> to vector<2x8x32xf32>
    %101 = arith.addf %0, %100 : vector<2x8x32xf32>
    %cst_43 = arith.constant dense<0.000000e+00> : vector<2x8xf32>
    %102 = vector.multi_reduction <add>, %101, %cst_43 [2] : vector<2x8x32xf32> to vector<2x8xf32>
    %103 = vector.shape_cast %102 : vector<2x8xf32> to vector<2x8x1xf32>
    %cst_44 = arith.constant 3.200000e+01 : f32
    %104 = vector.broadcast %cst_44 : f32 to vector<2x8x1xf32>
    %105 = arith.divf %103, %104 : vector<2x8x1xf32>
    %106 = vector.broadcast %105 : vector<2x8x1xf32> to vector<2x8x32xf32>
    %107 = arith.subf %101, %106 : vector<2x8x32xf32>
    %108 = arith.mulf %107, %107 : vector<2x8x32xf32>
    %cst_45 = arith.constant dense<0.000000e+00> : vector<2x8xf32>
    %109 = vector.multi_reduction <add>, %108, %cst_45 [2] : vector<2x8x32xf32> to vector<2x8xf32>
    %110 = vector.shape_cast %109 : vector<2x8xf32> to vector<2x8x1xf32>
    %cst_46 = arith.constant 3.200000e+01 : f32
    %111 = vector.broadcast %cst_46 : f32 to vector<2x8x1xf32>
    %112 = arith.divf %110, %111 : vector<2x8x1xf32>
    %cst_47 = arith.constant 9.99999974E-6 : f32
    %113 = vector.broadcast %cst_47 : f32 to vector<2x8x1xf32>
    %114 = arith.addf %112, %113 : vector<2x8x1xf32>
    %115 = math.rsqrt %114 : vector<2x8x1xf32>
    %116 = vector.broadcast %115 : vector<2x8x1xf32> to vector<2x8x32xf32>
    %117 = arith.mulf %107, %116 : vector<2x8x32xf32>
    %118 = vector.shape_cast %5 : vector<1x32xf32> to vector<1x1x32xf32>
    %119 = vector.broadcast %118 : vector<1x1x32xf32> to vector<2x8x32xf32>
    %120 = arith.mulf %117, %119 : vector<2x8x32xf32>
    %121 = vector.shape_cast %6 : vector<1x32xf32> to vector<1x1x32xf32>
    %122 = vector.broadcast %121 : vector<1x1x32xf32> to vector<2x8x32xf32>
    %123 = arith.addf %120, %122 : vector<2x8x32xf32>
    %124 = vector.shape_cast %123 : vector<2x8x32xf32> to vector<16x32xf32>
    %125 = arith.truncf %124 : vector<16x32xf32> to vector<16x32xbf16>
    %cst_48 = arith.constant dense<0.000000e+00> : vector<16x64xf32>
    %126 = tpu.matmul %125, %7, %cst_48 {dimension_numbers = #tpu.dot_dimension_numbers<[1], [0], [0], [1], [0, 0, 1, 1], [], []>} : vector<16x32xbf16>, vector<32x64xbf16>, vector<16x64xf32> -> vector<16x64xf32>
    %127 = vector.broadcast %8 : vector<1x64xf32> to vector<16x64xf32>
    %128 = arith.addf %126, %127 : vector<16x64xf32>
    %129 = vector.shape_cast %128 : vector<16x64xf32> to vector<2x8x64xf32>
    %cst_49 = arith.constant 0.000000e+00 : f32
    %130 = vector.broadcast %cst_49 : f32 to vector<2x8x64xf32>
    %131 = arith.maximumf %129, %130 : vector<2x8x64xf32>
    %132 = vector.shape_cast %131 : vector<2x8x64xf32> to vector<16x64xf32>
    %133 = arith.truncf %132 : vector<16x64xf32> to vector<16x64xbf16>
    %cst_50 = arith.constant dense<0.000000e+00> : vector<16x32xf32>
    %134 = tpu.matmul %133, %9, %cst_50 {dimension_numbers = #tpu.dot_dimension_numbers<[1], [0], [0], [1], [0, 0, 1, 1], [], []>} : vector<16x64xbf16>, vector<64x32xbf16>, vector<16x32xf32> -> vector<16x32xf32>
    %135 = vector.broadcast %10 : vector<1x32xf32> to vector<16x32xf32>
    %136 = arith.addf %134, %135 : vector<16x32xf32>
    %137 = vector.shape_cast %136 : vector<16x32xf32> to vector<2x8x32xf32>
    %138 = arith.addf %123, %137 : vector<2x8x32xf32>
    %cst_51 = arith.constant dense<0.000000e+00> : vector<2x8xf32>
    %139 = vector.multi_reduction <add>, %138, %cst_51 [2] : vector<2x8x32xf32> to vector<2x8xf32>
    %140 = vector.shape_cast %139 : vector<2x8xf32> to vector<2x8x1xf32>
    %cst_52 = arith.constant 3.200000e+01 : f32
    %141 = vector.broadcast %cst_52 : f32 to vector<2x8x1xf32>
    %142 = arith.divf %140, %141 : vector<2x8x1xf32>
    %143 = vector.broadcast %142 : vector<2x8x1xf32> to vector<2x8x32xf32>
    %144 = arith.subf %138, %143 : vector<2x8x32xf32>
    %145 = arith.mulf %144, %144 : vector<2x8x32xf32>
    %cst_53 = arith.constant dense<0.000000e+00> : vector<2x8xf32>
    %146 = vector.multi_reduction <add>, %145, %cst_53 [2] : vector<2x8x32xf32> to vector<2x8xf32>
    %147 = vector.shape_cast %146 : vector<2x8xf32> to vector<2x8x1xf32>
    %cst_54 = arith.constant 3.200000e+01 : f32
    %148 = vector.broadcast %cst_54 : f32 to vector<2x8x1xf32>
    %149 = arith.divf %147, %148 : vector<2x8x1xf32>
    %cst_55 = arith.constant 9.99999974E-6 : f32
    %150 = vector.broadcast %cst_55 : f32 to vector<2x8x1xf32>
    %151 = arith.addf %149, %150 : vector<2x8x1xf32>
    %152 = math.rsqrt %151 : vector<2x8x1xf32>
    %153 = vector.broadcast %152 : vector<2x8x1xf32> to vector<2x8x32xf32>
    %154 = arith.mulf %144, %153 : vector<2x8x32xf32>
    %155 = vector.shape_cast %11 : vector<1x32xf32> to vector<1x1x32xf32>
    %156 = vector.broadcast %155 : vector<1x1x32xf32> to vector<2x8x32xf32>
    %157 = arith.mulf %154, %156 : vector<2x8x32xf32>
    %158 = vector.shape_cast %12 : vector<1x32xf32> to vector<1x1x32xf32>
    %159 = vector.broadcast %158 : vector<1x1x32xf32> to vector<2x8x32xf32>
    %160 = arith.addf %157, %159 : vector<2x8x32xf32>
    %c0_56 = arith.constant 0 : index
    %c0_57 = arith.constant 0 : index
    %161 = vector.load %arg14[%c0_56, %c0_57] : memref<32x96xbf16, #tpu.memory_space<vmem>>, vector<32x96xbf16>
    %c0_58 = arith.constant 0 : index
    %c0_59 = arith.constant 0 : index
    %162 = vector.load %arg15[%c0_58, %c0_59] : memref<1x96xf32, #tpu.memory_space<vmem>>, vector<1x96xf32>
    %c0_60 = arith.constant 0 : index
    %c0_61 = arith.constant 0 : index
    %163 = vector.load %arg16[%c0_60, %c0_61] : memref<32x32xbf16, #tpu.memory_space<vmem>>, vector<32x32xbf16>
    %c0_62 = arith.constant 0 : index
    %c0_63 = arith.constant 0 : index
    %164 = vector.load %arg17[%c0_62, %c0_63] : memref<1x32xf32, #tpu.memory_space<vmem>>, vector<1x32xf32>
    %c0_64 = arith.constant 0 : index
    %c0_65 = arith.constant 0 : index
    %165 = vector.load %arg18[%c0_64, %c0_65] : memref<1x32xf32, #tpu.memory_space<vmem>>, vector<1x32xf32>
    %c0_66 = arith.constant 0 : index
    %c0_67 = arith.constant 0 : index
    %166 = vector.load %arg19[%c0_66, %c0_67] : memref<1x32xf32, #tpu.memory_space<vmem>>, vector<1x32xf32>
    %c0_68 = arith.constant 0 : index
    %c0_69 = arith.constant 0 : index
    %167 = vector.load %arg20[%c0_68, %c0_69] : memref<32x64xbf16, #tpu.memory_space<vmem>>, vector<32x64xbf16>
    %c0_70 = arith.constant 0 : index
    %c0_71 = arith.constant 0 : index
    %168 = vector.load %arg21[%c0_70, %c0_71] : memref<1x64xf32, #tpu.memory_space<vmem>>, vector<1x64xf32>
    %c0_72 = arith.constant 0 : index
    %c0_73 = arith.constant 0 : index
    %169 = vector.load %arg22[%c0_72, %c0_73] : memref<64x32xbf16, #tpu.memory_space<vmem>>, vector<64x32xbf16>
    %c0_74 = arith.constant 0 : index
    %c0_75 = arith.constant 0 : index
    %170 = vector.load %arg23[%c0_74, %c0_75] : memref<1x32xf32, #tpu.memory_space<vmem>>, vector<1x32xf32>
    %c0_76 = arith.constant 0 : index
    %c0_77 = arith.constant 0 : index
    %171 = vector.load %arg24[%c0_76, %c0_77] : memref<1x32xf32, #tpu.memory_space<vmem>>, vector<1x32xf32>
    %c0_78 = arith.constant 0 : index
    %c0_79 = arith.constant 0 : index
    %172 = vector.load %arg25[%c0_78, %c0_79] : memref<1x32xf32, #tpu.memory_space<vmem>>, vector<1x32xf32>
    %173 = vector.shape_cast %160 : vector<2x8x32xf32> to vector<16x32xf32>
    %174 = arith.truncf %173 : vector<16x32xf32> to vector<16x32xbf16>
    %cst_80 = arith.constant dense<0.000000e+00> : vector<16x96xf32>
    %175 = tpu.matmul %174, %161, %cst_80 {dimension_numbers = #tpu.dot_dimension_numbers<[1], [0], [0], [1], [0, 0, 1, 1], [], []>} : vector<16x32xbf16>, vector<32x96xbf16>, vector<16x96xf32> -> vector<16x96xf32>
    %176 = vector.broadcast %162 : vector<1x96xf32> to vector<16x96xf32>
    %177 = arith.addf %175, %176 : vector<16x96xf32>
    %178 = vector.shape_cast %177 : vector<16x96xf32> to vector<2x8x96xf32>
    %179 = vector.extract_strided_slice %178 {offsets = [0, 0, 0], sizes = [2, 8, 32], strides = [1, 1, 1]} : vector<2x8x96xf32> to vector<2x8x32xf32>
    %180 = vector.extract_strided_slice %178 {offsets = [0, 0, 32], sizes = [2, 8, 32], strides = [1, 1, 1]} : vector<2x8x96xf32> to vector<2x8x32xf32>
    %181 = vector.extract_strided_slice %178 {offsets = [0, 0, 64], sizes = [2, 8, 32], strides = [1, 1, 1]} : vector<2x8x96xf32> to vector<2x8x32xf32>
    %182 = vector.extract_strided_slice %179 {offsets = [0, 0, 0], sizes = [2, 8, 8], strides = [1, 1, 1]} : vector<2x8x32xf32> to vector<2x8x8xf32>
    %183 = arith.truncf %182 : vector<2x8x8xf32> to vector<2x8x8xbf16>
    %184 = vector.extract_strided_slice %180 {offsets = [0, 0, 0], sizes = [2, 8, 8], strides = [1, 1, 1]} : vector<2x8x32xf32> to vector<2x8x8xf32>
    %185 = arith.truncf %184 : vector<2x8x8xf32> to vector<2x8x8xbf16>
    "tpu.trace_start"() <{level = 10 : i32, message = "bqd,bkd->bqk"}> : () -> ()
    %cst_81 = arith.constant dense<0.000000e+00> : vector<2x8x8xf32>
    %186 = tpu.matmul %183, %185, %cst_81 {dimension_numbers = #tpu.dot_dimension_numbers<[2], [2], [1], [1], [0, 0, 0, 1, 1, 1], [0], [0]>} : vector<2x8x8xbf16>, vector<2x8x8xbf16>, vector<2x8x8xf32> -> vector<2x8x8xf32>
    "tpu.trace_stop"() : () -> ()
    %cst_82 = arith.constant dense<0xFF800000> : vector<2x8xf32>
    %187 = vector.multi_reduction <maximumf>, %186, %cst_82 [2] : vector<2x8x8xf32> to vector<2x8xf32>
    %188 = vector.shape_cast %187 : vector<2x8xf32> to vector<2x8x1xf32>
    %189 = vector.broadcast %188 : vector<2x8x1xf32> to vector<2x8x8xf32>
    %190 = arith.subf %186, %189 : vector<2x8x8xf32>
    %191 = math.exp %190 : vector<2x8x8xf32>
    %cst_83 = arith.constant dense<0.000000e+00> : vector<2x8xf32>
    %192 = vector.multi_reduction <add>, %191, %cst_83 [2] : vector<2x8x8xf32> to vector<2x8xf32>
    %193 = vector.shape_cast %192 : vector<2x8xf32> to vector<2x8x1xf32>
    %194 = vector.broadcast %193 : vector<2x8x1xf32> to vector<2x8x8xf32>
    %195 = arith.divf %191, %194 : vector<2x8x8xf32>
    %196 = arith.truncf %195 : vector<2x8x8xf32> to vector<2x8x8xbf16>
    %197 = vector.extract_strided_slice %181 {offsets = [0, 0, 0], sizes = [2, 8, 8], strides = [1, 1, 1]} : vector<2x8x32xf32> to vector<2x8x8xf32>
    %198 = arith.truncf %197 : vector<2x8x8xf32> to vector<2x8x8xbf16>
    "tpu.trace_start"() <{level = 10 : i32, message = "bqk,bkd->bqd"}> : () -> ()
    %cst_84 = arith.constant dense<0.000000e+00> : vector<2x8x8xf32>
    %199 = tpu.matmul %196, %198, %cst_84 {dimension_numbers = #tpu.dot_dimension_numbers<[2], [1], [1], [2], [0, 0, 0, 1, 1, 2], [0], [0]>} : vector<2x8x8xbf16>, vector<2x8x8xbf16>, vector<2x8x8xf32> -> vector<2x8x8xf32>
    "tpu.trace_stop"() : () -> ()
    %200 = vector.extract_strided_slice %179 {offsets = [0, 0, 8], sizes = [2, 8, 8], strides = [1, 1, 1]} : vector<2x8x32xf32> to vector<2x8x8xf32>
    %201 = arith.truncf %200 : vector<2x8x8xf32> to vector<2x8x8xbf16>
    %202 = vector.extract_strided_slice %180 {offsets = [0, 0, 8], sizes = [2, 8, 8], strides = [1, 1, 1]} : vector<2x8x32xf32> to vector<2x8x8xf32>
    %203 = arith.truncf %202 : vector<2x8x8xf32> to vector<2x8x8xbf16>
    "tpu.trace_start"() <{level = 10 : i32, message = "bqd,bkd->bqk"}> : () -> ()
    %cst_85 = arith.constant dense<0.000000e+00> : vector<2x8x8xf32>
    %204 = tpu.matmul %201, %203, %cst_85 {dimension_numbers = #tpu.dot_dimension_numbers<[2], [2], [1], [1], [0, 0, 0, 1, 1, 1], [0], [0]>} : vector<2x8x8xbf16>, vector<2x8x8xbf16>, vector<2x8x8xf32> -> vector<2x8x8xf32>
    "tpu.trace_stop"() : () -> ()
    %cst_86 = arith.constant dense<0xFF800000> : vector<2x8xf32>
    %205 = vector.multi_reduction <maximumf>, %204, %cst_86 [2] : vector<2x8x8xf32> to vector<2x8xf32>
    %206 = vector.shape_cast %205 : vector<2x8xf32> to vector<2x8x1xf32>
    %207 = vector.broadcast %206 : vector<2x8x1xf32> to vector<2x8x8xf32>
    %208 = arith.subf %204, %207 : vector<2x8x8xf32>
    %209 = math.exp %208 : vector<2x8x8xf32>
    %cst_87 = arith.constant dense<0.000000e+00> : vector<2x8xf32>
    %210 = vector.multi_reduction <add>, %209, %cst_87 [2] : vector<2x8x8xf32> to vector<2x8xf32>
    %211 = vector.shape_cast %210 : vector<2x8xf32> to vector<2x8x1xf32>
    %212 = vector.broadcast %211 : vector<2x8x1xf32> to vector<2x8x8xf32>
    %213 = arith.divf %209, %212 : vector<2x8x8xf32>
    %214 = arith.truncf %213 : vector<2x8x8xf32> to vector<2x8x8xbf16>
    %215 = vector.extract_strided_slice %181 {offsets = [0, 0, 8], sizes = [2, 8, 8], strides = [1, 1, 1]} : vector<2x8x32xf32> to vector<2x8x8xf32>
    %216 = arith.truncf %215 : vector<2x8x8xf32> to vector<2x8x8xbf16>
    "tpu.trace_start"() <{level = 10 : i32, message = "bqk,bkd->bqd"}> : () -> ()
    %cst_88 = arith.constant dense<0.000000e+00> : vector<2x8x8xf32>
    %217 = tpu.matmul %214, %216, %cst_88 {dimension_numbers = #tpu.dot_dimension_numbers<[2], [1], [1], [2], [0, 0, 0, 1, 1, 2], [0], [0]>} : vector<2x8x8xbf16>, vector<2x8x8xbf16>, vector<2x8x8xf32> -> vector<2x8x8xf32>
    "tpu.trace_stop"() : () -> ()
    %218 = vector.extract_strided_slice %179 {offsets = [0, 0, 16], sizes = [2, 8, 8], strides = [1, 1, 1]} : vector<2x8x32xf32> to vector<2x8x8xf32>
    %219 = arith.truncf %218 : vector<2x8x8xf32> to vector<2x8x8xbf16>
    %220 = vector.extract_strided_slice %180 {offsets = [0, 0, 16], sizes = [2, 8, 8], strides = [1, 1, 1]} : vector<2x8x32xf32> to vector<2x8x8xf32>
    %221 = arith.truncf %220 : vector<2x8x8xf32> to vector<2x8x8xbf16>
    "tpu.trace_start"() <{level = 10 : i32, message = "bqd,bkd->bqk"}> : () -> ()
    %cst_89 = arith.constant dense<0.000000e+00> : vector<2x8x8xf32>
    %222 = tpu.matmul %219, %221, %cst_89 {dimension_numbers = #tpu.dot_dimension_numbers<[2], [2], [1], [1], [0, 0, 0, 1, 1, 1], [0], [0]>} : vector<2x8x8xbf16>, vector<2x8x8xbf16>, vector<2x8x8xf32> -> vector<2x8x8xf32>
    "tpu.trace_stop"() : () -> ()
    %cst_90 = arith.constant dense<0xFF800000> : vector<2x8xf32>
    %223 = vector.multi_reduction <maximumf>, %222, %cst_90 [2] : vector<2x8x8xf32> to vector<2x8xf32>
    %224 = vector.shape_cast %223 : vector<2x8xf32> to vector<2x8x1xf32>
    %225 = vector.broadcast %224 : vector<2x8x1xf32> to vector<2x8x8xf32>
    %226 = arith.subf %222, %225 : vector<2x8x8xf32>
    %227 = math.exp %226 : vector<2x8x8xf32>
    %cst_91 = arith.constant dense<0.000000e+00> : vector<2x8xf32>
    %228 = vector.multi_reduction <add>, %227, %cst_91 [2] : vector<2x8x8xf32> to vector<2x8xf32>
    %229 = vector.shape_cast %228 : vector<2x8xf32> to vector<2x8x1xf32>
    %230 = vector.broadcast %229 : vector<2x8x1xf32> to vector<2x8x8xf32>
    %231 = arith.divf %227, %230 : vector<2x8x8xf32>
    %232 = arith.truncf %231 : vector<2x8x8xf32> to vector<2x8x8xbf16>
    %233 = vector.extract_strided_slice %181 {offsets = [0, 0, 16], sizes = [2, 8, 8], strides = [1, 1, 1]} : vector<2x8x32xf32> to vector<2x8x8xf32>
    %234 = arith.truncf %233 : vector<2x8x8xf32> to vector<2x8x8xbf16>
    "tpu.trace_start"() <{level = 10 : i32, message = "bqk,bkd->bqd"}> : () -> ()
    %cst_92 = arith.constant dense<0.000000e+00> : vector<2x8x8xf32>
    %235 = tpu.matmul %232, %234, %cst_92 {dimension_numbers = #tpu.dot_dimension_numbers<[2], [1], [1], [2], [0, 0, 0, 1, 1, 2], [0], [0]>} : vector<2x8x8xbf16>, vector<2x8x8xbf16>, vector<2x8x8xf32> -> vector<2x8x8xf32>
    "tpu.trace_stop"() : () -> ()
    %236 = vector.extract_strided_slice %179 {offsets = [0, 0, 24], sizes = [2, 8, 8], strides = [1, 1, 1]} : vector<2x8x32xf32> to vector<2x8x8xf32>
    %237 = arith.truncf %236 : vector<2x8x8xf32> to vector<2x8x8xbf16>
    %238 = vector.extract_strided_slice %180 {offsets = [0, 0, 24], sizes = [2, 8, 8], strides = [1, 1, 1]} : vector<2x8x32xf32> to vector<2x8x8xf32>
    %239 = arith.truncf %238 : vector<2x8x8xf32> to vector<2x8x8xbf16>
    "tpu.trace_start"() <{level = 10 : i32, message = "bqd,bkd->bqk"}> : () -> ()
    %cst_93 = arith.constant dense<0.000000e+00> : vector<2x8x8xf32>
    %240 = tpu.matmul %237, %239, %cst_93 {dimension_numbers = #tpu.dot_dimension_numbers<[2], [2], [1], [1], [0, 0, 0, 1, 1, 1], [0], [0]>} : vector<2x8x8xbf16>, vector<2x8x8xbf16>, vector<2x8x8xf32> -> vector<2x8x8xf32>
    "tpu.trace_stop"() : () -> ()
    %cst_94 = arith.constant dense<0xFF800000> : vector<2x8xf32>
    %241 = vector.multi_reduction <maximumf>, %240, %cst_94 [2] : vector<2x8x8xf32> to vector<2x8xf32>
    %242 = vector.shape_cast %241 : vector<2x8xf32> to vector<2x8x1xf32>
    %243 = vector.broadcast %242 : vector<2x8x1xf32> to vector<2x8x8xf32>
    %244 = arith.subf %240, %243 : vector<2x8x8xf32>
    %245 = math.exp %244 : vector<2x8x8xf32>
    %cst_95 = arith.constant dense<0.000000e+00> : vector<2x8xf32>
    %246 = vector.multi_reduction <add>, %245, %cst_95 [2] : vector<2x8x8xf32> to vector<2x8xf32>
    %247 = vector.shape_cast %246 : vector<2x8xf32> to vector<2x8x1xf32>
    %248 = vector.broadcast %247 : vector<2x8x1xf32> to vector<2x8x8xf32>
    %249 = arith.divf %245, %248 : vector<2x8x8xf32>
    %250 = arith.truncf %249 : vector<2x8x8xf32> to vector<2x8x8xbf16>
    %251 = vector.extract_strided_slice %181 {offsets = [0, 0, 24], sizes = [2, 8, 8], strides = [1, 1, 1]} : vector<2x8x32xf32> to vector<2x8x8xf32>
    %252 = arith.truncf %251 : vector<2x8x8xf32> to vector<2x8x8xbf16>
    "tpu.trace_start"() <{level = 10 : i32, message = "bqk,bkd->bqd"}> : () -> ()
    %cst_96 = arith.constant dense<0.000000e+00> : vector<2x8x8xf32>
    %253 = tpu.matmul %250, %252, %cst_96 {dimension_numbers = #tpu.dot_dimension_numbers<[2], [1], [1], [2], [0, 0, 0, 1, 1, 2], [0], [0]>} : vector<2x8x8xbf16>, vector<2x8x8xbf16>, vector<2x8x8xf32> -> vector<2x8x8xf32>
    "tpu.trace_stop"() : () -> ()
    %254 = tpu.concatenate %199, %217, %235, %253 in 2 : vector<2x8x8xf32>, vector<2x8x8xf32>, vector<2x8x8xf32>, vector<2x8x8xf32> -> vector<2x8x32xf32>
    %255 = vector.shape_cast %254 : vector<2x8x32xf32> to vector<16x32xf32>
    %256 = arith.truncf %255 : vector<16x32xf32> to vector<16x32xbf16>
    %cst_97 = arith.constant dense<0.000000e+00> : vector<16x32xf32>
    %257 = tpu.matmul %256, %163, %cst_97 {dimension_numbers = #tpu.dot_dimension_numbers<[1], [0], [0], [1], [0, 0, 1, 1], [], []>} : vector<16x32xbf16>, vector<32x32xbf16>, vector<16x32xf32> -> vector<16x32xf32>
    %258 = vector.broadcast %164 : vector<1x32xf32> to vector<16x32xf32>
    %259 = arith.addf %257, %258 : vector<16x32xf32>
    %260 = vector.shape_cast %259 : vector<16x32xf32> to vector<2x8x32xf32>
    %261 = arith.addf %160, %260 : vector<2x8x32xf32>
    %cst_98 = arith.constant dense<0.000000e+00> : vector<2x8xf32>
    %262 = vector.multi_reduction <add>, %261, %cst_98 [2] : vector<2x8x32xf32> to vector<2x8xf32>
    %263 = vector.shape_cast %262 : vector<2x8xf32> to vector<2x8x1xf32>
    %cst_99 = arith.constant 3.200000e+01 : f32
    %264 = vector.broadcast %cst_99 : f32 to vector<2x8x1xf32>
    %265 = arith.divf %263, %264 : vector<2x8x1xf32>
    %266 = vector.broadcast %265 : vector<2x8x1xf32> to vector<2x8x32xf32>
    %267 = arith.subf %261, %266 : vector<2x8x32xf32>
    %268 = arith.mulf %267, %267 : vector<2x8x32xf32>
    %cst_100 = arith.constant dense<0.000000e+00> : vector<2x8xf32>
    %269 = vector.multi_reduction <add>, %268, %cst_100 [2] : vector<2x8x32xf32> to vector<2x8xf32>
    %270 = vector.shape_cast %269 : vector<2x8xf32> to vector<2x8x1xf32>
    %cst_101 = arith.constant 3.200000e+01 : f32
    %271 = vector.broadcast %cst_101 : f32 to vector<2x8x1xf32>
    %272 = arith.divf %270, %271 : vector<2x8x1xf32>
    %cst_102 = arith.constant 9.99999974E-6 : f32
    %273 = vector.broadcast %cst_102 : f32 to vector<2x8x1xf32>
    %274 = arith.addf %272, %273 : vector<2x8x1xf32>
    %275 = math.rsqrt %274 : vector<2x8x1xf32>
    %276 = vector.broadcast %275 : vector<2x8x1xf32> to vector<2x8x32xf32>
    %277 = arith.mulf %267, %276 : vector<2x8x32xf32>
    %278 = vector.shape_cast %165 : vector<1x32xf32> to vector<1x1x32xf32>
    %279 = vector.broadcast %278 : vector<1x1x32xf32> to vector<2x8x32xf32>
    %280 = arith.mulf %277, %279 : vector<2x8x32xf32>
    %281 = vector.shape_cast %166 : vector<1x32xf32> to vector<1x1x32xf32>
    %282 = vector.broadcast %281 : vector<1x1x32xf32> to vector<2x8x32xf32>
    %283 = arith.addf %280, %282 : vector<2x8x32xf32>
    %284 = vector.shape_cast %283 : vector<2x8x32xf32> to vector<16x32xf32>
    %285 = arith.truncf %284 : vector<16x32xf32> to vector<16x32xbf16>
    %cst_103 = arith.constant dense<0.000000e+00> : vector<16x64xf32>
    %286 = tpu.matmul %285, %167, %cst_103 {dimension_numbers = #tpu.dot_dimension_numbers<[1], [0], [0], [1], [0, 0, 1, 1], [], []>} : vector<16x32xbf16>, vector<32x64xbf16>, vector<16x64xf32> -> vector<16x64xf32>
    %287 = vector.broadcast %168 : vector<1x64xf32> to vector<16x64xf32>
    %288 = arith.addf %286, %287 : vector<16x64xf32>
    %289 = vector.shape_cast %288 : vector<16x64xf32> to vector<2x8x64xf32>
    %cst_104 = arith.constant 0.000000e+00 : f32
    %290 = vector.broadcast %cst_104 : f32 to vector<2x8x64xf32>
    %291 = arith.maximumf %289, %290 : vector<2x8x64xf32>
    %292 = vector.shape_cast %291 : vector<2x8x64xf32> to vector<16x64xf32>
    %293 = arith.truncf %292 : vector<16x64xf32> to vector<16x64xbf16>
    %cst_105 = arith.constant dense<0.000000e+00> : vector<16x32xf32>
    %294 = tpu.matmul %293, %169, %cst_105 {dimension_numbers = #tpu.dot_dimension_numbers<[1], [0], [0], [1], [0, 0, 1, 1], [], []>} : vector<16x64xbf16>, vector<64x32xbf16>, vector<16x32xf32> -> vector<16x32xf32>
    %295 = vector.broadcast %170 : vector<1x32xf32> to vector<16x32xf32>
    %296 = arith.addf %294, %295 : vector<16x32xf32>
    %297 = vector.shape_cast %296 : vector<16x32xf32> to vector<2x8x32xf32>
    %298 = arith.addf %283, %297 : vector<2x8x32xf32>
    %cst_106 = arith.constant dense<0.000000e+00> : vector<2x8xf32>
    %299 = vector.multi_reduction <add>, %298, %cst_106 [2] : vector<2x8x32xf32> to vector<2x8xf32>
    %300 = vector.shape_cast %299 : vector<2x8xf32> to vector<2x8x1xf32>
    %cst_107 = arith.constant 3.200000e+01 : f32
    %301 = vector.broadcast %cst_107 : f32 to vector<2x8x1xf32>
    %302 = arith.divf %300, %301 : vector<2x8x1xf32>
    %303 = vector.broadcast %302 : vector<2x8x1xf32> to vector<2x8x32xf32>
    %304 = arith.subf %298, %303 : vector<2x8x32xf32>
    %305 = arith.mulf %304, %304 : vector<2x8x32xf32>
    %cst_108 = arith.constant dense<0.000000e+00> : vector<2x8xf32>
    %306 = vector.multi_reduction <add>, %305, %cst_108 [2] : vector<2x8x32xf32> to vector<2x8xf32>
    %307 = vector.shape_cast %306 : vector<2x8xf32> to vector<2x8x1xf32>
    %cst_109 = arith.constant 3.200000e+01 : f32
    %308 = vector.broadcast %cst_109 : f32 to vector<2x8x1xf32>
    %309 = arith.divf %307, %308 : vector<2x8x1xf32>
    %cst_110 = arith.constant 9.99999974E-6 : f32
    %310 = vector.broadcast %cst_110 : f32 to vector<2x8x1xf32>
    %311 = arith.addf %309, %310 : vector<2x8x1xf32>
    %312 = math.rsqrt %311 : vector<2x8x1xf32>
    %313 = vector.broadcast %312 : vector<2x8x1xf32> to vector<2x8x32xf32>
    %314 = arith.mulf %304, %313 : vector<2x8x32xf32>
    %315 = vector.shape_cast %171 : vector<1x32xf32> to vector<1x1x32xf32>
    %316 = vector.broadcast %315 : vector<1x1x32xf32> to vector<2x8x32xf32>
    %317 = arith.mulf %314, %316 : vector<2x8x32xf32>
    %318 = vector.shape_cast %172 : vector<1x32xf32> to vector<1x1x32xf32>
    %319 = vector.broadcast %318 : vector<1x1x32xf32> to vector<2x8x32xf32>
    %320 = arith.addf %317, %319 : vector<2x8x32xf32>
    %c0_111 = arith.constant 0 : index
    %c0_112 = arith.constant 0 : index
    %c0_113 = arith.constant 0 : index
    %321 = vector.load %arg1[%c0_111, %c0_112, %c0_113] : memref<2x8x32xf32, #tpu.memory_space<vmem>>, vector<2x8x32xf32>
    %c0_114 = arith.constant 0 : index
    %c0_115 = arith.constant 0 : index
    %322 = vector.load %arg26[%c0_114, %c0_115] : memref<32x96xbf16, #tpu.memory_space<vmem>>, vector<32x96xbf16>
    %c0_116 = arith.constant 0 : index
    %c0_117 = arith.constant 0 : index
    %323 = vector.load %arg27[%c0_116, %c0_117] : memref<1x96xf32, #tpu.memory_space<vmem>>, vector<1x96xf32>
    %c0_118 = arith.constant 0 : index
    %c0_119 = arith.constant 0 : index
    %324 = vector.load %arg28[%c0_118, %c0_119] : memref<32x32xbf16, #tpu.memory_space<vmem>>, vector<32x32xbf16>
    %c0_120 = arith.constant 0 : index
    %c0_121 = arith.constant 0 : index
    %325 = vector.load %arg29[%c0_120, %c0_121] : memref<1x32xf32, #tpu.memory_space<vmem>>, vector<1x32xf32>
    %c0_122 = arith.constant 0 : index
    %c0_123 = arith.constant 0 : index
    %326 = vector.load %arg30[%c0_122, %c0_123] : memref<1x32xf32, #tpu.memory_space<vmem>>, vector<1x32xf32>
    %c0_124 = arith.constant 0 : index
    %c0_125 = arith.constant 0 : index
    %327 = vector.load %arg31[%c0_124, %c0_125] : memref<1x32xf32, #tpu.memory_space<vmem>>, vector<1x32xf32>
    %c0_126 = arith.constant 0 : index
    %c0_127 = arith.constant 0 : index
    %328 = vector.load %arg32[%c0_126, %c0_127] : memref<32x32xbf16, #tpu.memory_space<vmem>>, vector<32x32xbf16>
    %c0_128 = arith.constant 0 : index
    %c0_129 = arith.constant 0 : index
    %329 = vector.load %arg33[%c0_128, %c0_129] : memref<1x32xf32, #tpu.memory_space<vmem>>, vector<1x32xf32>
    %c0_130 = arith.constant 0 : index
    %c0_131 = arith.constant 0 : index
    %330 = vector.load %arg34[%c0_130, %c0_131] : memref<32x64xbf16, #tpu.memory_space<vmem>>, vector<32x64xbf16>
    %c0_132 = arith.constant 0 : index
    %c0_133 = arith.constant 0 : index
    %331 = vector.load %arg35[%c0_132, %c0_133] : memref<1x64xf32, #tpu.memory_space<vmem>>, vector<1x64xf32>
    %c0_134 = arith.constant 0 : index
    %c0_135 = arith.constant 0 : index
    %332 = vector.load %arg36[%c0_134, %c0_135] : memref<32x32xbf16, #tpu.memory_space<vmem>>, vector<32x32xbf16>
    %c0_136 = arith.constant 0 : index
    %c0_137 = arith.constant 0 : index
    %333 = vector.load %arg37[%c0_136, %c0_137] : memref<1x32xf32, #tpu.memory_space<vmem>>, vector<1x32xf32>
    %c0_138 = arith.constant 0 : index
    %c0_139 = arith.constant 0 : index
    %334 = vector.load %arg38[%c0_138, %c0_139] : memref<1x32xf32, #tpu.memory_space<vmem>>, vector<1x32xf32>
    %c0_140 = arith.constant 0 : index
    %c0_141 = arith.constant 0 : index
    %335 = vector.load %arg39[%c0_140, %c0_141] : memref<1x32xf32, #tpu.memory_space<vmem>>, vector<1x32xf32>
    %c0_142 = arith.constant 0 : index
    %c0_143 = arith.constant 0 : index
    %336 = vector.load %arg40[%c0_142, %c0_143] : memref<32x64xbf16, #tpu.memory_space<vmem>>, vector<32x64xbf16>
    %c0_144 = arith.constant 0 : index
    %c0_145 = arith.constant 0 : index
    %337 = vector.load %arg41[%c0_144, %c0_145] : memref<1x64xf32, #tpu.memory_space<vmem>>, vector<1x64xf32>
    %c0_146 = arith.constant 0 : index
    %c0_147 = arith.constant 0 : index
    %338 = vector.load %arg42[%c0_146, %c0_147] : memref<64x32xbf16, #tpu.memory_space<vmem>>, vector<64x32xbf16>
    %c0_148 = arith.constant 0 : index
    %c0_149 = arith.constant 0 : index
    %339 = vector.load %arg43[%c0_148, %c0_149] : memref<1x32xf32, #tpu.memory_space<vmem>>, vector<1x32xf32>
    %c0_150 = arith.constant 0 : index
    %c0_151 = arith.constant 0 : index
    %340 = vector.load %arg44[%c0_150, %c0_151] : memref<1x32xf32, #tpu.memory_space<vmem>>, vector<1x32xf32>
    %c0_152 = arith.constant 0 : index
    %c0_153 = arith.constant 0 : index
    %341 = vector.load %arg45[%c0_152, %c0_153] : memref<1x32xf32, #tpu.memory_space<vmem>>, vector<1x32xf32>
    %342 = vector.shape_cast %321 : vector<2x8x32xf32> to vector<16x32xf32>
    %343 = arith.truncf %342 : vector<16x32xf32> to vector<16x32xbf16>
    %cst_154 = arith.constant dense<0.000000e+00> : vector<16x96xf32>
    %344 = tpu.matmul %343, %322, %cst_154 {dimension_numbers = #tpu.dot_dimension_numbers<[1], [0], [0], [1], [0, 0, 1, 1], [], []>} : vector<16x32xbf16>, vector<32x96xbf16>, vector<16x96xf32> -> vector<16x96xf32>
    %345 = vector.broadcast %323 : vector<1x96xf32> to vector<16x96xf32>
    %346 = arith.addf %344, %345 : vector<16x96xf32>
    %347 = vector.shape_cast %346 : vector<16x96xf32> to vector<2x8x96xf32>
    %348 = vector.extract_strided_slice %347 {offsets = [0, 0, 0], sizes = [2, 8, 32], strides = [1, 1, 1]} : vector<2x8x96xf32> to vector<2x8x32xf32>
    %349 = vector.extract_strided_slice %347 {offsets = [0, 0, 32], sizes = [2, 8, 32], strides = [1, 1, 1]} : vector<2x8x96xf32> to vector<2x8x32xf32>
    %350 = vector.extract_strided_slice %347 {offsets = [0, 0, 64], sizes = [2, 8, 32], strides = [1, 1, 1]} : vector<2x8x96xf32> to vector<2x8x32xf32>
    %351 = vector.extract_strided_slice %348 {offsets = [0, 0, 0], sizes = [2, 8, 8], strides = [1, 1, 1]} : vector<2x8x32xf32> to vector<2x8x8xf32>
    %352 = arith.truncf %351 : vector<2x8x8xf32> to vector<2x8x8xbf16>
    %353 = vector.extract_strided_slice %349 {offsets = [0, 0, 0], sizes = [2, 8, 8], strides = [1, 1, 1]} : vector<2x8x32xf32> to vector<2x8x8xf32>
    %354 = arith.truncf %353 : vector<2x8x8xf32> to vector<2x8x8xbf16>
    "tpu.trace_start"() <{level = 10 : i32, message = "bqd,bkd->bqk"}> : () -> ()
    %cst_155 = arith.constant dense<0.000000e+00> : vector<2x8x8xf32>
    %355 = tpu.matmul %352, %354, %cst_155 {dimension_numbers = #tpu.dot_dimension_numbers<[2], [2], [1], [1], [0, 0, 0, 1, 1, 1], [0], [0]>} : vector<2x8x8xbf16>, vector<2x8x8xbf16>, vector<2x8x8xf32> -> vector<2x8x8xf32>
    "tpu.trace_stop"() : () -> ()
    %cst_156 = arith.constant dense<0xFF800000> : vector<2x8xf32>
    %356 = vector.multi_reduction <maximumf>, %355, %cst_156 [2] : vector<2x8x8xf32> to vector<2x8xf32>
    %357 = vector.shape_cast %356 : vector<2x8xf32> to vector<2x8x1xf32>
    %358 = vector.broadcast %357 : vector<2x8x1xf32> to vector<2x8x8xf32>
    %359 = arith.subf %355, %358 : vector<2x8x8xf32>
    %360 = math.exp %359 : vector<2x8x8xf32>
    %cst_157 = arith.constant dense<0.000000e+00> : vector<2x8xf32>
    %361 = vector.multi_reduction <add>, %360, %cst_157 [2] : vector<2x8x8xf32> to vector<2x8xf32>
    %362 = vector.shape_cast %361 : vector<2x8xf32> to vector<2x8x1xf32>
    %363 = vector.broadcast %362 : vector<2x8x1xf32> to vector<2x8x8xf32>
    %364 = arith.divf %360, %363 : vector<2x8x8xf32>
    %365 = arith.truncf %364 : vector<2x8x8xf32> to vector<2x8x8xbf16>
    %366 = vector.extract_strided_slice %350 {offsets = [0, 0, 0], sizes = [2, 8, 8], strides = [1, 1, 1]} : vector<2x8x32xf32> to vector<2x8x8xf32>
    %367 = arith.truncf %366 : vector<2x8x8xf32> to vector<2x8x8xbf16>
    "tpu.trace_start"() <{level = 10 : i32, message = "bqk,bkd->bqd"}> : () -> ()
    %cst_158 = arith.constant dense<0.000000e+00> : vector<2x8x8xf32>
    %368 = tpu.matmul %365, %367, %cst_158 {dimension_numbers = #tpu.dot_dimension_numbers<[2], [1], [1], [2], [0, 0, 0, 1, 1, 2], [0], [0]>} : vector<2x8x8xbf16>, vector<2x8x8xbf16>, vector<2x8x8xf32> -> vector<2x8x8xf32>
    "tpu.trace_stop"() : () -> ()
    %369 = vector.extract_strided_slice %348 {offsets = [0, 0, 8], sizes = [2, 8, 8], strides = [1, 1, 1]} : vector<2x8x32xf32> to vector<2x8x8xf32>
    %370 = arith.truncf %369 : vector<2x8x8xf32> to vector<2x8x8xbf16>
    %371 = vector.extract_strided_slice %349 {offsets = [0, 0, 8], sizes = [2, 8, 8], strides = [1, 1, 1]} : vector<2x8x32xf32> to vector<2x8x8xf32>
    %372 = arith.truncf %371 : vector<2x8x8xf32> to vector<2x8x8xbf16>
    "tpu.trace_start"() <{level = 10 : i32, message = "bqd,bkd->bqk"}> : () -> ()
    %cst_159 = arith.constant dense<0.000000e+00> : vector<2x8x8xf32>
    %373 = tpu.matmul %370, %372, %cst_159 {dimension_numbers = #tpu.dot_dimension_numbers<[2], [2], [1], [1], [0, 0, 0, 1, 1, 1], [0], [0]>} : vector<2x8x8xbf16>, vector<2x8x8xbf16>, vector<2x8x8xf32> -> vector<2x8x8xf32>
    "tpu.trace_stop"() : () -> ()
    %cst_160 = arith.constant dense<0xFF800000> : vector<2x8xf32>
    %374 = vector.multi_reduction <maximumf>, %373, %cst_160 [2] : vector<2x8x8xf32> to vector<2x8xf32>
    %375 = vector.shape_cast %374 : vector<2x8xf32> to vector<2x8x1xf32>
    %376 = vector.broadcast %375 : vector<2x8x1xf32> to vector<2x8x8xf32>
    %377 = arith.subf %373, %376 : vector<2x8x8xf32>
    %378 = math.exp %377 : vector<2x8x8xf32>
    %cst_161 = arith.constant dense<0.000000e+00> : vector<2x8xf32>
    %379 = vector.multi_reduction <add>, %378, %cst_161 [2] : vector<2x8x8xf32> to vector<2x8xf32>
    %380 = vector.shape_cast %379 : vector<2x8xf32> to vector<2x8x1xf32>
    %381 = vector.broadcast %380 : vector<2x8x1xf32> to vector<2x8x8xf32>
    %382 = arith.divf %378, %381 : vector<2x8x8xf32>
    %383 = arith.truncf %382 : vector<2x8x8xf32> to vector<2x8x8xbf16>
    %384 = vector.extract_strided_slice %350 {offsets = [0, 0, 8], sizes = [2, 8, 8], strides = [1, 1, 1]} : vector<2x8x32xf32> to vector<2x8x8xf32>
    %385 = arith.truncf %384 : vector<2x8x8xf32> to vector<2x8x8xbf16>
    "tpu.trace_start"() <{level = 10 : i32, message = "bqk,bkd->bqd"}> : () -> ()
    %cst_162 = arith.constant dense<0.000000e+00> : vector<2x8x8xf32>
    %386 = tpu.matmul %383, %385, %cst_162 {dimension_numbers = #tpu.dot_dimension_numbers<[2], [1], [1], [2], [0, 0, 0, 1, 1, 2], [0], [0]>} : vector<2x8x8xbf16>, vector<2x8x8xbf16>, vector<2x8x8xf32> -> vector<2x8x8xf32>
    "tpu.trace_stop"() : () -> ()
    %387 = vector.extract_strided_slice %348 {offsets = [0, 0, 16], sizes = [2, 8, 8], strides = [1, 1, 1]} : vector<2x8x32xf32> to vector<2x8x8xf32>
    %388 = arith.truncf %387 : vector<2x8x8xf32> to vector<2x8x8xbf16>
    %389 = vector.extract_strided_slice %349 {offsets = [0, 0, 16], sizes = [2, 8, 8], strides = [1, 1, 1]} : vector<2x8x32xf32> to vector<2x8x8xf32>
    %390 = arith.truncf %389 : vector<2x8x8xf32> to vector<2x8x8xbf16>
    "tpu.trace_start"() <{level = 10 : i32, message = "bqd,bkd->bqk"}> : () -> ()
    %cst_163 = arith.constant dense<0.000000e+00> : vector<2x8x8xf32>
    %391 = tpu.matmul %388, %390, %cst_163 {dimension_numbers = #tpu.dot_dimension_numbers<[2], [2], [1], [1], [0, 0, 0, 1, 1, 1], [0], [0]>} : vector<2x8x8xbf16>, vector<2x8x8xbf16>, vector<2x8x8xf32> -> vector<2x8x8xf32>
    "tpu.trace_stop"() : () -> ()
    %cst_164 = arith.constant dense<0xFF800000> : vector<2x8xf32>
    %392 = vector.multi_reduction <maximumf>, %391, %cst_164 [2] : vector<2x8x8xf32> to vector<2x8xf32>
    %393 = vector.shape_cast %392 : vector<2x8xf32> to vector<2x8x1xf32>
    %394 = vector.broadcast %393 : vector<2x8x1xf32> to vector<2x8x8xf32>
    %395 = arith.subf %391, %394 : vector<2x8x8xf32>
    %396 = math.exp %395 : vector<2x8x8xf32>
    %cst_165 = arith.constant dense<0.000000e+00> : vector<2x8xf32>
    %397 = vector.multi_reduction <add>, %396, %cst_165 [2] : vector<2x8x8xf32> to vector<2x8xf32>
    %398 = vector.shape_cast %397 : vector<2x8xf32> to vector<2x8x1xf32>
    %399 = vector.broadcast %398 : vector<2x8x1xf32> to vector<2x8x8xf32>
    %400 = arith.divf %396, %399 : vector<2x8x8xf32>
    %401 = arith.truncf %400 : vector<2x8x8xf32> to vector<2x8x8xbf16>
    %402 = vector.extract_strided_slice %350 {offsets = [0, 0, 16], sizes = [2, 8, 8], strides = [1, 1, 1]} : vector<2x8x32xf32> to vector<2x8x8xf32>
    %403 = arith.truncf %402 : vector<2x8x8xf32> to vector<2x8x8xbf16>
    "tpu.trace_start"() <{level = 10 : i32, message = "bqk,bkd->bqd"}> : () -> ()
    %cst_166 = arith.constant dense<0.000000e+00> : vector<2x8x8xf32>
    %404 = tpu.matmul %401, %403, %cst_166 {dimension_numbers = #tpu.dot_dimension_numbers<[2], [1], [1], [2], [0, 0, 0, 1, 1, 2], [0], [0]>} : vector<2x8x8xbf16>, vector<2x8x8xbf16>, vector<2x8x8xf32> -> vector<2x8x8xf32>
    "tpu.trace_stop"() : () -> ()
    %405 = vector.extract_strided_slice %348 {offsets = [0, 0, 24], sizes = [2, 8, 8], strides = [1, 1, 1]} : vector<2x8x32xf32> to vector<2x8x8xf32>
    %406 = arith.truncf %405 : vector<2x8x8xf32> to vector<2x8x8xbf16>
    %407 = vector.extract_strided_slice %349 {offsets = [0, 0, 24], sizes = [2, 8, 8], strides = [1, 1, 1]} : vector<2x8x32xf32> to vector<2x8x8xf32>
    %408 = arith.truncf %407 : vector<2x8x8xf32> to vector<2x8x8xbf16>
    "tpu.trace_start"() <{level = 10 : i32, message = "bqd,bkd->bqk"}> : () -> ()
    %cst_167 = arith.constant dense<0.000000e+00> : vector<2x8x8xf32>
    %409 = tpu.matmul %406, %408, %cst_167 {dimension_numbers = #tpu.dot_dimension_numbers<[2], [2], [1], [1], [0, 0, 0, 1, 1, 1], [0], [0]>} : vector<2x8x8xbf16>, vector<2x8x8xbf16>, vector<2x8x8xf32> -> vector<2x8x8xf32>
    "tpu.trace_stop"() : () -> ()
    %cst_168 = arith.constant dense<0xFF800000> : vector<2x8xf32>
    %410 = vector.multi_reduction <maximumf>, %409, %cst_168 [2] : vector<2x8x8xf32> to vector<2x8xf32>
    %411 = vector.shape_cast %410 : vector<2x8xf32> to vector<2x8x1xf32>
    %412 = vector.broadcast %411 : vector<2x8x1xf32> to vector<2x8x8xf32>
    %413 = arith.subf %409, %412 : vector<2x8x8xf32>
    %414 = math.exp %413 : vector<2x8x8xf32>
    %cst_169 = arith.constant dense<0.000000e+00> : vector<2x8xf32>
    %415 = vector.multi_reduction <add>, %414, %cst_169 [2] : vector<2x8x8xf32> to vector<2x8xf32>
    %416 = vector.shape_cast %415 : vector<2x8xf32> to vector<2x8x1xf32>
    %417 = vector.broadcast %416 : vector<2x8x1xf32> to vector<2x8x8xf32>
    %418 = arith.divf %414, %417 : vector<2x8x8xf32>
    %419 = arith.truncf %418 : vector<2x8x8xf32> to vector<2x8x8xbf16>
    %420 = vector.extract_strided_slice %350 {offsets = [0, 0, 24], sizes = [2, 8, 8], strides = [1, 1, 1]} : vector<2x8x32xf32> to vector<2x8x8xf32>
    %421 = arith.truncf %420 : vector<2x8x8xf32> to vector<2x8x8xbf16>
    "tpu.trace_start"() <{level = 10 : i32, message = "bqk,bkd->bqd"}> : () -> ()
    %cst_170 = arith.constant dense<0.000000e+00> : vector<2x8x8xf32>
    %422 = tpu.matmul %419, %421, %cst_170 {dimension_numbers = #tpu.dot_dimension_numbers<[2], [1], [1], [2], [0, 0, 0, 1, 1, 2], [0], [0]>} : vector<2x8x8xbf16>, vector<2x8x8xbf16>, vector<2x8x8xf32> -> vector<2x8x8xf32>
    "tpu.trace_stop"() : () -> ()
    %423 = tpu.concatenate %368, %386, %404, %422 in 2 : vector<2x8x8xf32>, vector<2x8x8xf32>, vector<2x8x8xf32>, vector<2x8x8xf32> -> vector<2x8x32xf32>
    %424 = vector.shape_cast %423 : vector<2x8x32xf32> to vector<16x32xf32>
    %425 = arith.truncf %424 : vector<16x32xf32> to vector<16x32xbf16>
    %cst_171 = arith.constant dense<0.000000e+00> : vector<16x32xf32>
    %426 = tpu.matmul %425, %324, %cst_171 {dimension_numbers = #tpu.dot_dimension_numbers<[1], [0], [0], [1], [0, 0, 1, 1], [], []>} : vector<16x32xbf16>, vector<32x32xbf16>, vector<16x32xf32> -> vector<16x32xf32>
    %427 = vector.broadcast %325 : vector<1x32xf32> to vector<16x32xf32>
    %428 = arith.addf %426, %427 : vector<16x32xf32>
    %429 = vector.shape_cast %428 : vector<16x32xf32> to vector<2x8x32xf32>
    %430 = arith.addf %321, %429 : vector<2x8x32xf32>
    %cst_172 = arith.constant dense<0.000000e+00> : vector<2x8xf32>
    %431 = vector.multi_reduction <add>, %430, %cst_172 [2] : vector<2x8x32xf32> to vector<2x8xf32>
    %432 = vector.shape_cast %431 : vector<2x8xf32> to vector<2x8x1xf32>
    %cst_173 = arith.constant 3.200000e+01 : f32
    %433 = vector.broadcast %cst_173 : f32 to vector<2x8x1xf32>
    %434 = arith.divf %432, %433 : vector<2x8x1xf32>
    %435 = vector.broadcast %434 : vector<2x8x1xf32> to vector<2x8x32xf32>
    %436 = arith.subf %430, %435 : vector<2x8x32xf32>
    %437 = arith.mulf %436, %436 : vector<2x8x32xf32>
    %cst_174 = arith.constant dense<0.000000e+00> : vector<2x8xf32>
    %438 = vector.multi_reduction <add>, %437, %cst_174 [2] : vector<2x8x32xf32> to vector<2x8xf32>
    %439 = vector.shape_cast %438 : vector<2x8xf32> to vector<2x8x1xf32>
    %cst_175 = arith.constant 3.200000e+01 : f32
    %440 = vector.broadcast %cst_175 : f32 to vector<2x8x1xf32>
    %441 = arith.divf %439, %440 : vector<2x8x1xf32>
    %cst_176 = arith.constant 9.99999974E-6 : f32
    %442 = vector.broadcast %cst_176 : f32 to vector<2x8x1xf32>
    %443 = arith.addf %441, %442 : vector<2x8x1xf32>
    %444 = math.rsqrt %443 : vector<2x8x1xf32>
    %445 = vector.broadcast %444 : vector<2x8x1xf32> to vector<2x8x32xf32>
    %446 = arith.mulf %436, %445 : vector<2x8x32xf32>
    %447 = vector.shape_cast %326 : vector<1x32xf32> to vector<1x1x32xf32>
    %448 = vector.broadcast %447 : vector<1x1x32xf32> to vector<2x8x32xf32>
    %449 = arith.mulf %446, %448 : vector<2x8x32xf32>
    %450 = vector.shape_cast %327 : vector<1x32xf32> to vector<1x1x32xf32>
    %451 = vector.broadcast %450 : vector<1x1x32xf32> to vector<2x8x32xf32>
    %452 = arith.addf %449, %451 : vector<2x8x32xf32>
    %453 = vector.shape_cast %452 : vector<2x8x32xf32> to vector<16x32xf32>
    %454 = arith.truncf %453 : vector<16x32xf32> to vector<16x32xbf16>
    %cst_177 = arith.constant dense<0.000000e+00> : vector<16x32xf32>
    %455 = tpu.matmul %454, %328, %cst_177 {dimension_numbers = #tpu.dot_dimension_numbers<[1], [0], [0], [1], [0, 0, 1, 1], [], []>} : vector<16x32xbf16>, vector<32x32xbf16>, vector<16x32xf32> -> vector<16x32xf32>
    %456 = vector.broadcast %329 : vector<1x32xf32> to vector<16x32xf32>
    %457 = arith.addf %455, %456 : vector<16x32xf32>
    %458 = vector.shape_cast %457 : vector<16x32xf32> to vector<2x8x32xf32>
    %459 = vector.shape_cast %320 : vector<2x8x32xf32> to vector<16x32xf32>
    %460 = arith.truncf %459 : vector<16x32xf32> to vector<16x32xbf16>
    %cst_178 = arith.constant dense<0.000000e+00> : vector<16x64xf32>
    %461 = tpu.matmul %460, %330, %cst_178 {dimension_numbers = #tpu.dot_dimension_numbers<[1], [0], [0], [1], [0, 0, 1, 1], [], []>} : vector<16x32xbf16>, vector<32x64xbf16>, vector<16x64xf32> -> vector<16x64xf32>
    %462 = vector.broadcast %331 : vector<1x64xf32> to vector<16x64xf32>
    %463 = arith.addf %461, %462 : vector<16x64xf32>
    %464 = vector.shape_cast %463 : vector<16x64xf32> to vector<2x8x64xf32>
    %465 = vector.extract_strided_slice %464 {offsets = [0, 0, 0], sizes = [2, 8, 32], strides = [1, 1, 1]} : vector<2x8x64xf32> to vector<2x8x32xf32>
    %466 = vector.extract_strided_slice %464 {offsets = [0, 0, 32], sizes = [2, 8, 32], strides = [1, 1, 1]} : vector<2x8x64xf32> to vector<2x8x32xf32>
    %467 = vector.extract_strided_slice %458 {offsets = [0, 0, 0], sizes = [2, 8, 8], strides = [1, 1, 1]} : vector<2x8x32xf32> to vector<2x8x8xf32>
    %468 = arith.truncf %467 : vector<2x8x8xf32> to vector<2x8x8xbf16>
    %469 = vector.extract_strided_slice %465 {offsets = [0, 0, 0], sizes = [2, 8, 8], strides = [1, 1, 1]} : vector<2x8x32xf32> to vector<2x8x8xf32>
    %470 = arith.truncf %469 : vector<2x8x8xf32> to vector<2x8x8xbf16>
    "tpu.trace_start"() <{level = 10 : i32, message = "bqd,bkd->bqk"}> : () -> ()
    %cst_179 = arith.constant dense<0.000000e+00> : vector<2x8x8xf32>
    %471 = tpu.matmul %468, %470, %cst_179 {dimension_numbers = #tpu.dot_dimension_numbers<[2], [2], [1], [1], [0, 0, 0, 1, 1, 1], [0], [0]>} : vector<2x8x8xbf16>, vector<2x8x8xbf16>, vector<2x8x8xf32> -> vector<2x8x8xf32>
    "tpu.trace_stop"() : () -> ()
    %cst_180 = arith.constant dense<0xFF800000> : vector<2x8xf32>
    %472 = vector.multi_reduction <maximumf>, %471, %cst_180 [2] : vector<2x8x8xf32> to vector<2x8xf32>
    %473 = vector.shape_cast %472 : vector<2x8xf32> to vector<2x8x1xf32>
    %474 = vector.broadcast %473 : vector<2x8x1xf32> to vector<2x8x8xf32>
    %475 = arith.subf %471, %474 : vector<2x8x8xf32>
    %476 = math.exp %475 : vector<2x8x8xf32>
    %cst_181 = arith.constant dense<0.000000e+00> : vector<2x8xf32>
    %477 = vector.multi_reduction <add>, %476, %cst_181 [2] : vector<2x8x8xf32> to vector<2x8xf32>
    %478 = vector.shape_cast %477 : vector<2x8xf32> to vector<2x8x1xf32>
    %479 = vector.broadcast %478 : vector<2x8x1xf32> to vector<2x8x8xf32>
    %480 = arith.divf %476, %479 : vector<2x8x8xf32>
    %481 = arith.truncf %480 : vector<2x8x8xf32> to vector<2x8x8xbf16>
    %482 = vector.extract_strided_slice %466 {offsets = [0, 0, 0], sizes = [2, 8, 8], strides = [1, 1, 1]} : vector<2x8x32xf32> to vector<2x8x8xf32>
    %483 = arith.truncf %482 : vector<2x8x8xf32> to vector<2x8x8xbf16>
    "tpu.trace_start"() <{level = 10 : i32, message = "bqk,bkd->bqd"}> : () -> ()
    %cst_182 = arith.constant dense<0.000000e+00> : vector<2x8x8xf32>
    %484 = tpu.matmul %481, %483, %cst_182 {dimension_numbers = #tpu.dot_dimension_numbers<[2], [1], [1], [2], [0, 0, 0, 1, 1, 2], [0], [0]>} : vector<2x8x8xbf16>, vector<2x8x8xbf16>, vector<2x8x8xf32> -> vector<2x8x8xf32>
    "tpu.trace_stop"() : () -> ()
    %485 = vector.extract_strided_slice %458 {offsets = [0, 0, 8], sizes = [2, 8, 8], strides = [1, 1, 1]} : vector<2x8x32xf32> to vector<2x8x8xf32>
    %486 = arith.truncf %485 : vector<2x8x8xf32> to vector<2x8x8xbf16>
    %487 = vector.extract_strided_slice %465 {offsets = [0, 0, 8], sizes = [2, 8, 8], strides = [1, 1, 1]} : vector<2x8x32xf32> to vector<2x8x8xf32>
    %488 = arith.truncf %487 : vector<2x8x8xf32> to vector<2x8x8xbf16>
    "tpu.trace_start"() <{level = 10 : i32, message = "bqd,bkd->bqk"}> : () -> ()
    %cst_183 = arith.constant dense<0.000000e+00> : vector<2x8x8xf32>
    %489 = tpu.matmul %486, %488, %cst_183 {dimension_numbers = #tpu.dot_dimension_numbers<[2], [2], [1], [1], [0, 0, 0, 1, 1, 1], [0], [0]>} : vector<2x8x8xbf16>, vector<2x8x8xbf16>, vector<2x8x8xf32> -> vector<2x8x8xf32>
    "tpu.trace_stop"() : () -> ()
    %cst_184 = arith.constant dense<0xFF800000> : vector<2x8xf32>
    %490 = vector.multi_reduction <maximumf>, %489, %cst_184 [2] : vector<2x8x8xf32> to vector<2x8xf32>
    %491 = vector.shape_cast %490 : vector<2x8xf32> to vector<2x8x1xf32>
    %492 = vector.broadcast %491 : vector<2x8x1xf32> to vector<2x8x8xf32>
    %493 = arith.subf %489, %492 : vector<2x8x8xf32>
    %494 = math.exp %493 : vector<2x8x8xf32>
    %cst_185 = arith.constant dense<0.000000e+00> : vector<2x8xf32>
    %495 = vector.multi_reduction <add>, %494, %cst_185 [2] : vector<2x8x8xf32> to vector<2x8xf32>
    %496 = vector.shape_cast %495 : vector<2x8xf32> to vector<2x8x1xf32>
    %497 = vector.broadcast %496 : vector<2x8x1xf32> to vector<2x8x8xf32>
    %498 = arith.divf %494, %497 : vector<2x8x8xf32>
    %499 = arith.truncf %498 : vector<2x8x8xf32> to vector<2x8x8xbf16>
    %500 = vector.extract_strided_slice %466 {offsets = [0, 0, 8], sizes = [2, 8, 8], strides = [1, 1, 1]} : vector<2x8x32xf32> to vector<2x8x8xf32>
    %501 = arith.truncf %500 : vector<2x8x8xf32> to vector<2x8x8xbf16>
    "tpu.trace_start"() <{level = 10 : i32, message = "bqk,bkd->bqd"}> : () -> ()
    %cst_186 = arith.constant dense<0.000000e+00> : vector<2x8x8xf32>
    %502 = tpu.matmul %499, %501, %cst_186 {dimension_numbers = #tpu.dot_dimension_numbers<[2], [1], [1], [2], [0, 0, 0, 1, 1, 2], [0], [0]>} : vector<2x8x8xbf16>, vector<2x8x8xbf16>, vector<2x8x8xf32> -> vector<2x8x8xf32>
    "tpu.trace_stop"() : () -> ()
    %503 = vector.extract_strided_slice %458 {offsets = [0, 0, 16], sizes = [2, 8, 8], strides = [1, 1, 1]} : vector<2x8x32xf32> to vector<2x8x8xf32>
    %504 = arith.truncf %503 : vector<2x8x8xf32> to vector<2x8x8xbf16>
    %505 = vector.extract_strided_slice %465 {offsets = [0, 0, 16], sizes = [2, 8, 8], strides = [1, 1, 1]} : vector<2x8x32xf32> to vector<2x8x8xf32>
    %506 = arith.truncf %505 : vector<2x8x8xf32> to vector<2x8x8xbf16>
    "tpu.trace_start"() <{level = 10 : i32, message = "bqd,bkd->bqk"}> : () -> ()
    %cst_187 = arith.constant dense<0.000000e+00> : vector<2x8x8xf32>
    %507 = tpu.matmul %504, %506, %cst_187 {dimension_numbers = #tpu.dot_dimension_numbers<[2], [2], [1], [1], [0, 0, 0, 1, 1, 1], [0], [0]>} : vector<2x8x8xbf16>, vector<2x8x8xbf16>, vector<2x8x8xf32> -> vector<2x8x8xf32>
    "tpu.trace_stop"() : () -> ()
    %cst_188 = arith.constant dense<0xFF800000> : vector<2x8xf32>
    %508 = vector.multi_reduction <maximumf>, %507, %cst_188 [2] : vector<2x8x8xf32> to vector<2x8xf32>
    %509 = vector.shape_cast %508 : vector<2x8xf32> to vector<2x8x1xf32>
    %510 = vector.broadcast %509 : vector<2x8x1xf32> to vector<2x8x8xf32>
    %511 = arith.subf %507, %510 : vector<2x8x8xf32>
    %512 = math.exp %511 : vector<2x8x8xf32>
    %cst_189 = arith.constant dense<0.000000e+00> : vector<2x8xf32>
    %513 = vector.multi_reduction <add>, %512, %cst_189 [2] : vector<2x8x8xf32> to vector<2x8xf32>
    %514 = vector.shape_cast %513 : vector<2x8xf32> to vector<2x8x1xf32>
    %515 = vector.broadcast %514 : vector<2x8x1xf32> to vector<2x8x8xf32>
    %516 = arith.divf %512, %515 : vector<2x8x8xf32>
    %517 = arith.truncf %516 : vector<2x8x8xf32> to vector<2x8x8xbf16>
    %518 = vector.extract_strided_slice %466 {offsets = [0, 0, 16], sizes = [2, 8, 8], strides = [1, 1, 1]} : vector<2x8x32xf32> to vector<2x8x8xf32>
    %519 = arith.truncf %518 : vector<2x8x8xf32> to vector<2x8x8xbf16>
    "tpu.trace_start"() <{level = 10 : i32, message = "bqk,bkd->bqd"}> : () -> ()
    %cst_190 = arith.constant dense<0.000000e+00> : vector<2x8x8xf32>
    %520 = tpu.matmul %517, %519, %cst_190 {dimension_numbers = #tpu.dot_dimension_numbers<[2], [1], [1], [2], [0, 0, 0, 1, 1, 2], [0], [0]>} : vector<2x8x8xbf16>, vector<2x8x8xbf16>, vector<2x8x8xf32> -> vector<2x8x8xf32>
    "tpu.trace_stop"() : () -> ()
    %521 = vector.extract_strided_slice %458 {offsets = [0, 0, 24], sizes = [2, 8, 8], strides = [1, 1, 1]} : vector<2x8x32xf32> to vector<2x8x8xf32>
    %522 = arith.truncf %521 : vector<2x8x8xf32> to vector<2x8x8xbf16>
    %523 = vector.extract_strided_slice %465 {offsets = [0, 0, 24], sizes = [2, 8, 8], strides = [1, 1, 1]} : vector<2x8x32xf32> to vector<2x8x8xf32>
    %524 = arith.truncf %523 : vector<2x8x8xf32> to vector<2x8x8xbf16>
    "tpu.trace_start"() <{level = 10 : i32, message = "bqd,bkd->bqk"}> : () -> ()
    %cst_191 = arith.constant dense<0.000000e+00> : vector<2x8x8xf32>
    %525 = tpu.matmul %522, %524, %cst_191 {dimension_numbers = #tpu.dot_dimension_numbers<[2], [2], [1], [1], [0, 0, 0, 1, 1, 1], [0], [0]>} : vector<2x8x8xbf16>, vector<2x8x8xbf16>, vector<2x8x8xf32> -> vector<2x8x8xf32>
    "tpu.trace_stop"() : () -> ()
    %cst_192 = arith.constant dense<0xFF800000> : vector<2x8xf32>
    %526 = vector.multi_reduction <maximumf>, %525, %cst_192 [2] : vector<2x8x8xf32> to vector<2x8xf32>
    %527 = vector.shape_cast %526 : vector<2x8xf32> to vector<2x8x1xf32>
    %528 = vector.broadcast %527 : vector<2x8x1xf32> to vector<2x8x8xf32>
    %529 = arith.subf %525, %528 : vector<2x8x8xf32>
    %530 = math.exp %529 : vector<2x8x8xf32>
    %cst_193 = arith.constant dense<0.000000e+00> : vector<2x8xf32>
    %531 = vector.multi_reduction <add>, %530, %cst_193 [2] : vector<2x8x8xf32> to vector<2x8xf32>
    %532 = vector.shape_cast %531 : vector<2x8xf32> to vector<2x8x1xf32>
    %533 = vector.broadcast %532 : vector<2x8x1xf32> to vector<2x8x8xf32>
    %534 = arith.divf %530, %533 : vector<2x8x8xf32>
    %535 = arith.truncf %534 : vector<2x8x8xf32> to vector<2x8x8xbf16>
    %536 = vector.extract_strided_slice %466 {offsets = [0, 0, 24], sizes = [2, 8, 8], strides = [1, 1, 1]} : vector<2x8x32xf32> to vector<2x8x8xf32>
    %537 = arith.truncf %536 : vector<2x8x8xf32> to vector<2x8x8xbf16>
    "tpu.trace_start"() <{level = 10 : i32, message = "bqk,bkd->bqd"}> : () -> ()
    %cst_194 = arith.constant dense<0.000000e+00> : vector<2x8x8xf32>
    %538 = tpu.matmul %535, %537, %cst_194 {dimension_numbers = #tpu.dot_dimension_numbers<[2], [1], [1], [2], [0, 0, 0, 1, 1, 2], [0], [0]>} : vector<2x8x8xbf16>, vector<2x8x8xbf16>, vector<2x8x8xf32> -> vector<2x8x8xf32>
    "tpu.trace_stop"() : () -> ()
    %539 = tpu.concatenate %484, %502, %520, %538 in 2 : vector<2x8x8xf32>, vector<2x8x8xf32>, vector<2x8x8xf32>, vector<2x8x8xf32> -> vector<2x8x32xf32>
    %540 = vector.shape_cast %539 : vector<2x8x32xf32> to vector<16x32xf32>
    %541 = arith.truncf %540 : vector<16x32xf32> to vector<16x32xbf16>
    %cst_195 = arith.constant dense<0.000000e+00> : vector<16x32xf32>
    %542 = tpu.matmul %541, %332, %cst_195 {dimension_numbers = #tpu.dot_dimension_numbers<[1], [0], [0], [1], [0, 0, 1, 1], [], []>} : vector<16x32xbf16>, vector<32x32xbf16>, vector<16x32xf32> -> vector<16x32xf32>
    %543 = vector.broadcast %333 : vector<1x32xf32> to vector<16x32xf32>
    %544 = arith.addf %542, %543 : vector<16x32xf32>
    %545 = vector.shape_cast %544 : vector<16x32xf32> to vector<2x8x32xf32>
    %546 = arith.addf %452, %545 : vector<2x8x32xf32>
    %cst_196 = arith.constant dense<0.000000e+00> : vector<2x8xf32>
    %547 = vector.multi_reduction <add>, %546, %cst_196 [2] : vector<2x8x32xf32> to vector<2x8xf32>
    %548 = vector.shape_cast %547 : vector<2x8xf32> to vector<2x8x1xf32>
    %cst_197 = arith.constant 3.200000e+01 : f32
    %549 = vector.broadcast %cst_197 : f32 to vector<2x8x1xf32>
    %550 = arith.divf %548, %549 : vector<2x8x1xf32>
    %551 = vector.broadcast %550 : vector<2x8x1xf32> to vector<2x8x32xf32>
    %552 = arith.subf %546, %551 : vector<2x8x32xf32>
    %553 = arith.mulf %552, %552 : vector<2x8x32xf32>
    %cst_198 = arith.constant dense<0.000000e+00> : vector<2x8xf32>
    %554 = vector.multi_reduction <add>, %553, %cst_198 [2] : vector<2x8x32xf32> to vector<2x8xf32>
    %555 = vector.shape_cast %554 : vector<2x8xf32> to vector<2x8x1xf32>
    %cst_199 = arith.constant 3.200000e+01 : f32
    %556 = vector.broadcast %cst_199 : f32 to vector<2x8x1xf32>
    %557 = arith.divf %555, %556 : vector<2x8x1xf32>
    %cst_200 = arith.constant 9.99999974E-6 : f32
    %558 = vector.broadcast %cst_200 : f32 to vector<2x8x1xf32>
    %559 = arith.addf %557, %558 : vector<2x8x1xf32>
    %560 = math.rsqrt %559 : vector<2x8x1xf32>
    %561 = vector.broadcast %560 : vector<2x8x1xf32> to vector<2x8x32xf32>
    %562 = arith.mulf %552, %561 : vector<2x8x32xf32>
    %563 = vector.shape_cast %334 : vector<1x32xf32> to vector<1x1x32xf32>
    %564 = vector.broadcast %563 : vector<1x1x32xf32> to vector<2x8x32xf32>
    %565 = arith.mulf %562, %564 : vector<2x8x32xf32>
    %566 = vector.shape_cast %335 : vector<1x32xf32> to vector<1x1x32xf32>
    %567 = vector.broadcast %566 : vector<1x1x32xf32> to vector<2x8x32xf32>
    %568 = arith.addf %565, %567 : vector<2x8x32xf32>
    %569 = vector.shape_cast %568 : vector<2x8x32xf32> to vector<16x32xf32>
    %570 = arith.truncf %569 : vector<16x32xf32> to vector<16x32xbf16>
    %cst_201 = arith.constant dense<0.000000e+00> : vector<16x64xf32>
    %571 = tpu.matmul %570, %336, %cst_201 {dimension_numbers = #tpu.dot_dimension_numbers<[1], [0], [0], [1], [0, 0, 1, 1], [], []>} : vector<16x32xbf16>, vector<32x64xbf16>, vector<16x64xf32> -> vector<16x64xf32>
    %572 = vector.broadcast %337 : vector<1x64xf32> to vector<16x64xf32>
    %573 = arith.addf %571, %572 : vector<16x64xf32>
    %574 = vector.shape_cast %573 : vector<16x64xf32> to vector<2x8x64xf32>
    %cst_202 = arith.constant 0.000000e+00 : f32
    %575 = vector.broadcast %cst_202 : f32 to vector<2x8x64xf32>
    %576 = arith.maximumf %574, %575 : vector<2x8x64xf32>
    %577 = vector.shape_cast %576 : vector<2x8x64xf32> to vector<16x64xf32>
    %578 = arith.truncf %577 : vector<16x64xf32> to vector<16x64xbf16>
    %cst_203 = arith.constant dense<0.000000e+00> : vector<16x32xf32>
    %579 = tpu.matmul %578, %338, %cst_203 {dimension_numbers = #tpu.dot_dimension_numbers<[1], [0], [0], [1], [0, 0, 1, 1], [], []>} : vector<16x64xbf16>, vector<64x32xbf16>, vector<16x32xf32> -> vector<16x32xf32>
    %580 = vector.broadcast %339 : vector<1x32xf32> to vector<16x32xf32>
    %581 = arith.addf %579, %580 : vector<16x32xf32>
    %582 = vector.shape_cast %581 : vector<16x32xf32> to vector<2x8x32xf32>
    %583 = arith.addf %568, %582 : vector<2x8x32xf32>
    %cst_204 = arith.constant dense<0.000000e+00> : vector<2x8xf32>
    %584 = vector.multi_reduction <add>, %583, %cst_204 [2] : vector<2x8x32xf32> to vector<2x8xf32>
    %585 = vector.shape_cast %584 : vector<2x8xf32> to vector<2x8x1xf32>
    %cst_205 = arith.constant 3.200000e+01 : f32
    %586 = vector.broadcast %cst_205 : f32 to vector<2x8x1xf32>
    %587 = arith.divf %585, %586 : vector<2x8x1xf32>
    %588 = vector.broadcast %587 : vector<2x8x1xf32> to vector<2x8x32xf32>
    %589 = arith.subf %583, %588 : vector<2x8x32xf32>
    %590 = arith.mulf %589, %589 : vector<2x8x32xf32>
    %cst_206 = arith.constant dense<0.000000e+00> : vector<2x8xf32>
    %591 = vector.multi_reduction <add>, %590, %cst_206 [2] : vector<2x8x32xf32> to vector<2x8xf32>
    %592 = vector.shape_cast %591 : vector<2x8xf32> to vector<2x8x1xf32>
    %cst_207 = arith.constant 3.200000e+01 : f32
    %593 = vector.broadcast %cst_207 : f32 to vector<2x8x1xf32>
    %594 = arith.divf %592, %593 : vector<2x8x1xf32>
    %cst_208 = arith.constant 9.99999974E-6 : f32
    %595 = vector.broadcast %cst_208 : f32 to vector<2x8x1xf32>
    %596 = arith.addf %594, %595 : vector<2x8x1xf32>
    %597 = math.rsqrt %596 : vector<2x8x1xf32>
    %598 = vector.broadcast %597 : vector<2x8x1xf32> to vector<2x8x32xf32>
    %599 = arith.mulf %589, %598 : vector<2x8x32xf32>
    %600 = vector.shape_cast %340 : vector<1x32xf32> to vector<1x1x32xf32>
    %601 = vector.broadcast %600 : vector<1x1x32xf32> to vector<2x8x32xf32>
    %602 = arith.mulf %599, %601 : vector<2x8x32xf32>
    %603 = vector.shape_cast %341 : vector<1x32xf32> to vector<1x1x32xf32>
    %604 = vector.broadcast %603 : vector<1x1x32xf32> to vector<2x8x32xf32>
    %605 = arith.addf %602, %604 : vector<2x8x32xf32>
    %c0_209 = arith.constant 0 : index
    %c0_210 = arith.constant 0 : index
    %606 = vector.load %arg46[%c0_209, %c0_210] : memref<32x96xbf16, #tpu.memory_space<vmem>>, vector<32x96xbf16>
    %c0_211 = arith.constant 0 : index
    %c0_212 = arith.constant 0 : index
    %607 = vector.load %arg47[%c0_211, %c0_212] : memref<1x96xf32, #tpu.memory_space<vmem>>, vector<1x96xf32>
    %c0_213 = arith.constant 0 : index
    %c0_214 = arith.constant 0 : index
    %608 = vector.load %arg48[%c0_213, %c0_214] : memref<32x32xbf16, #tpu.memory_space<vmem>>, vector<32x32xbf16>
    %c0_215 = arith.constant 0 : index
    %c0_216 = arith.constant 0 : index
    %609 = vector.load %arg49[%c0_215, %c0_216] : memref<1x32xf32, #tpu.memory_space<vmem>>, vector<1x32xf32>
    %c0_217 = arith.constant 0 : index
    %c0_218 = arith.constant 0 : index
    %610 = vector.load %arg50[%c0_217, %c0_218] : memref<1x32xf32, #tpu.memory_space<vmem>>, vector<1x32xf32>
    %c0_219 = arith.constant 0 : index
    %c0_220 = arith.constant 0 : index
    %611 = vector.load %arg51[%c0_219, %c0_220] : memref<1x32xf32, #tpu.memory_space<vmem>>, vector<1x32xf32>
    %c0_221 = arith.constant 0 : index
    %c0_222 = arith.constant 0 : index
    %612 = vector.load %arg52[%c0_221, %c0_222] : memref<32x32xbf16, #tpu.memory_space<vmem>>, vector<32x32xbf16>
    %c0_223 = arith.constant 0 : index
    %c0_224 = arith.constant 0 : index
    %613 = vector.load %arg53[%c0_223, %c0_224] : memref<1x32xf32, #tpu.memory_space<vmem>>, vector<1x32xf32>
    %c0_225 = arith.constant 0 : index
    %c0_226 = arith.constant 0 : index
    %614 = vector.load %arg54[%c0_225, %c0_226] : memref<32x64xbf16, #tpu.memory_space<vmem>>, vector<32x64xbf16>
    %c0_227 = arith.constant 0 : index
    %c0_228 = arith.constant 0 : index
    %615 = vector.load %arg55[%c0_227, %c0_228] : memref<1x64xf32, #tpu.memory_space<vmem>>, vector<1x64xf32>
    %c0_229 = arith.constant 0 : index
    %c0_230 = arith.constant 0 : index
    %616 = vector.load %arg56[%c0_229, %c0_230] : memref<32x32xbf16, #tpu.memory_space<vmem>>, vector<32x32xbf16>
    %c0_231 = arith.constant 0 : index
    %c0_232 = arith.constant 0 : index
    %617 = vector.load %arg57[%c0_231, %c0_232] : memref<1x32xf32, #tpu.memory_space<vmem>>, vector<1x32xf32>
    %c0_233 = arith.constant 0 : index
    %c0_234 = arith.constant 0 : index
    %618 = vector.load %arg58[%c0_233, %c0_234] : memref<1x32xf32, #tpu.memory_space<vmem>>, vector<1x32xf32>
    %c0_235 = arith.constant 0 : index
    %c0_236 = arith.constant 0 : index
    %619 = vector.load %arg59[%c0_235, %c0_236] : memref<1x32xf32, #tpu.memory_space<vmem>>, vector<1x32xf32>
    %c0_237 = arith.constant 0 : index
    %c0_238 = arith.constant 0 : index
    %620 = vector.load %arg60[%c0_237, %c0_238] : memref<32x64xbf16, #tpu.memory_space<vmem>>, vector<32x64xbf16>
    %c0_239 = arith.constant 0 : index
    %c0_240 = arith.constant 0 : index
    %621 = vector.load %arg61[%c0_239, %c0_240] : memref<1x64xf32, #tpu.memory_space<vmem>>, vector<1x64xf32>
    %c0_241 = arith.constant 0 : index
    %c0_242 = arith.constant 0 : index
    %622 = vector.load %arg62[%c0_241, %c0_242] : memref<64x32xbf16, #tpu.memory_space<vmem>>, vector<64x32xbf16>
    %c0_243 = arith.constant 0 : index
    %c0_244 = arith.constant 0 : index
    %623 = vector.load %arg63[%c0_243, %c0_244] : memref<1x32xf32, #tpu.memory_space<vmem>>, vector<1x32xf32>
    %c0_245 = arith.constant 0 : index
    %c0_246 = arith.constant 0 : index
    %624 = vector.load %arg64[%c0_245, %c0_246] : memref<1x32xf32, #tpu.memory_space<vmem>>, vector<1x32xf32>
    %c0_247 = arith.constant 0 : index
    %c0_248 = arith.constant 0 : index
    %625 = vector.load %arg65[%c0_247, %c0_248] : memref<1x32xf32, #tpu.memory_space<vmem>>, vector<1x32xf32>
    %626 = vector.shape_cast %605 : vector<2x8x32xf32> to vector<16x32xf32>
    %627 = arith.truncf %626 : vector<16x32xf32> to vector<16x32xbf16>
    %cst_249 = arith.constant dense<0.000000e+00> : vector<16x96xf32>
    %628 = tpu.matmul %627, %606, %cst_249 {dimension_numbers = #tpu.dot_dimension_numbers<[1], [0], [0], [1], [0, 0, 1, 1], [], []>} : vector<16x32xbf16>, vector<32x96xbf16>, vector<16x96xf32> -> vector<16x96xf32>
    %629 = vector.broadcast %607 : vector<1x96xf32> to vector<16x96xf32>
    %630 = arith.addf %628, %629 : vector<16x96xf32>
    %631 = vector.shape_cast %630 : vector<16x96xf32> to vector<2x8x96xf32>
    %632 = vector.extract_strided_slice %631 {offsets = [0, 0, 0], sizes = [2, 8, 32], strides = [1, 1, 1]} : vector<2x8x96xf32> to vector<2x8x32xf32>
    %633 = vector.extract_strided_slice %631 {offsets = [0, 0, 32], sizes = [2, 8, 32], strides = [1, 1, 1]} : vector<2x8x96xf32> to vector<2x8x32xf32>
    %634 = vector.extract_strided_slice %631 {offsets = [0, 0, 64], sizes = [2, 8, 32], strides = [1, 1, 1]} : vector<2x8x96xf32> to vector<2x8x32xf32>
    %635 = vector.extract_strided_slice %632 {offsets = [0, 0, 0], sizes = [2, 8, 8], strides = [1, 1, 1]} : vector<2x8x32xf32> to vector<2x8x8xf32>
    %636 = arith.truncf %635 : vector<2x8x8xf32> to vector<2x8x8xbf16>
    %637 = vector.extract_strided_slice %633 {offsets = [0, 0, 0], sizes = [2, 8, 8], strides = [1, 1, 1]} : vector<2x8x32xf32> to vector<2x8x8xf32>
    %638 = arith.truncf %637 : vector<2x8x8xf32> to vector<2x8x8xbf16>
    "tpu.trace_start"() <{level = 10 : i32, message = "bqd,bkd->bqk"}> : () -> ()
    %cst_250 = arith.constant dense<0.000000e+00> : vector<2x8x8xf32>
    %639 = tpu.matmul %636, %638, %cst_250 {dimension_numbers = #tpu.dot_dimension_numbers<[2], [2], [1], [1], [0, 0, 0, 1, 1, 1], [0], [0]>} : vector<2x8x8xbf16>, vector<2x8x8xbf16>, vector<2x8x8xf32> -> vector<2x8x8xf32>
    "tpu.trace_stop"() : () -> ()
    %cst_251 = arith.constant dense<0xFF800000> : vector<2x8xf32>
    %640 = vector.multi_reduction <maximumf>, %639, %cst_251 [2] : vector<2x8x8xf32> to vector<2x8xf32>
    %641 = vector.shape_cast %640 : vector<2x8xf32> to vector<2x8x1xf32>
    %642 = vector.broadcast %641 : vector<2x8x1xf32> to vector<2x8x8xf32>
    %643 = arith.subf %639, %642 : vector<2x8x8xf32>
    %644 = math.exp %643 : vector<2x8x8xf32>
    %cst_252 = arith.constant dense<0.000000e+00> : vector<2x8xf32>
    %645 = vector.multi_reduction <add>, %644, %cst_252 [2] : vector<2x8x8xf32> to vector<2x8xf32>
    %646 = vector.shape_cast %645 : vector<2x8xf32> to vector<2x8x1xf32>
    %647 = vector.broadcast %646 : vector<2x8x1xf32> to vector<2x8x8xf32>
    %648 = arith.divf %644, %647 : vector<2x8x8xf32>
    %649 = arith.truncf %648 : vector<2x8x8xf32> to vector<2x8x8xbf16>
    %650 = vector.extract_strided_slice %634 {offsets = [0, 0, 0], sizes = [2, 8, 8], strides = [1, 1, 1]} : vector<2x8x32xf32> to vector<2x8x8xf32>
    %651 = arith.truncf %650 : vector<2x8x8xf32> to vector<2x8x8xbf16>
    "tpu.trace_start"() <{level = 10 : i32, message = "bqk,bkd->bqd"}> : () -> ()
    %cst_253 = arith.constant dense<0.000000e+00> : vector<2x8x8xf32>
    %652 = tpu.matmul %649, %651, %cst_253 {dimension_numbers = #tpu.dot_dimension_numbers<[2], [1], [1], [2], [0, 0, 0, 1, 1, 2], [0], [0]>} : vector<2x8x8xbf16>, vector<2x8x8xbf16>, vector<2x8x8xf32> -> vector<2x8x8xf32>
    "tpu.trace_stop"() : () -> ()
    %653 = vector.extract_strided_slice %632 {offsets = [0, 0, 8], sizes = [2, 8, 8], strides = [1, 1, 1]} : vector<2x8x32xf32> to vector<2x8x8xf32>
    %654 = arith.truncf %653 : vector<2x8x8xf32> to vector<2x8x8xbf16>
    %655 = vector.extract_strided_slice %633 {offsets = [0, 0, 8], sizes = [2, 8, 8], strides = [1, 1, 1]} : vector<2x8x32xf32> to vector<2x8x8xf32>
    %656 = arith.truncf %655 : vector<2x8x8xf32> to vector<2x8x8xbf16>
    "tpu.trace_start"() <{level = 10 : i32, message = "bqd,bkd->bqk"}> : () -> ()
    %cst_254 = arith.constant dense<0.000000e+00> : vector<2x8x8xf32>
    %657 = tpu.matmul %654, %656, %cst_254 {dimension_numbers = #tpu.dot_dimension_numbers<[2], [2], [1], [1], [0, 0, 0, 1, 1, 1], [0], [0]>} : vector<2x8x8xbf16>, vector<2x8x8xbf16>, vector<2x8x8xf32> -> vector<2x8x8xf32>
    "tpu.trace_stop"() : () -> ()
    %cst_255 = arith.constant dense<0xFF800000> : vector<2x8xf32>
    %658 = vector.multi_reduction <maximumf>, %657, %cst_255 [2] : vector<2x8x8xf32> to vector<2x8xf32>
    %659 = vector.shape_cast %658 : vector<2x8xf32> to vector<2x8x1xf32>
    %660 = vector.broadcast %659 : vector<2x8x1xf32> to vector<2x8x8xf32>
    %661 = arith.subf %657, %660 : vector<2x8x8xf32>
    %662 = math.exp %661 : vector<2x8x8xf32>
    %cst_256 = arith.constant dense<0.000000e+00> : vector<2x8xf32>
    %663 = vector.multi_reduction <add>, %662, %cst_256 [2] : vector<2x8x8xf32> to vector<2x8xf32>
    %664 = vector.shape_cast %663 : vector<2x8xf32> to vector<2x8x1xf32>
    %665 = vector.broadcast %664 : vector<2x8x1xf32> to vector<2x8x8xf32>
    %666 = arith.divf %662, %665 : vector<2x8x8xf32>
    %667 = arith.truncf %666 : vector<2x8x8xf32> to vector<2x8x8xbf16>
    %668 = vector.extract_strided_slice %634 {offsets = [0, 0, 8], sizes = [2, 8, 8], strides = [1, 1, 1]} : vector<2x8x32xf32> to vector<2x8x8xf32>
    %669 = arith.truncf %668 : vector<2x8x8xf32> to vector<2x8x8xbf16>
    "tpu.trace_start"() <{level = 10 : i32, message = "bqk,bkd->bqd"}> : () -> ()
    %cst_257 = arith.constant dense<0.000000e+00> : vector<2x8x8xf32>
    %670 = tpu.matmul %667, %669, %cst_257 {dimension_numbers = #tpu.dot_dimension_numbers<[2], [1], [1], [2], [0, 0, 0, 1, 1, 2], [0], [0]>} : vector<2x8x8xbf16>, vector<2x8x8xbf16>, vector<2x8x8xf32> -> vector<2x8x8xf32>
    "tpu.trace_stop"() : () -> ()
    %671 = vector.extract_strided_slice %632 {offsets = [0, 0, 16], sizes = [2, 8, 8], strides = [1, 1, 1]} : vector<2x8x32xf32> to vector<2x8x8xf32>
    %672 = arith.truncf %671 : vector<2x8x8xf32> to vector<2x8x8xbf16>
    %673 = vector.extract_strided_slice %633 {offsets = [0, 0, 16], sizes = [2, 8, 8], strides = [1, 1, 1]} : vector<2x8x32xf32> to vector<2x8x8xf32>
    %674 = arith.truncf %673 : vector<2x8x8xf32> to vector<2x8x8xbf16>
    "tpu.trace_start"() <{level = 10 : i32, message = "bqd,bkd->bqk"}> : () -> ()
    %cst_258 = arith.constant dense<0.000000e+00> : vector<2x8x8xf32>
    %675 = tpu.matmul %672, %674, %cst_258 {dimension_numbers = #tpu.dot_dimension_numbers<[2], [2], [1], [1], [0, 0, 0, 1, 1, 1], [0], [0]>} : vector<2x8x8xbf16>, vector<2x8x8xbf16>, vector<2x8x8xf32> -> vector<2x8x8xf32>
    "tpu.trace_stop"() : () -> ()
    %cst_259 = arith.constant dense<0xFF800000> : vector<2x8xf32>
    %676 = vector.multi_reduction <maximumf>, %675, %cst_259 [2] : vector<2x8x8xf32> to vector<2x8xf32>
    %677 = vector.shape_cast %676 : vector<2x8xf32> to vector<2x8x1xf32>
    %678 = vector.broadcast %677 : vector<2x8x1xf32> to vector<2x8x8xf32>
    %679 = arith.subf %675, %678 : vector<2x8x8xf32>
    %680 = math.exp %679 : vector<2x8x8xf32>
    %cst_260 = arith.constant dense<0.000000e+00> : vector<2x8xf32>
    %681 = vector.multi_reduction <add>, %680, %cst_260 [2] : vector<2x8x8xf32> to vector<2x8xf32>
    %682 = vector.shape_cast %681 : vector<2x8xf32> to vector<2x8x1xf32>
    %683 = vector.broadcast %682 : vector<2x8x1xf32> to vector<2x8x8xf32>
    %684 = arith.divf %680, %683 : vector<2x8x8xf32>
    %685 = arith.truncf %684 : vector<2x8x8xf32> to vector<2x8x8xbf16>
    %686 = vector.extract_strided_slice %634 {offsets = [0, 0, 16], sizes = [2, 8, 8], strides = [1, 1, 1]} : vector<2x8x32xf32> to vector<2x8x8xf32>
    %687 = arith.truncf %686 : vector<2x8x8xf32> to vector<2x8x8xbf16>
    "tpu.trace_start"() <{level = 10 : i32, message = "bqk,bkd->bqd"}> : () -> ()
    %cst_261 = arith.constant dense<0.000000e+00> : vector<2x8x8xf32>
    %688 = tpu.matmul %685, %687, %cst_261 {dimension_numbers = #tpu.dot_dimension_numbers<[2], [1], [1], [2], [0, 0, 0, 1, 1, 2], [0], [0]>} : vector<2x8x8xbf16>, vector<2x8x8xbf16>, vector<2x8x8xf32> -> vector<2x8x8xf32>
    "tpu.trace_stop"() : () -> ()
    %689 = vector.extract_strided_slice %632 {offsets = [0, 0, 24], sizes = [2, 8, 8], strides = [1, 1, 1]} : vector<2x8x32xf32> to vector<2x8x8xf32>
    %690 = arith.truncf %689 : vector<2x8x8xf32> to vector<2x8x8xbf16>
    %691 = vector.extract_strided_slice %633 {offsets = [0, 0, 24], sizes = [2, 8, 8], strides = [1, 1, 1]} : vector<2x8x32xf32> to vector<2x8x8xf32>
    %692 = arith.truncf %691 : vector<2x8x8xf32> to vector<2x8x8xbf16>
    "tpu.trace_start"() <{level = 10 : i32, message = "bqd,bkd->bqk"}> : () -> ()
    %cst_262 = arith.constant dense<0.000000e+00> : vector<2x8x8xf32>
    %693 = tpu.matmul %690, %692, %cst_262 {dimension_numbers = #tpu.dot_dimension_numbers<[2], [2], [1], [1], [0, 0, 0, 1, 1, 1], [0], [0]>} : vector<2x8x8xbf16>, vector<2x8x8xbf16>, vector<2x8x8xf32> -> vector<2x8x8xf32>
    "tpu.trace_stop"() : () -> ()
    %cst_263 = arith.constant dense<0xFF800000> : vector<2x8xf32>
    %694 = vector.multi_reduction <maximumf>, %693, %cst_263 [2] : vector<2x8x8xf32> to vector<2x8xf32>
    %695 = vector.shape_cast %694 : vector<2x8xf32> to vector<2x8x1xf32>
    %696 = vector.broadcast %695 : vector<2x8x1xf32> to vector<2x8x8xf32>
    %697 = arith.subf %693, %696 : vector<2x8x8xf32>
    %698 = math.exp %697 : vector<2x8x8xf32>
    %cst_264 = arith.constant dense<0.000000e+00> : vector<2x8xf32>
    %699 = vector.multi_reduction <add>, %698, %cst_264 [2] : vector<2x8x8xf32> to vector<2x8xf32>
    %700 = vector.shape_cast %699 : vector<2x8xf32> to vector<2x8x1xf32>
    %701 = vector.broadcast %700 : vector<2x8x1xf32> to vector<2x8x8xf32>
    %702 = arith.divf %698, %701 : vector<2x8x8xf32>
    %703 = arith.truncf %702 : vector<2x8x8xf32> to vector<2x8x8xbf16>
    %704 = vector.extract_strided_slice %634 {offsets = [0, 0, 24], sizes = [2, 8, 8], strides = [1, 1, 1]} : vector<2x8x32xf32> to vector<2x8x8xf32>
    %705 = arith.truncf %704 : vector<2x8x8xf32> to vector<2x8x8xbf16>
    "tpu.trace_start"() <{level = 10 : i32, message = "bqk,bkd->bqd"}> : () -> ()
    %cst_265 = arith.constant dense<0.000000e+00> : vector<2x8x8xf32>
    %706 = tpu.matmul %703, %705, %cst_265 {dimension_numbers = #tpu.dot_dimension_numbers<[2], [1], [1], [2], [0, 0, 0, 1, 1, 2], [0], [0]>} : vector<2x8x8xbf16>, vector<2x8x8xbf16>, vector<2x8x8xf32> -> vector<2x8x8xf32>
    "tpu.trace_stop"() : () -> ()
    %707 = tpu.concatenate %652, %670, %688, %706 in 2 : vector<2x8x8xf32>, vector<2x8x8xf32>, vector<2x8x8xf32>, vector<2x8x8xf32> -> vector<2x8x32xf32>
    %708 = vector.shape_cast %707 : vector<2x8x32xf32> to vector<16x32xf32>
    %709 = arith.truncf %708 : vector<16x32xf32> to vector<16x32xbf16>
    %cst_266 = arith.constant dense<0.000000e+00> : vector<16x32xf32>
    %710 = tpu.matmul %709, %608, %cst_266 {dimension_numbers = #tpu.dot_dimension_numbers<[1], [0], [0], [1], [0, 0, 1, 1], [], []>} : vector<16x32xbf16>, vector<32x32xbf16>, vector<16x32xf32> -> vector<16x32xf32>
    %711 = vector.broadcast %609 : vector<1x32xf32> to vector<16x32xf32>
    %712 = arith.addf %710, %711 : vector<16x32xf32>
    %713 = vector.shape_cast %712 : vector<16x32xf32> to vector<2x8x32xf32>
    %714 = arith.addf %605, %713 : vector<2x8x32xf32>
    %cst_267 = arith.constant dense<0.000000e+00> : vector<2x8xf32>
    %715 = vector.multi_reduction <add>, %714, %cst_267 [2] : vector<2x8x32xf32> to vector<2x8xf32>
    %716 = vector.shape_cast %715 : vector<2x8xf32> to vector<2x8x1xf32>
    %cst_268 = arith.constant 3.200000e+01 : f32
    %717 = vector.broadcast %cst_268 : f32 to vector<2x8x1xf32>
    %718 = arith.divf %716, %717 : vector<2x8x1xf32>
    %719 = vector.broadcast %718 : vector<2x8x1xf32> to vector<2x8x32xf32>
    %720 = arith.subf %714, %719 : vector<2x8x32xf32>
    %721 = arith.mulf %720, %720 : vector<2x8x32xf32>
    %cst_269 = arith.constant dense<0.000000e+00> : vector<2x8xf32>
    %722 = vector.multi_reduction <add>, %721, %cst_269 [2] : vector<2x8x32xf32> to vector<2x8xf32>
    %723 = vector.shape_cast %722 : vector<2x8xf32> to vector<2x8x1xf32>
    %cst_270 = arith.constant 3.200000e+01 : f32
    %724 = vector.broadcast %cst_270 : f32 to vector<2x8x1xf32>
    %725 = arith.divf %723, %724 : vector<2x8x1xf32>
    %cst_271 = arith.constant 9.99999974E-6 : f32
    %726 = vector.broadcast %cst_271 : f32 to vector<2x8x1xf32>
    %727 = arith.addf %725, %726 : vector<2x8x1xf32>
    %728 = math.rsqrt %727 : vector<2x8x1xf32>
    %729 = vector.broadcast %728 : vector<2x8x1xf32> to vector<2x8x32xf32>
    %730 = arith.mulf %720, %729 : vector<2x8x32xf32>
    %731 = vector.shape_cast %610 : vector<1x32xf32> to vector<1x1x32xf32>
    %732 = vector.broadcast %731 : vector<1x1x32xf32> to vector<2x8x32xf32>
    %733 = arith.mulf %730, %732 : vector<2x8x32xf32>
    %734 = vector.shape_cast %611 : vector<1x32xf32> to vector<1x1x32xf32>
    %735 = vector.broadcast %734 : vector<1x1x32xf32> to vector<2x8x32xf32>
    %736 = arith.addf %733, %735 : vector<2x8x32xf32>
    %737 = vector.shape_cast %736 : vector<2x8x32xf32> to vector<16x32xf32>
    %738 = arith.truncf %737 : vector<16x32xf32> to vector<16x32xbf16>
    %cst_272 = arith.constant dense<0.000000e+00> : vector<16x32xf32>
    %739 = tpu.matmul %738, %612, %cst_272 {dimension_numbers = #tpu.dot_dimension_numbers<[1], [0], [0], [1], [0, 0, 1, 1], [], []>} : vector<16x32xbf16>, vector<32x32xbf16>, vector<16x32xf32> -> vector<16x32xf32>
    %740 = vector.broadcast %613 : vector<1x32xf32> to vector<16x32xf32>
    %741 = arith.addf %739, %740 : vector<16x32xf32>
    %742 = vector.shape_cast %741 : vector<16x32xf32> to vector<2x8x32xf32>
    %743 = vector.shape_cast %320 : vector<2x8x32xf32> to vector<16x32xf32>
    %744 = arith.truncf %743 : vector<16x32xf32> to vector<16x32xbf16>
    %cst_273 = arith.constant dense<0.000000e+00> : vector<16x64xf32>
    %745 = tpu.matmul %744, %614, %cst_273 {dimension_numbers = #tpu.dot_dimension_numbers<[1], [0], [0], [1], [0, 0, 1, 1], [], []>} : vector<16x32xbf16>, vector<32x64xbf16>, vector<16x64xf32> -> vector<16x64xf32>
    %746 = vector.broadcast %615 : vector<1x64xf32> to vector<16x64xf32>
    %747 = arith.addf %745, %746 : vector<16x64xf32>
    %748 = vector.shape_cast %747 : vector<16x64xf32> to vector<2x8x64xf32>
    %749 = vector.extract_strided_slice %748 {offsets = [0, 0, 0], sizes = [2, 8, 32], strides = [1, 1, 1]} : vector<2x8x64xf32> to vector<2x8x32xf32>
    %750 = vector.extract_strided_slice %748 {offsets = [0, 0, 32], sizes = [2, 8, 32], strides = [1, 1, 1]} : vector<2x8x64xf32> to vector<2x8x32xf32>
    %751 = vector.extract_strided_slice %742 {offsets = [0, 0, 0], sizes = [2, 8, 8], strides = [1, 1, 1]} : vector<2x8x32xf32> to vector<2x8x8xf32>
    %752 = arith.truncf %751 : vector<2x8x8xf32> to vector<2x8x8xbf16>
    %753 = vector.extract_strided_slice %749 {offsets = [0, 0, 0], sizes = [2, 8, 8], strides = [1, 1, 1]} : vector<2x8x32xf32> to vector<2x8x8xf32>
    %754 = arith.truncf %753 : vector<2x8x8xf32> to vector<2x8x8xbf16>
    "tpu.trace_start"() <{level = 10 : i32, message = "bqd,bkd->bqk"}> : () -> ()
    %cst_274 = arith.constant dense<0.000000e+00> : vector<2x8x8xf32>
    %755 = tpu.matmul %752, %754, %cst_274 {dimension_numbers = #tpu.dot_dimension_numbers<[2], [2], [1], [1], [0, 0, 0, 1, 1, 1], [0], [0]>} : vector<2x8x8xbf16>, vector<2x8x8xbf16>, vector<2x8x8xf32> -> vector<2x8x8xf32>
    "tpu.trace_stop"() : () -> ()
    %cst_275 = arith.constant dense<0xFF800000> : vector<2x8xf32>
    %756 = vector.multi_reduction <maximumf>, %755, %cst_275 [2] : vector<2x8x8xf32> to vector<2x8xf32>
    %757 = vector.shape_cast %756 : vector<2x8xf32> to vector<2x8x1xf32>
    %758 = vector.broadcast %757 : vector<2x8x1xf32> to vector<2x8x8xf32>
    %759 = arith.subf %755, %758 : vector<2x8x8xf32>
    %760 = math.exp %759 : vector<2x8x8xf32>
    %cst_276 = arith.constant dense<0.000000e+00> : vector<2x8xf32>
    %761 = vector.multi_reduction <add>, %760, %cst_276 [2] : vector<2x8x8xf32> to vector<2x8xf32>
    %762 = vector.shape_cast %761 : vector<2x8xf32> to vector<2x8x1xf32>
    %763 = vector.broadcast %762 : vector<2x8x1xf32> to vector<2x8x8xf32>
    %764 = arith.divf %760, %763 : vector<2x8x8xf32>
    %765 = arith.truncf %764 : vector<2x8x8xf32> to vector<2x8x8xbf16>
    %766 = vector.extract_strided_slice %750 {offsets = [0, 0, 0], sizes = [2, 8, 8], strides = [1, 1, 1]} : vector<2x8x32xf32> to vector<2x8x8xf32>
    %767 = arith.truncf %766 : vector<2x8x8xf32> to vector<2x8x8xbf16>
    "tpu.trace_start"() <{level = 10 : i32, message = "bqk,bkd->bqd"}> : () -> ()
    %cst_277 = arith.constant dense<0.000000e+00> : vector<2x8x8xf32>
    %768 = tpu.matmul %765, %767, %cst_277 {dimension_numbers = #tpu.dot_dimension_numbers<[2], [1], [1], [2], [0, 0, 0, 1, 1, 2], [0], [0]>} : vector<2x8x8xbf16>, vector<2x8x8xbf16>, vector<2x8x8xf32> -> vector<2x8x8xf32>
    "tpu.trace_stop"() : () -> ()
    %769 = vector.extract_strided_slice %742 {offsets = [0, 0, 8], sizes = [2, 8, 8], strides = [1, 1, 1]} : vector<2x8x32xf32> to vector<2x8x8xf32>
    %770 = arith.truncf %769 : vector<2x8x8xf32> to vector<2x8x8xbf16>
    %771 = vector.extract_strided_slice %749 {offsets = [0, 0, 8], sizes = [2, 8, 8], strides = [1, 1, 1]} : vector<2x8x32xf32> to vector<2x8x8xf32>
    %772 = arith.truncf %771 : vector<2x8x8xf32> to vector<2x8x8xbf16>
    "tpu.trace_start"() <{level = 10 : i32, message = "bqd,bkd->bqk"}> : () -> ()
    %cst_278 = arith.constant dense<0.000000e+00> : vector<2x8x8xf32>
    %773 = tpu.matmul %770, %772, %cst_278 {dimension_numbers = #tpu.dot_dimension_numbers<[2], [2], [1], [1], [0, 0, 0, 1, 1, 1], [0], [0]>} : vector<2x8x8xbf16>, vector<2x8x8xbf16>, vector<2x8x8xf32> -> vector<2x8x8xf32>
    "tpu.trace_stop"() : () -> ()
    %cst_279 = arith.constant dense<0xFF800000> : vector<2x8xf32>
    %774 = vector.multi_reduction <maximumf>, %773, %cst_279 [2] : vector<2x8x8xf32> to vector<2x8xf32>
    %775 = vector.shape_cast %774 : vector<2x8xf32> to vector<2x8x1xf32>
    %776 = vector.broadcast %775 : vector<2x8x1xf32> to vector<2x8x8xf32>
    %777 = arith.subf %773, %776 : vector<2x8x8xf32>
    %778 = math.exp %777 : vector<2x8x8xf32>
    %cst_280 = arith.constant dense<0.000000e+00> : vector<2x8xf32>
    %779 = vector.multi_reduction <add>, %778, %cst_280 [2] : vector<2x8x8xf32> to vector<2x8xf32>
    %780 = vector.shape_cast %779 : vector<2x8xf32> to vector<2x8x1xf32>
    %781 = vector.broadcast %780 : vector<2x8x1xf32> to vector<2x8x8xf32>
    %782 = arith.divf %778, %781 : vector<2x8x8xf32>
    %783 = arith.truncf %782 : vector<2x8x8xf32> to vector<2x8x8xbf16>
    %784 = vector.extract_strided_slice %750 {offsets = [0, 0, 8], sizes = [2, 8, 8], strides = [1, 1, 1]} : vector<2x8x32xf32> to vector<2x8x8xf32>
    %785 = arith.truncf %784 : vector<2x8x8xf32> to vector<2x8x8xbf16>
    "tpu.trace_start"() <{level = 10 : i32, message = "bqk,bkd->bqd"}> : () -> ()
    %cst_281 = arith.constant dense<0.000000e+00> : vector<2x8x8xf32>
    %786 = tpu.matmul %783, %785, %cst_281 {dimension_numbers = #tpu.dot_dimension_numbers<[2], [1], [1], [2], [0, 0, 0, 1, 1, 2], [0], [0]>} : vector<2x8x8xbf16>, vector<2x8x8xbf16>, vector<2x8x8xf32> -> vector<2x8x8xf32>
    "tpu.trace_stop"() : () -> ()
    %787 = vector.extract_strided_slice %742 {offsets = [0, 0, 16], sizes = [2, 8, 8], strides = [1, 1, 1]} : vector<2x8x32xf32> to vector<2x8x8xf32>
    %788 = arith.truncf %787 : vector<2x8x8xf32> to vector<2x8x8xbf16>
    %789 = vector.extract_strided_slice %749 {offsets = [0, 0, 16], sizes = [2, 8, 8], strides = [1, 1, 1]} : vector<2x8x32xf32> to vector<2x8x8xf32>
    %790 = arith.truncf %789 : vector<2x8x8xf32> to vector<2x8x8xbf16>
    "tpu.trace_start"() <{level = 10 : i32, message = "bqd,bkd->bqk"}> : () -> ()
    %cst_282 = arith.constant dense<0.000000e+00> : vector<2x8x8xf32>
    %791 = tpu.matmul %788, %790, %cst_282 {dimension_numbers = #tpu.dot_dimension_numbers<[2], [2], [1], [1], [0, 0, 0, 1, 1, 1], [0], [0]>} : vector<2x8x8xbf16>, vector<2x8x8xbf16>, vector<2x8x8xf32> -> vector<2x8x8xf32>
    "tpu.trace_stop"() : () -> ()
    %cst_283 = arith.constant dense<0xFF800000> : vector<2x8xf32>
    %792 = vector.multi_reduction <maximumf>, %791, %cst_283 [2] : vector<2x8x8xf32> to vector<2x8xf32>
    %793 = vector.shape_cast %792 : vector<2x8xf32> to vector<2x8x1xf32>
    %794 = vector.broadcast %793 : vector<2x8x1xf32> to vector<2x8x8xf32>
    %795 = arith.subf %791, %794 : vector<2x8x8xf32>
    %796 = math.exp %795 : vector<2x8x8xf32>
    %cst_284 = arith.constant dense<0.000000e+00> : vector<2x8xf32>
    %797 = vector.multi_reduction <add>, %796, %cst_284 [2] : vector<2x8x8xf32> to vector<2x8xf32>
    %798 = vector.shape_cast %797 : vector<2x8xf32> to vector<2x8x1xf32>
    %799 = vector.broadcast %798 : vector<2x8x1xf32> to vector<2x8x8xf32>
    %800 = arith.divf %796, %799 : vector<2x8x8xf32>
    %801 = arith.truncf %800 : vector<2x8x8xf32> to vector<2x8x8xbf16>
    %802 = vector.extract_strided_slice %750 {offsets = [0, 0, 16], sizes = [2, 8, 8], strides = [1, 1, 1]} : vector<2x8x32xf32> to vector<2x8x8xf32>
    %803 = arith.truncf %802 : vector<2x8x8xf32> to vector<2x8x8xbf16>
    "tpu.trace_start"() <{level = 10 : i32, message = "bqk,bkd->bqd"}> : () -> ()
    %cst_285 = arith.constant dense<0.000000e+00> : vector<2x8x8xf32>
    %804 = tpu.matmul %801, %803, %cst_285 {dimension_numbers = #tpu.dot_dimension_numbers<[2], [1], [1], [2], [0, 0, 0, 1, 1, 2], [0], [0]>} : vector<2x8x8xbf16>, vector<2x8x8xbf16>, vector<2x8x8xf32> -> vector<2x8x8xf32>
    "tpu.trace_stop"() : () -> ()
    %805 = vector.extract_strided_slice %742 {offsets = [0, 0, 24], sizes = [2, 8, 8], strides = [1, 1, 1]} : vector<2x8x32xf32> to vector<2x8x8xf32>
    %806 = arith.truncf %805 : vector<2x8x8xf32> to vector<2x8x8xbf16>
    %807 = vector.extract_strided_slice %749 {offsets = [0, 0, 24], sizes = [2, 8, 8], strides = [1, 1, 1]} : vector<2x8x32xf32> to vector<2x8x8xf32>
    %808 = arith.truncf %807 : vector<2x8x8xf32> to vector<2x8x8xbf16>
    "tpu.trace_start"() <{level = 10 : i32, message = "bqd,bkd->bqk"}> : () -> ()
    %cst_286 = arith.constant dense<0.000000e+00> : vector<2x8x8xf32>
    %809 = tpu.matmul %806, %808, %cst_286 {dimension_numbers = #tpu.dot_dimension_numbers<[2], [2], [1], [1], [0, 0, 0, 1, 1, 1], [0], [0]>} : vector<2x8x8xbf16>, vector<2x8x8xbf16>, vector<2x8x8xf32> -> vector<2x8x8xf32>
    "tpu.trace_stop"() : () -> ()
    %cst_287 = arith.constant dense<0xFF800000> : vector<2x8xf32>
    %810 = vector.multi_reduction <maximumf>, %809, %cst_287 [2] : vector<2x8x8xf32> to vector<2x8xf32>
    %811 = vector.shape_cast %810 : vector<2x8xf32> to vector<2x8x1xf32>
    %812 = vector.broadcast %811 : vector<2x8x1xf32> to vector<2x8x8xf32>
    %813 = arith.subf %809, %812 : vector<2x8x8xf32>
    %814 = math.exp %813 : vector<2x8x8xf32>
    %cst_288 = arith.constant dense<0.000000e+00> : vector<2x8xf32>
    %815 = vector.multi_reduction <add>, %814, %cst_288 [2] : vector<2x8x8xf32> to vector<2x8xf32>
    %816 = vector.shape_cast %815 : vector<2x8xf32> to vector<2x8x1xf32>
    %817 = vector.broadcast %816 : vector<2x8x1xf32> to vector<2x8x8xf32>
    %818 = arith.divf %814, %817 : vector<2x8x8xf32>
    %819 = arith.truncf %818 : vector<2x8x8xf32> to vector<2x8x8xbf16>
    %820 = vector.extract_strided_slice %750 {offsets = [0, 0, 24], sizes = [2, 8, 8], strides = [1, 1, 1]} : vector<2x8x32xf32> to vector<2x8x8xf32>
    %821 = arith.truncf %820 : vector<2x8x8xf32> to vector<2x8x8xbf16>
    "tpu.trace_start"() <{level = 10 : i32, message = "bqk,bkd->bqd"}> : () -> ()
    %cst_289 = arith.constant dense<0.000000e+00> : vector<2x8x8xf32>
    %822 = tpu.matmul %819, %821, %cst_289 {dimension_numbers = #tpu.dot_dimension_numbers<[2], [1], [1], [2], [0, 0, 0, 1, 1, 2], [0], [0]>} : vector<2x8x8xbf16>, vector<2x8x8xbf16>, vector<2x8x8xf32> -> vector<2x8x8xf32>
    "tpu.trace_stop"() : () -> ()
    %823 = tpu.concatenate %768, %786, %804, %822 in 2 : vector<2x8x8xf32>, vector<2x8x8xf32>, vector<2x8x8xf32>, vector<2x8x8xf32> -> vector<2x8x32xf32>
    %824 = vector.shape_cast %823 : vector<2x8x32xf32> to vector<16x32xf32>
    %825 = arith.truncf %824 : vector<16x32xf32> to vector<16x32xbf16>
    %cst_290 = arith.constant dense<0.000000e+00> : vector<16x32xf32>
    %826 = tpu.matmul %825, %616, %cst_290 {dimension_numbers = #tpu.dot_dimension_numbers<[1], [0], [0], [1], [0, 0, 1, 1], [], []>} : vector<16x32xbf16>, vector<32x32xbf16>, vector<16x32xf32> -> vector<16x32xf32>
    %827 = vector.broadcast %617 : vector<1x32xf32> to vector<16x32xf32>
    %828 = arith.addf %826, %827 : vector<16x32xf32>
    %829 = vector.shape_cast %828 : vector<16x32xf32> to vector<2x8x32xf32>
    %830 = arith.addf %736, %829 : vector<2x8x32xf32>
    %cst_291 = arith.constant dense<0.000000e+00> : vector<2x8xf32>
    %831 = vector.multi_reduction <add>, %830, %cst_291 [2] : vector<2x8x32xf32> to vector<2x8xf32>
    %832 = vector.shape_cast %831 : vector<2x8xf32> to vector<2x8x1xf32>
    %cst_292 = arith.constant 3.200000e+01 : f32
    %833 = vector.broadcast %cst_292 : f32 to vector<2x8x1xf32>
    %834 = arith.divf %832, %833 : vector<2x8x1xf32>
    %835 = vector.broadcast %834 : vector<2x8x1xf32> to vector<2x8x32xf32>
    %836 = arith.subf %830, %835 : vector<2x8x32xf32>
    %837 = arith.mulf %836, %836 : vector<2x8x32xf32>
    %cst_293 = arith.constant dense<0.000000e+00> : vector<2x8xf32>
    %838 = vector.multi_reduction <add>, %837, %cst_293 [2] : vector<2x8x32xf32> to vector<2x8xf32>
    %839 = vector.shape_cast %838 : vector<2x8xf32> to vector<2x8x1xf32>
    %cst_294 = arith.constant 3.200000e+01 : f32
    %840 = vector.broadcast %cst_294 : f32 to vector<2x8x1xf32>
    %841 = arith.divf %839, %840 : vector<2x8x1xf32>
    %cst_295 = arith.constant 9.99999974E-6 : f32
    %842 = vector.broadcast %cst_295 : f32 to vector<2x8x1xf32>
    %843 = arith.addf %841, %842 : vector<2x8x1xf32>
    %844 = math.rsqrt %843 : vector<2x8x1xf32>
    %845 = vector.broadcast %844 : vector<2x8x1xf32> to vector<2x8x32xf32>
    %846 = arith.mulf %836, %845 : vector<2x8x32xf32>
    %847 = vector.shape_cast %618 : vector<1x32xf32> to vector<1x1x32xf32>
    %848 = vector.broadcast %847 : vector<1x1x32xf32> to vector<2x8x32xf32>
    %849 = arith.mulf %846, %848 : vector<2x8x32xf32>
    %850 = vector.shape_cast %619 : vector<1x32xf32> to vector<1x1x32xf32>
    %851 = vector.broadcast %850 : vector<1x1x32xf32> to vector<2x8x32xf32>
    %852 = arith.addf %849, %851 : vector<2x8x32xf32>
    %853 = vector.shape_cast %852 : vector<2x8x32xf32> to vector<16x32xf32>
    %854 = arith.truncf %853 : vector<16x32xf32> to vector<16x32xbf16>
    %cst_296 = arith.constant dense<0.000000e+00> : vector<16x64xf32>
    %855 = tpu.matmul %854, %620, %cst_296 {dimension_numbers = #tpu.dot_dimension_numbers<[1], [0], [0], [1], [0, 0, 1, 1], [], []>} : vector<16x32xbf16>, vector<32x64xbf16>, vector<16x64xf32> -> vector<16x64xf32>
    %856 = vector.broadcast %621 : vector<1x64xf32> to vector<16x64xf32>
    %857 = arith.addf %855, %856 : vector<16x64xf32>
    %858 = vector.shape_cast %857 : vector<16x64xf32> to vector<2x8x64xf32>
    %cst_297 = arith.constant 0.000000e+00 : f32
    %859 = vector.broadcast %cst_297 : f32 to vector<2x8x64xf32>
    %860 = arith.maximumf %858, %859 : vector<2x8x64xf32>
    %861 = vector.shape_cast %860 : vector<2x8x64xf32> to vector<16x64xf32>
    %862 = arith.truncf %861 : vector<16x64xf32> to vector<16x64xbf16>
    %cst_298 = arith.constant dense<0.000000e+00> : vector<16x32xf32>
    %863 = tpu.matmul %862, %622, %cst_298 {dimension_numbers = #tpu.dot_dimension_numbers<[1], [0], [0], [1], [0, 0, 1, 1], [], []>} : vector<16x64xbf16>, vector<64x32xbf16>, vector<16x32xf32> -> vector<16x32xf32>
    %864 = vector.broadcast %623 : vector<1x32xf32> to vector<16x32xf32>
    %865 = arith.addf %863, %864 : vector<16x32xf32>
    %866 = vector.shape_cast %865 : vector<16x32xf32> to vector<2x8x32xf32>
    %867 = arith.addf %852, %866 : vector<2x8x32xf32>
    %cst_299 = arith.constant dense<0.000000e+00> : vector<2x8xf32>
    %868 = vector.multi_reduction <add>, %867, %cst_299 [2] : vector<2x8x32xf32> to vector<2x8xf32>
    %869 = vector.shape_cast %868 : vector<2x8xf32> to vector<2x8x1xf32>
    %cst_300 = arith.constant 3.200000e+01 : f32
    %870 = vector.broadcast %cst_300 : f32 to vector<2x8x1xf32>
    %871 = arith.divf %869, %870 : vector<2x8x1xf32>
    %872 = vector.broadcast %871 : vector<2x8x1xf32> to vector<2x8x32xf32>
    %873 = arith.subf %867, %872 : vector<2x8x32xf32>
    %874 = arith.mulf %873, %873 : vector<2x8x32xf32>
    %cst_301 = arith.constant dense<0.000000e+00> : vector<2x8xf32>
    %875 = vector.multi_reduction <add>, %874, %cst_301 [2] : vector<2x8x32xf32> to vector<2x8xf32>
    %876 = vector.shape_cast %875 : vector<2x8xf32> to vector<2x8x1xf32>
    %cst_302 = arith.constant 3.200000e+01 : f32
    %877 = vector.broadcast %cst_302 : f32 to vector<2x8x1xf32>
    %878 = arith.divf %876, %877 : vector<2x8x1xf32>
    %cst_303 = arith.constant 9.99999974E-6 : f32
    %879 = vector.broadcast %cst_303 : f32 to vector<2x8x1xf32>
    %880 = arith.addf %878, %879 : vector<2x8x1xf32>
    %881 = math.rsqrt %880 : vector<2x8x1xf32>
    %882 = vector.broadcast %881 : vector<2x8x1xf32> to vector<2x8x32xf32>
    %883 = arith.mulf %873, %882 : vector<2x8x32xf32>
    %884 = vector.shape_cast %624 : vector<1x32xf32> to vector<1x1x32xf32>
    %885 = vector.broadcast %884 : vector<1x1x32xf32> to vector<2x8x32xf32>
    %886 = arith.mulf %883, %885 : vector<2x8x32xf32>
    %887 = vector.shape_cast %625 : vector<1x32xf32> to vector<1x1x32xf32>
    %888 = vector.broadcast %887 : vector<1x1x32xf32> to vector<2x8x32xf32>
    %889 = arith.addf %886, %888 : vector<2x8x32xf32>
    %c0_304 = arith.constant 0 : index
    %c0_305 = arith.constant 0 : index
    %c0_306 = arith.constant 0 : index
    %890 = vector.load %arg66[%c0_304, %c0_305, %c0_306] : memref<2x8x32xf32, #tpu.memory_space<vmem>>, vector<2x8x32xf32>
    tpu.vector_store %arg66[%c0_304, %c0_305, %c0_306], %889 {strides = array<i32>} : memref<2x8x32xf32, #tpu.memory_space<vmem>>, vector<2x8x32xf32>,
    return
  }
}

</mosaic_0001>

<bundles_post_ra>
// kernel: transformer_forward.1
= control target key start
LH: loop header
LB: loop body
LE: loop exit
PB: predicated region body
PF: predicated region fallthrough
CT: control target
= control target key end

     0   :  { %s10754_s6 = smov 1   ;;  %s10755_s10 = smov 2   ;;  %s12587_s0 = inlined_call_operand.smem [shape: u32[67], index: -1, kind: input, shape index: {}] }
   0x1   :  { %s10881_s5 = sld [smem:[%s12587_s0]]   ;;  %s10756_s14 = smov 3  }
   0x2   :  { %s10886_s9 = sld [smem:[%s12587_s0 + %s10754_s6]]   ;;  %s10757_s18 = smov 4  }
   0x3   :  { %s10891_s13 = sld [smem:[%s12587_s0 + %s10755_s10]]   ;;  %s10758_s22 = smov 5  }
   0x4   :  { %s10896_s17 = sld [smem:[%s12587_s0 + %s10756_s14]]   ;;  %s10759_s26 = smov 6  }
   0x5   :  { %s10901_s21 = sld [smem:[%s12587_s0 + %s10757_s18]]   ;;  %s10760_s30 = smov 7  }
   0x6   :  { %s10906_s25 = sld [smem:[%s12587_s0 + %s10758_s22]]   ;;  %s10761_s4 = smov 8  }
   0x7   :  { %12604 = sst [smem:[#allocation75_spill]] %s10881_s5  ;;  %s10762_s10 = smov 9  }
   0x8   :  { %12605 = sst [smem:[#allocation76_spill]] %s10886_s9  ;;  %s10763_s15 = smov 10  }
   0x9   :  { %12606 = sst [smem:[#allocation77_spill]] %s10891_s13  ;;  %s10764_s20 = smov 11  }
   0xa   :  { %12607 = sst [smem:[#allocation78_spill]] %s10896_s17  ;;  %s10766_s1 = smov 13  }
   0xb   :  { %12608 = sst [smem:[#allocation79_spill]] %s10901_s21  ;;  %s10767_s7 = smov 14  }
   0xc   :  { %12609 = sst [smem:[#allocation80_spill]] %s10906_s25  ;;  %s10769_s22 = smov 16  }
   0xd   :  { %s10911_s29 = sld [smem:[%s12587_s0 + %s10759_s26]]   ;;  %s10765_s26 = smov 12  }
   0xe   :  { %s10916_s3 = sld [smem:[%s12587_s0 + %s10760_s30]]   ;;  %s10770_s28 = smov 17  }
   0xf   :  { %s10921_s8 = sld [smem:[%s12587_s0 + %s10761_s4]]  }
  0x10   :  { %s10926_s14 = sld [smem:[%s12587_s0 + %s10762_s10]]  }
  0x11   :  { %s10931_s19 = sld [smem:[%s12587_s0 + %s10763_s15]]   ;;  %s10768_s15 = smov 15  }
  0x12   :  { %s10936_s24 = sld [smem:[%s12587_s0 + %s10764_s20]]  }
  0x13   :  { %12610 = sst [smem:[#allocation81_spill]] %s10911_s29 }
  0x14   :  { %12611 = sst [smem:[#allocation82_spill]] %s10916_s3 }
  0x15   :  { %12612 = sst [smem:[#allocation83_spill]] %s10921_s8 }
  0x16   :  { %12613 = sst [smem:[#allocation84_spill]] %s10926_s14 }
  0x17   :  { %12614 = sst [smem:[#allocation85_spill]] %s10931_s19 }
  0x18   :  { %12615 = sst [smem:[#allocation86_spill]] %s10936_s24 }
  0x19   :  { %s10941_s30 = sld [smem:[%s12587_s0 + %s10765_s26]]  }
  0x1a   :  { %s10946_s6 = sld [smem:[%s12587_s0 + %s10766_s1]]  }
  0x1b   :  { %s10951_s12 = sld [smem:[%s12587_s0 + %s10767_s7]]   ;;  %s10771_s7 = smov 18  }
  0x1c   :  { %s10956_s20 = sld [smem:[%s12587_s0 + %s10768_s15]]   ;;  %s10772_s15 = smov 19  }
  0x1d   :  { %s10961_s27 = sld [smem:[%s12587_s0 + %s10769_s22]]   ;;  %s10773_s22 = smov 20  }
  0x1e   :  { %s10966_s4 = sld [smem:[%s12587_s0 + %s10770_s28]]   ;;  %s10774_s28 = smov 21  }
  0x1f   :  { %12616 = sst [smem:[#allocation87_spill]] %s10941_s30 }
  0x20   :  { %12617 = sst [smem:[#allocation88_spill]] %s10946_s6 }
  0x21   :  { %12618 = sst [smem:[#allocation89_spill]] %s10951_s12 }
  0x22   :  { %12619 = sst [smem:[#allocation90_spill]] %s10956_s20 }
  0x23   :  { %12620 = sst [smem:[#allocation91_spill]] %s10961_s27 }
  0x24   :  { %12621 = sst [smem:[#allocation92_spill]] %s10966_s4 }
  0x25   :  { %s10971_s9 = sld [smem:[%s12587_s0 + %s10771_s7]]   ;;  %s10775_s7 = smov 22  }
  0x26   :  { %s10976_s20 = sld [smem:[%s12587_s0 + %s10772_s15]]   ;;  %s10776_s15 = smov 23  }
  0x27   :  { %s10981_s27 = sld [smem:[%s12587_s0 + %s10773_s22]]   ;;  %s10777_s22 = smov 24  }
  0x28   :  { %s10986_s4 = sld [smem:[%s12587_s0 + %s10774_s28]]   ;;  %s10778_s28 = smov 25  }
  0x2b   :  { %12622 = sst [smem:[#allocation93_spill]] %s10971_s9 }
  0x2c   :  { %12623 = sst [smem:[#allocation94_spill]] %s10976_s20 }
  0x2d   :  { %12624 = sst [smem:[#allocation95_spill]] %s10981_s27 }
  0x2e   :  { %12625 = sst [smem:[#allocation96_spill]] %s10986_s4 }
  0x2f   :  { %s10991_s9 = sld [smem:[%s12587_s0 + %s10775_s7]]   ;;  %s10779_s7 = smov 26  }
  0x30   :  { %s10996_s20 = sld [smem:[%s12587_s0 + %s10776_s15]]   ;;  %s10780_s15 = smov 27  }
  0x31   :  { %s11001_s27 = sld [smem:[%s12587_s0 + %s10777_s22]]   ;;  %s10781_s22 = smov 28  }
  0x32   :  { %s11006_s4 = sld [smem:[%s12587_s0 + %s10778_s28]]   ;;  %s10782_s28 = smov 29  }
  0x35   :  { %12626 = sst [smem:[#allocation97_spill]] %s10991_s9 }
  0x36   :  { %12627 = sst [smem:[#allocation98_spill]] %s10996_s20 }
  0x37   :  { %12628 = sst [smem:[#allocation99_spill]] %s11001_s27 }
  0x38   :  { %12629 = sst [smem:[#allocation100_spill]] %s11006_s4 }
  0x39   :  { %s11011_s9 = sld [smem:[%s12587_s0 + %s10779_s7]]   ;;  %s10783_s7 = smov 30  }
  0x3a   :  { %s11016_s20 = sld [smem:[%s12587_s0 + %s10780_s15]]   ;;  %s10784_s15 = smov 31  }
  0x3b   :  { %s11021_s27 = sld [smem:[%s12587_s0 + %s10781_s22]]   ;;  %s10785_s22 = smov 32  }
  0x3c   :  { %s11026_s4 = sld [smem:[%s12587_s0 + %s10782_s28]]   ;;  %s10786_s28 = smov 33  }
  0x3d   :  { %s11036_s6 = sld [smem:[%s12587_s0 + %s10784_s15]]   ;;  %s10788_s15 = smov 35  }
  0x3e   :  { %s11046_s30 = sld [smem:[%s12587_s0 + %s10786_s28]]   ;;  %s10790_s28 = smov 37  }
  0x3f   :  { %12630 = sst [smem:[#allocation101_spill]] %s11011_s9 }
  0x40   :  { %12631 = sst [smem:[#allocation102_spill]] %s11016_s20 }
  0x41   :  { %12632 = sst [smem:[#allocation103_spill]] %s11021_s27 }
  0x42   :  { %s11031_s9 = sld [smem:[%s12587_s0 + %s10783_s7]]   ;;  %s10787_s7 = smov 34  }
  0x43   :  { %s11041_s27 = sld [smem:[%s12587_s0 + %s10785_s22]]   ;;  %s10789_s22 = smov 36  }
  0x44   :  { %s11051_s12 = sld [smem:[%s12587_s0 + %s10787_s7]]   ;;  %s10791_s7 = smov 38  }
  0x45   :  { %s11056_s24 = sld [smem:[%s12587_s0 + %s10788_s15]]   ;;  %s10792_s15 = smov 39  }
  0x46   :  { %s11061_s14 = sld [smem:[%s12587_s0 + %s10789_s22]]   ;;  %s10793_s22 = smov 40  }
  0x47   :  { %s11066_s3 = sld [smem:[%s12587_s0 + %s10790_s28]]   ;;  %s10794_s28 = smov 41  }
  0x48   :  { %12633 = sst [smem:[#allocation104_spill]] %s11031_s9 }
  0x49   :  { %12634 = sst [smem:[#allocation105_spill]] %s11041_s27 }
  0x4a   :  { %12635 = sst [smem:[#allocation106_spill]] %s11051_s12 }
  0x4b   :  { %s11071_s29 = sld [smem:[%s12587_s0 + %s10791_s7]]   ;;  %s10795_s7 = smov 42  }
  0x4c   :  { %12636 = sst [smem:[#allocation107_spill]] %s11061_s14 }
  0x4d   :  { %s11076_s19 = sld [smem:[%s12587_s0 + %s10792_s15]]   ;;  %s10796_s15 = smov 43  }
  0x4e   :  { %s11081_s8 = sld [smem:[%s12587_s0 + %s10793_s22]]   ;;  %s10797_s22 = smov 44  }
  0x4f   :  { %s11086_s25 = sld [smem:[%s12587_s0 + %s10794_s28]]   ;;  %s10798_s28 = smov 45  }
  0x50   :  { %s11091_s21 = sld [smem:[%s12587_s0 + %s10795_s7]]   ;;  %s10799_s7 = smov 46  }
  0x51   :  { %12637 = sst [smem:[#allocation108_spill]] %s11071_s29 }
  0x52   :  { %s11096_s17 = sld [smem:[%s12587_s0 + %s10796_s15]]   ;;  %s10800_s15 = smov 47  }
  0x53   :  { %s11101_s5 = sld [smem:[%s12587_s0 + %s10797_s22]]   ;;  %s10801_s22 = smov 48  }
  0x54   :  { %12638 = sst [smem:[#allocation109_spill]] %s11081_s8 }
  0x55   :  { %s11106_s13 = sld [smem:[%s12587_s0 + %s10798_s28]]   ;;  %s10802_s28 = smov 49  }
  0x56   :  { %12639 = sst [smem:[#allocation110_spill]] %s11091_s21 }
  0x57   :  { %s11111_s21 = sld [smem:[%s12587_s0 + %s10799_s7]]   ;;  %s10803_s7 = smov 50  }
  0x58   :  { %12640 = sst [smem:[#allocation111_spill]] %s11096_s17 }
  0x59   :  { %s11116_s17 = sld [smem:[%s12587_s0 + %s10800_s15]]   ;;  %s10804_s15 = smov 51  }
  0x5a   :  { %s11121_s8 = sld [smem:[%s12587_s0 + %s10801_s22]]   ;;  %s10805_s22 = smov 52  }
  0x5b   :  { %12641 = sst [smem:[#allocation112_spill]] %s11106_s13 }
  0x5c   :  { %s11126_s13 = sld [smem:[%s12587_s0 + %s10802_s28]]   ;;  %s10806_s28 = smov 53  }
  0x5d   :  { %12642 = sst [smem:[#allocation113_spill]] %s11111_s21 }
  0x5e   :  { %s11131_s21 = sld [smem:[%s12587_s0 + %s10803_s7]]   ;;  %s10807_s7 = smov 54  }
  0x5f   :  { %s11136_s29 = sld [smem:[%s12587_s0 + %s10804_s15]]   ;;  %s10808_s15 = smov 55  }
  0x60   :  { %12643 = sst [smem:[#allocation114_spill]] %s11121_s8 }
  0x61   :  { %s11141_s8 = sld [smem:[%s12587_s0 + %s10805_s22]]   ;;  %s10809_s22 = smov 56  }
  0x62   :  { %12644 = sst [smem:[#allocation115_spill]] %s11126_s13 }
  0x63   :  { %s11146_s13 = sld [smem:[%s12587_s0 + %s10806_s28]]   ;;  %s10810_s28 = smov 57  }
  0x64   :  { %s11151_s14 = sld [smem:[%s12587_s0 + %s10807_s7]]   ;;  %s10811_s7 = smov 58  }
  0x65   :  { %12645 = sst [smem:[#allocation116_spill]] %s11136_s29 }
  0x66   :  { %s11156_s29 = sld [smem:[%s12587_s0 + %s10808_s15]]   ;;  %s10812_s15 = smov 59  }
  0x67   :  { %s11161_s12 = sld [smem:[%s12587_s0 + %s10809_s22]]   ;;  %s10813_s22 = smov 60  }
  0x68   :  { %s11171_s27 = sld [smem:[%s12587_s0 + %s10811_s7]]   ;;  %s10815_s7 = smov 62  }
  0x69   :  { %12646 = sst [smem:[#allocation117_spill]] %s11146_s13 }
  0x6a   :  { %s11166_s13 = sld [smem:[%s12587_s0 + %s10810_s28]]   ;;  %s10814_s28 = smov 61  }
  0x6b   :  { %s11181_s9 = sld [smem:[%s12587_s0 + %s10813_s22]]   ;;  %s10817_s22 = smov 64  }
  0x6c   :  { %12647 = sst [smem:[#allocation118_spill]] %s11156_s29 }
  0x6d   :  { %s11176_s29 = sld [smem:[%s12587_s0 + %s10812_s15]]   ;;  %s10816_s15 = smov 63  }
  0x6e   :  { %s11191_s20 = sld [smem:[%s12587_s0 + %s10815_s7]]   ;;  %s10819_s7 = smov 66  }
  0x70   :  { %12648 = sst [smem:[#allocation119_spill]] %s11166_s13 }
  0x71   :  { %12650 = sst [smem:[#allocation121_spill]] %s11181_s9 }
  0x72   :  { %s11186_s13 = sld [smem:[%s12587_s0 + %s10814_s28]]   ;;  %s10818_s28 = smov 65  }
  0x73   :  { %12649 = sst [smem:[#allocation120_spill]] %s11176_s29 }
  0x74   :  { %12652 = sst [smem:[#allocation123_spill]] %s11191_s20 }
  0x75   :  { %s11196_s29 = sld [smem:[%s12587_s0 + %s10816_s15]]  }
  0x76   :  { %s11201_s9 = sld [smem:[%s12587_s0 + %s10817_s22]]  }
  0x77   :  { %s11211_s20 = sld [smem:[%s12587_s0 + %s10819_s7]]  }
  0x78   :  { %12651 = sst [smem:[#allocation122_spill]] %s11186_s13 }
  0x79   :  { %s11206_s13 = sld [smem:[%s12587_s0 + %s10818_s28]]  }
  0x7a   :  { %138 = vsyncpa [#allocation3], 0 }
  0x7b   :  { %139 = vsyncpa [#allocation6], 0 }
  0x7c   :  { %140 = vsyncpa [#allocation9], 0 }
  0x7d   :  { %141 = vsyncpa [#allocation12], 0 }
  0x7e   :  { %142 = vsyncpa [#allocation15], 0 }
  0x7f   :  { %143 = vsyncpa [#allocation18], 0 }
  0x80   :  { %144 = vsyncpa [#allocation21], 0 }
  0x81   :  { %145 = vsyncpa [#allocation24], 0 }
  0x82   :  { %146 = vsyncpa [#allocation27], 0 }
  0x83   :  { %147 = vsyncpa [#allocation30], 0 }
  0x84   :  { %148 = vsyncpa [#allocation33], 0 }
  0x85   :  { %149 = vsyncpa [#allocation36], 0 }
  0x86   :  { %150 = vsyncpa [#allocation39], 0 }
  0x87   :  { %151 = vsyncpa [#allocation42], 0 }
  0x88   :  { %152 = vsyncpa [#allocation45], 0 }
  0x89   :  { %153 = vsyncpa [#allocation48], 0 }
  0x8a   :  { %154 = vsyncpa [#allocation51], 0 }
  0x8b   :  { %155 = vsyncpa [#allocation54], 0 }
  0x8c   :  { %156 = vsyncpa [#allocation4], 0  ;;  %s10820_s0 = smov [#allocation5]   ;;  %s10821_s16 = smov [#allocation8]  }
  0x8d   :  { %s229_s15 = sshll.u32 %s10820_s0, 4  ;;  %s249_s18 = sshll.u32 %s10821_s16, 4  ;;  %s230_s15 = int_to_ptr.vmem [resolvable:$true] %s229_s15  ;;  %s250_s18 = int_to_ptr.vmem [resolvable:$true] %s249_s18 }
  0x8e   :  { %s10024_s22 = scalar_lea.vmem %s230_s15, 16  ;;  %s10028_s23 = scalar_lea.vmem %s230_s15, 32 }
  0x8f   :  { %p10025_p0 = scmp.ne.s32.totalorder %s230_s15, %s10024_s22  ;;  %p10029_p1 = scmp.lt.s32.totalorder %s230_s15, %s230_s15 }
  0x90   :  { %p10030_p2 = scmp.lt.s32.totalorder %s10028_s23, %s10024_s22 }
  0x92   :  { %p10031_p3 = por %p10030_p2, %p10029_p1 }
  0x94   :  { %p10032_p4 = pnand %p10031_p3, %p10025_p0 }
  0x96   :  { %10035 = shalt.err (!%p10032_p4)
}
  0x97   :  { %232 = dma.hbm_to_vmem [thread:$0]  %s11026_s4, 16, %s230_s15, [#allocation6]  }
  0x98   :  { %s10044_s26 = scalar_lea.vmem %s250_s18, 16  ;;  %s10048_s28 = scalar_lea.vmem %s250_s18, 32 }
  0x99   :  { %p10045_p5 = scmp.ne.s32.totalorder %s250_s18, %s10044_s26  ;;  %p10049_p6 = scmp.lt.s32.totalorder %s250_s18, %s250_s18 }
  0x9a   :  { %p10050_p7 = scmp.lt.s32.totalorder %s10048_s28, %s10044_s26 }
  0x9c   :  { %p10051_p8 = por %p10050_p7, %p10049_p6 }
  0x9e   :  { %p10052_p9 = pnand %p10051_p8, %p10045_p5 }
  0xa0   :  { %10055 = shalt.err (!%p10052_p9)
}
  0xa1   :  { %252 = dma.hbm_to_vmem [thread:$0]  %s11036_s6, 16, %s250_s18, [#allocation9]  }
  0xa2   :  { %s10822_s1 = smov [#allocation11]   ;;  %s10823_s7 = smov [#allocation14]  }
  0xa3   :  { %s271_s2 = sshll.u32 %s10822_s1, 4  ;;  %s293_s10 = sshll.u32 %s10823_s7, 4  ;;  %s272_s2 = int_to_ptr.vmem [resolvable:$true] %s271_s2  ;;  %s294_s10 = int_to_ptr.vmem [resolvable:$true] %s293_s10 }
  0xa4   :  { %s10064_s11 = scalar_lea.vmem %s272_s2, 16  ;;  %s10068_s0 = scalar_lea.vmem %s272_s2, 32 }
  0xa5   :  { %p10065_p10 = scmp.ne.s32.totalorder %s272_s2, %s10064_s11  ;;  %p10069_p11 = scmp.lt.s32.totalorder %s272_s2, %s272_s2 }
  0xa6   :  { %p10070_p12 = scmp.lt.s32.totalorder %s10068_s0, %s10064_s11 }
  0xa8   :  { %p10071_p13 = por %p10070_p12, %p10069_p11 }
  0xaa   :  { %p10072_p0 = pnand %p10071_p13, %p10065_p10 }
  0xac   :  { %10075 = shalt.err (!%p10072_p0)
}
  0xad   :  { %274 = dma.hbm_to_vmem [thread:$0]  %s11046_s30, 16, %s272_s2, [#allocation12]  }
  0xae   :  { %s10084_s4 = scalar_lea.vmem %s294_s10, 16  ;;  %s10088_s15 = scalar_lea.vmem %s294_s10, 32 }
  0xaf   :  { %p10085_p1 = scmp.ne.s32.totalorder %s294_s10, %s10084_s4  ;;  %p10089_p2 = scmp.lt.s32.totalorder %s294_s10, %s294_s10 }
  0xb0   :  { %p10090_p3 = scmp.lt.s32.totalorder %s10088_s15, %s10084_s4 }
  0xb2   :  { %p10091_p4 = por %p10090_p3, %p10089_p2 }
  0xb4   :  { %p10092_p5 = pnand %p10091_p4, %p10085_p1 }
  0xb6   :  { %10095 = shalt.err (!%p10092_p5)
}
  0xb7   :  { %296 = dma.hbm_to_vmem [thread:$0]  %s11056_s24, 16, %s294_s10, [#allocation15]  }
  0xb8   :  { %s10824_s6 = smov [#allocation17]   ;;  %s10825_s18 = smov [#allocation20]  }
  0xb9   :  { %s315_s16 = sshll.u32 %s10824_s6, 4  ;;  %s335_s22 = sshll.u32 %s10825_s18, 4  ;;  %s316_s16 = int_to_ptr.vmem [resolvable:$true] %s315_s16  ;;  %s336_s22 = int_to_ptr.vmem [resolvable:$true] %s335_s22 }
  0xba   :  { %s10104_s23 = scalar_lea.vmem %s316_s16, 16  ;;  %s10108_s26 = scalar_lea.vmem %s316_s16, 32 }
  0xbb   :  { %p10105_p6 = scmp.ne.s32.totalorder %s316_s16, %s10104_s23  ;;  %p10109_p7 = scmp.lt.s32.totalorder %s316_s16, %s316_s16 }
  0xbc   :  { %p10110_p8 = scmp.lt.s32.totalorder %s10108_s26, %s10104_s23 }
  0xbe   :  { %p10111_p9 = por %p10110_p8, %p10109_p7 }
  0xc0   :  { %p10112_p10 = pnand %p10111_p9, %p10105_p6 }
  0xc2   :  { %10115 = shalt.err (!%p10112_p10)
}
  0xc3   :  { %318 = dma.hbm_to_vmem [thread:$0]  %s11066_s3, 16, %s316_s16, [#allocation18]  }
  0xc4   :  { %s10124_s30 = scalar_lea.vmem %s336_s22, 16  ;;  %s10128_s28 = scalar_lea.vmem %s336_s22, 32 }
  0xc5   :  { %p10125_p11 = scmp.ne.s32.totalorder %s336_s22, %s10124_s30  ;;  %p10129_p12 = scmp.lt.s32.totalorder %s336_s22, %s336_s22 }
  0xc6   :  { %p10130_p13 = scmp.lt.s32.totalorder %s10128_s28, %s10124_s30 }
  0xc8   :  { %p10131_p0 = por %p10130_p13, %p10129_p12 }
  0xca   :  { %p10132_p1 = pnand %p10131_p0, %p10125_p11 }
  0xcc   :  { %10135 = shalt.err (!%p10132_p1)
}
  0xcd   :  { %338 = dma.hbm_to_vmem [thread:$0]  %s11076_s19, 16, %s336_s22, [#allocation21]  }
  0xce   :  { %s10826_s24 = smov [#allocation23]   ;;  %s10827_s2 = smov [#allocation26]  }
  0xcf   :  { %s357_s1 = sshll.u32 %s10826_s24, 4  ;;  %s379_s7 = sshll.u32 %s10827_s2, 4  ;;  %s358_s1 = int_to_ptr.vmem [resolvable:$true] %s357_s1  ;;  %s380_s7 = int_to_ptr.vmem [resolvable:$true] %s379_s7 }
  0xd0   :  { %s10144_s10 = scalar_lea.vmem %s358_s1, 16  ;;  %s10148_s11 = scalar_lea.vmem %s358_s1, 32 }
  0xd1   :  { %p10145_p2 = scmp.ne.s32.totalorder %s358_s1, %s10144_s10  ;;  %p10149_p3 = scmp.lt.s32.totalorder %s358_s1, %s358_s1 }
  0xd2   :  { %p10150_p4 = scmp.lt.s32.totalorder %s10148_s11, %s10144_s10 }
  0xd4   :  { %p10151_p5 = por %p10150_p4, %p10149_p3 }
  0xd6   :  { %p10152_p6 = pnand %p10151_p5, %p10145_p2 }
  0xd8   :  { %10155 = shalt.err (!%p10152_p6)
}
  0xd9   :  { %360 = dma.hbm_to_vmem [thread:$0]  %s11086_s25, 16, %s358_s1, [#allocation24]  }
  0xda   :  { %s10164_s3 = scalar_lea.vmem %s380_s7, 16  ;;  %s10168_s0 = scalar_lea.vmem %s380_s7, 32 }
  0xdb   :  { %p10165_p7 = scmp.ne.s32.totalorder %s380_s7, %s10164_s3  ;;  %p10169_p8 = scmp.lt.s32.totalorder %s380_s7, %s380_s7 }
  0xdc   :  { %p10170_p9 = scmp.lt.s32.totalorder %s10168_s0, %s10164_s3 }
  0xde   :  { %p10171_p10 = por %p10170_p9, %p10169_p8 }
  0xe0   :  { %p10172_p11 = pnand %p10171_p10, %p10165_p7 }
  0xe2   :  { %10175 = shalt.err (!%p10172_p11)
}
  0xe3   :  { %382 = dma.hbm_to_vmem [thread:$0]  %s11101_s5, 16, %s380_s7, [#allocation27]  }
  0xe4   :  { %s10828_s19 = smov [#allocation29]   ;;  %s10829_s15 = smov [#allocation32]  }
  0xe5   :  { %s401_s4 = sshll.u32 %s10828_s19, 4  ;;  %s423_s6 = sshll.u32 %s10829_s15, 4  ;;  %s402_s4 = int_to_ptr.vmem [resolvable:$true] %s401_s4  ;;  %s424_s6 = int_to_ptr.vmem [resolvable:$true] %s423_s6 }
  0xe6   :  { %s10184_s16 = scalar_lea.vmem %s402_s4, 16  ;;  %s10188_s18 = scalar_lea.vmem %s402_s4, 32 }
  0xe7   :  { %p10185_p12 = scmp.ne.s32.totalorder %s402_s4, %s10184_s16  ;;  %p10189_p13 = scmp.lt.s32.totalorder %s402_s4, %s402_s4 }
  0xe8   :  { %p10190_p0 = scmp.lt.s32.totalorder %s10188_s18, %s10184_s16 }
  0xea   :  { %p10191_p1 = por %p10190_p0, %p10189_p13 }
  0xec   :  { %p10192_p2 = pnand %p10191_p1, %p10185_p12 }
  0xee   :  { %10195 = shalt.err (!%p10192_p2)
}
  0xef   :  { %404 = dma.hbm_to_vmem [thread:$0]  %s11116_s17, 16, %s402_s4, [#allocation30]  }
  0xf0   :  { %s10204_s25 = scalar_lea.vmem %s424_s6, 16  ;;  %s10208_s22 = scalar_lea.vmem %s424_s6, 32 }
  0xf1   :  { %p10205_p3 = scmp.ne.s32.totalorder %s424_s6, %s10204_s25  ;;  %p10209_p4 = scmp.lt.s32.totalorder %s424_s6, %s424_s6 }
  0xf2   :  { %p10210_p5 = scmp.lt.s32.totalorder %s10208_s22, %s10204_s25 }
  0xf4   :  { %p10211_p6 = por %p10210_p5, %p10209_p4 }
  0xf6   :  { %p10212_p7 = pnand %p10211_p6, %p10205_p3 }
  0xf8   :  { %10215 = shalt.err (!%p10212_p7)
}
  0xf9   :  { %426 = dma.hbm_to_vmem [thread:$0]  %s11131_s21, 16, %s424_s6, [#allocation33]  }
  0xfa   :  { %s10830_s5 = smov [#allocation35]   ;;  %s10831_s26 = smov [#allocation38]  }
  0xfb   :  { %s442_s23 = sshll.u32 %s10830_s5, 4  ;;  %s464_s30 = sshll.u32 %s10831_s26, 4  ;;  %s443_s23 = int_to_ptr.vmem [resolvable:$true] %s442_s23  ;;  %s465_s30 = int_to_ptr.vmem [resolvable:$true] %s464_s30 }
  0xfc   :  { %s10224_s28 = scalar_lea.vmem %s443_s23, 256  ;;  %p10229_p9 = scmp.lt.s32.totalorder %s443_s23, %s443_s23 }
  0xfd   :  { %p10225_p8 = scmp.ne.s32.totalorder %s443_s23, %s10224_s28  ;;  %p10230_p10 = scmp.lt.s32.totalorder %s10224_s28, %s10224_s28 }
  0xff   :  { %p10231_p11 = por %p10230_p10, %p10229_p9 }
 0x101   :  { %p10232_p12 = pnand %p10231_p11, %p10225_p8 }
 0x103   :  { %10235 = shalt.err (!%p10232_p12)
}
 0x104   :  { %s10832_s17 = smov 64   ;;  %s10833_s24 = smov 4  }
 0x105   :  { %448 = dma.hbm_to_vmem [thread:$0]  %s11141_s8, 256, %s443_s23, [#allocation36], %s10832_s17, %s10832_s17, %s10833_s24  }
 0x106   :  { %s10244_s21 = scalar_lea.vmem %s465_s30, 256  ;;  %p10249_p0 = scmp.lt.s32.totalorder %s465_s30, %s465_s30 }
 0x107   :  { %p10245_p13 = scmp.ne.s32.totalorder %s465_s30, %s10244_s21  ;;  %p10250_p1 = scmp.lt.s32.totalorder %s10244_s21, %s10244_s21 }
 0x109   :  { %p10251_p2 = por %p10250_p1, %p10249_p0 }
 0x10b   :  { %p10252_p3 = pnand %p10251_p2, %p10245_p13 }
 0x10d   :  { %10255 = shalt.err (!%p10252_p3)
}
 0x10e   :  { %470 = dma.hbm_to_vmem [thread:$0]  %s11151_s14, 256, %s465_s30, [#allocation39], %s10832_s17, %s10832_s17, %s10833_s24  }
 0x10f   :  { %s10834_s1 = smov [#allocation41]   ;;  %s10835_s7 = smov [#allocation44]  }
 0x110   :  { %s486_s2 = sshll.u32 %s10834_s1, 4  ;;  %s509_s10 = sshll.u32 %s10835_s7, 4  ;;  %s487_s2 = int_to_ptr.vmem [resolvable:$true] %s486_s2  ;;  %s510_s10 = int_to_ptr.vmem [resolvable:$true] %s509_s10 }
 0x111   :  { %s10264_s11 = scalar_lea.vmem %s487_s2, 256  ;;  %p10269_p5 = scmp.lt.s32.totalorder %s487_s2, %s487_s2 }
 0x112   :  { %p10265_p4 = scmp.ne.s32.totalorder %s487_s2, %s10264_s11  ;;  %p10270_p6 = scmp.lt.s32.totalorder %s10264_s11, %s10264_s11 }
 0x114   :  { %p10271_p7 = por %p10270_p6, %p10269_p5 }
 0x116   :  { %p10272_p8 = pnand %p10271_p7, %p10265_p4 }
 0x118   :  { %10275 = shalt.err (!%p10272_p8)
}
 0x119   :  { %492 = dma.hbm_to_vmem [thread:$0]  %s11161_s12, 256, %s487_s2, [#allocation42], %s10832_s17, %s10832_s17, %s10833_s24  }
 0x11a   :  { %s10284_s8 = scalar_lea.vmem %s510_s10, 16  ;;  %s10288_s14 = scalar_lea.vmem %s510_s10, 32 }
 0x11b   :  { %p10285_p9 = scmp.ne.s32.totalorder %s510_s10, %s10284_s8  ;;  %p10289_p10 = scmp.lt.s32.totalorder %s510_s10, %s510_s10 }
 0x11c   :  { %p10290_p11 = scmp.lt.s32.totalorder %s10288_s14, %s10284_s8 }
 0x11e   :  { %p10291_p12 = por %p10290_p11, %p10289_p10 }
 0x120   :  { %p10292_p13 = pnand %p10291_p12, %p10285_p9 }
 0x122   :  { %10295 = shalt.err (!%p10292_p13)
}
 0x123   :  { %512 = dma.hbm_to_vmem [thread:$0]  %s11171_s27, 16, %s510_s10, [#allocation45]  }
 0x124   :  { %s10836_s3 = smov [#allocation47]   ;;  %s10837_s19 = smov [#allocation50]  }
 0x125   :  { %s528_s0 = sshll.u32 %s10836_s3, 4  ;;  %s553_s4 = sshll.u32 %s10837_s19, 4  ;;  %s529_s0 = int_to_ptr.vmem [resolvable:$true] %s528_s0  ;;  %s554_s4 = int_to_ptr.vmem [resolvable:$true] %s553_s4 }
 0x126   :  { %s10304_s15 = scalar_lea.vmem %s529_s0, 256  ;;  %p10309_p1 = scmp.lt.s32.totalorder %s529_s0, %s529_s0 }
 0x127   :  { %p10305_p0 = scmp.ne.s32.totalorder %s529_s0, %s10304_s15  ;;  %p10310_p2 = scmp.lt.s32.totalorder %s10304_s15, %s10304_s15 }
 0x129   :  { %p10311_p3 = por %p10310_p2, %p10309_p1 }
 0x12b   :  { %p10312_p4 = pnand %p10311_p3, %p10305_p0 }
 0x12d   :  { %10315 = shalt.err (!%p10312_p4)
}
 0x12e   :  { %s12653_s12 = sld [smem:[#allocation121_spill]]  ;;  %s10324_s6 = scalar_lea.vmem %s554_s4, 16 }
 0x12f   :  { %p10325_p5 = scmp.ne.s32.totalorder %s554_s4, %s10324_s6  ;;  %s10328_s27 = scalar_lea.vmem %s554_s4, 32 }
 0x130   :  { %p10329_p6 = scmp.lt.s32.totalorder %s554_s4, %s554_s4  ;;  %p10330_p7 = scmp.lt.s32.totalorder %s10328_s27, %s10324_s6 }
 0x132   :  { %p10331_p8 = por %p10330_p7, %p10329_p6 }
 0x134   :  { %534 = dma.hbm_to_vmem [thread:$0]  %s12653_s12, 256, %s529_s0, [#allocation48], %s10832_s17, %s10832_s17, %s10833_s24  }
 0x135   :  { %p10332_p9 = pnand %p10331_p8, %p10325_p5 }
 0x137   :  { %10335 = shalt.err (!%p10332_p9)
}
 0x138   :  { %556 = dma.hbm_to_vmem [thread:$0]  %s11196_s29, 16, %s554_s4, [#allocation51]  }
 0x139   :  { %s10838_s16 = smov [#allocation2]   ;;  %s10839_s25 = smov [#allocation7]  }
 0x13a   :  { %s217_s18 = sshll.u32 %s10838_s16, 4  ;;  %s239_s22 = sshll.u32 %s10839_s25, 4  ;;  %s218_s18 = int_to_ptr.vmem [resolvable:$true] %s217_s18  ;;  %s240_s22 = int_to_ptr.vmem [resolvable:$true] %s239_s22 }
 0x13b   :  { %s10344_s5 = scalar_lea.vmem %s218_s18, 16  ;;  %s10348_s23 = scalar_lea.vmem %s218_s18, 32 }
 0x13c   :  { %p10345_p10 = scmp.ne.s32.totalorder %s218_s18, %s10344_s5  ;;  %p10349_p11 = scmp.lt.s32.totalorder %s218_s18, %s218_s18 }
 0x13d   :  { %p10350_p12 = scmp.lt.s32.totalorder %s10348_s23, %s10344_s5 }
 0x13f   :  { %p10351_p13 = por %p10350_p12, %p10349_p11 }
 0x141   :  { %p10352_p0 = pnand %p10351_p13, %p10345_p10 }
 0x143   :  { %10355 = shalt.err (!%p10352_p0)
}
 0x144   :  { %s12654_s26 = sld [smem:[#allocation102_spill]]  ;;  %s10364_s30 = scalar_lea.vmem %s240_s22, 16 }
 0x145   :  { %p10365_p1 = scmp.ne.s32.totalorder %s240_s22, %s10364_s30  ;;  %s10368_s28 = scalar_lea.vmem %s240_s22, 32 }
 0x146   :  { %p10369_p2 = scmp.lt.s32.totalorder %s240_s22, %s240_s22  ;;  %p10370_p3 = scmp.lt.s32.totalorder %s10368_s28, %s10364_s30 }
 0x148   :  { %p10371_p4 = por %p10370_p3, %p10369_p2 }
 0x14a   :  { %220 = dma.hbm_to_vmem [thread:$0]  %s12654_s26, 16, %s218_s18, [#allocation3]  }
 0x14b   :  { %p10372_p5 = pnand %p10371_p4, %p10365_p1 }
 0x14d   :  { %10375 = shalt.err (!%p10372_p5)
}
 0x14e   :  { %s12655_s29 = sld [smem:[#allocation104_spill]]  ;;  %s10840_s21 = smov [#allocation10]  }
 0x14f   :  { %s258_s1 = sshll.u32 %s10840_s21, 4  ;;  %s10841_s2 = smov [#allocation13]   ;;  %s259_s1 = int_to_ptr.vmem [resolvable:$true] %s258_s1 }
 0x150   :  { %s280_s7 = sshll.u32 %s10841_s2, 4  ;;  %s10384_s10 = scalar_lea.vmem %s259_s1, 256  ;;  %s281_s7 = int_to_ptr.vmem [resolvable:$true] %s280_s7 }
 0x151   :  { %p10385_p6 = scmp.ne.s32.totalorder %s259_s1, %s10384_s10  ;;  %p10389_p7 = scmp.lt.s32.totalorder %s259_s1, %s259_s1 }
 0x152   :  { %p10390_p8 = scmp.lt.s32.totalorder %s10384_s10, %s10384_s10 }
 0x154   :  { %242 = dma.hbm_to_vmem [thread:$0]  %s12655_s29, 16, %s240_s22, [#allocation6]  }
 0x155   :  { %p10391_p9 = por %p10390_p8, %p10389_p7 }
 0x157   :  { %p10392_p10 = pnand %p10391_p9, %p10385_p6 }
 0x159   :  { %10395 = shalt.err (!%p10392_p10)
}
 0x15a   :  { %s12656_s11 = sld [smem:[#allocation105_spill]]  ;;  %s10404_s8 = scalar_lea.vmem %s281_s7, 256 }
 0x15b   :  { %p10405_p11 = scmp.ne.s32.totalorder %s281_s7, %s10404_s8  ;;  %p10409_p12 = scmp.lt.s32.totalorder %s281_s7, %s281_s7 }
 0x15c   :  { %p10410_p13 = scmp.lt.s32.totalorder %s10404_s8, %s10404_s8 }
 0x15e   :  { %p10411_p0 = por %p10410_p13, %p10409_p12 }
 0x160   :  { %264 = dma.hbm_to_vmem [thread:$0]  %s12656_s11, 256, %s259_s1, [#allocation9], %s10832_s17, %s10832_s17, %s10833_s24  }
 0x161   :  { %p10412_p1 = pnand %p10411_p0, %p10405_p11 }
 0x163   :  { %10415 = shalt.err (!%p10412_p1)
}
 0x164   :  { %s12657_s14 = sld [smem:[#allocation106_spill]]  ;;  %s10842_s3 = smov [#allocation16]  }
 0x165   :  { %s302_s0 = sshll.u32 %s10842_s3, 4  ;;  %s10843_s19 = smov [#allocation19]   ;;  %s303_s0 = int_to_ptr.vmem [resolvable:$true] %s302_s0 }
 0x166   :  { %s325_s4 = sshll.u32 %s10843_s19, 4  ;;  %s10424_s15 = scalar_lea.vmem %s303_s0, 256  ;;  %s326_s4 = int_to_ptr.vmem [resolvable:$true] %s325_s4 }
 0x167   :  { %p10425_p2 = scmp.ne.s32.totalorder %s303_s0, %s10424_s15  ;;  %p10429_p3 = scmp.lt.s32.totalorder %s303_s0, %s303_s0 }
 0x168   :  { %p10430_p4 = scmp.lt.s32.totalorder %s10424_s15, %s10424_s15 }
 0x16a   :  { %286 = dma.hbm_to_vmem [thread:$0]  %s12657_s14, 256, %s281_s7, [#allocation12], %s10832_s17, %s10832_s17, %s10833_s24  }
 0x16b   :  { %p10431_p5 = por %p10430_p4, %p10429_p3 }
 0x16d   :  { %p10432_p6 = pnand %p10431_p5, %p10425_p2 }
 0x16f   :  { %10435 = shalt.err (!%p10432_p6)
}
 0x170   :  { %s12658_s12 = sld [smem:[#allocation107_spill]]  ;;  %s10444_s6 = scalar_lea.vmem %s326_s4, 16 }
 0x171   :  { %p10445_p7 = scmp.ne.s32.totalorder %s326_s4, %s10444_s6  ;;  %s10448_s27 = scalar_lea.vmem %s326_s4, 32 }
 0x172   :  { %p10449_p8 = scmp.lt.s32.totalorder %s326_s4, %s326_s4  ;;  %p10450_p9 = scmp.lt.s32.totalorder %s10448_s27, %s10444_s6 }
 0x174   :  { %p10451_p10 = por %p10450_p9, %p10449_p8 }
 0x176   :  { %308 = dma.hbm_to_vmem [thread:$0]  %s12658_s12, 256, %s303_s0, [#allocation15], %s10832_s17, %s10832_s17, %s10833_s24  }
 0x177   :  { %p10452_p11 = pnand %p10451_p10, %p10445_p7 }
 0x179   :  { %10455 = shalt.err (!%p10452_p11)
}
 0x17a   :  { %s12659_s16 = sld [smem:[#allocation108_spill]]  ;;  %s10844_s18 = smov [#allocation22]  }
 0x17b   :  { %s344_s25 = sshll.u32 %s10844_s18, 4  ;;  %s10845_s22 = smov [#allocation25]   ;;  %s345_s25 = int_to_ptr.vmem [resolvable:$true] %s344_s25 }
 0x17c   :  { %s369_s5 = sshll.u32 %s10845_s22, 4  ;;  %s10464_s23 = scalar_lea.vmem %s345_s25, 256  ;;  %s370_s5 = int_to_ptr.vmem [resolvable:$true] %s369_s5 }
 0x17d   :  { %p10465_p12 = scmp.ne.s32.totalorder %s345_s25, %s10464_s23  ;;  %p10469_p13 = scmp.lt.s32.totalorder %s345_s25, %s345_s25 }
 0x17e   :  { %p10470_p0 = scmp.lt.s32.totalorder %s10464_s23, %s10464_s23 }
 0x180   :  { %328 = dma.hbm_to_vmem [thread:$0]  %s12659_s16, 16, %s326_s4, [#allocation18]  }
 0x181   :  { %p10471_p1 = por %p10470_p0, %p10469_p13 }
 0x183   :  { %p10472_p2 = pnand %p10471_p1, %p10465_p12 }
 0x185   :  { %10475 = shalt.err (!%p10472_p2)
}
 0x186   :  { %s12660_s26 = sld [smem:[#allocation109_spill]]  ;;  %s10484_s30 = scalar_lea.vmem %s370_s5, 16 }
 0x187   :  { %p10485_p3 = scmp.ne.s32.totalorder %s370_s5, %s10484_s30  ;;  %s10488_s28 = scalar_lea.vmem %s370_s5, 32 }
 0x188   :  { %p10489_p4 = scmp.lt.s32.totalorder %s370_s5, %s370_s5  ;;  %p10490_p5 = scmp.lt.s32.totalorder %s10488_s28, %s10484_s30 }
 0x18a   :  { %p10491_p6 = por %p10490_p5, %p10489_p4 }
 0x18c   :  { %350 = dma.hbm_to_vmem [thread:$0]  %s12660_s26, 256, %s345_s25, [#allocation21], %s10832_s17, %s10832_s17, %s10833_s24  }
 0x18d   :  { %p10492_p7 = pnand %p10491_p6, %p10485_p3 }
 0x18f   :  { %10495 = shalt.err (!%p10492_p7)
}
 0x190   :  { %s12661_s29 = sld [smem:[#allocation111_spill]]  ;;  %s10846_s21 = smov [#allocation28]  }
 0x191   :  { %s389_s1 = sshll.u32 %s10846_s21, 4  ;;  %s10847_s2 = smov [#allocation31]   ;;  %s390_s1 = int_to_ptr.vmem [resolvable:$true] %s389_s1 }
 0x192   :  { %s413_s7 = sshll.u32 %s10847_s2, 4  ;;  %s10504_s10 = scalar_lea.vmem %s390_s1, 16  ;;  %s414_s7 = int_to_ptr.vmem [resolvable:$true] %s413_s7 }
 0x193   :  { %p10505_p8 = scmp.ne.s32.totalorder %s390_s1, %s10504_s10  ;;  %s10508_s11 = scalar_lea.vmem %s390_s1, 32 }
 0x194   :  { %p10509_p9 = scmp.lt.s32.totalorder %s390_s1, %s390_s1  ;;  %p10510_p10 = scmp.lt.s32.totalorder %s10508_s11, %s10504_s10 }
 0x196   :  { %372 = dma.hbm_to_vmem [thread:$0]  %s12661_s29, 16, %s370_s5, [#allocation24]  }
 0x197   :  { %p10511_p11 = por %p10510_p10, %p10509_p9 }
 0x199   :  { %p10512_p12 = pnand %p10511_p11, %p10505_p8 }
 0x19b   :  { %10515 = shalt.err (!%p10512_p12)
}
 0x19c   :  { %s12662_s24 = sld [smem:[#allocation112_spill]]  ;;  %s10524_s8 = scalar_lea.vmem %s414_s7, 16 }
 0x19d   :  { %p10525_p13 = scmp.ne.s32.totalorder %s414_s7, %s10524_s8  ;;  %s10528_s14 = scalar_lea.vmem %s414_s7, 32 }
 0x19e   :  { %p10529_p0 = scmp.lt.s32.totalorder %s414_s7, %s414_s7  ;;  %p10530_p1 = scmp.lt.s32.totalorder %s10528_s14, %s10524_s8 }
 0x1a0   :  { %p10531_p2 = por %p10530_p1, %p10529_p0 }
 0x1a2   :  { %392 = dma.hbm_to_vmem [thread:$0]  %s12662_s24, 16, %s390_s1, [#allocation27]  }
 0x1a3   :  { %p10532_p3 = pnand %p10531_p2, %p10525_p13 }
 0x1a5   :  { %10535 = shalt.err (!%p10532_p3)
}
 0x1a6   :  { %s12663_s3 = sld [smem:[#allocation115_spill]]  ;;  %s10848_s0 = smov [#allocation34]  }
 0x1a7   :  { %s433_s19 = sshll.u32 %s10848_s0, 4  ;;  %s10849_s4 = smov [#allocation37]   ;;  %s434_s19 = int_to_ptr.vmem [resolvable:$true] %s433_s19 }
 0x1a8   :  { %s455_s15 = sshll.u32 %s10849_s4, 4  ;;  %s10544_s12 = scalar_lea.vmem %s434_s19, 16  ;;  %s456_s15 = int_to_ptr.vmem [resolvable:$true] %s455_s15 }
 0x1a9   :  { %p10545_p4 = scmp.ne.s32.totalorder %s434_s19, %s10544_s12  ;;  %s10548_s6 = scalar_lea.vmem %s434_s19, 32 }
 0x1aa   :  { %p10549_p5 = scmp.lt.s32.totalorder %s434_s19, %s434_s19  ;;  %p10550_p6 = scmp.lt.s32.totalorder %s10548_s6, %s10544_s12 }
 0x1ac   :  { %416 = dma.hbm_to_vmem [thread:$0]  %s12663_s3, 16, %s414_s7, [#allocation30]  }
 0x1ad   :  { %p10551_p7 = por %p10550_p6, %p10549_p5 }
 0x1af   :  { %p10552_p8 = pnand %p10551_p7, %p10545_p4 }
 0x1b1   :  { %10555 = shalt.err (!%p10552_p8)
}
 0x1b2   :  { %s12664_s27 = sld [smem:[#allocation116_spill]]  ;;  %s10564_s16 = scalar_lea.vmem %s456_s15, 16 }
 0x1b3   :  { %p10565_p9 = scmp.ne.s32.totalorder %s456_s15, %s10564_s16  ;;  %s10568_s18 = scalar_lea.vmem %s456_s15, 32 }
 0x1b4   :  { %p10569_p10 = scmp.lt.s32.totalorder %s456_s15, %s456_s15  ;;  %p10570_p11 = scmp.lt.s32.totalorder %s10568_s18, %s10564_s16 }
 0x1b6   :  { %p10571_p12 = por %p10570_p11, %p10569_p10 }
 0x1b8   :  { %436 = dma.hbm_to_vmem [thread:$0]  %s12664_s27, 16, %s434_s19, [#allocation33]  }
 0x1b9   :  { %p10572_p13 = pnand %p10571_p12, %p10565_p9 }
 0x1bb   :  { %10575 = shalt.err (!%p10572_p13)
}
 0x1bc   :  { %s12665_s25 = sld [smem:[#allocation117_spill]]  ;;  %s10850_s22 = smov [#allocation40]  }
 0x1bd   :  { %s477_s5 = sshll.u32 %s10850_s22, 4  ;;  %s10851_s23 = smov [#allocation43]   ;;  %s478_s5 = int_to_ptr.vmem [resolvable:$true] %s477_s5 }
 0x1be   :  { %s499_s26 = sshll.u32 %s10851_s23, 4  ;;  %s10584_s30 = scalar_lea.vmem %s478_s5, 16  ;;  %s500_s26 = int_to_ptr.vmem [resolvable:$true] %s499_s26 }
 0x1bf   :  { %p10585_p0 = scmp.ne.s32.totalorder %s478_s5, %s10584_s30  ;;  %s10588_s28 = scalar_lea.vmem %s478_s5, 32 }
 0x1c0   :  { %p10589_p1 = scmp.lt.s32.totalorder %s478_s5, %s478_s5  ;;  %p10590_p2 = scmp.lt.s32.totalorder %s10588_s28, %s10584_s30 }
 0x1c2   :  { %458 = dma.hbm_to_vmem [thread:$0]  %s12665_s25, 16, %s456_s15, [#allocation36]  }
 0x1c3   :  { %p10591_p3 = por %p10590_p2, %p10589_p1 }
 0x1c5   :  { %p10592_p4 = pnand %p10591_p3, %p10585_p0 }
 0x1c7   :  { %10595 = shalt.err (!%p10592_p4)
}
 0x1c8   :  { %s12666_s29 = sld [smem:[#allocation118_spill]]  ;;  %s10604_s21 = scalar_lea.vmem %s500_s26, 16 }
 0x1c9   :  { %p10605_p5 = scmp.ne.s32.totalorder %s500_s26, %s10604_s21  ;;  %s10608_s1 = scalar_lea.vmem %s500_s26, 32 }
 0x1ca   :  { %p10609_p6 = scmp.lt.s32.totalorder %s500_s26, %s500_s26  ;;  %p10610_p7 = scmp.lt.s32.totalorder %s10608_s1, %s10604_s21 }
 0x1cc   :  { %p10611_p8 = por %p10610_p7, %p10609_p6 }
 0x1ce   :  { %480 = dma.hbm_to_vmem [thread:$0]  %s12666_s29, 16, %s478_s5, [#allocation39]  }
 0x1cf   :  { %p10612_p9 = pnand %p10611_p8, %p10605_p5 }
 0x1d1   :  { %10615 = shalt.err (!%p10612_p9)
}
 0x1d2   :  { %s12667_s2 = sld [smem:[#allocation119_spill]]  ;;  %s10852_s7 = smov [#allocation46]  }
 0x1d3   :  { %s519_s10 = sshll.u32 %s10852_s7, 4  ;;  %s10853_s11 = smov [#allocation49]   ;;  %s520_s10 = int_to_ptr.vmem [resolvable:$true] %s519_s10 }
 0x1d4   :  { %s541_s24 = sshll.u32 %s10853_s11, 4  ;;  %s10624_s8 = scalar_lea.vmem %s520_s10, 16  ;;  %s542_s24 = int_to_ptr.vmem [resolvable:$true] %s541_s24 }
 0x1d5   :  { %p10625_p10 = scmp.ne.s32.totalorder %s520_s10, %s10624_s8  ;;  %s10628_s14 = scalar_lea.vmem %s520_s10, 32 }
 0x1d6   :  { %p10629_p11 = scmp.lt.s32.totalorder %s520_s10, %s520_s10  ;;  %p10630_p12 = scmp.lt.s32.totalorder %s10628_s14, %s10624_s8 }
 0x1d8   :  { %502 = dma.hbm_to_vmem [thread:$0]  %s12667_s2, 16, %s500_s26, [#allocation42]  }
 0x1d9   :  { %p10631_p13 = por %p10630_p12, %p10629_p11 }
 0x1db   :  { %p10632_p0 = pnand %p10631_p13, %p10625_p10 }
 0x1dd   :  { %10635 = shalt.err (!%p10632_p0)
}
 0x1de   :  { %s12668_s3 = sld [smem:[#allocation120_spill]]  ;;  %s10644_s0 = scalar_lea.vmem %s542_s24, 16 }
 0x1df   :  { %p10645_p1 = scmp.ne.s32.totalorder %s542_s24, %s10644_s0  ;;  %s10648_s19 = scalar_lea.vmem %s542_s24, 32 }
 0x1e0   :  { %p10649_p2 = scmp.lt.s32.totalorder %s542_s24, %s542_s24  ;;  %p10650_p3 = scmp.lt.s32.totalorder %s10648_s19, %s10644_s0 }
 0x1e2   :  { %p10651_p4 = por %p10650_p3, %p10649_p2 }
 0x1e4   :  { %522 = dma.hbm_to_vmem [thread:$0]  %s12668_s3, 16, %s520_s10, [#allocation45]  }
 0x1e5   :  { %p10652_p5 = pnand %p10651_p4, %p10645_p1 }
 0x1e7   :  { %10655 = shalt.err (!%p10652_p5)
}
 0x1e8   :  { %s12669_s4 = sld [smem:[#allocation122_spill]]  ;;  %s10854_s15 = smov [#allocation52]  }
 0x1e9   :  { %s563_s12 = sshll.u32 %s10854_s15, 4  ;;  %s10855_s6 = smov [#allocation53]   ;;  %s564_s12 = int_to_ptr.vmem [resolvable:$true] %s563_s12 }
 0x1ea   :  { %s573_s27 = sshll.u32 %s10855_s6, 4  ;;  %s10664_s16 = scalar_lea.vmem %s564_s12, 16  ;;  %s574_s27 = int_to_ptr.vmem [resolvable:$true] %s573_s27 }
 0x1eb   :  { %p10665_p6 = scmp.ne.s32.totalorder %s564_s12, %s10664_s16  ;;  %s10668_s18 = scalar_lea.vmem %s564_s12, 32 }
 0x1ec   :  { %p10669_p7 = scmp.lt.s32.totalorder %s564_s12, %s564_s12  ;;  %p10670_p8 = scmp.lt.s32.totalorder %s10668_s18, %s10664_s16 }
 0x1ee   :  { %544 = dma.hbm_to_vmem [thread:$0]  %s12669_s4, 16, %s542_s24, [#allocation48]  }
 0x1ef   :  { %p10671_p9 = por %p10670_p8, %p10669_p7 }
 0x1f1   :  { %p10672_p10 = pnand %p10671_p9, %p10665_p6 }
 0x1f3   :  { %10675 = shalt.err (!%p10672_p10)
}
 0x1f4   :  { %566 = dma.hbm_to_vmem [thread:$0]  %s11201_s9, 16, %s564_s12, [#allocation51]  }
 0x1f5   :  { %s10684_s25 = scalar_lea.vmem %s574_s27, 16  ;;  %s10688_s22 = scalar_lea.vmem %s574_s27, 32 }
 0x1f6   :  { %p10685_p11 = scmp.ne.s32.totalorder %s574_s27, %s10684_s25  ;;  %p10689_p12 = scmp.lt.s32.totalorder %s574_s27, %s574_s27 }
 0x1f7   :  { %p10690_p13 = scmp.lt.s32.totalorder %s10688_s22, %s10684_s25 }
 0x1f9   :  { %p10691_p0 = por %p10690_p13, %p10689_p12 }
 0x1fb   :  { %p10692_p1 = pnand %p10691_p0, %p10685_p11 }
 0x1fd   :  { %10695 = shalt.err (!%p10692_p1)
}
 0x1fe   :  { %576 = dma.hbm_to_vmem [thread:$0]  %s11206_s13, 16, %s574_s27, [#allocation54]  }
 0x1ff   :  { %10716 = dma.done.wait [#allocation3], 16  }
 0x200   :  { %10717 = vsyncadd [#allocation3], 4294967280 }
 0x201   :  { %10718 = dma.done.wait [#allocation6], 32  }
 0x202   :  { %10719 = vsyncadd [#allocation6], 4294967264 }
 0x203   :  { %10720 = dma.done.wait [#allocation9], 272  }
 0x204   :  { %10721 = vsyncadd [#allocation9], 4294967024 }
 0x205   :  { %10722 = dma.done.wait [#allocation12], 272  }
 0x206   :  { %10723 = vsyncadd [#allocation12], 4294967024 }
 0x207   :  { %10724 = dma.done.wait [#allocation15], 272  }
 0x208   :  { %10725 = vsyncadd [#allocation15], 4294967024 }
 0x209   :  { %10726 = dma.done.wait [#allocation18], 32  }
 0x20a   :  { %10727 = vsyncadd [#allocation18], 4294967264 }
 0x20b   :  { %10728 = dma.done.wait [#allocation21], 272  }
 0x20c   :  { %10729 = vsyncadd [#allocation21], 4294967024 }
 0x20d   :  { %10730 = dma.done.wait [#allocation24], 32  }
 0x20e   :  { %10731 = vsyncadd [#allocation24], 4294967264 }
 0x20f   :  { %10732 = dma.done.wait [#allocation27], 32  }
 0x210   :  { %10733 = vsyncadd [#allocation27], 4294967264 }
 0x211   :  { %10734 = dma.done.wait [#allocation30], 32  }
 0x212   :  { %10735 = vsyncadd [#allocation30], 4294967264 }
 0x213   :  { %10736 = dma.done.wait [#allocation33], 32  }
 0x214   :  { %10737 = vsyncadd [#allocation33], 4294967264 }
 0x215   :  { %10738 = dma.done.wait [#allocation36], 272  }
 0x216   :  { %10739 = vsyncadd [#allocation36], 4294967024 }
 0x217   :  { %10740 = dma.done.wait [#allocation39], 272  }
 0x218   :  { %10741 = vsyncadd [#allocation39], 4294967024 }
 0x219   :  { %10742 = dma.done.wait [#allocation42], 272  }
 0x21a   :  { %10743 = vsyncadd [#allocation42], 4294967024 }
 0x21b   :  { %10744 = dma.done.wait [#allocation45], 32  }
 0x21c   :  { %10745 = vsyncadd [#allocation45], 4294967264 }
 0x21d   :  { %10746 = dma.done.wait [#allocation48], 272  }
 0x21e   :  { %10747 = vsyncadd [#allocation48], 4294967024 }
 0x21f   :  { %10748 = dma.done.wait [#allocation51], 32  }
 0x220   :  { %10749 = vsyncadd [#allocation51], 4294967264 }
 0x221   :  { %10750 = dma.done.wait [#allocation54], 16  }
 0x222   :  { %10751 = vsyncadd [#allocation54], 4294967280  ;;  %s12670_s9 = sld [smem:[#allocation77_spill]]  ;;  %v10856_v0 = vmov 0.0   ;;  %vm10857_vm0 = vmmov 0   ;;  %vm729_vm1 = vcmask 261120  }
 0x223   :  { %s12671_s13 = sld [smem:[#allocation75_spill]]  ;;  %8755 = vmatprep.subr.bf16.mxu1 %v10856_v0  ;;  %8759 = vmatprep.mubr.msk.bf16.mxu1 %vm10857_vm0, %v10856_v0  ;;  %s10858_s23 = smov 96   ;;  %vm779_vm2 = vcmask 64512   ;;  %vm904_vm3 = vcmask 1043456   ;;  %vm1682_vm4 = vcmask 130048   ;;  %vm1685_vm5 = vcmask 195584  }
 0x224   :  { %s12672_s5 = sld [smem:[#allocation78_spill]]  ;;  %8769 = vmatprep.subr.bf16.mxu0 %v10856_v0  ;;  %8771 = vmatprep.mubr.msk.bf16.mxu0 %vm10857_vm0, %v10856_v0  ;;  %s10859_s26 = smov 88   ;;  %vm1892_vm6 = vcmask 523264  }
 0x225   :  { %s10860_s30 = smov 120   ;;  %s10861_s28 = smov 56  }
 0x226   :  { %s10862_s29 = smov 80   ;;  %s10863_s21 = smov 112  }
 0x227   :  { %s10864_s1 = smov 48   ;;  %s10865_s2 = smov 72  }
 0x228   :  { %v9732_v1 = vld [vmem:[%s12670_s9 + $0x8] sm:$0xff]   ;;  %v9733_v2 = vld [vmem:[%s12670_s9] sm:$0xff]   ;;  %s10866_s7 = smov 104   ;;  %s10867_s10 = smov 40  }
 0x229   :  { %8756 = vmatpush3.bf16.msra.mxu1 %v9732_v1  ;;  %v11280_v3 = vld [vmem:[%s12671_s13] sm:$0xff]  ;;  %v11283_v4 = vld [vmem:[%s12671_s13 + $0x8] sm:$0xff]  ;;  %s10868_s11 = smov 8   ;;  %s10869_s24 = smov 16  }
 0x22a   :  { %8757 = vmatprep.subr.bf16.mxu1 %v10856_v0  ;;  %v710_v5 = vpack.c.bf16 %v11283_v4, %v11280_v3  ;;  %v8277_v6 = vld [vmem:[%s12672_s5] ss:$0 sm:$0xff]  ;;  %s12673_s8 = sld [smem:[#allocation79_spill]]  ;;  %s10870_s14 = smov 24  }
 0x22b   :  { %s12674_s3 = sld [smem:[#allocation80_spill]] }
 0x22c   :  { %s12675_s0 = sld [smem:[#allocation83_spill]] }
 0x22d   :  { %8758 = vmatpush3.bf16.msra.mxu1 %v9733_v2  ;;  %s12676_s19 = sld [smem:[#allocation85_spill]] }
 0x22e   :  { %8763 = vmatprep.subr.bf16.mxu1 %v10856_v0  ;;  %s12677_s4 = sld [smem:[#allocation81_spill]] }
 0x22f   :  { %s12678_s15 = sld [smem:[#allocation82_spill]] }
 0x230   :  { %8760 = vmatmul.mubr.msk.bf16.vlgmr.msra.gmra.mxu1 %vm729_vm1, %v710_v5  ;;  %s12679_s12 = sld [smem:[#allocation84_spill]] }
 0x231   :  { %8765 = vmatprep.mubr.msk.bf16.mxu1 %vm10857_vm0, %v10856_v0  ;;  %s12680_s6 = sld [smem:[#allocation86_spill]] }
 0x232   :  { %s12681_s27 = sld [smem:[#allocation89_spill]] }
 0x233   :  { %s12682_s16 = sld [smem:[#allocation87_spill]] }
 0x234   :  { %s12683_s18 = sld [smem:[#allocation88_spill]] }
 0x235   :  { %s12684_s25 = sld [smem:[#allocation90_spill]] }
 0x236   :  { %s12685_s22 = sld [smem:[#allocation91_spill]] }
 0x237   :  { %s12686_s9 = sld [smem:[#allocation92_spill]] }
 0x238   :  { %s12687_s13 = sld [smem:[#allocation95_spill]] }
 0x239   :  { %s12688_s5 = sld [smem:[#allocation97_spill]] }
 0x2f0   :  { %v767_v7 = vpop.f32.mrf.mxu1 }
 0x2f1   :  { %v768_v8 = vadd.f32 %v8277_v6, %v767_v7 }
 0x2f2   :  { %v8761_v9 = vpop.f32.mrf.mxu1 }
 0x2f3   :  { %v11293_v10 = vpack.c.bf16 %v768_v8, %v768_v8 }
 0x2f4   :  { %v770_v11 = vpop.f32.mrf.mxu1 }
 0x2f5   :  { %v771_v12 = vadd.f32 %v8277_v6, %v770_v11  ;;  %777 = vrot.lane.b32.xlu0 %v11293_v10, %s10858_s23 }
 0x2f6   :  { %v8762_v13 = vpop.f32.mrf.mxu1 }
 0x2f7   :  { %v11297_v14 = vpack.c.bf16 %v771_v12, %v771_v12 }
 0x2f9   :  { %827 = vrot.lane.b32.xlu0 %v11297_v14, %s10858_s23 }
 0x367   :  { %v778_v15 = vpop.permute.xlu0 %777 }
 0x368   :  { %v784_v16 = vsel %vm779_vm2, %v778_v15, 0 }
 0x369   :  { %8764 = vmatpush3.bf16.xpose.msra.mxu1 %v784_v16 }
 0x36a   :  { %8775 = vmatprep.subr.bf16.mxu1 %v10856_v0 }
 0x36b   :  { %v828_v17 = vpop.permute.xlu0 %827 }
 0x36c   :  { %v833_v18 = vsel %vm779_vm2, %v828_v17, 0 }
 0x36d   :  { %8770 = vmatpush3.bf16.xpose.msra.mxu0 %v833_v18 }
 0x36e   :  { %8781 = vmatprep.subr.bf16.mxu0 %v10856_v0 }
 0x370   :  { %8766 = vmatmul.mubr.msk.bf16.vlgmr.msra.gmra.mxu1 %vm779_vm2, %v11293_v10 }
 0x371   :  { %8777 = vmatprep.mubr.msk.bf16.mxu1 %vm10857_vm0, %v10856_v0 }
 0x374   :  { %8772 = vmatmul.mubr.msk.bf16.vlgmr.msra.gmra.mxu0 %vm779_vm2, %v11297_v14 }
 0x375   :  { %8783 = vmatprep.mubr.msk.bf16.mxu0 %vm10857_vm0, %v10856_v0 }
 0x430   :  { %v820_v19 = vpop.f32.mrf.mxu1 }
 0x431   :  { %v875_v20 = vsel %vm779_vm2, %v820_v19, -inf }
 0x432   :  { %876 = vmax.xlane.f32.xlu1 %v875_v20  ;;  %v8767_v21 = vpop.f32.mrf.mxu1 }
 0x434   :  { %v823_v22 = vpop.f32.mrf.mxu1  ;;  %v869_v23 = vpop.f32.mrf.mxu0 }
 0x435   :  { %v878_v24 = vsel %vm779_vm2, %v869_v23, -inf }
 0x436   :  { %v8773_v25 = vpop.f32.mrf.mxu0  ;;  %879 = vmax.xlane.f32.xlu1 %v878_v24  ;;  %v8768_v26 = vpop.f32.mrf.mxu1 }
 0x438   :  { %v872_v27 = vpop.f32.mrf.mxu0 }
 0x43a   :  { %v8774_v28 = vpop.f32.mrf.mxu0 }
 0x447   :  { %899 = vrot.lane.b32.xlu1 %v11293_v10, %s10832_s17 }
 0x44b   :  { %948 = vrot.lane.b32.xlu1 %v11297_v14, %s10832_s17 }
 0x44f   :  { %998 = vrot.lane.b32.xlu1 %v11293_v10, %s10859_s26 }
 0x4bb   :  { %v877_v29 = vpop.xlane.xlu1 %876 }
 0x4bc   :  { %v881_v30 = vsub.f32 %v820_v19, %v877_v29 }
 0x4be   :  { %v883_v31 = vmul.f32 1.442695, %v881_v30 }
 0x4bf   :  { %v880_v32 = vpop.xlane.xlu1 %879 }
 0x4c0   :  { %9784 = vpow2.f32 %v883_v31  ;;  %v882_v33 = vsub.f32 %v869_v23, %v880_v32 }
 0x4c2   :  { %v885_v34 = vmul.f32 1.442695, %v882_v33 }
 0x4c3   :  { %v900_v35 = vpop.permute.xlu1 %899 }
 0x4c4   :  { %9786 = vpow2.f32 %v885_v34  ;;  %v906_v36 = vsel %vm904_vm3, %v900_v35, 0 }
 0x4c5   :  { %8776 = vmatpush3.bf16.msra.mxu1 %v906_v36 }
 0x4c6   :  { %8787 = vmatprep.subr.bf16.mxu1 %v10856_v0 }
 0x4c7   :  { %v949_v37 = vpop.permute.xlu1 %948 }
 0x4c8   :  { %v954_v38 = vsel %vm904_vm3, %v949_v37, 0 }
 0x4c9   :  { %8782 = vmatpush3.bf16.msra.mxu0 %v954_v38 }
 0x4ca   :  { %8793 = vmatprep.subr.bf16.mxu0 %v10856_v0 }
 0x4cb   :  { %v999_v43 = vpop.permute.xlu1 %998 }
 0x4cc   :  { %v1004_v50 = vsel %vm779_vm2, %v999_v43, 0 }
 0x4cd   :  { %v9785_v39 = vpop.eup %9784 }
 0x4ce   :  { %v887_v40 = vsel %vm779_vm2, %v9785_v39, 0.0 }
 0x4cf   :  { %888 = vadd.xlane.f32.xlu0 %v887_v40 }
 0x4d1   :  { %v9787_v41 = vpop.eup %9786 }
 0x4d2   :  { %v890_v42 = vsel %vm779_vm2, %v9787_v41, 0.0 }
 0x4d3   :  { %891 = vadd.xlane.f32.xlu1 %v890_v42 }
 0x4e4   :  { %1048 = vrot.lane.b32.xlu1 %v11297_v14, %s10859_s26 }
 0x4e5   :  { %996 = vrot.lane.b32.xlu0 %v11293_v10, %s10860_s30 }
 0x4e8   :  { %1046 = vrot.lane.b32.xlu1 %v11297_v14, %s10860_s30 }
 0x558   :  { %v889_v44 = vpop.xlane.xlu0 %888 }
 0x559   :  { %9788 = vrcp.f32 %v889_v44 }
 0x55c   :  { %v892_v45 = vpop.xlane.xlu1 %891  ;;  %v997_v55 = vpop.permute.xlu0 %996 }
 0x55d   :  { %9790 = vrcp.f32 %v892_v45 }
 0x560   :  { %v1049_v52 = vpop.permute.xlu1 %1048 }
 0x561   :  { %v1054_v54 = vsel %vm779_vm2, %v1049_v52, 0 }
 0x564   :  { %v1047_v56 = vpop.permute.xlu1 %1046 }
 0x566   :  { %v9789_v46 = vpop.eup %9788 }
 0x567   :  { %v894_v47 = vmul.f32 %v9789_v46, %v9785_v39 }
 0x569   :  { %v897_v48 = vpack.c.bf16 %v894_v47, %v894_v47 }
 0x56a   :  { %v9791_v49 = vpop.eup %9790 }
 0x56b   :  { %8778 = vmatmul.mubr.msk.bf16.vlgmr.msra.gmra.mxu1 %vm779_vm2, %v897_v48  ;;  %v896_v51 = vmul.f32 %v9791_v49, %v9787_v41 }
 0x56c   :  { %8788 = vmatpush3.bf16.xpose.msra.mxu1 %v1004_v50  ;;  %8789 = vmatprep.mubr.msk.bf16.mxu1 %vm10857_vm0, %v10856_v0 }
 0x56d   :  { %v898_v53 = vpack.c.bf16 %v896_v51, %v896_v51  ;;  %8799 = vmatprep.subr.bf16.mxu1 %v10856_v0 }
 0x56f   :  { %8784 = vmatmul.mubr.msk.bf16.vlgmr.msra.gmra.mxu0 %vm779_vm2, %v898_v53 }
 0x570   :  { %8794 = vmatpush3.bf16.xpose.msra.mxu0 %v1054_v54  ;;  %8795 = vmatprep.mubr.msk.bf16.mxu0 %vm10857_vm0, %v10856_v0 }
 0x571   :  { %8805 = vmatprep.subr.bf16.mxu0 %v10856_v0 }
 0x573   :  { %8790 = vmatmul.mubr.msk.bf16.vlgmr.msra.gmra.mxu1 %vm779_vm2, %v997_v55 }
 0x574   :  { %8801 = vmatprep.mubr.msk.bf16.mxu1 %vm10857_vm0, %v10856_v0 }
 0x577   :  { %8796 = vmatmul.mubr.msk.bf16.vlgmr.msra.gmra.mxu0 %vm779_vm2, %v1047_v56 }
 0x578   :  { %8807 = vmatprep.mubr.msk.bf16.mxu0 %vm10857_vm0, %v10856_v0 }
 0x62b   :  { %v11349_v57 = vpop.f32.mrf.mxu1 }
 0x62d   :  { %v8779_v58 = vpop.f32.mrf.mxu1 }
 0x62f   :  { %v945_v59 = vpop.f32.mrf.mxu1  ;;  %v11351_v60 = vpop.f32.mrf.mxu0 }
 0x631   :  { %v8780_v61 = vpop.f32.mrf.mxu1  ;;  %v8785_v62 = vpop.f32.mrf.mxu0 }
 0x633   :  { %v993_v63 = vpop.f32.mrf.mxu0  ;;  %v1040_v1 = vpop.f32.mrf.mxu1 }
 0x634   :  { %v1096_v2 = vsel %vm779_vm2, %v1040_v1, -inf }
 0x635   :  { %v8786_v5 = vpop.f32.mrf.mxu0  ;;  %1097 = vmax.xlane.f32.xlu1 %v1096_v2  ;;  %v8791_v6 = vpop.f32.mrf.mxu1 }
 0x637   :  { %v1043_v7 = vpop.f32.mrf.mxu1  ;;  %v1090_v8 = vpop.f32.mrf.mxu0 }
 0x638   :  { %v1099_v9 = vsel %vm779_vm2, %v1090_v8, -inf }
 0x639   :  { %1100 = vmax.xlane.f32.xlu0 %v1099_v9  ;;  %v8792_v11 = vpop.f32.mrf.mxu1  ;;  %v8797_v12 = vpop.f32.mrf.mxu0 }
 0x63b   :  { %v1093_v13 = vpop.f32.mrf.mxu0 }
 0x63d   :  { %v8798_v15 = vpop.f32.mrf.mxu0 }
 0x646   :  { %1120 = vrot.lane.b32.xlu1 %v11293_v10, %s10861_s28 }
 0x64a   :  { %1218 = vrot.lane.b32.xlu1 %v11293_v10, %s10862_s29 }
 0x64f   :  { %1168 = vrot.lane.b32.xlu0 %v11297_v14, %s10861_s28 }
 0x653   :  { %1216 = vrot.lane.b32.xlu0 %v11293_v10, %s10863_s21 }
 0x6be   :  { %v1098_v16 = vpop.xlane.xlu1 %1097 }
 0x6bf   :  { %v1102_v17 = vsub.f32 %v1040_v1, %v1098_v16 }
 0x6c1   :  { %v1104_v18 = vmul.f32 1.442695, %v1102_v17 }
 0x6c2   :  { %v1101_v19 = vpop.xlane.xlu0 %1100  ;;  %v1121_v20 = vpop.permute.xlu1 %1120 }
 0x6c3   :  { %9792 = vpow2.f32 %v1104_v18  ;;  %v1103_v21 = vsub.f32 %v1090_v8, %v1101_v19  ;;  %v1126_v22 = vsel %vm904_vm3, %v1121_v20, 0 }
 0x6c4   :  { %8800 = vmatpush3.bf16.msra.mxu1 %v1126_v22 }
 0x6c5   :  { %v1106_v23 = vmul.f32 1.442695, %v1103_v21  ;;  %8811 = vmatprep.subr.bf16.mxu1 %v10856_v0 }
 0x6c6   :  { %v1169_v24 = vpop.permute.xlu0 %1168  ;;  %v1219_v30 = vpop.permute.xlu1 %1218 }
 0x6c7   :  { %9794 = vpow2.f32 %v1106_v23  ;;  %v1174_v25 = vsel %vm904_vm3, %v1169_v24, 0  ;;  %v1224_v37 = vsel %vm779_vm2, %v1219_v30, 0 }
 0x6c8   :  { %8806 = vmatpush3.bf16.msra.mxu0 %v1174_v25 }
 0x6c9   :  { %8817 = vmatprep.subr.bf16.mxu0 %v10856_v0 }
 0x6ca   :  { %v1217_v42 = vpop.permute.xlu0 %1216 }
 0x6d0   :  { %v9793_v26 = vpop.eup %9792 }
 0x6d1   :  { %v1108_v27 = vsel %vm779_vm2, %v9793_v26, 0.0 }
 0x6d2   :  { %1109 = vadd.xlane.f32.xlu1 %v1108_v27 }
 0x6d4   :  { %v9795_v28 = vpop.eup %9794 }
 0x6d5   :  { %v1111_v29 = vsel %vm779_vm2, %v9795_v28, 0.0 }
 0x6d6   :  { %1112 = vadd.xlane.f32.xlu1 %v1111_v29 }
 0x6e7   :  { %1268 = vrot.lane.b32.xlu1 %v11297_v14, %s10862_s29 }
 0x6eb   :  { %1266 = vrot.lane.b32.xlu1 %v11297_v14, %s10863_s21 }
 0x75b   :  { %v1110_v31 = vpop.xlane.xlu1 %1109 }
 0x75c   :  { %9796 = vrcp.f32 %v1110_v31 }
 0x75f   :  { %v1113_v32 = vpop.xlane.xlu1 %1112 }
 0x760   :  { %9798 = vrcp.f32 %v1113_v32 }
 0x763   :  { %v1269_v39 = vpop.permute.xlu1 %1268 }
 0x764   :  { %v1274_v41 = vsel %vm779_vm2, %v1269_v39, 0 }
 0x767   :  { %v1267_v43 = vpop.permute.xlu1 %1266 }
 0x769   :  { %v9797_v33 = vpop.eup %9796 }
 0x76a   :  { %v1115_v34 = vmul.f32 %v9797_v33, %v9793_v26 }
 0x76c   :  { %v1118_v35 = vpack.c.bf16 %v1115_v34, %v1115_v34 }
 0x76d   :  { %v9799_v36 = vpop.eup %9798 }
 0x76e   :  { %8802 = vmatmul.mubr.msk.bf16.vlgmr.msra.gmra.mxu1 %vm779_vm2, %v1118_v35  ;;  %v1117_v38 = vmul.f32 %v9799_v36, %v9795_v28 }
 0x76f   :  { %8812 = vmatpush3.bf16.xpose.msra.mxu1 %v1224_v37  ;;  %8813 = vmatprep.mubr.msk.bf16.mxu1 %vm10857_vm0, %v10856_v0 }
 0x770   :  { %v1119_v40 = vpack.c.bf16 %v1117_v38, %v1117_v38  ;;  %8823 = vmatprep.subr.bf16.mxu1 %v10856_v0 }
 0x772   :  { %8808 = vmatmul.mubr.msk.bf16.vlgmr.msra.gmra.mxu0 %vm779_vm2, %v1119_v40 }
 0x773   :  { %8818 = vmatpush3.bf16.xpose.msra.mxu0 %v1274_v41  ;;  %8819 = vmatprep.mubr.msk.bf16.mxu0 %vm10857_vm0, %v10856_v0 }
 0x774   :  { %8829 = vmatprep.subr.bf16.mxu0 %v10856_v0 }
 0x776   :  { %8814 = vmatmul.mubr.msk.bf16.vlgmr.msra.gmra.mxu1 %vm779_vm2, %v1217_v42 }
 0x777   :  { %8825 = vmatprep.mubr.msk.bf16.mxu1 %vm10857_vm0, %v10856_v0 }
 0x77a   :  { %8820 = vmatmul.mubr.msk.bf16.vlgmr.msra.gmra.mxu0 %vm779_vm2, %v1267_v43 }
 0x77b   :  { %8831 = vmatprep.mubr.msk.bf16.mxu0 %vm10857_vm0, %v10856_v0 }
 0x82e   :  { %v11389_v44 = vpop.f32.mrf.mxu1 }
 0x830   :  { %v8803_v45 = vpop.f32.mrf.mxu1 }
 0x832   :  { %v1165_v46 = vpop.f32.mrf.mxu1  ;;  %v11391_v47 = vpop.f32.mrf.mxu0 }
 0x833   :  { %v9642_v48 = vpack.i.bf16 %v11391_v47, %v11389_v44 }
 0x834   :  { %v8804_v49 = vpop.f32.mrf.mxu1  ;;  %v8809_v50 = vpop.f32.mrf.mxu0 }
 0x836   :  { %v1213_v51 = vpop.f32.mrf.mxu0  ;;  %v1260_v52 = vpop.f32.mrf.mxu1 }
 0x837   :  { %v1316_v53 = vsel %vm779_vm2, %v1260_v52, -inf }
 0x838   :  { %v8810_v54 = vpop.f32.mrf.mxu0  ;;  %1317 = vmax.xlane.f32.xlu0 %v1316_v53  ;;  %v8815_v55 = vpop.f32.mrf.mxu1 }
 0x83a   :  { %v1263_v56 = vpop.f32.mrf.mxu1  ;;  %v1310_v58 = vpop.f32.mrf.mxu0 }
 0x83b   :  { %v1319_v59 = vsel %vm779_vm2, %v1310_v58, -inf }
 0x83c   :  { %1320 = vmax.xlane.f32.xlu1 %v1319_v59  ;;  %v8816_v61 = vpop.f32.mrf.mxu1  ;;  %v8821_v62 = vpop.f32.mrf.mxu0 }
 0x83e   :  { %v1313_v63 = vpop.f32.mrf.mxu0 }
 0x840   :  { %v8822_v1 = vpop.f32.mrf.mxu0 }
 0x84d   :  { %1340 = vrot.lane.b32.xlu1 %v11293_v10, %s10864_s1 }
 0x851   :  { %1438 = vrot.lane.b32.xlu1 %v11293_v10, %s10865_s2 }
 0x855   :  { %1488 = vrot.lane.b32.xlu1 %v11297_v14, %s10865_s2 }
 0x859   :  { %1486 = vrot.lane.b32.xlu1 %v11297_v14, %s10866_s7 }
 0x8c1   :  { %v1318_v2 = vpop.xlane.xlu0 %1317 }
 0x8c2   :  { %v1322_v5 = vsub.f32 %v1260_v52, %v1318_v2 }
 0x8c4   :  { %v1324_v6 = vmul.f32 1.442695, %v1322_v5 }
 0x8c5   :  { %v1321_v7 = vpop.xlane.xlu1 %1320 }
 0x8c6   :  { %9800 = vpow2.f32 %v1324_v6  ;;  %v1323_v8 = vsub.f32 %v1310_v58, %v1321_v7 }
 0x8c8   :  { %v1326_v9 = vmul.f32 1.442695, %v1323_v8 }
 0x8c9   :  { %v1341_v11 = vpop.permute.xlu1 %1340 }
 0x8ca   :  { %9802 = vpow2.f32 %v1326_v9  ;;  %v1346_v12 = vsel %vm904_vm3, %v1341_v11, 0 }
 0x8cb   :  { %8824 = vmatpush3.bf16.msra.mxu1 %v1346_v12 }
 0x8cc   :  { %8835 = vmatprep.subr.bf16.mxu1 %v10856_v0 }
 0x8cd   :  { %v1439_v23 = vpop.permute.xlu1 %1438 }
 0x8ce   :  { %v1444_v27 = vsel %vm779_vm2, %v1439_v23, 0 }
 0x8d1   :  { %v1489_v29 = vpop.permute.xlu1 %1488 }
 0x8d2   :  { %v1494_v31 = vsel %vm779_vm2, %v1489_v29, 0 }
 0x8d3   :  { %v9801_v13 = vpop.eup %9800 }
 0x8d4   :  { %v1328_v15 = vsel %vm779_vm2, %v9801_v13, 0.0 }
 0x8d5   :  { %1329 = vadd.xlane.f32.xlu0 %v1328_v15  ;;  %v1487_v33 = vpop.permute.xlu1 %1486 }
 0x8d7   :  { %v9803_v16 = vpop.eup %9802 }
 0x8d8   :  { %v1331_v17 = vsel %vm779_vm2, %v9803_v16, 0.0 }
 0x8d9   :  { %1332 = vadd.xlane.f32.xlu0 %v1331_v17  ;;  %v9735_v17 = vld [vmem:[%s12673_s8] sm:$0xff]  }
 0x8ef   :  { %1388 = vrot.lane.b32.xlu0 %v11297_v14, %s10864_s1 }
 0x8f3   :  { %1436 = vrot.lane.b32.xlu0 %v11293_v10, %s10866_s7 }
 0x95e   :  { %v1330_v18 = vpop.xlane.xlu0 %1329 }
 0x95f   :  { %9804 = vrcp.f32 %v1330_v18 }
 0x962   :  { %v1333_v19 = vpop.xlane.xlu0 %1332 }
 0x963   :  { %9806 = vrcp.f32 %v1333_v19 }
 0x966   :  { %v1389_v20 = vpop.permute.xlu0 %1388 }
 0x967   :  { %v1394_v21 = vsel %vm904_vm3, %v1389_v20, 0 }
 0x968   :  { %8830 = vmatpush3.bf16.msra.mxu0 %v1394_v21 }
 0x969   :  { %8841 = vmatprep.subr.bf16.mxu0 %v10856_v0 }
 0x96a   :  { %v1437_v32 = vpop.permute.xlu0 %1436 }
 0x96c   :  { %v9805_v22 = vpop.eup %9804 }
 0x96d   :  { %v1335_v24 = vmul.f32 %v9805_v22, %v9801_v13 }
 0x96f   :  { %v1338_v25 = vpack.c.bf16 %v1335_v24, %v1335_v24 }
 0x970   :  { %v9807_v26 = vpop.eup %9806 }
 0x971   :  { %8826 = vmatmul.mubr.msk.bf16.vlgmr.msra.gmra.mxu1 %vm779_vm2, %v1338_v25  ;;  %v1337_v28 = vmul.f32 %v9807_v26, %v9803_v16  ;;  %v9734_v16 = vld [vmem:[%s12673_s8 + $0x8] sm:$0xff]   ;;  %s12689_s8 = sld [smem:[#allocation93_spill]] }
 0x972   :  { %8836 = vmatpush3.bf16.xpose.msra.mxu1 %v1444_v27  ;;  %8837 = vmatprep.mubr.msk.bf16.mxu1 %vm10857_vm0, %v10856_v0 }
 0x973   :  { %v1339_v30 = vpack.c.bf16 %v1337_v28, %v1337_v28  ;;  %8847 = vmatprep.subr.bf16.mxu1 %v10856_v0 }
 0x975   :  { %8832 = vmatmul.mubr.msk.bf16.vlgmr.msra.gmra.mxu0 %vm779_vm2, %v1339_v30 }
 0x976   :  { %8842 = vmatpush3.bf16.xpose.msra.mxu0 %v1494_v31  ;;  %8843 = vmatprep.mubr.msk.bf16.mxu0 %vm10857_vm0, %v10856_v0 }
 0x977   :  { %8853 = vmatprep.subr.bf16.mxu0 %v10856_v0 }
 0x979   :  { %8838 = vmatmul.mubr.msk.bf16.vlgmr.msra.gmra.mxu1 %vm779_vm2, %v1437_v32 }
 0x97a   :  { %8849 = vmatprep.mubr.msk.bf16.mxu1 %vm10857_vm0, %v10856_v0 }
 0x97d   :  { %8844 = vmatmul.mubr.msk.bf16.vlgmr.msra.gmra.mxu0 %vm779_vm2, %v1487_v33 }
 0x97e   :  { %8855 = vmatprep.mubr.msk.bf16.mxu0 %vm10857_vm0, %v10856_v0 }
 0xa31   :  { %v1382_v34 = vpop.f32.mrf.mxu1 }
 0xa33   :  { %v8827_v35 = vpop.f32.mrf.mxu1 }
 0xa35   :  { %v1385_v36 = vpop.f32.mrf.mxu1  ;;  %v1430_v37 = vpop.f32.mrf.mxu0 }
 0xa36   :  { %v9647_v55 = vpack.i.bf16 %v1430_v37, %v1382_v34 }
 0xa37   :  { %v8828_v38 = vpop.f32.mrf.mxu1  ;;  %v8833_v39 = vpop.f32.mrf.mxu0 }
 0xa39   :  { %v1433_v40 = vpop.f32.mrf.mxu0  ;;  %v1480_v41 = vpop.f32.mrf.mxu1 }
 0xa3a   :  { %v1536_v42 = vsel %vm779_vm2, %v1480_v41, -inf }
 0xa3b   :  { %v8834_v43 = vpop.f32.mrf.mxu0  ;;  %1537 = vmax.xlane.f32.xlu0 %v1536_v42  ;;  %v8839_v45 = vpop.f32.mrf.mxu1 }
 0xa3d   :  { %v1483_v46 = vpop.f32.mrf.mxu1  ;;  %v1530_v49 = vpop.f32.mrf.mxu0 }
 0xa3e   :  { %v1539_v50 = vsel %vm779_vm2, %v1530_v49, -inf }
 0xa3f   :  { %1540 = vmax.xlane.f32.xlu1 %v1539_v50  ;;  %v8840_v51 = vpop.f32.mrf.mxu1  ;;  %v8845_v52 = vpop.f32.mrf.mxu0 }
 0xa41   :  { %v1533_v53 = vpop.f32.mrf.mxu0 }
 0xa43   :  { %v8846_v54 = vpop.f32.mrf.mxu0 }
 0xa50   :  { %1560 = vrot.lane.b32.xlu1 %v11293_v10, %s10867_s10 }
 0xa54   :  { %9643 = vrot.lane.b32.xlu1 %v9642_v48, %s10868_s11 }
 0xa58   :  { %9648 = vrot.lane.b32.xlu1 %v9647_v55, %s10869_s24 }
 0xac4   :  { %v1538_v56 = vpop.xlane.xlu0 %1537 }
 0xac5   :  { %v1542_v58 = vsub.f32 %v1480_v41, %v1538_v56 }
 0xac7   :  { %v1544_v59 = vmul.f32 1.442695, %v1542_v58 }
 0xac8   :  { %v1541_v61 = vpop.xlane.xlu1 %1540 }
 0xac9   :  { %9808 = vpow2.f32 %v1544_v59  ;;  %v1543_v62 = vsub.f32 %v1530_v49, %v1541_v61 }
 0xacb   :  { %v1546_v63 = vmul.f32 1.442695, %v1543_v62 }
 0xacc   :  { %v1561_v1 = vpop.permute.xlu1 %1560 }
 0xacd   :  { %9810 = vpow2.f32 %v1546_v63  ;;  %v1566_v10 = vsel %vm904_vm3, %v1561_v1, 0 }
 0xace   :  { %8848 = vmatpush3.bf16.msra.mxu1 %v1566_v10 }
 0xacf   :  { %8859 = vmatprep.subr.bf16.mxu1 %v10856_v0 }
 0xad0   :  { %v9644_v27 = vpop.permute.xlu1 %9643 }
 0xad1   :  { %v9646_v29 = vunpack.i.h.bf16 %v9644_v27  ;;  %v9645_v30 = vunpack.i.l.bf16 %v9644_v27 }
 0xad3   :  { %v1681_v34 = vsel %vm779_vm2, %v11351_v60, %v9646_v29  ;;  %v1680_v35 = vsel %vm779_vm2, %v11349_v57, %v9645_v30  ;;  %v8297_v60 = vld [vmem:[%s12674_s3] ss:$0 sm:$0xff]  ;;  %s12690_s3 = sld [smem:[#allocation94_spill]] }
 0xad4   :  { %v9649_v28 = vpop.permute.xlu1 %9648 }
 0xad5   :  { %v9651_v31 = vunpack.i.h.bf16 %v9649_v28  ;;  %v9650_v32 = vunpack.i.l.bf16 %v9649_v28 }
 0xad6   :  { %v9809_v44 = vpop.eup %9808 }
 0xad7   :  { %v1548_v47 = vsel %vm779_vm2, %v9809_v44, 0.0  ;;  %v1684_v38 = vsel %vm1682_vm4, %v1681_v34, %v9651_v31  ;;  %v1683_v39 = vsel %vm1682_vm4, %v1680_v35, %v9650_v32  ;;  %v8307_v34 = vld [vmem:[%s12680_s6] ss:$0 sm:$0xff]  ;;  %s12696_s6 = sld [smem:[#allocation99_spill]] }
 0xad8   :  { %1549 = vadd.xlane.f32.xlu0 %v1548_v47  ;;  %v9738_v47 = vld [vmem:[%s12676_s19 + $0x18] sm:$0xff]  }
 0xada   :  { %v9811_v48 = vpop.eup %9810 }
 0xadb   :  { %v1551_v2 = vsel %vm779_vm2, %v9811_v48, 0.0 }
 0xadc   :  { %1552 = vadd.xlane.f32.xlu0 %v1551_v2 }
 0xaf2   :  { %1608 = vrot.lane.b32.xlu0 %v11297_v14, %s10867_s10 }
 0xb61   :  { %v1550_v5 = vpop.xlane.xlu0 %1549 }
 0xb62   :  { %9812 = vrcp.f32 %v1550_v5 }
 0xb65   :  { %v1553_v6 = vpop.xlane.xlu0 %1552 }
 0xb66   :  { %9814 = vrcp.f32 %v1553_v6 }
 0xb69   :  { %v1609_v7 = vpop.permute.xlu0 %1608 }
 0xb6a   :  { %v1614_v8 = vsel %vm904_vm3, %v1609_v7, 0 }
 0xb6b   :  { %8854 = vmatpush3.bf16.msra.mxu0 %v1614_v8 }
 0xb6c   :  { %8867 = vmatprep.subr.bf16.mxu0 %v10856_v0 }
 0xb6f   :  { %v9813_v9 = vpop.eup %9812 }
 0xb70   :  { %v1555_v11 = vmul.f32 %v9813_v9, %v9809_v44  ;;  %v9737_v44 = vld [vmem:[%s12675_s0] sm:$0xff]  }
 0xb72   :  { %v1558_v12 = vpack.c.bf16 %v1555_v11, %v1555_v11 }
 0xb73   :  { %v9815_v13 = vpop.eup %9814 }
 0xb74   :  { %8850 = vmatmul.mubr.msk.bf16.vlgmr.msra.gmra.mxu1 %vm779_vm2, %v1558_v12  ;;  %v1557_v15 = vmul.f32 %v9815_v13, %v9811_v48  ;;  %v8301_v12 = vld [vmem:[%s12677_s4] ss:$0 sm:$0xff]  ;;  %s12693_s4 = sld [smem:[#allocation96_spill]] }
 0xb75   :  { %8863 = vmatprep.mubr.msk.bf16.mxu1 %vm10857_vm0, %v10856_v0  ;;  %8860 = vmatpush3.bf16.msra.mxu1 %v9734_v16  ;;  %v8302_v16 = vld [vmem:[%s12678_s15] ss:$0 sm:$0xff]  ;;  %s12694_s15 = sld [smem:[#allocation98_spill]] }
 0xb76   :  { %v1559_v14 = vpack.c.bf16 %v1557_v15, %v1557_v15  ;;  %8861 = vmatprep.subr.bf16.mxu1 %v10856_v0 }
 0xb78   :  { %8856 = vmatmul.mubr.msk.bf16.vlgmr.msra.gmra.mxu0 %vm779_vm2, %v1559_v14 }
 0xb79   :  { %8871 = vmatprep.mubr.msk.bf16.mxu0 %vm10857_vm0, %v10856_v0  ;;  %8862 = vmatpush3.bf16.msra.mxu1 %v9735_v17 }
 0xb7a   :  { %8875 = vmatprep.subr.bf16.mxu1 %v10856_v0 }
 0xc34   :  { %v1602_v18 = vpop.f32.mrf.mxu1 }
 0xc36   :  { %v8851_v19 = vpop.f32.mrf.mxu1 }
 0xc38   :  { %v1605_v20 = vpop.f32.mrf.mxu1  ;;  %v1650_v21 = vpop.f32.mrf.mxu0 }
 0xc39   :  { %v9652_v22 = vpack.i.bf16 %v1650_v21, %v1602_v18  ;;  %v9739_v21 = vld [vmem:[%s12676_s19 + $0x10] sm:$0xff]  }
 0xc3a   :  { %v8852_v23 = vpop.f32.mrf.mxu1  ;;  %v8857_v24 = vpop.f32.mrf.mxu0 }
 0xc3b   :  { %9653 = vrot.lane.b32.xlu0 %v9652_v22, %s10870_s14  ;;  %v9740_v22 = vld [vmem:[%s12676_s19 + $0x8] sm:$0xff]   ;;  %v9741_v23 = vld [vmem:[%s12676_s19] sm:$0xff]   ;;  %s12692_s19 = sld [smem:[#allocation76_spill]] }
 0xc3c   :  { %v1653_v25 = vpop.f32.mrf.mxu0  ;;  %v8303_v24 = vld [vmem:[%s12679_s12] ss:$0 sm:$0xff]  ;;  %s12695_s12 = sld [smem:[#allocation103_spill]] }
 0xc3e   :  { %v8858_v26 = vpop.f32.mrf.mxu0 }
 0xcad   :  { %v9654_v33 = vpop.permute.xlu0 %9653 }
 0xcae   :  { %v9656_v36 = vunpack.i.h.bf16 %v9654_v33  ;;  %v9655_v37 = vunpack.i.l.bf16 %v9654_v33 }
 0xcb0   :  { %v1687_v40 = vsel %vm1685_vm5, %v1684_v38, %v9656_v36  ;;  %v1686_v41 = vsel %vm1685_vm5, %v1683_v39, %v9655_v37 }
 0xcb1   :  { %v1688_v42 = vpack.c.bf16 %v1687_v40, %v1686_v41 }
 0xcb3   :  { %8864 = vmatmul.mubr.msk.bf16.vlgmr.msra.gmra.mxu1 %vm729_vm1, %v1688_v42 }
 0xcb4   :  { %8883 = vmatprep.mubr.msk.bf16.mxu1 %vm10857_vm0, %v10856_v0  ;;  %8876 = vmatpush3.bf16.msra.mxu1 %v9738_v47 }
 0xcb5   :  { %8877 = vmatprep.subr.bf16.mxu1 %v10856_v0 }
 0xcb8   :  { %8878 = vmatpush3.bf16.msra.mxu1 %v9739_v21 }
 0xcb9   :  { %8879 = vmatprep.subr.bf16.mxu1 %v10856_v0 }
 0xcbc   :  { %8880 = vmatpush3.bf16.msra.mxu1 %v9740_v22 }
 0xcbd   :  { %8881 = vmatprep.subr.bf16.mxu1 %v10856_v0 }
 0xcc0   :  { %8882 = vmatpush3.bf16.msra.mxu1 %v9741_v23 }
 0xcc1   :  { %8901 = vmatprep.subr.bf16.mxu1 %v10856_v0 }
 0xd73   :  { %v1744_v43 = vpop.f32.mrf.mxu1 }
 0xd74   :  { %v1745_v45 = vadd.f32 %v8297_v60, %v1744_v43 }
 0xd75   :  { %v8865_v57 = vpop.f32.mrf.mxu1 }
 0xd76   :  { %v1751_v46 = vadd.f32 %v1745_v45, %v11280_v3 }
 0xd77   :  { %v1747_v49 = vpop.f32.mrf.mxu1 }
 0xd78   :  { %v1748_v50 = vadd.f32 %v8297_v60, %v1747_v49  ;;  %v1753_v51 = vsel %vm729_vm1, %v1751_v46, 0.0 }
 0xd79   :  { %1754 = vadd.xlane.f32.xlu1 %v1753_v51  ;;  %v8866_v52 = vpop.f32.mrf.mxu1 }
 0xd7a   :  { %v1752_v53 = vadd.f32 %v1748_v50, %v11283_v4  ;;  %v9736_v4 = vld [vmem:[%s12675_s0 + $0x8] sm:$0xff]   ;;  %s12691_s0 = sld [smem:[#allocation101_spill]] }
 0xd7b   :  { %8868 = vmatpush3.bf16.msra.mxu0 %v9736_v4 }
 0xd7c   :  { %v1756_v54 = vsel %vm729_vm1, %v1752_v53, 0.0  ;;  %8869 = vmatprep.subr.bf16.mxu0 %v10856_v0 }
 0xd7d   :  { %1757 = vadd.xlane.f32.xlu0 %v1756_v54 }
 0xd7f   :  { %8870 = vmatpush3.bf16.msra.mxu0 %v9737_v44  ;;  %v8313_v44 = vld [vmem:[%s12682_s16] ss:$0 sm:$0xff]  ;;  %s12698_s16 = sld [smem:[#allocation110_spill]] }
 0xd80   :  { %8887 = vmatprep.subr.bf16.mxu0 %v10856_v0 }
 0xe02   :  { %v1755_v55 = vpop.xlane.xlu1 %1754 }
 0xe03   :  { %v1760_v56 = vmul.f32 0.03125, %v1755_v55 }
 0xe05   :  { %v1762_v58 = vsub.f32 %v1751_v46, %v1760_v56  ;;  %v9742_v56 = vld [vmem:[%s12681_s27 + $0x8] sm:$0xff]  }
 0xe06   :  { %v1758_v59 = vpop.xlane.xlu0 %1757 }
 0xe07   :  { %v1761_v61 = vmul.f32 0.03125, %v1758_v59  ;;  %v1764_v3 = vmul.f32 %v1762_v58, %v1762_v58 }
 0xe09   :  { %v1763_v62 = vsub.f32 %v1752_v53, %v1761_v61  ;;  %v1766_v63 = vsel %vm729_vm1, %v1764_v3, 0.0 }
 0xe0a   :  { %1767 = vadd.xlane.f32.xlu0 %v1766_v63 }
 0xe0b   :  { %v1765_v1 = vmul.f32 %v1763_v62, %v1763_v62 }
 0xe0d   :  { %v1769_v10 = vsel %vm729_vm1, %v1765_v1, 0.0 }
 0xe0e   :  { %1770 = vadd.xlane.f32.xlu1 %v1769_v10 }
 0xe93   :  { %v1768_v48 = vpop.xlane.xlu0 %1767 }
 0xe94   :  { %v1772_v2 = vmul.f32 0.03125, %v1768_v48 }
 0xe96   :  { %v1774_v5 = vadd.f32 1e-05, %v1772_v2 }
 0xe97   :  { %v1771_v6 = vpop.xlane.xlu1 %1770 }
 0xe98   :  { %9816 = vrsqrt.f32 %v1774_v5  ;;  %v1773_v7 = vmul.f32 0.03125, %v1771_v6  ;;  %v8314_v5 = vld [vmem:[%s12683_s18] ss:$0 sm:$0xff]  ;;  %s12699_s18 = sld [smem:[#allocation113_spill]] }
 0xe9a   :  { %v1775_v8 = vadd.f32 1e-05, %v1773_v7 }
 0xe9c   :  { %9818 = vrsqrt.f32 %v1775_v8 }
 0xea5   :  { %v9817_v9 = vpop.eup %9816 }
 0xea6   :  { %v1778_v11 = vmul.f32 %v9817_v9, %v1762_v58  ;;  %v9743_v58 = vld [vmem:[%s12681_s27] sm:$0xff]   ;;  %s12697_s27 = sld [smem:[#allocation100_spill]] }
 0xea8   :  { %v1786_v14 = vmul.f32 %v8301_v12, %v1778_v11  ;;  %v8315_v11 = vld [vmem:[%s12684_s25] ss:$0 sm:$0xff] }
 0xea9   :  { %v9819_v13 = vpop.eup %9818 }
 0xeaa   :  { %v1779_v15 = vmul.f32 %v9819_v13, %v1763_v62  ;;  %v1794_v18 = vadd.f32 %v8302_v16, %v1786_v14 }
 0xeac   :  { %v1787_v17 = vmul.f32 %v8301_v12, %v1779_v15 }
 0xeae   :  { %v1795_v19 = vadd.f32 %v8302_v16, %v1787_v17 }
 0xeb0   :  { %v1796_v20 = vpack.c.bf16 %v1795_v19, %v1794_v18 }
 0xeb2   :  { %8872 = vmatmul.mubr.msk.bf16.vlgmr.msra.gmra.mxu0 %vm729_vm1, %v1796_v20 }
 0xeb3   :  { %8891 = vmatprep.mubr.msk.bf16.mxu0 %vm10857_vm0, %v10856_v0  ;;  %8888 = vmatpush3.bf16.msra.mxu0 %v9742_v56 }
 0xeb4   :  { %8889 = vmatprep.subr.bf16.mxu0 %v10856_v0 }
 0xeb7   :  { %8890 = vmatpush3.bf16.msra.mxu0 %v9743_v58 }
 0xeb8   :  { %8895 = vmatprep.subr.bf16.mxu0 %v10856_v0 }
 0xf72   :  { %v1852_v25 = vpop.f32.mrf.mxu0 }
 0xf73   :  { %v1853_v27 = vadd.f32 %v8303_v24, %v1852_v25 }
 0xf74   :  { %v8873_v26 = vpop.f32.mrf.mxu0 }
 0xf75   :  { %v1859_v31 = vmax.f32 %v1853_v27, 0.0 }
 0xf76   :  { %v1855_v28 = vpop.f32.mrf.mxu0 }
 0xf77   :  { %v1856_v29 = vadd.f32 %v8303_v24, %v1855_v28 }
 0xf78   :  { %v8874_v30 = vpop.f32.mrf.mxu0 }
 0xf79   :  { %v1860_v32 = vmax.f32 %v1856_v29, 0.0 }
 0xf7b   :  { %v1861_v33 = vpack.c.bf16 %v1860_v32, %v1859_v31 }
 0xf7d   :  { %8884 = vmatmul.mubr.msk.bf16.vlgmr.msra.gmra.mxu1 %vm1892_vm6, %v1861_v33 }
 0xf7e   :  { %8903 = vmatprep.mubr.msk.bf16.mxu1 %vm10857_vm0, %v10856_v0 }
0x103d   :  { %v1930_v35 = vpop.f32.mrf.mxu1 }
0x103e   :  { %v1931_v36 = vadd.f32 %v8307_v34, %v1930_v35 }
0x103f   :  { %v8885_v37 = vpop.f32.mrf.mxu1 }
0x1040   :  { %v1937_v38 = vadd.f32 %v1931_v36, %v1794_v18 }
0x1041   :  { %v1933_v39 = vpop.f32.mrf.mxu1 }
0x1042   :  { %v1934_v40 = vadd.f32 %v8307_v34, %v1933_v39  ;;  %v1939_v41 = vsel %vm729_vm1, %v1937_v38, 0.0 }
0x1043   :  { %1940 = vadd.xlane.f32.xlu0 %v1939_v41  ;;  %v8886_v42 = vpop.f32.mrf.mxu1 }
0x1044   :  { %v1938_v60 = vadd.f32 %v1934_v40, %v1795_v19 }
0x1046   :  { %v1942_v43 = vsel %vm729_vm1, %v1938_v60, 0.0 }
0x1047   :  { %1943 = vadd.xlane.f32.xlu1 %v1942_v43 }
0x10cc   :  { %v1941_v45 = vpop.xlane.xlu0 %1940 }
0x10cd   :  { %v1945_v57 = vmul.f32 0.03125, %v1941_v45 }
0x10cf   :  { %v1947_v46 = vsub.f32 %v1937_v38, %v1945_v57 }
0x10d0   :  { %v1944_v49 = vpop.xlane.xlu1 %1943 }
0x10d1   :  { %v1946_v50 = vmul.f32 0.03125, %v1944_v49  ;;  %v1949_v51 = vmul.f32 %v1947_v46, %v1947_v46 }
0x10d3   :  { %v1948_v52 = vsub.f32 %v1938_v60, %v1946_v50  ;;  %v1951_v53 = vsel %vm729_vm1, %v1949_v51, 0.0 }
0x10d4   :  { %1952 = vadd.xlane.f32.xlu0 %v1951_v53 }
0x10d5   :  { %v1950_v54 = vmul.f32 %v1948_v52, %v1948_v52 }
0x10d7   :  { %v1954_v55 = vsel %vm729_vm1, %v1950_v54, 0.0 }
0x10d8   :  { %1955 = vadd.xlane.f32.xlu1 %v1954_v55 }
0x115d   :  { %v1953_v59 = vpop.xlane.xlu0 %1952 }
0x115e   :  { %v1957_v61 = vmul.f32 0.03125, %v1953_v59 }
0x1160   :  { %v1959_v3 = vadd.f32 1e-05, %v1957_v61 }
0x1161   :  { %v1956_v62 = vpop.xlane.xlu1 %1955 }
0x1162   :  { %9820 = vrsqrt.f32 %v1959_v3  ;;  %v1958_v63 = vmul.f32 0.03125, %v1956_v62 }
0x1164   :  { %v1960_v1 = vadd.f32 1e-05, %v1958_v63 }
0x1166   :  { %9822 = vrsqrt.f32 %v1960_v1 }
0x116f   :  { %v9821_v10 = vpop.eup %9820 }
0x1170   :  { %v1963_v4 = vmul.f32 %v9821_v10, %v1947_v46 }
0x1172   :  { %v1971_v2 = vmul.f32 %v8313_v44, %v1963_v4 }
0x1173   :  { %v9823_v47 = vpop.eup %9822 }
0x1174   :  { %v1964_v48 = vmul.f32 %v9823_v47, %v1948_v52  ;;  %v11509_v7 = vadd.f32 %v8314_v5, %v1971_v2 }
0x1176   :  { %v1972_v6 = vmul.f32 %v8313_v44, %v1964_v48 }
0x1178   :  { %v11511_v8 = vadd.f32 %v8314_v5, %v1972_v6 }
0x117a   :  { %v2009_v9 = vpack.c.bf16 %v11511_v8, %v11509_v7 }
0x117c   :  { %8892 = vmatmul.mubr.msk.bf16.vlgmr.msra.gmra.mxu0 %vm729_vm1, %v2009_v9 }
0x117d   :  { %8897 = vmatprep.mubr.msk.bf16.mxu0 %vm10857_vm0, %v10856_v0 }
0x123c   :  { %v2065_v12 = vpop.f32.mrf.mxu0 }
0x123d   :  { %v2066_v13 = vadd.f32 %v8315_v11, %v2065_v12 }
0x123e   :  { %v8893_v15 = vpop.f32.mrf.mxu0 }
0x123f   :  { %v11519_v14 = vpack.c.bf16 %v2066_v13, %v2066_v13 }
0x1240   :  { %v2068_v16 = vpop.f32.mrf.mxu0 }
0x1241   :  { %v2069_v17 = vadd.f32 %v8315_v11, %v2068_v16  ;;  %2075 = vrot.lane.b32.xlu0 %v11519_v14, %s10858_s23 }
0x1242   :  { %v8894_v18 = vpop.f32.mrf.mxu0 }
0x1243   :  { %v11523_v19 = vpack.c.bf16 %v2069_v17, %v2069_v17 }
0x1245   :  { %2124 = vrot.lane.b32.xlu1 %v11523_v19, %s10858_s23 }
0x12b3   :  { %v2076_v20 = vpop.permute.xlu0 %2075 }
0x12b4   :  { %v2081_v21 = vsel %vm779_vm2, %v2076_v20, 0 }
0x12b5   :  { %8896 = vmatpush3.bf16.xpose.msra.mxu0 %v2081_v21 }
0x12b6   :  { %8907 = vmatprep.subr.bf16.mxu0 %v10856_v0 }
0x12b7   :  { %v2125_v22 = vpop.permute.xlu1 %2124 }
0x12b8   :  { %v2130_v23 = vsel %vm779_vm2, %v2125_v22, 0 }
0x12b9   :  { %8902 = vmatpush3.bf16.xpose.msra.mxu1 %v2130_v23 }
0x12ba   :  { %8913 = vmatprep.subr.bf16.mxu1 %v10856_v0 }
0x12bc   :  { %8898 = vmatmul.mubr.msk.bf16.vlgmr.msra.gmra.mxu0 %vm779_vm2, %v11519_v14 }
0x12bd   :  { %8909 = vmatprep.mubr.msk.bf16.mxu0 %vm10857_vm0, %v10856_v0 }
0x12c0   :  { %8904 = vmatmul.mubr.msk.bf16.vlgmr.msra.gmra.mxu1 %vm779_vm2, %v11523_v19 }
0x12c1   :  { %8915 = vmatprep.mubr.msk.bf16.mxu1 %vm10857_vm0, %v10856_v0 }
0x137c   :  { %v2117_v24 = vpop.f32.mrf.mxu0 }
0x137d   :  { %v2172_v25 = vsel %vm779_vm2, %v2117_v24, -inf }
0x137e   :  { %2173 = vmax.xlane.f32.xlu1 %v2172_v25  ;;  %v8899_v26 = vpop.f32.mrf.mxu0 }
0x1380   :  { %v2120_v27 = vpop.f32.mrf.mxu0  ;;  %v2166_v28 = vpop.f32.mrf.mxu1 }
0x1381   :  { %v2175_v29 = vsel %vm779_vm2, %v2166_v28, -inf }
0x1382   :  { %v8900_v30 = vpop.f32.mrf.mxu0  ;;  %2176 = vmax.xlane.f32.xlu0 %v2175_v29  ;;  %v8905_v31 = vpop.f32.mrf.mxu1 }
0x1384   :  { %v2169_v32 = vpop.f32.mrf.mxu1 }
0x1386   :  { %v8906_v33 = vpop.f32.mrf.mxu1 }
0x138f   :  { %2244 = vrot.lane.b32.xlu1 %v11523_v19, %s10832_s17 }
0x1398   :  { %2196 = vrot.lane.b32.xlu0 %v11519_v14, %s10832_s17 }
0x1407   :  { %v2174_v34 = vpop.xlane.xlu1 %2173 }
0x1408   :  { %v2178_v35 = vsub.f32 %v2117_v24, %v2174_v34 }
0x140a   :  { %v2180_v36 = vmul.f32 1.442695, %v2178_v35 }
0x140b   :  { %v2245_v37 = vpop.permute.xlu1 %2244  ;;  %v2177_v38 = vpop.xlane.xlu0 %2176 }
0x140c   :  { %9824 = vpow2.f32 %v2180_v36  ;;  %v2250_v39 = vsel %vm904_vm3, %v2245_v37, 0  ;;  %v2179_v40 = vsub.f32 %v2166_v28, %v2177_v38 }
0x140d   :  { %8914 = vmatpush3.bf16.msra.mxu1 %v2250_v39 }
0x140e   :  { %v2182_v41 = vmul.f32 1.442695, %v2179_v40  ;;  %8925 = vmatprep.subr.bf16.mxu1 %v10856_v0 }
0x140f   :  { %v2197_v42 = vpop.permute.xlu0 %2196 }
0x1410   :  { %9826 = vpow2.f32 %v2182_v41  ;;  %v2202_v60 = vsel %vm904_vm3, %v2197_v42, 0 }
0x1411   :  { %8908 = vmatpush3.bf16.msra.mxu0 %v2202_v60 }
0x1412   :  { %8919 = vmatprep.subr.bf16.mxu0 %v10856_v0 }
0x1419   :  { %v9825_v43 = vpop.eup %9824 }
0x141a   :  { %v2184_v45 = vsel %vm779_vm2, %v9825_v43, 0.0 }
0x141b   :  { %2185 = vadd.xlane.f32.xlu0 %v2184_v45 }
0x141d   :  { %v9827_v57 = vpop.eup %9826 }
0x141e   :  { %v2187_v46 = vsel %vm779_vm2, %v9827_v57, 0.0 }
0x141f   :  { %2188 = vadd.xlane.f32.xlu1 %v2187_v46 }
0x1430   :  { %2294 = vrot.lane.b32.xlu1 %v11519_v14, %s10859_s26 }
0x1431   :  { %2344 = vrot.lane.b32.xlu0 %v11523_v19, %s10859_s26 }
0x1434   :  { %2292 = vrot.lane.b32.xlu1 %v11519_v14, %s10860_s30 }
0x1435   :  { %2342 = vrot.lane.b32.xlu0 %v11523_v19, %s10860_s30 }
0x14a4   :  { %v2186_v49 = vpop.xlane.xlu0 %2185 }
0x14a5   :  { %9828 = vrcp.f32 %v2186_v49 }
0x14a8   :  { %v2189_v50 = vpop.xlane.xlu1 %2188  ;;  %v2345_v59 = vpop.permute.xlu0 %2344 }
0x14a9   :  { %9830 = vrcp.f32 %v2189_v50  ;;  %v2350_v3 = vsel %vm779_vm2, %v2345_v59, 0 }
0x14ac   :  { %v2295_v53 = vpop.permute.xlu1 %2294  ;;  %v2343_v63 = vpop.permute.xlu0 %2342 }
0x14ad   :  { %v2300_v56 = vsel %vm779_vm2, %v2295_v53, 0 }
0x14b0   :  { %v2293_v62 = vpop.permute.xlu1 %2292 }
0x14b2   :  { %v9829_v51 = vpop.eup %9828 }
0x14b3   :  { %v2191_v52 = vmul.f32 %v9829_v51, %v9825_v43 }
0x14b5   :  { %v2194_v54 = vpack.c.bf16 %v2191_v52, %v2191_v52 }
0x14b6   :  { %v9831_v55 = vpop.eup %9830 }
0x14b7   :  { %8910 = vmatmul.mubr.msk.bf16.vlgmr.msra.gmra.mxu0 %vm779_vm2, %v2194_v54  ;;  %v2193_v58 = vmul.f32 %v9831_v55, %v9827_v57 }
0x14b8   :  { %8920 = vmatpush3.bf16.xpose.msra.mxu0 %v2300_v56  ;;  %8921 = vmatprep.mubr.msk.bf16.mxu0 %vm10857_vm0, %v10856_v0 }
0x14b9   :  { %v2195_v61 = vpack.c.bf16 %v2193_v58, %v2193_v58  ;;  %8931 = vmatprep.subr.bf16.mxu0 %v10856_v0 }
0x14bb   :  { %8916 = vmatmul.mubr.msk.bf16.vlgmr.msra.gmra.mxu1 %vm779_vm2, %v2195_v61 }
0x14bc   :  { %8926 = vmatpush3.bf16.xpose.msra.mxu1 %v2350_v3  ;;  %8927 = vmatprep.mubr.msk.bf16.mxu1 %vm10857_vm0, %v10856_v0 }
0x14bd   :  { %8937 = vmatprep.subr.bf16.mxu1 %v10856_v0 }
0x14bf   :  { %8922 = vmatmul.mubr.msk.bf16.vlgmr.msra.gmra.mxu0 %vm779_vm2, %v2293_v62 }
0x14c0   :  { %8933 = vmatprep.mubr.msk.bf16.mxu0 %vm10857_vm0, %v10856_v0 }
0x14c3   :  { %8928 = vmatmul.mubr.msk.bf16.vlgmr.msra.gmra.mxu1 %vm779_vm2, %v2343_v63 }
0x14c4   :  { %8939 = vmatprep.mubr.msk.bf16.mxu1 %vm10857_vm0, %v10856_v0 }
0x1577   :  { %v11575_v1 = vpop.f32.mrf.mxu0 }
0x1579   :  { %v8911_v10 = vpop.f32.mrf.mxu0 }
0x157b   :  { %v2241_v4 = vpop.f32.mrf.mxu0  ;;  %v11577_v44 = vpop.f32.mrf.mxu1 }
0x157d   :  { %v8912_v47 = vpop.f32.mrf.mxu0  ;;  %v8917_v48 = vpop.f32.mrf.mxu1 }
0x157f   :  { %v2289_v2 = vpop.f32.mrf.mxu1  ;;  %v2336_v5 = vpop.f32.mrf.mxu0 }
0x1580   :  { %v2392_v6 = vsel %vm779_vm2, %v2336_v5, -inf }
0x1581   :  { %2393 = vmax.xlane.f32.xlu1 %v2392_v6  ;;  %v8918_v9 = vpop.f32.mrf.mxu1  ;;  %v8923_v11 = vpop.f32.mrf.mxu0 }
0x1583   :  { %v2339_v12 = vpop.f32.mrf.mxu0  ;;  %v2386_v13 = vpop.f32.mrf.mxu1 }
0x1584   :  { %v2395_v15 = vsel %vm779_vm2, %v2386_v13, -inf }
0x1585   :  { %v8924_v16 = vpop.f32.mrf.mxu0  ;;  %2396 = vmax.xlane.f32.xlu0 %v2395_v15  ;;  %v8929_v17 = vpop.f32.mrf.mxu1 }
0x1587   :  { %v2389_v18 = vpop.f32.mrf.mxu1 }
0x1589   :  { %v8930_v20 = vpop.f32.mrf.mxu1 }
0x1592   :  { %2464 = vrot.lane.b32.xlu1 %v11523_v19, %s10861_s28 }
0x159b   :  { %2416 = vrot.lane.b32.xlu0 %v11519_v14, %s10861_s28 }
0x160a   :  { %v2394_v21 = vpop.xlane.xlu1 %2393 }
0x160b   :  { %v2398_v22 = vsub.f32 %v2336_v5, %v2394_v21 }
0x160d   :  { %v2400_v23 = vmul.f32 1.442695, %v2398_v22 }
0x160e   :  { %v2465_v24 = vpop.permute.xlu1 %2464  ;;  %v2397_v25 = vpop.xlane.xlu0 %2396 }
0x160f   :  { %9832 = vpow2.f32 %v2400_v23  ;;  %v2470_v26 = vsel %vm904_vm3, %v2465_v24, 0  ;;  %v2399_v27 = vsub.f32 %v2386_v13, %v2397_v25 }
0x1610   :  { %8938 = vmatpush3.bf16.msra.mxu1 %v2470_v26 }
0x1611   :  { %v2402_v28 = vmul.f32 1.442695, %v2399_v27  ;;  %8949 = vmatprep.subr.bf16.mxu1 %v10856_v0 }
0x1612   :  { %v2417_v29 = vpop.permute.xlu0 %2416 }
0x1613   :  { %9834 = vpow2.f32 %v2402_v28  ;;  %v2422_v30 = vsel %vm904_vm3, %v2417_v29, 0 }
0x1614   :  { %8932 = vmatpush3.bf16.msra.mxu0 %v2422_v30 }
0x1615   :  { %8943 = vmatprep.subr.bf16.mxu0 %v10856_v0 }
0x161c   :  { %v9833_v31 = vpop.eup %9832 }
0x161d   :  { %v2404_v32 = vsel %vm779_vm2, %v9833_v31, 0.0 }
0x161e   :  { %2405 = vadd.xlane.f32.xlu0 %v2404_v32 }
0x1620   :  { %v9835_v33 = vpop.eup %9834 }
0x1621   :  { %v2407_v34 = vsel %vm779_vm2, %v9835_v33, 0.0 }
0x1622   :  { %2408 = vadd.xlane.f32.xlu1 %v2407_v34 }
0x1633   :  { %2514 = vrot.lane.b32.xlu1 %v11519_v14, %s10862_s29 }
0x1634   :  { %2564 = vrot.lane.b32.xlu0 %v11523_v19, %s10862_s29 }
0x1637   :  { %2512 = vrot.lane.b32.xlu1 %v11519_v14, %s10863_s21 }
0x1638   :  { %2562 = vrot.lane.b32.xlu0 %v11523_v19, %s10863_s21 }
0x16a7   :  { %v2406_v35 = vpop.xlane.xlu0 %2405 }
0x16a8   :  { %9836 = vrcp.f32 %v2406_v35 }
0x16ab   :  { %v2409_v36 = vpop.xlane.xlu1 %2408  ;;  %v2565_v43 = vpop.permute.xlu0 %2564 }
0x16ac   :  { %9838 = vrcp.f32 %v2409_v36  ;;  %v2570_v57 = vsel %vm779_vm2, %v2565_v43, 0 }
0x16af   :  { %v2515_v39 = vpop.permute.xlu1 %2514  ;;  %v2563_v49 = vpop.permute.xlu0 %2562 }
0x16b0   :  { %v2520_v42 = vsel %vm779_vm2, %v2515_v39, 0 }
0x16b3   :  { %v2513_v46 = vpop.permute.xlu1 %2512 }
0x16b5   :  { %v9837_v37 = vpop.eup %9836 }
0x16b6   :  { %v2411_v38 = vmul.f32 %v9837_v37, %v9833_v31 }
0x16b8   :  { %v2414_v40 = vpack.c.bf16 %v2411_v38, %v2411_v38 }
0x16b9   :  { %v9839_v41 = vpop.eup %9838 }
0x16ba   :  { %8934 = vmatmul.mubr.msk.bf16.vlgmr.msra.gmra.mxu0 %vm779_vm2, %v2414_v40  ;;  %v2413_v60 = vmul.f32 %v9839_v41, %v9835_v33 }
0x16bb   :  { %8944 = vmatpush3.bf16.xpose.msra.mxu0 %v2520_v42  ;;  %8945 = vmatprep.mubr.msk.bf16.mxu0 %vm10857_vm0, %v10856_v0 }
0x16bc   :  { %v2415_v45 = vpack.c.bf16 %v2413_v60, %v2413_v60  ;;  %8955 = vmatprep.subr.bf16.mxu0 %v10856_v0 }
0x16be   :  { %8940 = vmatmul.mubr.msk.bf16.vlgmr.msra.gmra.mxu1 %vm779_vm2, %v2415_v45 }
0x16bf   :  { %8950 = vmatpush3.bf16.xpose.msra.mxu1 %v2570_v57  ;;  %8951 = vmatprep.mubr.msk.bf16.mxu1 %vm10857_vm0, %v10856_v0 }
0x16c0   :  { %8961 = vmatprep.subr.bf16.mxu1 %v10856_v0 }
0x16c2   :  { %8946 = vmatmul.mubr.msk.bf16.vlgmr.msra.gmra.mxu0 %vm779_vm2, %v2513_v46 }
0x16c3   :  { %8957 = vmatprep.mubr.msk.bf16.mxu0 %vm10857_vm0, %v10856_v0 }
0x16c6   :  { %8952 = vmatmul.mubr.msk.bf16.vlgmr.msra.gmra.mxu1 %vm779_vm2, %v2563_v49 }
0x16c7   :  { %8963 = vmatprep.mubr.msk.bf16.mxu1 %vm10857_vm0, %v10856_v0 }
0x177a   :  { %v11615_v50 = vpop.f32.mrf.mxu0 }
0x177c   :  { %v8935_v51 = vpop.f32.mrf.mxu0 }
0x177e   :  { %v2461_v52 = vpop.f32.mrf.mxu0  ;;  %v11617_v53 = vpop.f32.mrf.mxu1 }
0x177f   :  { %v9657_v54 = vpack.i.bf16 %v11617_v53, %v11615_v50 }
0x1780   :  { %v8936_v55 = vpop.f32.mrf.mxu0  ;;  %v8941_v56 = vpop.f32.mrf.mxu1 }
0x1782   :  { %v2509_v58 = vpop.f32.mrf.mxu1  ;;  %v2556_v59 = vpop.f32.mrf.mxu0 }
0x1783   :  { %v2612_v61 = vsel %vm779_vm2, %v2556_v59, -inf }
0x1784   :  { %2613 = vmax.xlane.f32.xlu1 %v2612_v61  ;;  %v8942_v3 = vpop.f32.mrf.mxu1  ;;  %v8947_v62 = vpop.f32.mrf.mxu0 }
0x1786   :  { %v2559_v63 = vpop.f32.mrf.mxu0  ;;  %v2606_v10 = vpop.f32.mrf.mxu1 }
0x1787   :  { %v2615_v4 = vsel %vm779_vm2, %v2606_v10, -inf }
0x1788   :  { %v8948_v47 = vpop.f32.mrf.mxu0  ;;  %2616 = vmax.xlane.f32.xlu0 %v2615_v4  ;;  %v8953_v48 = vpop.f32.mrf.mxu1 }
0x178a   :  { %v2609_v2 = vpop.f32.mrf.mxu1 }
0x178c   :  { %v8954_v5 = vpop.f32.mrf.mxu1 }
0x1795   :  { %2684 = vrot.lane.b32.xlu1 %v11523_v19, %s10864_s1 }
0x179e   :  { %2636 = vrot.lane.b32.xlu0 %v11519_v14, %s10864_s1 }
0x180d   :  { %v2614_v6 = vpop.xlane.xlu1 %2613 }
0x180e   :  { %v2618_v9 = vsub.f32 %v2556_v59, %v2614_v6 }
0x1810   :  { %v2620_v11 = vmul.f32 1.442695, %v2618_v9 }
0x1811   :  { %v2685_v12 = vpop.permute.xlu1 %2684  ;;  %v2617_v13 = vpop.xlane.xlu0 %2616 }
0x1812   :  { %9840 = vpow2.f32 %v2620_v11  ;;  %v2690_v15 = vsel %vm904_vm3, %v2685_v12, 0  ;;  %v2619_v16 = vsub.f32 %v2606_v10, %v2617_v13 }
0x1813   :  { %8962 = vmatpush3.bf16.msra.mxu1 %v2690_v15 }
0x1814   :  { %v2622_v17 = vmul.f32 1.442695, %v2619_v16  ;;  %8973 = vmatprep.subr.bf16.mxu1 %v10856_v0 }
0x1815   :  { %v2637_v18 = vpop.permute.xlu0 %2636 }
0x1816   :  { %9842 = vpow2.f32 %v2622_v17  ;;  %v2642_v20 = vsel %vm904_vm3, %v2637_v18, 0 }
0x1817   :  { %8956 = vmatpush3.bf16.msra.mxu0 %v2642_v20 }
0x1818   :  { %8967 = vmatprep.subr.bf16.mxu0 %v10856_v0 }
0x181f   :  { %v9841_v21 = vpop.eup %9840 }
0x1820   :  { %v2624_v22 = vsel %vm779_vm2, %v9841_v21, 0.0 }
0x1821   :  { %2625 = vadd.xlane.f32.xlu0 %v2624_v22  ;;  %v9745_v22 = vld [vmem:[%s12685_s22] sm:$0xff]  }
0x1823   :  { %v9843_v23 = vpop.eup %9842 }
0x1824   :  { %v2627_v24 = vsel %vm779_vm2, %v9843_v23, 0.0 }
0x1825   :  { %2628 = vadd.xlane.f32.xlu1 %v2627_v24 }
0x1836   :  { %2734 = vrot.lane.b32.xlu1 %v11519_v14, %s10865_s2 }
0x1837   :  { %2784 = vrot.lane.b32.xlu0 %v11523_v19, %s10865_s2 }
0x183a   :  { %2732 = vrot.lane.b32.xlu1 %v11519_v14, %s10866_s7 }
0x183b   :  { %2782 = vrot.lane.b32.xlu0 %v11523_v19, %s10866_s7 }
0x18aa   :  { %v2626_v25 = vpop.xlane.xlu0 %2625 }
0x18ab   :  { %9844 = vrcp.f32 %v2626_v25 }
0x18ae   :  { %v2629_v26 = vpop.xlane.xlu1 %2628  ;;  %v2785_v34 = vpop.permute.xlu0 %2784 }
0x18af   :  { %9846 = vrcp.f32 %v2629_v26  ;;  %v2790_v36 = vsel %vm779_vm2, %v2785_v34, 0 }
0x18b2   :  { %v2735_v29 = vpop.permute.xlu1 %2734  ;;  %v2783_v38 = vpop.permute.xlu0 %2782 }
0x18b3   :  { %v2740_v32 = vsel %vm779_vm2, %v2735_v29, 0 }
0x18b6   :  { %v2733_v37 = vpop.permute.xlu1 %2732 }
0x18b8   :  { %v9845_v27 = vpop.eup %9844 }
0x18b9   :  { %v2631_v28 = vmul.f32 %v9845_v27, %v9841_v21  ;;  %v9744_v21 = vld [vmem:[%s12685_s22 + $0x8] sm:$0xff]  }
0x18bb   :  { %v2634_v30 = vpack.c.bf16 %v2631_v28, %v2631_v28 }
0x18bc   :  { %v9847_v31 = vpop.eup %9846 }
0x18bd   :  { %8958 = vmatmul.mubr.msk.bf16.vlgmr.msra.gmra.mxu0 %vm779_vm2, %v2634_v30  ;;  %v2633_v33 = vmul.f32 %v9847_v31, %v9843_v23 }
0x18be   :  { %8968 = vmatpush3.bf16.xpose.msra.mxu0 %v2740_v32  ;;  %8969 = vmatprep.mubr.msk.bf16.mxu0 %vm10857_vm0, %v10856_v0 }
0x18bf   :  { %v2635_v35 = vpack.c.bf16 %v2633_v33, %v2633_v33  ;;  %8979 = vmatprep.subr.bf16.mxu0 %v10856_v0 }
0x18c1   :  { %8964 = vmatmul.mubr.msk.bf16.vlgmr.msra.gmra.mxu1 %vm779_vm2, %v2635_v35 }
0x18c2   :  { %8974 = vmatpush3.bf16.xpose.msra.mxu1 %v2790_v36  ;;  %8975 = vmatprep.mubr.msk.bf16.mxu1 %vm10857_vm0, %v10856_v0 }
0x18c3   :  { %8985 = vmatprep.subr.bf16.mxu1 %v10856_v0 }
0x18c5   :  { %8970 = vmatmul.mubr.msk.bf16.vlgmr.msra.gmra.mxu0 %vm779_vm2, %v2733_v37 }
0x18c6   :  { %8981 = vmatprep.mubr.msk.bf16.mxu0 %vm10857_vm0, %v10856_v0 }
0x18c9   :  { %8976 = vmatmul.mubr.msk.bf16.vlgmr.msra.gmra.mxu1 %vm779_vm2, %v2783_v38 }
0x18ca   :  { %8987 = vmatprep.mubr.msk.bf16.mxu1 %vm10857_vm0, %v10856_v0 }
0x197d   :  { %v2678_v39 = vpop.f32.mrf.mxu0 }
0x197f   :  { %v8959_v40 = vpop.f32.mrf.mxu0 }
0x1981   :  { %v2681_v41 = vpop.f32.mrf.mxu0  ;;  %v2726_v42 = vpop.f32.mrf.mxu1 }
0x1982   :  { %v9662_v60 = vpack.i.bf16 %v2726_v42, %v2678_v39 }
0x1983   :  { %v8960_v43 = vpop.f32.mrf.mxu0  ;;  %v8965_v45 = vpop.f32.mrf.mxu1 }
0x1985   :  { %v2729_v57 = vpop.f32.mrf.mxu1  ;;  %v2776_v46 = vpop.f32.mrf.mxu0 }
0x1986   :  { %v2832_v49 = vsel %vm779_vm2, %v2776_v46, -inf }
0x1987   :  { %2833 = vmax.xlane.f32.xlu1 %v2832_v49  ;;  %v8966_v51 = vpop.f32.mrf.mxu1  ;;  %v8971_v52 = vpop.f32.mrf.mxu0 }
0x1989   :  { %v2779_v55 = vpop.f32.mrf.mxu0  ;;  %v2826_v56 = vpop.f32.mrf.mxu1 }
0x198a   :  { %v2835_v58 = vsel %vm779_vm2, %v2826_v56, -inf }
0x198b   :  { %v8972_v59 = vpop.f32.mrf.mxu0  ;;  %2836 = vmax.xlane.f32.xlu0 %v2835_v58  ;;  %v8977_v61 = vpop.f32.mrf.mxu1 }
0x198d   :  { %v2829_v3 = vpop.f32.mrf.mxu1 }
0x198f   :  { %v8978_v62 = vpop.f32.mrf.mxu1 }
0x1a10   :  { %v2834_v63 = vpop.xlane.xlu1 %2833 }
0x1a11   :  { %v2838_v10 = vsub.f32 %v2776_v46, %v2834_v63 }
0x1a13   :  { %v2840_v4 = vmul.f32 1.442695, %v2838_v10 }
0x1a14   :  { %v2837_v47 = vpop.xlane.xlu0 %2836 }
0x1a15   :  { %9848 = vpow2.f32 %v2840_v4  ;;  %v2839_v48 = vsub.f32 %v2826_v56, %v2837_v47 }
0x1a17   :  { %v2842_v2 = vmul.f32 1.442695, %v2839_v48 }
0x1a19   :  { %9850 = vpow2.f32 %v2842_v2 }
0x1a22   :  { %v9849_v5 = vpop.eup %9848 }
0x1a23   :  { %v2844_v6 = vsel %vm779_vm2, %v9849_v5, 0.0 }
0x1a24   :  { %2845 = vadd.xlane.f32.xlu0 %v2844_v6 }
0x1a26   :  { %v9851_v9 = vpop.eup %9850 }
0x1a27   :  { %v2847_v11 = vsel %vm779_vm2, %v9851_v9, 0.0 }
0x1a28   :  { %2848 = vadd.xlane.f32.xlu1 %v2847_v11  ;;  %v9750_v11 = vld [vmem:[%s12688_s5 + $0x18] sm:$0xff]  }
0x1a39   :  { %2904 = vrot.lane.b32.xlu1 %v11523_v19, %s10867_s10 }
0x1a3a   :  { %2856 = vrot.lane.b32.xlu0 %v11519_v14, %s10867_s10 }
0x1a3d   :  { %9658 = vrot.lane.b32.xlu1 %v9657_v54, %s10868_s11 }
0x1a3e   :  { %9663 = vrot.lane.b32.xlu0 %v9662_v60, %s10869_s24 }
0x1aad   :  { %v2846_v12 = vpop.xlane.xlu0 %2845 }
0x1aae   :  { %9852 = vrcp.f32 %v2846_v12 }
0x1ab1   :  { %v2849_v13 = vpop.xlane.xlu1 %2848  ;;  %v2857_v15 = vpop.permute.xlu0 %2856 }
0x1ab2   :  { %9854 = vrcp.f32 %v2849_v13  ;;  %v2862_v16 = vsel %vm904_vm3, %v2857_v15, 0 }
0x1ab3   :  { %8980 = vmatpush3.bf16.msra.mxu0 %v2862_v16 }
0x1ab4   :  { %8991 = vmatprep.subr.bf16.mxu0 %v10856_v0 }
0x1ab5   :  { %v2905_v19 = vpop.permute.xlu1 %2904  ;;  %v9664_v35 = vpop.permute.xlu0 %9663 }
0x1ab6   :  { %v2910_v14 = vsel %vm904_vm3, %v2905_v19, 0  ;;  %v9666_v38 = vunpack.i.h.bf16 %v9664_v35  ;;  %v9665_v39 = vunpack.i.l.bf16 %v9664_v35 }
0x1ab7   :  { %8986 = vmatpush3.bf16.msra.mxu1 %v2910_v14 }
0x1ab8   :  { %8999 = vmatprep.subr.bf16.mxu1 %v10856_v0 }
0x1ab9   :  { %v9659_v32 = vpop.permute.xlu1 %9658 }
0x1aba   :  { %v9661_v33 = vunpack.i.h.bf16 %v9659_v32  ;;  %v9660_v34 = vunpack.i.l.bf16 %v9659_v32  ;;  %v9752_v32 = vld [vmem:[%s12688_s5 + $0x8] sm:$0xff]  }
0x1abb   :  { %v9853_v50 = vpop.eup %9852 }
0x1abc   :  { %v2851_v53 = vmul.f32 %v9853_v50, %v9849_v5  ;;  %v2977_v36 = vsel %vm779_vm2, %v11577_v44, %v9661_v33  ;;  %v2976_v37 = vsel %vm779_vm2, %v11575_v1, %v9660_v34  ;;  %v8335_v1 = vld [vmem:[%s12686_s9] ss:$0 sm:$0xff] }
0x1abd   :  { %v2978_v60 = vsel %vm1682_vm4, %v2976_v37, %v9665_v39  ;;  %v2979_v43 = vsel %vm1682_vm4, %v2977_v36, %v9666_v38  ;;  %v9753_v33 = vld [vmem:[%s12688_s5] sm:$0xff]  }
0x1abe   :  { %v2854_v54 = vpack.c.bf16 %v2851_v53, %v2851_v53  ;;  %v8341_v34 = vld [vmem:[%s12693_s4] ss:$0 sm:$0xff] }
0x1abf   :  { %v9855_v17 = vpop.eup %9854 }
0x1ac0   :  { %8982 = vmatmul.mubr.msk.bf16.vlgmr.msra.gmra.mxu0 %vm779_vm2, %v2854_v54  ;;  %v2853_v18 = vmul.f32 %v9855_v17, %v9851_v9  ;;  %v9747_v9 = vld [vmem:[%s12687_s13] sm:$0xff]  }
0x1ac1   :  { %8995 = vmatprep.mubr.msk.bf16.mxu0 %vm10857_vm0, %v10856_v0  ;;  %8992 = vmatpush3.bf16.msra.mxu0 %v9744_v21  ;;  %v8339_v54 = vld [vmem:[%s12689_s8] ss:$0 sm:$0xff] }
0x1ac2   :  { %v2855_v20 = vpack.c.bf16 %v2853_v18, %v2853_v18  ;;  %8993 = vmatprep.subr.bf16.mxu0 %v10856_v0  ;;  %v8340_v21 = vld [vmem:[%s12690_s3] ss:$0 sm:$0xff] }
0x1ac4   :  { %8988 = vmatmul.mubr.msk.bf16.vlgmr.msra.gmra.mxu1 %vm779_vm2, %v2855_v20 }
0x1ac5   :  { %9003 = vmatprep.mubr.msk.bf16.mxu1 %vm10857_vm0, %v10856_v0  ;;  %8994 = vmatpush3.bf16.msra.mxu0 %v9745_v22 }
0x1ac6   :  { %9007 = vmatprep.subr.bf16.mxu0 %v10856_v0 }
0x1b80   :  { %v2898_v23 = vpop.f32.mrf.mxu0 }
0x1b82   :  { %v8983_v24 = vpop.f32.mrf.mxu0 }
0x1b84   :  { %v2901_v25 = vpop.f32.mrf.mxu0  ;;  %v2946_v26 = vpop.f32.mrf.mxu1 }
0x1b85   :  { %v9667_v27 = vpack.i.bf16 %v2946_v26, %v2898_v23  ;;  %v9748_v25 = vld [vmem:[%s12691_s0 + $0x8] sm:$0xff]  }
0x1b86   :  { %v8984_v28 = vpop.f32.mrf.mxu0  ;;  %v8989_v29 = vpop.f32.mrf.mxu1 }
0x1b87   :  { %9668 = vrot.lane.b32.xlu1 %v9667_v27, %s10870_s14  ;;  %v9749_v27 = vld [vmem:[%s12691_s0] sm:$0xff]   ;;  %v11726_v29 = vld [vmem:[%s12692_s19 + $0x8] sm:$0xff] }
0x1b88   :  { %v2949_v30 = vpop.f32.mrf.mxu1  ;;  %v11723_v28 = vld [vmem:[%s12692_s19] sm:$0xff] }
0x1b89   :  { %v3320_v30 = vpack.c.bf16 %v11726_v29, %v11723_v28 }
0x1b8a   :  { %v8990_v31 = vpop.f32.mrf.mxu1 }
0x1b8b   :  { %v9751_v31 = vld [vmem:[%s12688_s5 + $0x10] sm:$0xff]  }
0x1bf9   :  { %v9669_v40 = vpop.permute.xlu1 %9668 }
0x1bfa   :  { %v9671_v41 = vunpack.i.h.bf16 %v9669_v40  ;;  %v9670_v42 = vunpack.i.l.bf16 %v9669_v40 }
0x1bfc   :  { %v2981_v45 = vsel %vm1685_vm5, %v2979_v43, %v9671_v41  ;;  %v2980_v57 = vsel %vm1685_vm5, %v2978_v60, %v9670_v42  ;;  %v8353_v41 = vld [vmem:[#allocation2] ss:$0 sm:$0xff] }
0x1bfd   :  { %v2982_v46 = vpack.c.bf16 %v2981_v45, %v2980_v57 }
0x1bff   :  { %8996 = vmatmul.mubr.msk.bf16.vlgmr.msra.gmra.mxu0 %vm729_vm1, %v2982_v46 }
0x1c00   :  { %9015 = vmatprep.mubr.msk.bf16.mxu0 %vm10857_vm0, %v10856_v0  ;;  %9008 = vmatpush3.bf16.msra.mxu0 %v9750_v11 }
0x1c01   :  { %9009 = vmatprep.subr.bf16.mxu0 %v10856_v0 }
0x1c04   :  { %9010 = vmatpush3.bf16.msra.mxu0 %v9751_v31 }
0x1c05   :  { %9011 = vmatprep.subr.bf16.mxu0 %v10856_v0 }
0x1c08   :  { %9012 = vmatpush3.bf16.msra.mxu0 %v9752_v32 }
0x1c09   :  { %9013 = vmatprep.subr.bf16.mxu0 %v10856_v0 }
0x1c0c   :  { %9014 = vmatpush3.bf16.msra.mxu0 %v9753_v33 }
0x1c0d   :  { %9033 = vmatprep.subr.bf16.mxu0 %v10856_v0 }
0x1cbf   :  { %v3038_v44 = vpop.f32.mrf.mxu0 }
0x1cc0   :  { %v3039_v49 = vadd.f32 %v8335_v1, %v3038_v44 }
0x1cc1   :  { %v8997_v51 = vpop.f32.mrf.mxu0 }
0x1cc2   :  { %v3045_v52 = vadd.f32 %v3039_v49, %v11509_v7 }
0x1cc3   :  { %v3041_v55 = vpop.f32.mrf.mxu0 }
0x1cc4   :  { %v3042_v56 = vadd.f32 %v8335_v1, %v3041_v55  ;;  %v3047_v58 = vsel %vm729_vm1, %v3045_v52, 0.0 }
0x1cc5   :  { %3048 = vadd.xlane.f32.xlu0 %v3047_v58  ;;  %v8998_v59 = vpop.f32.mrf.mxu0 }
0x1cc6   :  { %v3046_v61 = vadd.f32 %v3042_v56, %v11511_v8  ;;  %v9746_v8 = vld [vmem:[%s12687_s13 + $0x8] sm:$0xff]  }
0x1cc7   :  { %9000 = vmatpush3.bf16.msra.mxu1 %v9746_v8 }
0x1cc8   :  { %v3050_v3 = vsel %vm729_vm1, %v3046_v61, 0.0  ;;  %9001 = vmatprep.subr.bf16.mxu1 %v10856_v0 }
0x1cc9   :  { %3051 = vadd.xlane.f32.xlu1 %v3050_v3 }
0x1ccb   :  { %9002 = vmatpush3.bf16.msra.mxu1 %v9747_v9 }
0x1ccc   :  { %9019 = vmatprep.subr.bf16.mxu1 %v10856_v0 }
0x1d4e   :  { %v3049_v62 = vpop.xlane.xlu0 %3048 }
0x1d4f   :  { %v3053_v63 = vmul.f32 0.03125, %v3049_v62  ;;  %v11768_v62 = vld [vmem:[%s12694_s15] ss:$0 sm:$0xff] }
0x1d51   :  { %v3055_v10 = vsub.f32 %v3045_v52, %v3053_v63 }
0x1d52   :  { %v3052_v4 = vpop.xlane.xlu1 %3051 }
0x1d53   :  { %v3054_v47 = vmul.f32 0.03125, %v3052_v4  ;;  %v3057_v7 = vmul.f32 %v3055_v10, %v3055_v10 }
0x1d55   :  { %v3056_v48 = vsub.f32 %v3046_v61, %v3054_v47  ;;  %v3059_v2 = vsel %vm729_vm1, %v3057_v7, 0.0 }
0x1d56   :  { %3060 = vadd.xlane.f32.xlu0 %v3059_v2 }
0x1d57   :  { %v3058_v5 = vmul.f32 %v3056_v48, %v3056_v48 }
0x1d59   :  { %v3062_v6 = vsel %vm729_vm1, %v3058_v5, 0.0 }
0x1d5a   :  { %3063 = vadd.xlane.f32.xlu0 %v3062_v6 }
0x1ddf   :  { %v3061_v12 = vpop.xlane.xlu0 %3060 }
0x1de0   :  { %v3065_v13 = vmul.f32 0.03125, %v3061_v12 }
0x1de2   :  { %v3067_v15 = vadd.f32 1e-05, %v3065_v13 }
0x1de3   :  { %v3064_v16 = vpop.xlane.xlu0 %3063 }
0x1de4   :  { %9856 = vrsqrt.f32 %v3067_v15  ;;  %v3066_v19 = vmul.f32 0.03125, %v3064_v16 }
0x1de6   :  { %v3068_v14 = vadd.f32 1e-05, %v3066_v19 }
0x1de8   :  { %9858 = vrsqrt.f32 %v3068_v14 }
0x1df1   :  { %v9857_v50 = vpop.eup %9856 }
0x1df2   :  { %v3071_v53 = vmul.f32 %v9857_v50, %v3055_v10 }
0x1df4   :  { %v3079_v20 = vmul.f32 %v8339_v54, %v3071_v53 }
0x1df5   :  { %v9859_v17 = vpop.eup %9858 }
0x1df6   :  { %v3072_v18 = vmul.f32 %v9859_v17, %v3056_v48  ;;  %v11711_v23 = vadd.f32 %v8340_v21, %v3079_v20 }
0x1df8   :  { %v3080_v22 = vmul.f32 %v8339_v54, %v3072_v18 }
0x1dfa   :  { %v11713_v24 = vadd.f32 %v8340_v21, %v3080_v22 }
0x1dfc   :  { %v3089_v26 = vpack.c.bf16 %v11713_v24, %v11711_v23 }
0x1dfe   :  { %9004 = vmatmul.mubr.msk.bf16.vlgmr.msra.gmra.mxu1 %vm729_vm1, %v3089_v26 }
0x1dff   :  { %9020 = vmatpush3.bf16.msra.mxu1 %v9748_v25  ;;  %9023 = vmatprep.mubr.msk.bf16.mxu1 %vm10857_vm0, %v10856_v0 }
0x1e00   :  { %9021 = vmatprep.subr.bf16.mxu1 %v10856_v0 }
0x1e03   :  { %9022 = vmatpush3.bf16.msra.mxu1 %v9749_v27 }
0x1e04   :  { %9027 = vmatprep.subr.bf16.mxu1 %v10856_v0 }
0x1e06   :  { %9024 = vmatmul.mubr.msk.bf16.vlgmr.msra.gmra.mxu1 %vm729_vm1, %v3320_v30 }
0x1e07   :  { %9029 = vmatprep.mubr.msk.bf16.mxu1 %vm10857_vm0, %v10856_v0 }
0x1ebe   :  { %v3145_v35 = vpop.f32.mrf.mxu1 }
0x1ebf   :  { %v3146_v37 = vadd.f32 %v8341_v34, %v3145_v35 }
0x1ec0   :  { %v9005_v36 = vpop.f32.mrf.mxu1 }
0x1ec1   :  { %v3152_v42 = vmax.f32 %v3146_v37, 0.0 }
0x1ec2   :  { %v3148_v38 = vpop.f32.mrf.mxu1 }
0x1ec3   :  { %v3149_v39 = vadd.f32 %v8341_v34, %v3148_v38 }
0x1ec4   :  { %v9006_v40 = vpop.f32.mrf.mxu1 }
0x1ec5   :  { %v3153_v60 = vmax.f32 %v3149_v39, 0.0 }
0x1ec6   :  { %v3376_v43 = vpop.f32.mrf.mxu1 }
0x1ec7   :  { %v3154_v45 = vpack.c.bf16 %v3153_v60, %v3152_v42  ;;  %v3377_v57 = vadd.f32 %v8353_v41, %v3376_v43 }
0x1ec8   :  { %v9025_v46 = vpop.f32.mrf.mxu1 }
0x1ec9   :  { %v11742_v1 = vpack.c.bf16 %v3377_v57, %v3377_v57  ;;  %9016 = vmatmul.mubr.msk.bf16.vlgmr.msra.gmra.mxu0 %vm1892_vm6, %v3154_v45 }
0x1eca   :  { %v3379_v44 = vpop.f32.mrf.mxu1  ;;  %9035 = vmatprep.mubr.msk.bf16.mxu0 %vm10857_vm0, %v10856_v0 }
0x1ecb   :  { %v3380_v49 = vadd.f32 %v8353_v41, %v3379_v44  ;;  %3386 = vrot.lane.b32.xlu1 %v11742_v1, %s10858_s23 }
0x1ecc   :  { %v9026_v51 = vpop.f32.mrf.mxu1 }
0x1ecd   :  { %v11749_v52 = vpack.c.bf16 %v3380_v49, %v3380_v49 }
0x1ecf   :  { %3435 = vrot.lane.b32.xlu0 %v11749_v52, %s10858_s23 }
0x1f3d   :  { %v3387_v55 = vpop.permute.xlu1 %3386 }
0x1f3e   :  { %v3392_v56 = vsel %vm779_vm2, %v3387_v55, 0 }
0x1f3f   :  { %9028 = vmatpush3.bf16.xpose.msra.mxu1 %v3392_v56 }
0x1f40   :  { %9039 = vmatprep.subr.bf16.mxu1 %v10856_v0 }
0x1f41   :  { %v3436_v58 = vpop.permute.xlu0 %3435 }
0x1f42   :  { %v3441_v59 = vsel %vm779_vm2, %v3436_v58, 0 }
0x1f43   :  { %9034 = vmatpush3.bf16.xpose.msra.mxu0 %v3441_v59 }
0x1f44   :  { %9045 = vmatprep.subr.bf16.mxu0 %v10856_v0 }
0x1f46   :  { %9030 = vmatmul.mubr.msk.bf16.vlgmr.msra.gmra.mxu1 %vm779_vm2, %v11742_v1 }
0x1f47   :  { %9041 = vmatprep.mubr.msk.bf16.mxu1 %vm10857_vm0, %v10856_v0 }
0x1f4a   :  { %9036 = vmatmul.mubr.msk.bf16.vlgmr.msra.gmra.mxu0 %vm779_vm2, %v11749_v52 }
0x1f4b   :  { %9047 = vmatprep.mubr.msk.bf16.mxu0 %vm10857_vm0, %v10856_v0 }
0x1f89   :  { %v11765_v61 = vpop.f32.mrf.mxu0 }
0x1f8b   :  { %v9017_v3 = vpop.f32.mrf.mxu0 }
0x1f8d   :  { %v3225_v63 = vpop.f32.mrf.mxu0 }
0x1f8e   :  { %v11771_v10 = vadd.f32 %v11768_v62, %v3225_v63 }
0x1f8f   :  { %v9018_v4 = vpop.f32.mrf.mxu0 }
0x2006   :  { %v3428_v47 = vpop.f32.mrf.mxu1 }
0x2007   :  { %v3483_v7 = vsel %vm779_vm2, %v3428_v47, -inf }
0x2008   :  { %3484 = vmax.xlane.f32.xlu1 %v3483_v7  ;;  %v9031_v48 = vpop.f32.mrf.mxu1 }
0x200a   :  { %v3431_v2 = vpop.f32.mrf.mxu1  ;;  %v3477_v5 = vpop.f32.mrf.mxu0 }
0x200b   :  { %v3486_v6 = vsel %vm779_vm2, %v3477_v5, -inf }
0x200c   :  { %3487 = vmax.xlane.f32.xlu0 %v3486_v6  ;;  %v9032_v8 = vpop.f32.mrf.mxu1  ;;  %v9037_v9 = vpop.f32.mrf.mxu0 }
0x200e   :  { %v3480_v11 = vpop.f32.mrf.mxu0 }
0x2010   :  { %v9038_v12 = vpop.f32.mrf.mxu0 }
0x2019   :  { %3507 = vrot.lane.b32.xlu1 %v11742_v1, %s10832_s17 }
0x2091   :  { %v3485_v13 = vpop.xlane.xlu1 %3484 }
0x2092   :  { %v3489_v15 = vsub.f32 %v3428_v47, %v3485_v13 }
0x2094   :  { %v3491_v16 = vmul.f32 1.442695, %v3489_v15 }
0x2095   :  { %v3488_v19 = vpop.xlane.xlu0 %3487  ;;  %v3508_v14 = vpop.permute.xlu1 %3507 }
0x2096   :  { %9860 = vpow2.f32 %v3491_v16  ;;  %v3490_v50 = vsub.f32 %v3477_v5, %v3488_v19  ;;  %v3513_v53 = vsel %vm904_vm3, %v3508_v14, 0 }
0x2097   :  { %9040 = vmatpush3.bf16.msra.mxu1 %v3513_v53 }
0x2098   :  { %v3493_v54 = vmul.f32 1.442695, %v3490_v50  ;;  %9051 = vmatprep.subr.bf16.mxu1 %v10856_v0 }
0x209a   :  { %9862 = vpow2.f32 %v3493_v54 }
0x20a3   :  { %v9861_v17 = vpop.eup %9860 }
0x20a4   :  { %v3495_v18 = vsel %vm779_vm2, %v9861_v17, 0.0 }
0x20a5   :  { %3496 = vadd.xlane.f32.xlu1 %v3495_v18 }
0x20a7   :  { %v9863_v20 = vpop.eup %9862 }
0x20a8   :  { %v3498_v21 = vsel %vm779_vm2, %v9863_v20, 0.0 }
0x20a9   :  { %3499 = vadd.xlane.f32.xlu0 %v3498_v21 }
0x20b6   :  { %3605 = vrot.lane.b32.xlu1 %v11742_v1, %s10859_s26 }
0x20ba   :  { %3655 = vrot.lane.b32.xlu1 %v11749_v52, %s10859_s26 }
0x20be   :  { %3653 = vrot.lane.b32.xlu1 %v11749_v52, %s10860_s30 }
0x20bf   :  { %3555 = vrot.lane.b32.xlu0 %v11749_v52, %s10832_s17 }
0x20c3   :  { %3603 = vrot.lane.b32.xlu0 %v11742_v1, %s10860_s30 }
0x212e   :  { %v3497_v22 = vpop.xlane.xlu1 %3496 }
0x212f   :  { %9864 = vrcp.f32 %v3497_v22 }
0x2132   :  { %v3500_v25 = vpop.xlane.xlu0 %3499  ;;  %v3606_v31 = vpop.permute.xlu1 %3605 }
0x2133   :  { %9866 = vrcp.f32 %v3500_v25  ;;  %v3611_v35 = vsel %vm779_vm2, %v3606_v31, 0 }
0x2136   :  { %v3556_v26 = vpop.permute.xlu0 %3555  ;;  %v3656_v37 = vpop.permute.xlu1 %3655 }
0x2137   :  { %v3561_v27 = vsel %vm904_vm3, %v3556_v26, 0  ;;  %v3661_v39 = vsel %vm779_vm2, %v3656_v37, 0 }
0x2138   :  { %9046 = vmatpush3.bf16.msra.mxu0 %v3561_v27 }
0x2139   :  { %9057 = vmatprep.subr.bf16.mxu0 %v10856_v0 }
0x213a   :  { %v3604_v40 = vpop.permute.xlu0 %3603  ;;  %v3654_v41 = vpop.permute.xlu1 %3653 }
0x213c   :  { %v9865_v30 = vpop.eup %9864 }
0x213d   :  { %v3502_v32 = vmul.f32 %v9865_v30, %v9861_v17 }
0x213f   :  { %v3505_v33 = vpack.c.bf16 %v3502_v32, %v3502_v32 }
0x2140   :  { %v9867_v34 = vpop.eup %9866 }
0x2141   :  { %9042 = vmatmul.mubr.msk.bf16.vlgmr.msra.gmra.mxu1 %vm779_vm2, %v3505_v33  ;;  %v3504_v36 = vmul.f32 %v9867_v34, %v9863_v20 }
0x2142   :  { %9052 = vmatpush3.bf16.xpose.msra.mxu1 %v3611_v35  ;;  %9053 = vmatprep.mubr.msk.bf16.mxu1 %vm10857_vm0, %v10856_v0 }
0x2143   :  { %v3506_v38 = vpack.c.bf16 %v3504_v36, %v3504_v36  ;;  %9063 = vmatprep.subr.bf16.mxu1 %v10856_v0 }
0x2145   :  { %9048 = vmatmul.mubr.msk.bf16.vlgmr.msra.gmra.mxu0 %vm779_vm2, %v3506_v38 }
0x2146   :  { %9058 = vmatpush3.bf16.xpose.msra.mxu0 %v3661_v39  ;;  %9059 = vmatprep.mubr.msk.bf16.mxu0 %vm10857_vm0, %v10856_v0 }
0x2147   :  { %9069 = vmatprep.subr.bf16.mxu0 %v10856_v0 }
0x2149   :  { %9054 = vmatmul.mubr.msk.bf16.vlgmr.msra.gmra.mxu1 %vm779_vm2, %v3604_v40 }
0x214a   :  { %9065 = vmatprep.mubr.msk.bf16.mxu1 %vm10857_vm0, %v10856_v0 }
0x214d   :  { %9060 = vmatmul.mubr.msk.bf16.vlgmr.msra.gmra.mxu0 %vm779_vm2, %v3654_v41 }
0x214e   :  { %9071 = vmatprep.mubr.msk.bf16.mxu0 %vm10857_vm0, %v10856_v0 }
0x2201   :  { %v11809_v42 = vpop.f32.mrf.mxu1 }
0x2203   :  { %v9043_v60 = vpop.f32.mrf.mxu1 }
0x2205   :  { %v3552_v43 = vpop.f32.mrf.mxu1  ;;  %v11811_v45 = vpop.f32.mrf.mxu0 }
0x2207   :  { %v9044_v57 = vpop.f32.mrf.mxu1  ;;  %v9049_v46 = vpop.f32.mrf.mxu0 }
0x2209   :  { %v3600_v44 = vpop.f32.mrf.mxu0  ;;  %v3647_v49 = vpop.f32.mrf.mxu1 }
0x220a   :  { %v3703_v51 = vsel %vm779_vm2, %v3647_v49, -inf }
0x220b   :  { %v9050_v55 = vpop.f32.mrf.mxu0  ;;  %3704 = vmax.xlane.f32.xlu0 %v3703_v51  ;;  %v9055_v56 = vpop.f32.mrf.mxu1 }
0x220d   :  { %v3650_v58 = vpop.f32.mrf.mxu1  ;;  %v3697_v59 = vpop.f32.mrf.mxu0 }
0x220e   :  { %v3706_v3 = vsel %vm779_vm2, %v3697_v59, -inf }
0x220f   :  { %3707 = vmax.xlane.f32.xlu1 %v3706_v3  ;;  %v9056_v63 = vpop.f32.mrf.mxu1  ;;  %v9061_v4 = vpop.f32.mrf.mxu0 }
0x2211   :  { %v3700_v47 = vpop.f32.mrf.mxu0 }
0x2213   :  { %v9062_v7 = vpop.f32.mrf.mxu0 }
0x2220   :  { %3727 = vrot.lane.b32.xlu1 %v11742_v1, %s10861_s28 }
0x2224   :  { %3825 = vrot.lane.b32.xlu1 %v11742_v1, %s10862_s29 }
0x2228   :  { %3875 = vrot.lane.b32.xlu1 %v11749_v52, %s10862_s29 }
0x222c   :  { %3873 = vrot.lane.b32.xlu1 %v11749_v52, %s10863_s21 }
0x2294   :  { %v3705_v48 = vpop.xlane.xlu0 %3704 }
0x2295   :  { %v3709_v2 = vsub.f32 %v3647_v49, %v3705_v48 }
0x2297   :  { %v3711_v5 = vmul.f32 1.442695, %v3709_v2 }
0x2298   :  { %v3708_v6 = vpop.xlane.xlu1 %3707 }
0x2299   :  { %9868 = vpow2.f32 %v3711_v5  ;;  %v3710_v8 = vsub.f32 %v3697_v59, %v3708_v6 }
0x229b   :  { %v3713_v9 = vmul.f32 1.442695, %v3710_v8 }
0x229c   :  { %v3728_v11 = vpop.permute.xlu1 %3727 }
0x229d   :  { %9870 = vpow2.f32 %v3713_v9  ;;  %v3733_v12 = vsel %vm904_vm3, %v3728_v11, 0 }
0x229e   :  { %9064 = vmatpush3.bf16.msra.mxu1 %v3733_v12 }
0x229f   :  { %9075 = vmatprep.subr.bf16.mxu1 %v10856_v0 }
0x22a0   :  { %v3826_v18 = vpop.permute.xlu1 %3825 }
0x22a1   :  { %v3831_v25 = vsel %vm779_vm2, %v3826_v18, 0 }
0x22a4   :  { %v3876_v27 = vpop.permute.xlu1 %3875 }
0x22a5   :  { %v3881_v31 = vsel %vm779_vm2, %v3876_v27, 0 }
0x22a6   :  { %v9869_v13 = vpop.eup %9868 }
0x22a7   :  { %v3715_v15 = vsel %vm779_vm2, %v9869_v13, 0.0 }
0x22a8   :  { %3716 = vadd.xlane.f32.xlu0 %v3715_v15  ;;  %v3874_v33 = vpop.permute.xlu1 %3873 }
0x22aa   :  { %v9871_v16 = vpop.eup %9870 }
0x22ab   :  { %v3718_v19 = vsel %vm779_vm2, %v9871_v16, 0.0 }
0x22ac   :  { %3719 = vadd.xlane.f32.xlu0 %v3718_v19 }
0x22c2   :  { %3775 = vrot.lane.b32.xlu0 %v11749_v52, %s10861_s28 }
0x22c6   :  { %3823 = vrot.lane.b32.xlu0 %v11742_v1, %s10863_s21 }
0x2331   :  { %v3717_v14 = vpop.xlane.xlu0 %3716 }
0x2332   :  { %9872 = vrcp.f32 %v3717_v14 }
0x2335   :  { %v3720_v50 = vpop.xlane.xlu0 %3719 }
0x2336   :  { %9874 = vrcp.f32 %v3720_v50 }
0x2339   :  { %v3776_v53 = vpop.permute.xlu0 %3775 }
0x233a   :  { %v3781_v54 = vsel %vm904_vm3, %v3776_v53, 0 }
0x233b   :  { %9070 = vmatpush3.bf16.msra.mxu0 %v3781_v54 }
0x233c   :  { %9081 = vmatprep.subr.bf16.mxu0 %v10856_v0 }
0x233d   :  { %v3824_v32 = vpop.permute.xlu0 %3823 }
0x233f   :  { %v9873_v17 = vpop.eup %9872 }
0x2340   :  { %v3722_v20 = vmul.f32 %v9873_v17, %v9869_v13 }
0x2342   :  { %v3725_v21 = vpack.c.bf16 %v3722_v20, %v3722_v20 }
0x2343   :  { %v9875_v22 = vpop.eup %9874 }
0x2344   :  { %9066 = vmatmul.mubr.msk.bf16.vlgmr.msra.gmra.mxu1 %vm779_vm2, %v3725_v21  ;;  %v3724_v26 = vmul.f32 %v9875_v22, %v9871_v16 }
0x2345   :  { %9076 = vmatpush3.bf16.xpose.msra.mxu1 %v3831_v25  ;;  %9077 = vmatprep.mubr.msk.bf16.mxu1 %vm10857_vm0, %v10856_v0 }
0x2346   :  { %v3726_v30 = vpack.c.bf16 %v3724_v26, %v3724_v26  ;;  %9087 = vmatprep.subr.bf16.mxu1 %v10856_v0 }
0x2348   :  { %9072 = vmatmul.mubr.msk.bf16.vlgmr.msra.gmra.mxu0 %vm779_vm2, %v3726_v30 }
0x2349   :  { %9082 = vmatpush3.bf16.xpose.msra.mxu0 %v3881_v31  ;;  %9083 = vmatprep.mubr.msk.bf16.mxu0 %vm10857_vm0, %v10856_v0 }
0x234a   :  { %9093 = vmatprep.subr.bf16.mxu0 %v10856_v0 }
0x234c   :  { %9078 = vmatmul.mubr.msk.bf16.vlgmr.msra.gmra.mxu1 %vm779_vm2, %v3824_v32 }
0x234d   :  { %9089 = vmatprep.mubr.msk.bf16.mxu1 %vm10857_vm0, %v10856_v0 }
0x2350   :  { %9084 = vmatmul.mubr.msk.bf16.vlgmr.msra.gmra.mxu0 %vm779_vm2, %v3874_v33 }
0x2351   :  { %9095 = vmatprep.mubr.msk.bf16.mxu0 %vm10857_vm0, %v10856_v0 }
0x2404   :  { %v11849_v34 = vpop.f32.mrf.mxu1 }
0x2406   :  { %v9067_v35 = vpop.f32.mrf.mxu1 }
0x2408   :  { %v3772_v36 = vpop.f32.mrf.mxu1  ;;  %v11851_v37 = vpop.f32.mrf.mxu0 }
0x2409   :  { %v9672_v38 = vpack.i.bf16 %v11851_v37, %v11849_v34 }
0x240a   :  { %v9068_v39 = vpop.f32.mrf.mxu1  ;;  %v9073_v40 = vpop.f32.mrf.mxu0 }
0x240c   :  { %v3820_v41 = vpop.f32.mrf.mxu0  ;;  %v3867_v60 = vpop.f32.mrf.mxu1 }
0x240d   :  { %v3923_v43 = vsel %vm779_vm2, %v3867_v60, -inf }
0x240e   :  { %v9074_v57 = vpop.f32.mrf.mxu0  ;;  %3924 = vmax.xlane.f32.xlu0 %v3923_v43  ;;  %v9079_v46 = vpop.f32.mrf.mxu1 }
0x2410   :  { %v3870_v44 = vpop.f32.mrf.mxu1  ;;  %v3917_v49 = vpop.f32.mrf.mxu0 }
0x2411   :  { %v3926_v51 = vsel %vm779_vm2, %v3917_v49, -inf }
0x2412   :  { %3927 = vmax.xlane.f32.xlu1 %v3926_v51  ;;  %v9080_v55 = vpop.f32.mrf.mxu1  ;;  %v9085_v56 = vpop.f32.mrf.mxu0 }
0x2414   :  { %v3920_v58 = vpop.f32.mrf.mxu0 }
0x2415   :  { %v3223_v58 = vadd.f32 %v11768_v62, %v11765_v61 }
0x2416   :  { %v9086_v59 = vpop.f32.mrf.mxu0 }
0x2417   :  { %v11903_v59 = vadd.f32 %v3223_v58, %v11711_v23 }
0x2423   :  { %3947 = vrot.lane.b32.xlu1 %v11742_v1, %s10864_s1 }
0x2427   :  { %4045 = vrot.lane.b32.xlu1 %v11742_v1, %s10865_s2 }
0x242b   :  { %4095 = vrot.lane.b32.xlu1 %v11749_v52, %s10865_s2 }
0x242f   :  { %4093 = vrot.lane.b32.xlu1 %v11749_v52, %s10866_s7 }
0x2497   :  { %v3925_v3 = vpop.xlane.xlu0 %3924 }
0x2498   :  { %v3929_v63 = vsub.f32 %v3867_v60, %v3925_v3  ;;  %v3231_v3 = vsel %vm729_vm1, %v11903_v59, 0.0 }
0x249a   :  { %v3931_v4 = vmul.f32 1.442695, %v3929_v63 }
0x249b   :  { %v3928_v47 = vpop.xlane.xlu1 %3927 }
0x249c   :  { %9876 = vpow2.f32 %v3931_v4  ;;  %v3930_v7 = vsub.f32 %v3917_v49, %v3928_v47 }
0x249e   :  { %v3933_v48 = vmul.f32 1.442695, %v3930_v7 }
0x249f   :  { %v3948_v2 = vpop.permute.xlu1 %3947 }
0x24a0   :  { %9878 = vpow2.f32 %v3933_v48  ;;  %v3953_v5 = vsel %vm904_vm3, %v3948_v2, 0 }
0x24a1   :  { %9088 = vmatpush3.bf16.msra.mxu1 %v3953_v5 }
0x24a2   :  { %9099 = vmatprep.subr.bf16.mxu1 %v10856_v0 }
0x24a3   :  { %v4046_v14 = vpop.permute.xlu1 %4045 }
0x24a4   :  { %v4051_v17 = vsel %vm779_vm2, %v4046_v14, 0 }
0x24a7   :  { %v4096_v20 = vpop.permute.xlu1 %4095 }
0x24a8   :  { %v4101_v22 = vsel %vm779_vm2, %v4096_v20, 0 }
0x24a9   :  { %v9877_v6 = vpop.eup %9876 }
0x24aa   :  { %v3935_v8 = vsel %vm779_vm2, %v9877_v6, 0.0 }
0x24ab   :  { %3936 = vadd.xlane.f32.xlu0 %v3935_v8  ;;  %v4094_v26 = vpop.permute.xlu1 %4093 }
0x24ad   :  { %v9879_v9 = vpop.eup %9878 }
0x24ae   :  { %v3938_v11 = vsel %vm779_vm2, %v9879_v9, 0.0 }
0x24af   :  { %3939 = vadd.xlane.f32.xlu0 %v3938_v11 }
0x24c5   :  { %3995 = vrot.lane.b32.xlu0 %v11749_v52, %s10864_s1 }
0x24c9   :  { %4043 = vrot.lane.b32.xlu0 %v11742_v1, %s10866_s7 }
0x2534   :  { %v3937_v12 = vpop.xlane.xlu0 %3936 }
0x2535   :  { %9880 = vrcp.f32 %v3937_v12 }
0x2538   :  { %v3940_v13 = vpop.xlane.xlu0 %3939 }
0x2539   :  { %9882 = vrcp.f32 %v3940_v13 }
0x253c   :  { %v3996_v15 = vpop.permute.xlu0 %3995 }
0x253d   :  { %v4001_v16 = vsel %vm904_vm3, %v3996_v15, 0 }
0x253e   :  { %9094 = vmatpush3.bf16.msra.mxu0 %v4001_v16  ;;  %v9754_v16 = vld [vmem:[%s12695_s12 + $0x8] sm:$0xff]  }
0x253f   :  { %9105 = vmatprep.subr.bf16.mxu0 %v10856_v0 }
0x2540   :  { %v4044_v25 = vpop.permute.xlu0 %4043 }
0x2542   :  { %v9881_v19 = vpop.eup %9880 }
0x2543   :  { %v3942_v50 = vmul.f32 %v9881_v19, %v9877_v6  ;;  %v9755_v19 = vld [vmem:[%s12695_s12] sm:$0xff]  }
0x2545   :  { %v3945_v53 = vpack.c.bf16 %v3942_v50, %v3942_v50 }
0x2546   :  { %v9883_v54 = vpop.eup %9882 }
0x2547   :  { %9090 = vmatmul.mubr.msk.bf16.vlgmr.msra.gmra.mxu1 %vm779_vm2, %v3945_v53  ;;  %v3944_v18 = vmul.f32 %v9883_v54, %v9879_v9 }
0x2548   :  { %9100 = vmatpush3.bf16.xpose.msra.mxu1 %v4051_v17  ;;  %9101 = vmatprep.mubr.msk.bf16.mxu1 %vm10857_vm0, %v10856_v0 }
0x2549   :  { %v3946_v21 = vpack.c.bf16 %v3944_v18, %v3944_v18  ;;  %9111 = vmatprep.subr.bf16.mxu1 %v10856_v0 }
0x254b   :  { %9096 = vmatmul.mubr.msk.bf16.vlgmr.msra.gmra.mxu0 %vm779_vm2, %v3946_v21 }
0x254c   :  { %9106 = vmatpush3.bf16.xpose.msra.mxu0 %v4101_v22  ;;  %9107 = vmatprep.mubr.msk.bf16.mxu0 %vm10857_vm0, %v10856_v0 }
0x254d   :  { %9117 = vmatprep.subr.bf16.mxu0 %v10856_v0 }
0x254f   :  { %9102 = vmatmul.mubr.msk.bf16.vlgmr.msra.gmra.mxu1 %vm779_vm2, %v4044_v25  ;;  %v3230_v25 = vadd.f32 %v11771_v10, %v11713_v24 }
0x2550   :  { %9113 = vmatprep.mubr.msk.bf16.mxu1 %vm10857_vm0, %v10856_v0 }
0x2553   :  { %9108 = vmatmul.mubr.msk.bf16.vlgmr.msra.gmra.mxu0 %vm779_vm2, %v4094_v26  ;;  %v3234_v26 = vsel %vm729_vm1, %v3230_v25, 0.0 }
0x2554   :  { %9119 = vmatprep.mubr.msk.bf16.mxu0 %vm10857_vm0, %v10856_v0 }
0x2607   :  { %v3989_v27 = vpop.f32.mrf.mxu1 }
0x2609   :  { %v9091_v30 = vpop.f32.mrf.mxu1 }
0x260b   :  { %v3992_v31 = vpop.f32.mrf.mxu1  ;;  %v4037_v32 = vpop.f32.mrf.mxu0 }
0x260c   :  { %v9677_v56 = vpack.i.bf16 %v4037_v32, %v3989_v27 }
0x260d   :  { %v9092_v33 = vpop.f32.mrf.mxu1  ;;  %v9097_v35 = vpop.f32.mrf.mxu0 }
0x260f   :  { %v4040_v36 = vpop.f32.mrf.mxu0  ;;  %v4087_v39 = vpop.f32.mrf.mxu1 }
0x2610   :  { %v4143_v40 = vsel %vm779_vm2, %v4087_v39, -inf }
0x2611   :  { %v9098_v41 = vpop.f32.mrf.mxu0  ;;  %4144 = vmax.xlane.f32.xlu0 %v4143_v40  ;;  %v9103_v60 = vpop.f32.mrf.mxu1 }
0x2613   :  { %v4090_v43 = vpop.f32.mrf.mxu1  ;;  %v4137_v57 = vpop.f32.mrf.mxu0 }
0x2614   :  { %v4146_v46 = vsel %vm779_vm2, %v4137_v57, -inf }
0x2615   :  { %4147 = vmax.xlane.f32.xlu1 %v4146_v46  ;;  %v9104_v44 = vpop.f32.mrf.mxu1  ;;  %v9109_v49 = vpop.f32.mrf.mxu0 }
0x2617   :  { %v4140_v51 = vpop.f32.mrf.mxu0 }
0x2619   :  { %v9110_v55 = vpop.f32.mrf.mxu0 }
0x2626   :  { %4167 = vrot.lane.b32.xlu1 %v11742_v1, %s10867_s10 }
0x262a   :  { %9673 = vrot.lane.b32.xlu1 %v9672_v38, %s10868_s11 }
0x262e   :  { %9678 = vrot.lane.b32.xlu1 %v9677_v56, %s10869_s24 }
0x2652   :  { %3232 = vadd.xlane.f32.xlu1 %v3231_v3 }
0x269a   :  { %v4145_v63 = vpop.xlane.xlu0 %4144 }
0x269b   :  { %v4149_v1 = vsub.f32 %v4087_v39, %v4145_v63 }
0x269d   :  { %v4151_v4 = vmul.f32 1.442695, %v4149_v1 }
0x269e   :  { %v4148_v47 = vpop.xlane.xlu1 %4147 }
0x269f   :  { %9884 = vpow2.f32 %v4151_v4  ;;  %v4150_v34 = vsub.f32 %v4137_v57, %v4148_v47 }
0x26a1   :  { %v4153_v37 = vmul.f32 1.442695, %v4150_v34 }
0x26a2   :  { %v4168_v38 = vpop.permute.xlu1 %4167 }
0x26a3   :  { %9886 = vpow2.f32 %v4153_v37  ;;  %v4173_v7 = vsel %vm904_vm3, %v4168_v38, 0 }
0x26a4   :  { %9112 = vmatpush3.bf16.msra.mxu1 %v4173_v7 }
0x26a5   :  { %9123 = vmatprep.subr.bf16.mxu1 %v10856_v0 }
0x26a6   :  { %v9674_v27 = vpop.permute.xlu1 %9673 }
0x26a7   :  { %v9676_v31 = vunpack.i.h.bf16 %v9674_v27  ;;  %v9675_v32 = vunpack.i.l.bf16 %v9674_v27 }
0x26a9   :  { %v4288_v39 = vsel %vm779_vm2, %v11811_v45, %v9676_v31  ;;  %v4287_v40 = vsel %vm779_vm2, %v11809_v42, %v9675_v32  ;;  %v8373_v42 = vld [vmem:[#allocation5] ss:$0 sm:$0xff]  ;;  %v9758_v32 = vld [vmem:[#allocation10 + $0x8] sm:$0xff]  }
0x26aa   :  { %v9679_v30 = vpop.permute.xlu1 %9678 }
0x26ab   :  { %v9681_v33 = vunpack.i.h.bf16 %v9679_v30  ;;  %v9680_v35 = vunpack.i.l.bf16 %v9679_v30 }
0x26ac   :  { %v9885_v23 = vpop.eup %9884 }
0x26ad   :  { %v4155_v61 = vsel %vm779_vm2, %v9885_v23, 0.0  ;;  %v4290_v24 = vsel %vm1682_vm4, %v4288_v39, %v9681_v33  ;;  %v4289_v10 = vsel %vm1682_vm4, %v4287_v40, %v9680_v35  ;;  %v9759_v33 = vld [vmem:[#allocation10] sm:$0xff]  }
0x26ae   :  { %4156 = vadd.xlane.f32.xlu0 %v4155_v61 }
0x26b0   :  { %v9887_v62 = vpop.eup %9886 }
0x26b1   :  { %v4158_v48 = vsel %vm779_vm2, %v9887_v62, 0.0 }
0x26b2   :  { %4159 = vadd.xlane.f32.xlu0 %v4158_v48  ;;  %v9757_v48 = vld [vmem:[#allocation13] sm:$0xff]  }
0x26c8   :  { %4215 = vrot.lane.b32.xlu0 %v11749_v52, %s10867_s10 }
0x26db   :  { %v3233_v45 = vpop.xlane.xlu1 %3232 }
0x26dc   :  { %v3237_v44 = vmul.f32 0.03125, %v3233_v45 }
0x26de   :  { %v3239_v55 = vsub.f32 %v11903_v59, %v3237_v44  ;;  %v8378_v44 = vld [vmem:[#allocation8] ss:$0 sm:$0xff] }
0x26e0   :  { %v3241_v37 = vmul.f32 %v3239_v55, %v3239_v55 }
0x2737   :  { %v4157_v2 = vpop.xlane.xlu0 %4156 }
0x2738   :  { %9888 = vrcp.f32 %v4157_v2 }
0x273b   :  { %v4160_v5 = vpop.xlane.xlu0 %4159 }
0x273c   :  { %9890 = vrcp.f32 %v4160_v5 }
0x273f   :  { %v4216_v6 = vpop.permute.xlu0 %4215 }
0x2740   :  { %v4221_v8 = vsel %vm904_vm3, %v4216_v6, 0 }
0x2741   :  { %9118 = vmatpush3.bf16.msra.mxu0 %v4221_v8 }
0x2742   :  { %9131 = vmatprep.subr.bf16.mxu0 %v10856_v0 }
0x2745   :  { %v9889_v9 = vpop.eup %9888 }
0x2746   :  { %v4162_v11 = vmul.f32 %v9889_v9, %v9885_v23  ;;  %v3243_v23 = vsel %vm729_vm1, %v3241_v37, 0.0 }
0x2748   :  { %v4165_v12 = vpack.c.bf16 %v4162_v11, %v4162_v11 }
0x2749   :  { %v9891_v13 = vpop.eup %9890 }
0x274a   :  { %9114 = vmatmul.mubr.msk.bf16.vlgmr.msra.gmra.mxu1 %vm779_vm2, %v4165_v12  ;;  %v4164_v15 = vmul.f32 %v9891_v13, %v9887_v62 }
0x274b   :  { %9127 = vmatprep.mubr.msk.bf16.mxu1 %vm10857_vm0, %v10856_v0  ;;  %9124 = vmatpush3.bf16.msra.mxu1 %v9754_v16 }
0x274c   :  { %v4166_v52 = vpack.c.bf16 %v4164_v15, %v4164_v15  ;;  %9125 = vmatprep.subr.bf16.mxu1 %v10856_v0 }
0x274e   :  { %9120 = vmatmul.mubr.msk.bf16.vlgmr.msra.gmra.mxu0 %vm779_vm2, %v4166_v52 }
0x274f   :  { %9135 = vmatprep.mubr.msk.bf16.mxu0 %vm10857_vm0, %v10856_v0  ;;  %9126 = vmatpush3.bf16.msra.mxu1 %v9755_v19 }
0x2750   :  { %9139 = vmatprep.subr.bf16.mxu1 %v10856_v0  ;;  %9132 = vmatpush3.bf16.msra.mxu0 %v9758_v32 }
0x2751   :  { %9133 = vmatprep.subr.bf16.mxu0 %v10856_v0 }
0x2754   :  { %9134 = vmatpush3.bf16.msra.mxu0 %v9759_v33 }
0x2755   :  { %9147 = vmatprep.subr.bf16.mxu0 %v10856_v0 }
0x280a   :  { %v4209_v14 = vpop.f32.mrf.mxu1 }
0x280c   :  { %v9115_v50 = vpop.f32.mrf.mxu1 }
0x280e   :  { %v4212_v53 = vpop.f32.mrf.mxu1  ;;  %v4257_v54 = vpop.f32.mrf.mxu0 }
0x280f   :  { %v9682_v17 = vpack.i.bf16 %v4257_v54, %v4209_v14 }
0x2810   :  { %v9116_v18 = vpop.f32.mrf.mxu1  ;;  %v9121_v20 = vpop.f32.mrf.mxu0 }
0x2811   :  { %9683 = vrot.lane.b32.xlu0 %v9682_v17, %s10870_s14  ;;  %v8351_v18 = vld [vmem:[%s12696_s6] ss:$0 sm:$0xff] }
0x2812   :  { %v4260_v21 = vpop.f32.mrf.mxu0 }
0x2814   :  { %v9122_v22 = vpop.f32.mrf.mxu0 }
0x2830   :  { %3235 = vadd.xlane.f32.xlu0 %v3234_v26 }
0x2883   :  { %v9684_v36 = vpop.permute.xlu0 %9683 }
0x2884   :  { %v9686_v41 = vunpack.i.h.bf16 %v9684_v36  ;;  %v9685_v60 = vunpack.i.l.bf16 %v9684_v36 }
0x2886   :  { %v4292_v43 = vsel %vm1685_vm5, %v4290_v24, %v9686_v41  ;;  %v4291_v57 = vsel %vm1685_vm5, %v4289_v10, %v9685_v60 }
0x2887   :  { %v4293_v46 = vpack.c.bf16 %v4292_v43, %v4291_v57  ;;  %v8377_v43 = vld [vmem:[#allocation7] ss:$0 sm:$0xff] }
0x2889   :  { %9128 = vmatmul.mubr.msk.bf16.vlgmr.msra.gmra.mxu1 %vm729_vm1, %v4293_v46 }
0x288a   :  { %9143 = vmatprep.mubr.msk.bf16.mxu1 %vm10857_vm0, %v10856_v0 }
0x28b9   :  { %v3236_v49 = vpop.xlane.xlu0 %3235 }
0x28ba   :  { %v3238_v56 = vmul.f32 0.03125, %v3236_v49 }
0x28bc   :  { %v3240_v4 = vsub.f32 %v3230_v25, %v3238_v56  ;;  %v8352_v25 = vld [vmem:[%s12697_s27] ss:$0 sm:$0xff]  ;;  %v8383_v56 = vld [vmem:[#allocation14] ss:$0 sm:$0xff] }
0x28be   :  { %v3242_v59 = vmul.f32 %v3240_v4, %v3240_v4 }
0x28c0   :  { %v3246_v62 = vsel %vm729_vm1, %v3242_v59, 0.0 }
0x2949   :  { %v4349_v51 = vpop.f32.mrf.mxu1 }
0x294a   :  { %v4350_v58 = vadd.f32 %v8373_v42, %v4349_v51 }
0x294b   :  { %v9129_v3 = vpop.f32.mrf.mxu1 }
0x294c   :  { %v4356_v63 = vadd.f32 %v4350_v58, %v11723_v28  ;;  %v9756_v28 = vld [vmem:[#allocation13 + $0x8] sm:$0xff]  }
0x294d   :  { %v4352_v1 = vpop.f32.mrf.mxu1  ;;  %9140 = vmatpush3.bf16.msra.mxu1 %v9756_v28 }
0x294e   :  { %v4353_v47 = vadd.f32 %v8373_v42, %v4352_v1  ;;  %v4358_v34 = vsel %vm729_vm1, %v4356_v63, 0.0  ;;  %9141 = vmatprep.subr.bf16.mxu1 %v10856_v0 }
0x294f   :  { %4359 = vadd.xlane.f32.xlu0 %v4358_v34  ;;  %v9130_v38 = vpop.f32.mrf.mxu1 }
0x2950   :  { %v4357_v7 = vadd.f32 %v4353_v47, %v11726_v29 }
0x2951   :  { %9142 = vmatpush3.bf16.msra.mxu1 %v9757_v48 }
0x2952   :  { %v4361_v61 = vsel %vm729_vm1, %v4357_v7, 0.0  ;;  %9153 = vmatprep.subr.bf16.mxu1 %v10856_v0 }
0x2953   :  { %3244 = vadd.xlane.f32.xlu0 %v3243_v23  ;;  %4362 = vadd.xlane.f32.xlu1 %v4361_v61  ;;  %v8379_v23 = vld [vmem:[#allocation11] ss:$0 sm:$0xff] }
0x2957   :  { %3247 = vadd.xlane.f32.xlu1 %v3246_v62 }
0x29d8   :  { %v4360_v2 = vpop.xlane.xlu0 %4359 }
0x29d9   :  { %v4364_v29 = vmul.f32 0.03125, %v4360_v2 }
0x29db   :  { %v4366_v5 = vsub.f32 %v4356_v63, %v4364_v29 }
0x29dc   :  { %v3245_v6 = vpop.xlane.xlu0 %3244  ;;  %v4363_v8 = vpop.xlane.xlu1 %4362 }
0x29dd   :  { %v3249_v9 = vmul.f32 0.03125, %v3245_v6  ;;  %v4365_v11 = vmul.f32 0.03125, %v4363_v8  ;;  %v4368_v12 = vmul.f32 %v4366_v5, %v4366_v5 }
0x29df   :  { %v3251_v13 = vadd.f32 1e-05, %v3249_v9  ;;  %v4367_v15 = vsub.f32 %v4357_v7, %v4365_v11  ;;  %v4370_v52 = vsel %vm729_vm1, %v4368_v12, 0.0 }
0x29e0   :  { %4371 = vadd.xlane.f32.xlu0 %v4370_v52  ;;  %v3248_v16 = vpop.xlane.xlu1 %3247 }
0x29e1   :  { %9892 = vrsqrt.f32 %v3251_v13  ;;  %v3250_v19 = vmul.f32 0.03125, %v3248_v16  ;;  %v4369_v14 = vmul.f32 %v4367_v15, %v4367_v15 }
0x29e3   :  { %v3252_v50 = vadd.f32 1e-05, %v3250_v19  ;;  %v4373_v53 = vsel %vm729_vm1, %v4369_v14, 0.0 }
0x29e4   :  { %4374 = vadd.xlane.f32.xlu1 %v4373_v53 }
0x29e5   :  { %9894 = vrsqrt.f32 %v3252_v50 }
0x29ee   :  { %v9893_v54 = vpop.eup %9892 }
0x29ef   :  { %v3255_v17 = vmul.f32 %v9893_v54, %v3239_v55 }
0x29f1   :  { %v3263_v21 = vmul.f32 %v8351_v18, %v3255_v17 }
0x29f2   :  { %v9895_v20 = vpop.eup %9894 }
0x29f3   :  { %v3256_v22 = vmul.f32 %v9895_v20, %v3240_v4  ;;  %v3271_v27 = vadd.f32 %v8352_v25, %v3263_v21 }
0x29f5   :  { %v3264_v26 = vmul.f32 %v8351_v18, %v3256_v22 }
0x29f7   :  { %v3272_v30 = vadd.f32 %v8352_v25, %v3264_v26 }
0x29f9   :  { %v11953_v31 = vpack.c.bf16 %v3272_v30, %v3271_v27 }
0x29fb   :  { %9144 = vmatmul.mubr.msk.bf16.vlgmr.msra.gmra.mxu1 %vm729_vm1, %v11953_v31 }
0x29fc   :  { %9155 = vmatprep.mubr.msk.bf16.mxu1 %vm10857_vm0, %v10856_v0 }
0x2a69   :  { %v4372_v35 = vpop.xlane.xlu0 %4371 }
0x2a6a   :  { %v4376_v36 = vmul.f32 0.03125, %v4372_v35 }
0x2a6c   :  { %v4378_v39 = vadd.f32 1e-05, %v4376_v36 }
0x2a6d   :  { %v4375_v40 = vpop.xlane.xlu1 %4374 }
0x2a6e   :  { %9896 = vrsqrt.f32 %v4378_v39  ;;  %v4377_v41 = vmul.f32 0.03125, %v4375_v40 }
0x2a70   :  { %v4379_v60 = vadd.f32 1e-05, %v4377_v41 }
0x2a72   :  { %9898 = vrsqrt.f32 %v4379_v60 }
0x2a7b   :  { %v9897_v24 = vpop.eup %9896 }
0x2a7c   :  { %v4382_v10 = vmul.f32 %v9897_v24, %v4366_v5 }
0x2a7e   :  { %v4390_v46 = vmul.f32 %v8377_v43, %v4382_v10 }
0x2a7f   :  { %v9899_v57 = vpop.eup %9898 }
0x2a80   :  { %v4383_v45 = vmul.f32 %v9899_v57, %v4367_v15  ;;  %v11961_v42 = vadd.f32 %v8378_v44, %v4390_v46 }
0x2a82   :  { %v4391_v49 = vmul.f32 %v8377_v43, %v4383_v45 }
0x2a84   :  { %v11963_v51 = vadd.f32 %v8378_v44, %v4391_v49 }
0x2a86   :  { %v4400_v55 = vpack.c.bf16 %v11963_v51, %v11961_v42 }
0x2a88   :  { %9136 = vmatmul.mubr.msk.bf16.vlgmr.msra.gmra.mxu0 %vm729_vm1, %v4400_v55 }
0x2a89   :  { %9149 = vmatprep.mubr.msk.bf16.mxu0 %vm10857_vm0, %v10856_v0 }
0x2abb   :  { %v4519_v58 = vpop.f32.mrf.mxu1 }
0x2abc   :  { %v4520_v3 = vadd.f32 %v8383_v56, %v4519_v58 }
0x2abd   :  { %v9145_v63 = vpop.f32.mrf.mxu1 }
0x2abe   :  { %v11970_v1 = vpack.c.bf16 %v4520_v3, %v4520_v3 }
0x2abf   :  { %v4522_v4 = vpop.f32.mrf.mxu1 }
0x2ac0   :  { %v4523_v47 = vadd.f32 %v8383_v56, %v4522_v4  ;;  %v4534_v34 = vsel %vm779_vm2, %v11970_v1, 0 }
0x2ac1   :  { %v9146_v37 = vpop.f32.mrf.mxu1  ;;  %9148 = vmatpush3.bf16.xpose.msra.mxu0 %v4534_v34 }
0x2ac2   :  { %v11974_v38 = vpack.c.bf16 %v4523_v47, %v4523_v47  ;;  %9159 = vmatprep.subr.bf16.mxu0 %v10856_v0 }
0x2ac4   :  { %v4580_v7 = vsel %vm779_vm2, %v11974_v38, 0 }
0x2ac5   :  { %9154 = vmatpush3.bf16.xpose.msra.mxu1 %v4580_v7 }
0x2ac6   :  { %9165 = vmatprep.subr.bf16.mxu1 %v10856_v0 }
0x2b48   :  { %v4456_v61 = vpop.f32.mrf.mxu0 }
0x2b49   :  { %v4457_v59 = vadd.f32 %v8379_v23, %v4456_v61 }
0x2b4a   :  { %v9137_v62 = vpop.f32.mrf.mxu0 }
0x2b4b   :  { %v11980_v28 = vpack.c.bf16 %v4457_v59, %v4457_v59 }
0x2b4c   :  { %v4459_v48 = vpop.f32.mrf.mxu0 }
0x2b4d   :  { %v4460_v2 = vadd.f32 %v8379_v23, %v4459_v48  ;;  %9150 = vmatmul.mubr.msk.bf16.vlgmr.msra.gmra.mxu0 %vm779_vm2, %v11980_v28 }
0x2b4e   :  { %v9138_v29 = vpop.f32.mrf.mxu0  ;;  %9161 = vmatprep.mubr.msk.bf16.mxu0 %vm10857_vm0, %v10856_v0 }
0x2b4f   :  { %v11986_v5 = vpack.c.bf16 %v4460_v2, %v4460_v2 }
0x2b51   :  { %9156 = vmatmul.mubr.msk.bf16.vlgmr.msra.gmra.mxu1 %vm779_vm2, %v11986_v5 }
0x2b52   :  { %9167 = vmatprep.mubr.msk.bf16.mxu1 %vm10857_vm0, %v10856_v0 }
0x2c0d   :  { %v4570_v6 = vpop.f32.mrf.mxu0 }
0x2c0e   :  { %v4622_v8 = vsel %vm779_vm2, %v4570_v6, -inf }
0x2c0f   :  { %4623 = vmax.xlane.f32.xlu0 %v4622_v8  ;;  %v9151_v9 = vpop.f32.mrf.mxu0 }
0x2c11   :  { %v4573_v11 = vpop.f32.mrf.mxu0  ;;  %v4616_v12 = vpop.f32.mrf.mxu1 }
0x2c12   :  { %v4625_v13 = vsel %vm779_vm2, %v4616_v12, -inf }
0x2c13   :  { %v9152_v15 = vpop.f32.mrf.mxu0  ;;  %4626 = vmax.xlane.f32.xlu1 %v4625_v13  ;;  %v9157_v52 = vpop.f32.mrf.mxu1 }
0x2c15   :  { %v4619_v16 = vpop.f32.mrf.mxu1 }
0x2c17   :  { %v9158_v19 = vpop.f32.mrf.mxu1 }
0x2c24   :  { %4696 = vrot.lane.b32.xlu1 %v11974_v38, %s10858_s23 }
0x2c25   :  { %4647 = vrot.lane.b32.xlu0 %v11970_v1, %s10858_s23 }
0x2c98   :  { %v4624_v14 = vpop.xlane.xlu0 %4623 }
0x2c99   :  { %v4628_v50 = vsub.f32 %v4570_v6, %v4624_v14 }
0x2c9b   :  { %v4630_v53 = vmul.f32 1.442695, %v4628_v50 }
0x2c9c   :  { %v4648_v54 = vpop.permute.xlu0 %4647  ;;  %v4627_v17 = vpop.xlane.xlu1 %4626 }
0x2c9d   :  { %9900 = vpow2.f32 %v4630_v53  ;;  %v4653_v18 = vsel %vm904_vm3, %v4648_v54, 0  ;;  %v4629_v20 = vsub.f32 %v4616_v12, %v4627_v17 }
0x2c9e   :  { %9160 = vmatpush3.bf16.msra.mxu0 %v4653_v18 }
0x2c9f   :  { %v4632_v21 = vmul.f32 1.442695, %v4629_v20  ;;  %9171 = vmatprep.subr.bf16.mxu0 %v10856_v0 }
0x2ca0   :  { %v4697_v22 = vpop.permute.xlu1 %4696 }
0x2ca1   :  { %9902 = vpow2.f32 %v4632_v21  ;;  %v4702_v25 = vsel %vm904_vm3, %v4697_v22, 0 }
0x2ca2   :  { %9166 = vmatpush3.bf16.msra.mxu1 %v4702_v25 }
0x2ca3   :  { %9177 = vmatprep.subr.bf16.mxu1 %v10856_v0 }
0x2caa   :  { %v9901_v26 = vpop.eup %9900 }
0x2cab   :  { %v4634_v27 = vsel %vm779_vm2, %v9901_v26, 0.0 }
0x2cac   :  { %4635 = vadd.xlane.f32.xlu0 %v4634_v27 }
0x2cae   :  { %v9903_v30 = vpop.eup %9902 }
0x2caf   :  { %v4637_v32 = vsel %vm779_vm2, %v9903_v30, 0.0 }
0x2cb0   :  { %4638 = vadd.xlane.f32.xlu1 %v4637_v32 }
0x2cc1   :  { %4747 = vrot.lane.b32.xlu1 %v11970_v1, %s10860_s30 }
0x2cc2   :  { %4798 = vrot.lane.b32.xlu0 %v11974_v38, %s10860_s30 }
0x2cc5   :  { %4745 = vrot.lane.b32.xlu1 %v11980_v28, %s10860_s30 }
0x2cc6   :  { %4796 = vrot.lane.b32.xlu0 %v11986_v5, %s10860_s30 }
0x2d35   :  { %v4636_v33 = vpop.xlane.xlu0 %4635 }
0x2d36   :  { %9904 = vrcp.f32 %v4636_v33 }
0x2d39   :  { %v4639_v35 = vpop.xlane.xlu1 %4638  ;;  %v4799_v43 = vpop.permute.xlu0 %4798 }
0x2d3a   :  { %9906 = vrcp.f32 %v4639_v35  ;;  %v4804_v46 = vsel %vm779_vm2, %v4799_v43, 0 }
0x2d3d   :  { %v4748_v40 = vpop.permute.xlu1 %4747  ;;  %v4797_v44 = vpop.permute.xlu0 %4796 }
0x2d3e   :  { %v4753_v10 = vsel %vm779_vm2, %v4748_v40, 0 }
0x2d41   :  { %v4746_v45 = vpop.permute.xlu1 %4745 }
0x2d43   :  { %v9905_v36 = vpop.eup %9904 }
0x2d44   :  { %v4641_v39 = vmul.f32 %v9905_v36, %v9901_v26 }
0x2d46   :  { %v4644_v41 = vpack.c.bf16 %v4641_v39, %v4641_v39 }
0x2d47   :  { %v9907_v60 = vpop.eup %9906 }
0x2d48   :  { %v4643_v24 = vmul.f32 %v9907_v60, %v9903_v30  ;;  %9162 = vmatmul.mubr.msk.bf16.vlgmr.msra.gmra.mxu0 %vm779_vm2, %v4644_v41 }
0x2d49   :  { %9172 = vmatpush3.bf16.xpose.msra.mxu0 %v4753_v10  ;;  %9173 = vmatprep.mubr.msk.bf16.mxu0 %vm10857_vm0, %v10856_v0 }
0x2d4a   :  { %v4645_v57 = vpack.c.bf16 %v4643_v24, %v4643_v24  ;;  %9183 = vmatprep.subr.bf16.mxu0 %v10856_v0 }
0x2d4c   :  { %9168 = vmatmul.mubr.msk.bf16.vlgmr.msra.gmra.mxu1 %vm779_vm2, %v4645_v57 }
0x2d4d   :  { %9178 = vmatpush3.bf16.xpose.msra.mxu1 %v4804_v46  ;;  %9179 = vmatprep.mubr.msk.bf16.mxu1 %vm10857_vm0, %v10856_v0 }
0x2d4e   :  { %9189 = vmatprep.subr.bf16.mxu1 %v10856_v0 }
0x2d50   :  { %9174 = vmatmul.mubr.msk.bf16.vlgmr.msra.gmra.mxu0 %vm779_vm2, %v4746_v45 }
0x2d51   :  { %9185 = vmatprep.mubr.msk.bf16.mxu0 %vm10857_vm0, %v10856_v0 }
0x2d54   :  { %9180 = vmatmul.mubr.msk.bf16.vlgmr.msra.gmra.mxu1 %vm779_vm2, %v4797_v44 }
0x2d55   :  { %9191 = vmatprep.mubr.msk.bf16.mxu1 %vm10857_vm0, %v10856_v0 }
0x2e08   :  { %v12028_v49 = vpop.f32.mrf.mxu0 }
0x2e0a   :  { %v9163_v55 = vpop.f32.mrf.mxu0 }
0x2e0c   :  { %v4692_v56 = vpop.f32.mrf.mxu0  ;;  %v12030_v58 = vpop.f32.mrf.mxu1 }
0x2e0e   :  { %v9164_v3 = vpop.f32.mrf.mxu0  ;;  %v9169_v63 = vpop.f32.mrf.mxu1 }
0x2e10   :  { %v4741_v4 = vpop.f32.mrf.mxu1  ;;  %v4789_v47 = vpop.f32.mrf.mxu0 }
0x2e11   :  { %v4846_v34 = vsel %vm779_vm2, %v4789_v47, -inf }
0x2e12   :  { %4847 = vmax.xlane.f32.xlu1 %v4846_v34  ;;  %v9170_v37 = vpop.f32.mrf.mxu1  ;;  %v9175_v7 = vpop.f32.mrf.mxu0 }
0x2e14   :  { %v4792_v23 = vpop.f32.mrf.mxu0  ;;  %v4840_v61 = vpop.f32.mrf.mxu1 }
0x2e15   :  { %v4849_v59 = vsel %vm779_vm2, %v4840_v61, -inf }
0x2e16   :  { %v9176_v62 = vpop.f32.mrf.mxu0  ;;  %4850 = vmax.xlane.f32.xlu0 %v4849_v59  ;;  %v9181_v48 = vpop.f32.mrf.mxu1 }
0x2e18   :  { %v4843_v2 = vpop.f32.mrf.mxu1 }
0x2e1a   :  { %v9182_v29 = vpop.f32.mrf.mxu1 }
0x2e23   :  { %4918 = vrot.lane.b32.xlu1 %v11974_v38, %s10859_s26 }
0x2e2c   :  { %4870 = vrot.lane.b32.xlu0 %v11970_v1, %s10859_s26 }
0x2e9b   :  { %v4848_v6 = vpop.xlane.xlu1 %4847 }
0x2e9c   :  { %v4852_v8 = vsub.f32 %v4789_v47, %v4848_v6 }
0x2e9e   :  { %v4854_v9 = vmul.f32 1.442695, %v4852_v8 }
0x2e9f   :  { %v4919_v11 = vpop.permute.xlu1 %4918  ;;  %v4851_v12 = vpop.xlane.xlu0 %4850 }
0x2ea0   :  { %9908 = vpow2.f32 %v4854_v9  ;;  %v4924_v13 = vsel %vm904_vm3, %v4919_v11, 0  ;;  %v4853_v15 = vsub.f32 %v4840_v61, %v4851_v12 }
0x2ea1   :  { %9190 = vmatpush3.bf16.msra.mxu1 %v4924_v13 }
0x2ea2   :  { %v4856_v52 = vmul.f32 1.442695, %v4853_v15  ;;  %9201 = vmatprep.subr.bf16.mxu1 %v10856_v0 }
0x2ea3   :  { %v4871_v16 = vpop.permute.xlu0 %4870 }
0x2ea4   :  { %9910 = vpow2.f32 %v4856_v52  ;;  %v4876_v19 = vsel %vm904_vm3, %v4871_v16, 0 }
0x2ea5   :  { %9184 = vmatpush3.bf16.msra.mxu0 %v4876_v19 }
0x2ea6   :  { %9195 = vmatprep.subr.bf16.mxu0 %v10856_v0 }
0x2ead   :  { %v9909_v14 = vpop.eup %9908 }
0x2eae   :  { %v4858_v50 = vsel %vm779_vm2, %v9909_v14, 0.0 }
0x2eaf   :  { %4859 = vadd.xlane.f32.xlu0 %v4858_v50 }
0x2eb1   :  { %v9911_v53 = vpop.eup %9910 }
0x2eb2   :  { %v4861_v54 = vsel %vm779_vm2, %v9911_v53, 0.0 }
0x2eb3   :  { %4862 = vadd.xlane.f32.xlu1 %v4861_v54 }
0x2ec4   :  { %4968 = vrot.lane.b32.xlu1 %v11970_v1, %s10863_s21 }
0x2ec5   :  { %5018 = vrot.lane.b32.xlu0 %v11974_v38, %s10863_s21 }
0x2ec8   :  { %4966 = vrot.lane.b32.xlu1 %v11980_v28, %s10863_s21 }
0x2ec9   :  { %5016 = vrot.lane.b32.xlu0 %v11986_v5, %s10863_s21 }
0x2f38   :  { %v4860_v17 = vpop.xlane.xlu0 %4859 }
0x2f39   :  { %9912 = vrcp.f32 %v4860_v17 }
0x2f3c   :  { %v4863_v18 = vpop.xlane.xlu1 %4862  ;;  %v5019_v32 = vpop.permute.xlu0 %5018 }
0x2f3d   :  { %9914 = vrcp.f32 %v4863_v18  ;;  %v5024_v35 = vsel %vm779_vm2, %v5019_v32, 0 }
0x2f40   :  { %v4969_v22 = vpop.permute.xlu1 %4968  ;;  %v5017_v39 = vpop.permute.xlu0 %5016 }
0x2f41   :  { %v4974_v30 = vsel %vm779_vm2, %v4969_v22, 0 }
0x2f44   :  { %v4967_v36 = vpop.permute.xlu1 %4966 }
0x2f46   :  { %v9913_v20 = vpop.eup %9912 }
0x2f47   :  { %v4865_v21 = vmul.f32 %v9913_v20, %v9909_v14 }
0x2f49   :  { %v4868_v25 = vpack.c.bf16 %v4865_v21, %v4865_v21 }
0x2f4a   :  { %v9915_v26 = vpop.eup %9914 }
0x2f4b   :  { %v4867_v27 = vmul.f32 %v9915_v26, %v9911_v53  ;;  %9186 = vmatmul.mubr.msk.bf16.vlgmr.msra.gmra.mxu0 %vm779_vm2, %v4868_v25 }
0x2f4c   :  { %9196 = vmatpush3.bf16.xpose.msra.mxu0 %v4974_v30  ;;  %9197 = vmatprep.mubr.msk.bf16.mxu0 %vm10857_vm0, %v10856_v0 }
0x2f4d   :  { %v4869_v33 = vpack.c.bf16 %v4867_v27, %v4867_v27  ;;  %9207 = vmatprep.subr.bf16.mxu0 %v10856_v0 }
0x2f4f   :  { %9192 = vmatmul.mubr.msk.bf16.vlgmr.msra.gmra.mxu1 %vm779_vm2, %v4869_v33 }
0x2f50   :  { %9202 = vmatpush3.bf16.xpose.msra.mxu1 %v5024_v35  ;;  %9203 = vmatprep.mubr.msk.bf16.mxu1 %vm10857_vm0, %v10856_v0 }
0x2f51   :  { %9213 = vmatprep.subr.bf16.mxu1 %v10856_v0 }
0x2f53   :  { %9198 = vmatmul.mubr.msk.bf16.vlgmr.msra.gmra.mxu0 %vm779_vm2, %v4967_v36 }
0x2f54   :  { %9209 = vmatprep.mubr.msk.bf16.mxu0 %vm10857_vm0, %v10856_v0 }
0x2f57   :  { %9204 = vmatmul.mubr.msk.bf16.vlgmr.msra.gmra.mxu1 %vm779_vm2, %v5017_v39 }
0x2f58   :  { %9215 = vmatprep.mubr.msk.bf16.mxu1 %vm10857_vm0, %v10856_v0 }
0x300b   :  { %v12068_v40 = vpop.f32.mrf.mxu0 }
0x300d   :  { %v9187_v41 = vpop.f32.mrf.mxu0 }
0x300f   :  { %v4915_v60 = vpop.f32.mrf.mxu0  ;;  %v12070_v24 = vpop.f32.mrf.mxu1 }
0x3010   :  { %v9687_v10 = vpack.i.bf16 %v12070_v24, %v12068_v40 }
0x3011   :  { %v9188_v43 = vpop.f32.mrf.mxu0  ;;  %v9193_v57 = vpop.f32.mrf.mxu1 }
0x3013   :  { %v4963_v46 = vpop.f32.mrf.mxu1  ;;  %v5010_v45 = vpop.f32.mrf.mxu0 }
0x3014   :  { %v5066_v44 = vsel %vm779_vm2, %v5010_v45, -inf }
0x3015   :  { %5067 = vmax.xlane.f32.xlu1 %v5066_v44  ;;  %v9194_v55 = vpop.f32.mrf.mxu1  ;;  %v9199_v56 = vpop.f32.mrf.mxu0 }
0x3017   :  { %v5013_v3 = vpop.f32.mrf.mxu0  ;;  %v5060_v63 = vpop.f32.mrf.mxu1 }
0x3018   :  { %v5069_v4 = vsel %vm779_vm2, %v5060_v63, -inf }
0x3019   :  { %v9200_v47 = vpop.f32.mrf.mxu0  ;;  %5070 = vmax.xlane.f32.xlu0 %v5069_v4  ;;  %v9205_v34 = vpop.f32.mrf.mxu1 }
0x301b   :  { %v5063_v37 = vpop.f32.mrf.mxu1 }
0x301d   :  { %v9206_v7 = vpop.f32.mrf.mxu1 }
0x3026   :  { %5138 = vrot.lane.b32.xlu1 %v11974_v38, %s10862_s29 }
0x302f   :  { %5090 = vrot.lane.b32.xlu0 %v11970_v1, %s10862_s29 }
0x309e   :  { %v5068_v23 = vpop.xlane.xlu1 %5067 }
0x309f   :  { %v5072_v61 = vsub.f32 %v5010_v45, %v5068_v23 }
0x30a1   :  { %v5074_v59 = vmul.f32 1.442695, %v5072_v61 }
0x30a2   :  { %v5139_v62 = vpop.permute.xlu1 %5138  ;;  %v5071_v48 = vpop.xlane.xlu0 %5070 }
0x30a3   :  { %9916 = vpow2.f32 %v5074_v59  ;;  %v5144_v2 = vsel %vm904_vm3, %v5139_v62, 0  ;;  %v5073_v29 = vsub.f32 %v5060_v63, %v5071_v48 }
0x30a4   :  { %9214 = vmatpush3.bf16.msra.mxu1 %v5144_v2 }
0x30a5   :  { %v5076_v6 = vmul.f32 1.442695, %v5073_v29  ;;  %9225 = vmatprep.subr.bf16.mxu1 %v10856_v0 }
0x30a6   :  { %v5091_v8 = vpop.permute.xlu0 %5090 }
0x30a7   :  { %9918 = vpow2.f32 %v5076_v6  ;;  %v5096_v9 = vsel %vm904_vm3, %v5091_v8, 0 }
0x30a8   :  { %9208 = vmatpush3.bf16.msra.mxu0 %v5096_v9 }
0x30a9   :  { %9219 = vmatprep.subr.bf16.mxu0 %v10856_v0 }
0x30b0   :  { %v9917_v11 = vpop.eup %9916 }
0x30b1   :  { %v5078_v12 = vsel %vm779_vm2, %v9917_v11, 0.0 }
0x30b2   :  { %5079 = vadd.xlane.f32.xlu0 %v5078_v12  ;;  %v9760_v12 = vld [vmem:[#allocation16 + $0x8] sm:$0xff]  }
0x30b4   :  { %v9919_v13 = vpop.eup %9918 }
0x30b5   :  { %v5081_v15 = vsel %vm779_vm2, %v9919_v13, 0.0 }
0x30b6   :  { %5082 = vadd.xlane.f32.xlu1 %v5081_v15 }
0x30c7   :  { %5188 = vrot.lane.b32.xlu1 %v11970_v1, %s10866_s7 }
0x30c8   :  { %5238 = vrot.lane.b32.xlu0 %v11974_v38, %s10866_s7 }
0x30cb   :  { %5186 = vrot.lane.b32.xlu1 %v11980_v28, %s10866_s7 }
0x30cc   :  { %5236 = vrot.lane.b32.xlu0 %v11986_v5, %s10866_s7 }
0x313b   :  { %v5080_v52 = vpop.xlane.xlu0 %5079 }
0x313c   :  { %9920 = vrcp.f32 %v5080_v52 }
0x313f   :  { %v5083_v16 = vpop.xlane.xlu1 %5082  ;;  %v5239_v20 = vpop.permute.xlu0 %5238 }
0x3140   :  { %9922 = vrcp.f32 %v5083_v16  ;;  %v5244_v5 = vsel %vm779_vm2, %v5239_v20, 0 }
0x3143   :  { %v5189_v50 = vpop.permute.xlu1 %5188  ;;  %v5237_v22 = vpop.permute.xlu0 %5236 }
0x3144   :  { %v5194_v18 = vsel %vm779_vm2, %v5189_v50, 0 }
0x3147   :  { %v5187_v21 = vpop.permute.xlu1 %5186 }
0x3149   :  { %v9921_v19 = vpop.eup %9920 }
0x314a   :  { %v5085_v14 = vmul.f32 %v9921_v19, %v9917_v11 }
0x314c   :  { %v5088_v53 = vpack.c.bf16 %v5085_v14, %v5085_v14 }
0x314d   :  { %v9923_v54 = vpop.eup %9922 }
0x314e   :  { %v5087_v17 = vmul.f32 %v9923_v54, %v9919_v13  ;;  %9210 = vmatmul.mubr.msk.bf16.vlgmr.msra.gmra.mxu0 %vm779_vm2, %v5088_v53  ;;  %v9761_v13 = vld [vmem:[#allocation16] sm:$0xff]  }
0x314f   :  { %9220 = vmatpush3.bf16.xpose.msra.mxu0 %v5194_v18  ;;  %9221 = vmatprep.mubr.msk.bf16.mxu0 %vm10857_vm0, %v10856_v0 }
0x3150   :  { %v5089_v28 = vpack.c.bf16 %v5087_v17, %v5087_v17  ;;  %9231 = vmatprep.subr.bf16.mxu0 %v10856_v0 }
0x3152   :  { %9216 = vmatmul.mubr.msk.bf16.vlgmr.msra.gmra.mxu1 %vm779_vm2, %v5089_v28 }
0x3153   :  { %9226 = vmatpush3.bf16.xpose.msra.mxu1 %v5244_v5  ;;  %9227 = vmatprep.mubr.msk.bf16.mxu1 %vm10857_vm0, %v10856_v0 }
0x3154   :  { %9237 = vmatprep.subr.bf16.mxu1 %v10856_v0 }
0x3156   :  { %9222 = vmatmul.mubr.msk.bf16.vlgmr.msra.gmra.mxu0 %vm779_vm2, %v5187_v21 }
0x3157   :  { %9233 = vmatprep.mubr.msk.bf16.mxu0 %vm10857_vm0, %v10856_v0 }
0x315a   :  { %9228 = vmatmul.mubr.msk.bf16.vlgmr.msra.gmra.mxu1 %vm779_vm2, %v5237_v22 }
0x315b   :  { %9239 = vmatprep.mubr.msk.bf16.mxu1 %vm10857_vm0, %v10856_v0 }
0x320e   :  { %v5132_v25 = vpop.f32.mrf.mxu0 }
0x3210   :  { %v9211_v26 = vpop.f32.mrf.mxu0 }
0x3212   :  { %v5135_v27 = vpop.f32.mrf.mxu0  ;;  %v5180_v30 = vpop.f32.mrf.mxu1 }
0x3213   :  { %v9692_v32 = vpack.i.bf16 %v5180_v30, %v5132_v25 }
0x3214   :  { %v9212_v33 = vpop.f32.mrf.mxu0  ;;  %v9217_v35 = vpop.f32.mrf.mxu1 }
0x3216   :  { %v5183_v36 = vpop.f32.mrf.mxu1  ;;  %v5230_v39 = vpop.f32.mrf.mxu0 }
0x3217   :  { %v5286_v41 = vsel %vm779_vm2, %v5230_v39, -inf }
0x3218   :  { %5287 = vmax.xlane.f32.xlu1 %v5286_v41  ;;  %v9218_v60 = vpop.f32.mrf.mxu1  ;;  %v9223_v43 = vpop.f32.mrf.mxu0 }
0x321a   :  { %v5233_v57 = vpop.f32.mrf.mxu0  ;;  %v5280_v46 = vpop.f32.mrf.mxu1 }
0x321b   :  { %v5289_v45 = vsel %vm779_vm2, %v5280_v46, -inf }
0x321c   :  { %v9224_v44 = vpop.f32.mrf.mxu0  ;;  %5290 = vmax.xlane.f32.xlu0 %v5289_v45  ;;  %v9229_v55 = vpop.f32.mrf.mxu1 }
0x321e   :  { %v5283_v56 = vpop.f32.mrf.mxu1 }
0x3220   :  { %v9230_v3 = vpop.f32.mrf.mxu1 }
0x32a1   :  { %v5288_v63 = vpop.xlane.xlu1 %5287 }
0x32a2   :  { %v5292_v4 = vsub.f32 %v5230_v39, %v5288_v63 }
0x32a4   :  { %v5294_v47 = vmul.f32 1.442695, %v5292_v4 }
0x32a5   :  { %v5291_v34 = vpop.xlane.xlu0 %5290 }
0x32a6   :  { %9924 = vpow2.f32 %v5294_v47  ;;  %v5293_v37 = vsub.f32 %v5280_v46, %v5291_v34 }
0x32a8   :  { %v5296_v7 = vmul.f32 1.442695, %v5293_v37 }
0x32aa   :  { %9926 = vpow2.f32 %v5296_v7 }
0x32b3   :  { %v9925_v23 = vpop.eup %9924 }
0x32b4   :  { %v5298_v61 = vsel %vm779_vm2, %v9925_v23, 0.0 }
0x32b5   :  { %5299 = vadd.xlane.f32.xlu0 %v5298_v61 }
0x32b7   :  { %v9927_v59 = vpop.eup %9926 }
0x32b8   :  { %v5301_v62 = vsel %vm779_vm2, %v9927_v59, 0.0 }
0x32b9   :  { %5302 = vadd.xlane.f32.xlu1 %v5301_v62  ;;  %v9762_v62 = vld [vmem:[#allocation22 + $0x8] sm:$0xff]  }
0x32ca   :  { %5358 = vrot.lane.b32.xlu1 %v11974_v38, %s10865_s2 }
0x32cb   :  { %5310 = vrot.lane.b32.xlu0 %v11970_v1, %s10865_s2 }
0x32ce   :  { %9688 = vrot.lane.b32.xlu1 %v9687_v10, %s10868_s11 }
0x32cf   :  { %9693 = vrot.lane.b32.xlu0 %v9692_v32, %s10869_s24 }
0x333e   :  { %v5300_v48 = vpop.xlane.xlu0 %5299 }
0x333f   :  { %9928 = vrcp.f32 %v5300_v48  ;;  %v9764_v48 = vld [vmem:[%s12698_s16 + $0x18] sm:$0xff]  }
0x3342   :  { %v5303_v2 = vpop.xlane.xlu1 %5302  ;;  %v5311_v29 = vpop.permute.xlu0 %5310 }
0x3343   :  { %9930 = vrcp.f32 %v5303_v2  ;;  %v5316_v6 = vsel %vm904_vm3, %v5311_v29, 0 }
0x3344   :  { %9232 = vmatpush3.bf16.msra.mxu0 %v5316_v6 }
0x3345   :  { %9243 = vmatprep.subr.bf16.mxu0 %v10856_v0 }
0x3346   :  { %v5359_v38 = vpop.permute.xlu1 %5358  ;;  %v9694_v5 = vpop.permute.xlu0 %9693 }
0x3347   :  { %v5364_v1 = vsel %vm904_vm3, %v5359_v38, 0  ;;  %v9696_v25 = vunpack.i.h.bf16 %v9694_v5  ;;  %v9695_v26 = vunpack.i.l.bf16 %v9694_v5 }
0x3348   :  { %9238 = vmatpush3.bf16.msra.mxu1 %v5364_v1 }
0x3349   :  { %9251 = vmatprep.subr.bf16.mxu1 %v10856_v0 }
0x334a   :  { %v9689_v18 = vpop.permute.xlu1 %9688 }
0x334b   :  { %v9691_v20 = vunpack.i.h.bf16 %v9689_v18  ;;  %v9690_v28 = vunpack.i.l.bf16 %v9689_v18 }
0x334c   :  { %v9929_v40 = vpop.eup %9928 }
0x334d   :  { %v5305_v24 = vmul.f32 %v9929_v40, %v9925_v23  ;;  %v5431_v21 = vsel %vm779_vm2, %v12030_v58, %v9691_v20  ;;  %v5430_v22 = vsel %vm779_vm2, %v12028_v49, %v9690_v28  ;;  %v8403_v49 = vld [vmem:[#allocation17] ss:$0 sm:$0xff] }
0x334e   :  { %v5432_v33 = vsel %vm1682_vm4, %v5430_v22, %v9695_v26  ;;  %v5433_v35 = vsel %vm1682_vm4, %v5431_v21, %v9696_v25 }
0x334f   :  { %v5308_v10 = vpack.c.bf16 %v5305_v24, %v5305_v24 }
0x3350   :  { %v9931_v8 = vpop.eup %9930 }
0x3351   :  { %v5307_v9 = vmul.f32 %v9931_v8, %v9927_v59  ;;  %9234 = vmatmul.mubr.msk.bf16.vlgmr.msra.gmra.mxu0 %vm779_vm2, %v5308_v10  ;;  %v8407_v8 = vld [vmem:[#allocation19] ss:$0 sm:$0xff] }
0x3352   :  { %9247 = vmatprep.mubr.msk.bf16.mxu0 %vm10857_vm0, %v10856_v0  ;;  %9244 = vmatpush3.bf16.msra.mxu0 %v9760_v12 }
0x3353   :  { %v5309_v11 = vpack.c.bf16 %v5307_v9, %v5307_v9  ;;  %9245 = vmatprep.subr.bf16.mxu0 %v10856_v0 }
0x3355   :  { %9240 = vmatmul.mubr.msk.bf16.vlgmr.msra.gmra.mxu1 %vm779_vm2, %v5309_v11 }
0x3356   :  { %9255 = vmatprep.mubr.msk.bf16.mxu1 %vm10857_vm0, %v10856_v0  ;;  %9246 = vmatpush3.bf16.msra.mxu0 %v9761_v13  ;;  %v8408_v13 = vld [vmem:[#allocation20] ss:$0 sm:$0xff] }
0x3357   :  { %9259 = vmatprep.subr.bf16.mxu0 %v10856_v0  ;;  %9252 = vmatpush3.bf16.msra.mxu1 %v9762_v62 }
0x3358   :  { %9253 = vmatprep.subr.bf16.mxu1 %v10856_v0 }
0x3411   :  { %v5352_v15 = vpop.f32.mrf.mxu0 }
0x3413   :  { %v9235_v52 = vpop.f32.mrf.mxu0 }
0x3415   :  { %v5355_v16 = vpop.f32.mrf.mxu0  ;;  %v5400_v19 = vpop.f32.mrf.mxu1 }
0x3416   :  { %v9697_v14 = vpack.i.bf16 %v5400_v19, %v5352_v15 }
0x3417   :  { %v9236_v50 = vpop.f32.mrf.mxu0  ;;  %v9241_v53 = vpop.f32.mrf.mxu1 }
0x3418   :  { %9698 = vrot.lane.b32.xlu1 %v9697_v14, %s10870_s14  ;;  %v9765_v14 = vld [vmem:[%s12698_s16 + $0x10] sm:$0xff]   ;;  %v9766_v50 = vld [vmem:[%s12698_s16 + $0x8] sm:$0xff]   ;;  %v9767_v53 = vld [vmem:[%s12698_s16] sm:$0xff]  }
0x3419   :  { %v5403_v54 = vpop.f32.mrf.mxu1 }
0x341a   :  { %v8409_v54 = vld [vmem:[#allocation23] ss:$0 sm:$0xff] }
0x341b   :  { %v9242_v17 = vpop.f32.mrf.mxu1 }
0x348a   :  { %v9699_v27 = vpop.permute.xlu1 %9698 }
0x348b   :  { %v9701_v30 = vunpack.i.h.bf16 %v9699_v27  ;;  %v9700_v32 = vunpack.i.l.bf16 %v9699_v27  ;;  %v8413_v27 = vld [vmem:[#allocation25] ss:$0 sm:$0xff] }
0x348d   :  { %v5435_v36 = vsel %vm1685_vm5, %v5433_v35, %v9701_v30  ;;  %v5434_v39 = vsel %vm1685_vm5, %v5432_v33, %v9700_v32 }
0x348e   :  { %v5436_v41 = vpack.c.bf16 %v5435_v36, %v5434_v39 }
0x3490   :  { %9248 = vmatmul.mubr.msk.bf16.vlgmr.msra.gmra.mxu0 %vm729_vm1, %v5436_v41 }
0x3491   :  { %9267 = vmatprep.mubr.msk.bf16.mxu0 %vm10857_vm0, %v10856_v0  ;;  %9260 = vmatpush3.bf16.msra.mxu0 %v9764_v48  ;;  %v8419_v48 = vld [vmem:[#allocation26] ss:$0 sm:$0xff] }
0x3492   :  { %9261 = vmatprep.subr.bf16.mxu0 %v10856_v0 }
0x3495   :  { %9262 = vmatpush3.bf16.msra.mxu0 %v9765_v14 }
0x3496   :  { %9263 = vmatprep.subr.bf16.mxu0 %v10856_v0 }
0x3499   :  { %9264 = vmatpush3.bf16.msra.mxu0 %v9766_v50 }
0x349a   :  { %9265 = vmatprep.subr.bf16.mxu0 %v10856_v0 }
0x349d   :  { %9266 = vmatpush3.bf16.msra.mxu0 %v9767_v53 }
0x349e   :  { %9285 = vmatprep.subr.bf16.mxu0 %v10856_v0 }
0x3550   :  { %v5492_v58 = vpop.f32.mrf.mxu0 }
0x3551   :  { %v5493_v60 = vadd.f32 %v8403_v49, %v5492_v58 }
0x3552   :  { %v9249_v43 = vpop.f32.mrf.mxu0 }
0x3553   :  { %v5499_v57 = vadd.f32 %v5493_v60, %v11961_v42 }
0x3554   :  { %v5495_v46 = vpop.f32.mrf.mxu0 }
0x3555   :  { %v5496_v45 = vadd.f32 %v8403_v49, %v5495_v46  ;;  %v5501_v44 = vsel %vm729_vm1, %v5499_v57, 0.0 }
0x3556   :  { %5502 = vadd.xlane.f32.xlu0 %v5501_v44  ;;  %v9250_v55 = vpop.f32.mrf.mxu0 }
0x3557   :  { %v5500_v56 = vadd.f32 %v5496_v45, %v11963_v51  ;;  %v9763_v51 = vld [vmem:[#allocation22] sm:$0xff]  }
0x3558   :  { %9254 = vmatpush3.bf16.msra.mxu1 %v9763_v51 }
0x3559   :  { %v5504_v3 = vsel %vm729_vm1, %v5500_v56, 0.0  ;;  %9271 = vmatprep.subr.bf16.mxu1 %v10856_v0 }
0x355a   :  { %5505 = vadd.xlane.f32.xlu1 %v5504_v3 }
0x35df   :  { %v5503_v63 = vpop.xlane.xlu0 %5502 }
0x35e0   :  { %v5507_v4 = vmul.f32 0.03125, %v5503_v63 }
0x35e2   :  { %v5509_v47 = vsub.f32 %v5499_v57, %v5507_v4 }
0x35e3   :  { %v5506_v34 = vpop.xlane.xlu1 %5505 }
0x35e4   :  { %v5508_v37 = vmul.f32 0.03125, %v5506_v34  ;;  %v5511_v7 = vmul.f32 %v5509_v47, %v5509_v47  ;;  %v9769_v34 = vld [vmem:[%s12699_s18] sm:$0xff]  }
0x35e6   :  { %v5510_v23 = vsub.f32 %v5500_v56, %v5508_v37  ;;  %v5513_v42 = vsel %vm729_vm1, %v5511_v7, 0.0 }
0x35e7   :  { %5514 = vadd.xlane.f32.xlu0 %v5513_v42 }
0x35e8   :  { %v5512_v61 = vmul.f32 %v5510_v23, %v5510_v23 }
0x35ea   :  { %v5516_v59 = vsel %vm729_vm1, %v5512_v61, 0.0 }
0x35eb   :  { %5517 = vadd.xlane.f32.xlu0 %v5516_v59 }
0x3670   :  { %v5515_v2 = vpop.xlane.xlu0 %5514 }
0x3671   :  { %v5519_v29 = vmul.f32 0.03125, %v5515_v2 }
0x3673   :  { %v5521_v6 = vadd.f32 1e-05, %v5519_v29 }
0x3674   :  { %v5518_v38 = vpop.xlane.xlu0 %5517 }
0x3675   :  { %9932 = vrsqrt.f32 %v5521_v6  ;;  %v5520_v1 = vmul.f32 0.03125, %v5518_v38  ;;  %v8420_v38 = vld [vmem:[#allocation28] ss:$0 sm:$0xff] }
0x3677   :  { %v5522_v40 = vadd.f32 1e-05, %v5520_v1 }
0x3679   :  { %9934 = vrsqrt.f32 %v5522_v40 }
0x3682   :  { %v9933_v24 = vpop.eup %9932 }
0x3683   :  { %v5525_v10 = vmul.f32 %v9933_v24, %v5509_v47  ;;  %v9768_v47 = vld [vmem:[%s12699_s18 + $0x8] sm:$0xff]  }
0x3685   :  { %v5533_v11 = vmul.f32 %v8407_v8, %v5525_v10 }
0x3686   :  { %v9935_v9 = vpop.eup %9934 }
0x3687   :  { %v5526_v12 = vmul.f32 %v9935_v9, %v5510_v23  ;;  %v5541_v52 = vadd.f32 %v8408_v13, %v5533_v11 }
0x3689   :  { %v5534_v15 = vmul.f32 %v8407_v8, %v5526_v12  ;;  %v8421_v8 = vld [vmem:[#allocation29] ss:$0 sm:$0xff] }
0x368b   :  { %v5542_v16 = vadd.f32 %v8408_v13, %v5534_v15 }
0x368d   :  { %v5543_v19 = vpack.c.bf16 %v5542_v16, %v5541_v52 }
0x368f   :  { %9256 = vmatmul.mubr.msk.bf16.vlgmr.msra.gmra.mxu1 %vm729_vm1, %v5543_v19 }
0x3690   :  { %9275 = vmatprep.mubr.msk.bf16.mxu1 %vm10857_vm0, %v10856_v0  ;;  %9272 = vmatpush3.bf16.msra.mxu1 %v9768_v47 }
0x3691   :  { %9273 = vmatprep.subr.bf16.mxu1 %v10856_v0 }
0x3694   :  { %9274 = vmatpush3.bf16.msra.mxu1 %v9769_v34 }
0x3695   :  { %9279 = vmatprep.subr.bf16.mxu1 %v10856_v0 }
0x374f   :  { %v5599_v17 = vpop.f32.mrf.mxu1 }
0x3750   :  { %v5600_v20 = vadd.f32 %v8409_v54, %v5599_v17 }
0x3751   :  { %v9257_v18 = vpop.f32.mrf.mxu1 }
0x3752   :  { %v5606_v22 = vmax.f32 %v5600_v20, 0.0 }
0x3753   :  { %v5602_v28 = vpop.f32.mrf.mxu1 }
0x3754   :  { %v5603_v5 = vadd.f32 %v8409_v54, %v5602_v28 }
0x3755   :  { %v9258_v21 = vpop.f32.mrf.mxu1 }
0x3756   :  { %v5607_v25 = vmax.f32 %v5603_v5, 0.0 }
0x3758   :  { %v5608_v26 = vpack.c.bf16 %v5607_v25, %v5606_v22 }
0x375a   :  { %9268 = vmatmul.mubr.msk.bf16.vlgmr.msra.gmra.mxu0 %vm1892_vm6, %v5608_v26 }
0x375b   :  { %9287 = vmatprep.mubr.msk.bf16.mxu0 %vm10857_vm0, %v10856_v0 }
0x381a   :  { %v5676_v30 = vpop.f32.mrf.mxu0 }
0x381b   :  { %v5677_v32 = vadd.f32 %v8413_v27, %v5676_v30 }
0x381c   :  { %v9269_v33 = vpop.f32.mrf.mxu0 }
0x381d   :  { %v5683_v35 = vadd.f32 %v5677_v32, %v5541_v52 }
0x381e   :  { %v5679_v36 = vpop.f32.mrf.mxu0 }
0x381f   :  { %v5680_v39 = vadd.f32 %v8413_v27, %v5679_v36  ;;  %v5685_v41 = vsel %vm729_vm1, %v5683_v35, 0.0 }
0x3820   :  { %5686 = vadd.xlane.f32.xlu1 %v5685_v41  ;;  %v9270_v49 = vpop.f32.mrf.mxu0 }
0x3821   :  { %v5684_v58 = vadd.f32 %v5680_v39, %v5542_v16 }
0x3823   :  { %v5688_v60 = vsel %vm729_vm1, %v5684_v58, 0.0 }
0x3824   :  { %5689 = vadd.xlane.f32.xlu0 %v5688_v60 }
0x38a9   :  { %v5687_v43 = vpop.xlane.xlu1 %5686 }
0x38aa   :  { %v5691_v57 = vmul.f32 0.03125, %v5687_v43 }
0x38ac   :  { %v5693_v46 = vsub.f32 %v5683_v35, %v5691_v57 }
0x38ad   :  { %v5690_v45 = vpop.xlane.xlu0 %5689 }
0x38ae   :  { %v5692_v44 = vmul.f32 0.03125, %v5690_v45  ;;  %v5695_v55 = vmul.f32 %v5693_v46, %v5693_v46 }
0x38b0   :  { %v5694_v56 = vsub.f32 %v5684_v58, %v5692_v44  ;;  %v5697_v3 = vsel %vm729_vm1, %v5695_v55, 0.0 }
0x38b1   :  { %5698 = vadd.xlane.f32.xlu1 %v5697_v3 }
0x38b2   :  { %v5696_v63 = vmul.f32 %v5694_v56, %v5694_v56 }
0x38b4   :  { %v5700_v4 = vsel %vm729_vm1, %v5696_v63, 0.0 }
0x38b5   :  { %5701 = vadd.xlane.f32.xlu0 %v5700_v4 }
0x393a   :  { %v5699_v37 = vpop.xlane.xlu1 %5698 }
0x393b   :  { %v5703_v7 = vmul.f32 0.03125, %v5699_v37 }
0x393d   :  { %v5705_v23 = vadd.f32 1e-05, %v5703_v7 }
0x393e   :  { %v5702_v42 = vpop.xlane.xlu0 %5701 }
0x393f   :  { %9936 = vrsqrt.f32 %v5705_v23  ;;  %v5704_v61 = vmul.f32 0.03125, %v5702_v42 }
0x3941   :  { %v5706_v59 = vadd.f32 1e-05, %v5704_v61 }
0x3943   :  { %9938 = vrsqrt.f32 %v5706_v59 }
0x394c   :  { %v9937_v62 = vpop.eup %9936 }
0x394d   :  { %v5709_v51 = vmul.f32 %v9937_v62, %v5693_v46 }
0x394f   :  { %v5717_v29 = vmul.f32 %v8419_v48, %v5709_v51 }
0x3950   :  { %v9939_v2 = vpop.eup %9938 }
0x3951   :  { %v5710_v6 = vmul.f32 %v9939_v2, %v5694_v56  ;;  %v12177_v40 = vadd.f32 %v8420_v38, %v5717_v29 }
0x3953   :  { %v5718_v1 = vmul.f32 %v8419_v48, %v5710_v6 }
0x3955   :  { %v12179_v24 = vadd.f32 %v8420_v38, %v5718_v1 }
0x3957   :  { %v5772_v10 = vpack.c.bf16 %v12179_v24, %v12177_v40 }
0x3959   :  { %9276 = vmatmul.mubr.msk.bf16.vlgmr.msra.gmra.mxu1 %vm729_vm1, %v5772_v10 }
0x395a   :  { %9281 = vmatprep.mubr.msk.bf16.mxu1 %vm10857_vm0, %v10856_v0 }
0x3a19   :  { %v5828_v9 = vpop.f32.mrf.mxu1 }
0x3a1a   :  { %v5829_v11 = vadd.f32 %v8421_v8, %v5828_v9 }
0x3a1b   :  { %v9277_v12 = vpop.f32.mrf.mxu1 }
0x3a1c   :  { %v12186_v13 = vpack.c.bf16 %v5829_v11, %v5829_v11 }
0x3a1d   :  { %v5831_v15 = vpop.f32.mrf.mxu1 }
0x3a1e   :  { %v5832_v52 = vadd.f32 %v8421_v8, %v5831_v15  ;;  %5838 = vrot.lane.b32.xlu1 %v12186_v13, %s10858_s23 }
0x3a1f   :  { %v9278_v16 = vpop.f32.mrf.mxu1 }
0x3a20   :  { %v12190_v19 = vpack.c.bf16 %v5832_v52, %v5832_v52 }
0x3a22   :  { %5887 = vrot.lane.b32.xlu0 %v12190_v19, %s10858_s23 }
0x3a90   :  { %v5839_v14 = vpop.permute.xlu1 %5838 }
0x3a91   :  { %v5844_v50 = vsel %vm779_vm2, %v5839_v14, 0 }
0x3a92   :  { %9280 = vmatpush3.bf16.xpose.msra.mxu1 %v5844_v50 }
0x3a93   :  { %9291 = vmatprep.subr.bf16.mxu1 %v10856_v0 }
0x3a94   :  { %v5888_v53 = vpop.permute.xlu0 %5887 }
0x3a95   :  { %v5893_v54 = vsel %vm779_vm2, %v5888_v53, 0 }
0x3a96   :  { %9286 = vmatpush3.bf16.xpose.msra.mxu0 %v5893_v54 }
0x3a97   :  { %9297 = vmatprep.subr.bf16.mxu0 %v10856_v0 }
0x3a99   :  { %9282 = vmatmul.mubr.msk.bf16.vlgmr.msra.gmra.mxu1 %vm779_vm2, %v12186_v13 }
0x3a9a   :  { %9293 = vmatprep.mubr.msk.bf16.mxu1 %vm10857_vm0, %v10856_v0 }
0x3a9d   :  { %9288 = vmatmul.mubr.msk.bf16.vlgmr.msra.gmra.mxu0 %vm779_vm2, %v12190_v19 }
0x3a9e   :  { %9299 = vmatprep.mubr.msk.bf16.mxu0 %vm10857_vm0, %v10856_v0 }
0x3b59   :  { %v5880_v17 = vpop.f32.mrf.mxu1 }
0x3b5a   :  { %v5935_v18 = vsel %vm779_vm2, %v5880_v17, -inf }
0x3b5b   :  { %5936 = vmax.xlane.f32.xlu1 %v5935_v18  ;;  %v9283_v20 = vpop.f32.mrf.mxu1 }
0x3b5d   :  { %v5883_v28 = vpop.f32.mrf.mxu1  ;;  %v5929_v5 = vpop.f32.mrf.mxu0 }
0x3b5e   :  { %v5938_v21 = vsel %vm779_vm2, %v5929_v5, -inf }
0x3b5f   :  { %5939 = vmax.xlane.f32.xlu0 %v5938_v21  ;;  %v9284_v22 = vpop.f32.mrf.mxu1  ;;  %v9289_v25 = vpop.f32.mrf.mxu0 }
0x3b61   :  { %v5932_v26 = vpop.f32.mrf.mxu0 }
0x3b63   :  { %v9290_v27 = vpop.f32.mrf.mxu0 }
0x3b6c   :  { %5959 = vrot.lane.b32.xlu1 %v12186_v13, %s10832_s17 }
0x3be4   :  { %v5937_v30 = vpop.xlane.xlu1 %5936 }
0x3be5   :  { %v5941_v32 = vsub.f32 %v5880_v17, %v5937_v30 }
0x3be7   :  { %v5943_v33 = vmul.f32 1.442695, %v5941_v32 }
0x3be8   :  { %v5940_v35 = vpop.xlane.xlu0 %5939  ;;  %v5960_v36 = vpop.permute.xlu1 %5959 }
0x3be9   :  { %9940 = vpow2.f32 %v5943_v33  ;;  %v5942_v39 = vsub.f32 %v5929_v5, %v5940_v35  ;;  %v5965_v41 = vsel %vm904_vm3, %v5960_v36, 0 }
0x3bea   :  { %9292 = vmatpush3.bf16.msra.mxu1 %v5965_v41 }
0x3beb   :  { %v5945_v49 = vmul.f32 1.442695, %v5942_v39  ;;  %9303 = vmatprep.subr.bf16.mxu1 %v10856_v0 }
0x3bed   :  { %9942 = vpow2.f32 %v5945_v49 }
0x3bf6   :  { %v9941_v58 = vpop.eup %9940 }
0x3bf7   :  { %v5947_v60 = vsel %vm779_vm2, %v9941_v58, 0.0 }
0x3bf8   :  { %5948 = vadd.xlane.f32.xlu1 %v5947_v60 }
0x3bfa   :  { %v9943_v43 = vpop.eup %9942 }
0x3bfb   :  { %v5950_v57 = vsel %vm779_vm2, %v9943_v43, 0.0 }
0x3bfc   :  { %5951 = vadd.xlane.f32.xlu0 %v5950_v57 }
0x3c09   :  { %6057 = vrot.lane.b32.xlu1 %v12186_v13, %s10859_s26 }
0x3c0d   :  { %6107 = vrot.lane.b32.xlu1 %v12190_v19, %s10859_s26 }
0x3c11   :  { %6105 = vrot.lane.b32.xlu1 %v12190_v19, %s10860_s30 }
0x3c12   :  { %6007 = vrot.lane.b32.xlu0 %v12190_v19, %s10832_s17  ;;  %s12700_s17 = sld [smem:[#allocation114_spill]] }
0x3c16   :  { %6055 = vrot.lane.b32.xlu0 %v12186_v13, %s10860_s30 }
0x3c81   :  { %v5949_v46 = vpop.xlane.xlu1 %5948 }
0x3c82   :  { %9944 = vrcp.f32 %v5949_v46 }
0x3c85   :  { %v5952_v45 = vpop.xlane.xlu0 %5951  ;;  %v6058_v3 = vpop.permute.xlu1 %6057 }
0x3c86   :  { %9946 = vrcp.f32 %v5952_v45  ;;  %v6063_v37 = vsel %vm779_vm2, %v6058_v3, 0 }
0x3c89   :  { %v6008_v44 = vpop.permute.xlu0 %6007  ;;  %v6108_v7 = vpop.permute.xlu1 %6107 }
0x3c8a   :  { %v6013_v55 = vsel %vm904_vm3, %v6008_v44, 0  ;;  %v6113_v42 = vsel %vm779_vm2, %v6108_v7, 0 }
0x3c8b   :  { %9298 = vmatpush3.bf16.msra.mxu0 %v6013_v55 }
0x3c8c   :  { %9309 = vmatprep.subr.bf16.mxu0 %v10856_v0 }
0x3c8d   :  { %v6056_v61 = vpop.permute.xlu0 %6055  ;;  %v6106_v59 = vpop.permute.xlu1 %6105 }
0x3c8f   :  { %v9945_v56 = vpop.eup %9944 }
0x3c90   :  { %v5954_v63 = vmul.f32 %v9945_v56, %v9941_v58 }
0x3c92   :  { %v5957_v4 = vpack.c.bf16 %v5954_v63, %v5954_v63 }
0x3c93   :  { %v9947_v47 = vpop.eup %9946 }
0x3c94   :  { %v5956_v34 = vmul.f32 %v9947_v47, %v9943_v43  ;;  %9294 = vmatmul.mubr.msk.bf16.vlgmr.msra.gmra.mxu1 %vm779_vm2, %v5957_v4 }
0x3c95   :  { %9304 = vmatpush3.bf16.xpose.msra.mxu1 %v6063_v37  ;;  %9305 = vmatprep.mubr.msk.bf16.mxu1 %vm10857_vm0, %v10856_v0 }
0x3c96   :  { %v5958_v23 = vpack.c.bf16 %v5956_v34, %v5956_v34  ;;  %9315 = vmatprep.subr.bf16.mxu1 %v10856_v0 }
0x3c98   :  { %9300 = vmatmul.mubr.msk.bf16.vlgmr.msra.gmra.mxu0 %vm779_vm2, %v5958_v23 }
0x3c99   :  { %9310 = vmatpush3.bf16.xpose.msra.mxu0 %v6113_v42  ;;  %9311 = vmatprep.mubr.msk.bf16.mxu0 %vm10857_vm0, %v10856_v0 }
0x3c9a   :  { %9321 = vmatprep.subr.bf16.mxu0 %v10856_v0 }
0x3c9c   :  { %9306 = vmatmul.mubr.msk.bf16.vlgmr.msra.gmra.mxu1 %vm779_vm2, %v6056_v61 }
0x3c9d   :  { %9317 = vmatprep.mubr.msk.bf16.mxu1 %vm10857_vm0, %v10856_v0 }
0x3ca0   :  { %9312 = vmatmul.mubr.msk.bf16.vlgmr.msra.gmra.mxu0 %vm779_vm2, %v6106_v59 }
0x3ca1   :  { %9323 = vmatprep.mubr.msk.bf16.mxu0 %vm10857_vm0, %v10856_v0 }
0x3d54   :  { %v12242_v62 = vpop.f32.mrf.mxu1 }
0x3d56   :  { %v9295_v51 = vpop.f32.mrf.mxu1 }
0x3d58   :  { %v6004_v48 = vpop.f32.mrf.mxu1  ;;  %v12244_v2 = vpop.f32.mrf.mxu0 }
0x3d5a   :  { %v9296_v29 = vpop.f32.mrf.mxu1  ;;  %v9301_v6 = vpop.f32.mrf.mxu0 }
0x3d5c   :  { %v6052_v38 = vpop.f32.mrf.mxu0  ;;  %v6099_v1 = vpop.f32.mrf.mxu1 }
0x3d5d   :  { %v6155_v10 = vsel %vm779_vm2, %v6099_v1, -inf }
0x3d5e   :  { %v9302_v8 = vpop.f32.mrf.mxu0  ;;  %6156 = vmax.xlane.f32.xlu0 %v6155_v10  ;;  %v9307_v9 = vpop.f32.mrf.mxu1 }
0x3d60   :  { %v6102_v11 = vpop.f32.mrf.mxu1  ;;  %v6149_v12 = vpop.f32.mrf.mxu0 }
0x3d61   :  { %v6158_v15 = vsel %vm779_vm2, %v6149_v12, -inf }
0x3d62   :  { %6159 = vmax.xlane.f32.xlu1 %v6158_v15  ;;  %v9308_v52 = vpop.f32.mrf.mxu1  ;;  %v9313_v16 = vpop.f32.mrf.mxu0 }
0x3d64   :  { %v6152_v14 = vpop.f32.mrf.mxu0 }
0x3d66   :  { %v9314_v50 = vpop.f32.mrf.mxu0 }
0x3d73   :  { %6179 = vrot.lane.b32.xlu1 %v12186_v13, %s10861_s28 }
0x3d77   :  { %6277 = vrot.lane.b32.xlu1 %v12186_v13, %s10862_s29 }
0x3d7b   :  { %6327 = vrot.lane.b32.xlu1 %v12190_v19, %s10862_s29 }
0x3d7f   :  { %6325 = vrot.lane.b32.xlu1 %v12190_v19, %s10863_s21 }
0x3de7   :  { %v6157_v53 = vpop.xlane.xlu0 %6156 }
0x3de8   :  { %v6161_v54 = vsub.f32 %v6099_v1, %v6157_v53 }
0x3dea   :  { %v6163_v17 = vmul.f32 1.442695, %v6161_v54 }
0x3deb   :  { %v6160_v18 = vpop.xlane.xlu1 %6159 }
0x3dec   :  { %9948 = vpow2.f32 %v6163_v17  ;;  %v6162_v20 = vsub.f32 %v6149_v12, %v6160_v18 }
0x3dee   :  { %v6165_v28 = vmul.f32 1.442695, %v6162_v20 }
0x3def   :  { %v6180_v5 = vpop.permute.xlu1 %6179 }
0x3df0   :  { %9950 = vpow2.f32 %v6165_v28  ;;  %v6185_v21 = vsel %vm904_vm3, %v6180_v5, 0 }
0x3df1   :  { %9316 = vmatpush3.bf16.msra.mxu1 %v6185_v21 }
0x3df2   :  { %9327 = vmatprep.subr.bf16.mxu1 %v10856_v0 }
0x3df3   :  { %v6278_v39 = vpop.permute.xlu1 %6277 }
0x3df4   :  { %v6283_v60 = vsel %vm779_vm2, %v6278_v39, 0 }
0x3df7   :  { %v6328_v57 = vpop.permute.xlu1 %6327 }
0x3df8   :  { %v6333_v45 = vsel %vm779_vm2, %v6328_v57, 0 }
0x3df9   :  { %v9949_v22 = vpop.eup %9948 }
0x3dfa   :  { %v6167_v25 = vsel %vm779_vm2, %v9949_v22, 0.0 }
0x3dfb   :  { %6168 = vadd.xlane.f32.xlu0 %v6167_v25  ;;  %v6326_v55 = vpop.permute.xlu1 %6325 }
0x3dfd   :  { %v9951_v26 = vpop.eup %9950 }
0x3dfe   :  { %v6170_v27 = vsel %vm779_vm2, %v9951_v26, 0.0 }
0x3dff   :  { %6171 = vadd.xlane.f32.xlu0 %v6170_v27 }
0x3e15   :  { %6227 = vrot.lane.b32.xlu0 %v12190_v19, %s10861_s28 }
0x3e19   :  { %6275 = vrot.lane.b32.xlu0 %v12186_v13, %s10863_s21 }
0x3e84   :  { %v6169_v30 = vpop.xlane.xlu0 %6168 }
0x3e85   :  { %9952 = vrcp.f32 %v6169_v30 }
0x3e88   :  { %v6172_v32 = vpop.xlane.xlu0 %6171 }
0x3e89   :  { %9954 = vrcp.f32 %v6172_v32 }
0x3e8c   :  { %v6228_v33 = vpop.permute.xlu0 %6227 }
0x3e8d   :  { %v6233_v35 = vsel %vm904_vm3, %v6228_v33, 0 }
0x3e8e   :  { %9322 = vmatpush3.bf16.msra.mxu0 %v6233_v35 }
0x3e8f   :  { %9333 = vmatprep.subr.bf16.mxu0 %v10856_v0 }
0x3e90   :  { %v6276_v44 = vpop.permute.xlu0 %6275 }
0x3e92   :  { %v9953_v36 = vpop.eup %9952 }
0x3e93   :  { %v6174_v41 = vmul.f32 %v9953_v36, %v9949_v22 }
0x3e95   :  { %v6177_v49 = vpack.c.bf16 %v6174_v41, %v6174_v41 }
0x3e96   :  { %v9955_v58 = vpop.eup %9954 }
0x3e97   :  { %v6176_v43 = vmul.f32 %v9955_v58, %v9951_v26  ;;  %9318 = vmatmul.mubr.msk.bf16.vlgmr.msra.gmra.mxu1 %vm779_vm2, %v6177_v49 }
0x3e98   :  { %9328 = vmatpush3.bf16.xpose.msra.mxu1 %v6283_v60  ;;  %9329 = vmatprep.mubr.msk.bf16.mxu1 %vm10857_vm0, %v10856_v0 }
0x3e99   :  { %v6178_v46 = vpack.c.bf16 %v6176_v43, %v6176_v43  ;;  %9339 = vmatprep.subr.bf16.mxu1 %v10856_v0 }
0x3e9b   :  { %9324 = vmatmul.mubr.msk.bf16.vlgmr.msra.gmra.mxu0 %vm779_vm2, %v6178_v46 }
0x3e9c   :  { %9334 = vmatpush3.bf16.xpose.msra.mxu0 %v6333_v45  ;;  %9335 = vmatprep.mubr.msk.bf16.mxu0 %vm10857_vm0, %v10856_v0 }
0x3e9d   :  { %9345 = vmatprep.subr.bf16.mxu0 %v10856_v0 }
0x3e9f   :  { %9330 = vmatmul.mubr.msk.bf16.vlgmr.msra.gmra.mxu1 %vm779_vm2, %v6276_v44 }
0x3ea0   :  { %9341 = vmatprep.mubr.msk.bf16.mxu1 %vm10857_vm0, %v10856_v0 }
0x3ea3   :  { %9336 = vmatmul.mubr.msk.bf16.vlgmr.msra.gmra.mxu0 %vm779_vm2, %v6326_v55 }
0x3ea4   :  { %9347 = vmatprep.mubr.msk.bf16.mxu0 %vm10857_vm0, %v10856_v0 }
0x3f57   :  { %v12282_v56 = vpop.f32.mrf.mxu1 }
0x3f59   :  { %v9319_v3 = vpop.f32.mrf.mxu1 }
0x3f5b   :  { %v6224_v63 = vpop.f32.mrf.mxu1  ;;  %v12284_v4 = vpop.f32.mrf.mxu0 }
0x3f5c   :  { %v9702_v47 = vpack.i.bf16 %v12284_v4, %v12282_v56 }
0x3f5d   :  { %v9320_v34 = vpop.f32.mrf.mxu1  ;;  %v9325_v37 = vpop.f32.mrf.mxu0 }
0x3f5f   :  { %v6272_v7 = vpop.f32.mrf.mxu0  ;;  %v6319_v23 = vpop.f32.mrf.mxu1 }
0x3f60   :  { %v6375_v42 = vsel %vm779_vm2, %v6319_v23, -inf }
0x3f61   :  { %v9326_v61 = vpop.f32.mrf.mxu0  ;;  %6376 = vmax.xlane.f32.xlu0 %v6375_v42  ;;  %v9331_v59 = vpop.f32.mrf.mxu1 }
0x3f63   :  { %v6322_v51 = vpop.f32.mrf.mxu1  ;;  %v6369_v48 = vpop.f32.mrf.mxu0 }
0x3f64   :  { %v6378_v29 = vsel %vm779_vm2, %v6369_v48, -inf }
0x3f65   :  { %6379 = vmax.xlane.f32.xlu1 %v6378_v29  ;;  %v9332_v6 = vpop.f32.mrf.mxu1  ;;  %v9337_v38 = vpop.f32.mrf.mxu0 }
0x3f67   :  { %v6372_v1 = vpop.f32.mrf.mxu0 }
0x3f69   :  { %v9338_v10 = vpop.f32.mrf.mxu0 }
0x3f76   :  { %6399 = vrot.lane.b32.xlu1 %v12186_v13, %s10864_s1 }
0x3f7a   :  { %6497 = vrot.lane.b32.xlu1 %v12186_v13, %s10865_s2 }
0x3f7e   :  { %6547 = vrot.lane.b32.xlu1 %v12190_v19, %s10865_s2 }
0x3f82   :  { %6545 = vrot.lane.b32.xlu1 %v12190_v19, %s10866_s7 }
0x3fea   :  { %v6377_v8 = vpop.xlane.xlu0 %6376 }
0x3feb   :  { %v6381_v9 = vsub.f32 %v6319_v23, %v6377_v8 }
0x3fed   :  { %v6383_v11 = vmul.f32 1.442695, %v6381_v9 }
0x3fee   :  { %v6380_v12 = vpop.xlane.xlu1 %6379 }
0x3fef   :  { %9956 = vpow2.f32 %v6383_v11  ;;  %v6382_v15 = vsub.f32 %v6369_v48, %v6380_v12 }
0x3ff1   :  { %v6385_v52 = vmul.f32 1.442695, %v6382_v15 }
0x3ff2   :  { %v6400_v16 = vpop.permute.xlu1 %6399 }
0x3ff3   :  { %9958 = vpow2.f32 %v6385_v52  ;;  %v6405_v14 = vsel %vm904_vm3, %v6400_v16, 0 }
0x3ff4   :  { %9340 = vmatpush3.bf16.msra.mxu1 %v6405_v14 }
0x3ff5   :  { %9351 = vmatprep.subr.bf16.mxu1 %v10856_v0 }
0x3ff6   :  { %v6498_v22 = vpop.permute.xlu1 %6497 }
0x3ff7   :  { %v6503_v30 = vsel %vm779_vm2, %v6498_v22, 0 }
0x3ffa   :  { %v6548_v33 = vpop.permute.xlu1 %6547 }
0x3ffb   :  { %v6553_v36 = vsel %vm779_vm2, %v6548_v33, 0 }
0x3ffc   :  { %v9957_v50 = vpop.eup %9956 }
0x3ffd   :  { %v6387_v53 = vsel %vm779_vm2, %v9957_v50, 0.0 }
0x3ffe   :  { %6388 = vadd.xlane.f32.xlu0 %v6387_v53  ;;  %v6546_v41 = vpop.permute.xlu1 %6545 }
0x4000   :  { %v9959_v54 = vpop.eup %9958 }
0x4001   :  { %v6390_v17 = vsel %vm779_vm2, %v9959_v54, 0.0 }
0x4002   :  { %6391 = vadd.xlane.f32.xlu0 %v6390_v17  ;;  %v9770_v17 = vld [vmem:[%s12700_s17 + $0x8] sm:$0xff]  }
0x4018   :  { %6447 = vrot.lane.b32.xlu0 %v12190_v19, %s10864_s1 }
0x401c   :  { %6495 = vrot.lane.b32.xlu0 %v12186_v13, %s10866_s7 }
0x4087   :  { %v6389_v18 = vpop.xlane.xlu0 %6388 }
0x4088   :  { %9960 = vrcp.f32 %v6389_v18  ;;  %v9771_v18 = vld [vmem:[%s12700_s17] sm:$0xff]  }
0x408b   :  { %v6392_v20 = vpop.xlane.xlu0 %6391 }
0x408c   :  { %9962 = vrcp.f32 %v6392_v20 }
0x408f   :  { %v6448_v28 = vpop.permute.xlu0 %6447 }
0x4090   :  { %v6453_v5 = vsel %vm904_vm3, %v6448_v28, 0 }
0x4091   :  { %9346 = vmatpush3.bf16.msra.mxu0 %v6453_v5 }
0x4092   :  { %9357 = vmatprep.subr.bf16.mxu0 %v10856_v0 }
0x4093   :  { %v6496_v39 = vpop.permute.xlu0 %6495 }
0x4095   :  { %v9961_v21 = vpop.eup %9960 }
0x4096   :  { %v6394_v25 = vmul.f32 %v9961_v21, %v9957_v50 }
0x4098   :  { %v6397_v26 = vpack.c.bf16 %v6394_v25, %v6394_v25 }
0x4099   :  { %v9963_v27 = vpop.eup %9962 }
0x409a   :  { %v6396_v32 = vmul.f32 %v9963_v27, %v9959_v54  ;;  %9342 = vmatmul.mubr.msk.bf16.vlgmr.msra.gmra.mxu1 %vm779_vm2, %v6397_v26 }
0x409b   :  { %9352 = vmatpush3.bf16.xpose.msra.mxu1 %v6503_v30  ;;  %9353 = vmatprep.mubr.msk.bf16.mxu1 %vm10857_vm0, %v10856_v0 }
0x409c   :  { %v6398_v35 = vpack.c.bf16 %v6396_v32, %v6396_v32  ;;  %9363 = vmatprep.subr.bf16.mxu1 %v10856_v0 }
0x409e   :  { %9348 = vmatmul.mubr.msk.bf16.vlgmr.msra.gmra.mxu0 %vm779_vm2, %v6398_v35 }
0x409f   :  { %9358 = vmatpush3.bf16.xpose.msra.mxu0 %v6553_v36  ;;  %9359 = vmatprep.mubr.msk.bf16.mxu0 %vm10857_vm0, %v10856_v0 }
0x40a0   :  { %9369 = vmatprep.subr.bf16.mxu0 %v10856_v0 }
0x40a2   :  { %9354 = vmatmul.mubr.msk.bf16.vlgmr.msra.gmra.mxu1 %vm779_vm2, %v6496_v39 }
0x40a3   :  { %9365 = vmatprep.mubr.msk.bf16.mxu1 %vm10857_vm0, %v10856_v0 }
0x40a6   :  { %9360 = vmatmul.mubr.msk.bf16.vlgmr.msra.gmra.mxu0 %vm779_vm2, %v6546_v41 }
0x40a7   :  { %9371 = vmatprep.mubr.msk.bf16.mxu0 %vm10857_vm0, %v10856_v0 }
0x415a   :  { %v6441_v49 = vpop.f32.mrf.mxu1 }
0x415c   :  { %v9343_v58 = vpop.f32.mrf.mxu1 }
0x415e   :  { %v6444_v60 = vpop.f32.mrf.mxu1  ;;  %v6489_v43 = vpop.f32.mrf.mxu0 }
0x415f   :  { %v9707_v51 = vpack.i.bf16 %v6489_v43, %v6441_v49 }
0x4160   :  { %v9344_v57 = vpop.f32.mrf.mxu1  ;;  %v9349_v46 = vpop.f32.mrf.mxu0 }
0x4162   :  { %v6492_v45 = vpop.f32.mrf.mxu0  ;;  %v6539_v44 = vpop.f32.mrf.mxu1 }
0x4163   :  { %v6595_v55 = vsel %vm779_vm2, %v6539_v44, -inf }
0x4164   :  { %v9350_v3 = vpop.f32.mrf.mxu0  ;;  %6596 = vmax.xlane.f32.xlu0 %v6595_v55  ;;  %v9355_v63 = vpop.f32.mrf.mxu1 }
0x4165   :  { %v9772_v3 = vld [vmem:[#allocation38 + $0x8] sm:$0xff]  }
0x4166   :  { %v6542_v34 = vpop.f32.mrf.mxu1  ;;  %v6589_v37 = vpop.f32.mrf.mxu0 }
0x4167   :  { %v6598_v7 = vsel %vm779_vm2, %v6589_v37, -inf  ;;  %v9773_v34 = vld [vmem:[#allocation38] sm:$0xff]  }
0x4168   :  { %6599 = vmax.xlane.f32.xlu1 %v6598_v7  ;;  %v9356_v23 = vpop.f32.mrf.mxu1  ;;  %v9361_v42 = vpop.f32.mrf.mxu0 }
0x416a   :  { %v6592_v61 = vpop.f32.mrf.mxu0 }
0x416c   :  { %v9362_v59 = vpop.f32.mrf.mxu0 }
0x4179   :  { %6619 = vrot.lane.b32.xlu1 %v12186_v13, %s10867_s10 }
0x417d   :  { %9703 = vrot.lane.b32.xlu1 %v9702_v47, %s10868_s11 }
0x4181   :  { %9708 = vrot.lane.b32.xlu1 %v9707_v51, %s10869_s24 }
0x41ed   :  { %v6597_v48 = vpop.xlane.xlu0 %6596 }
0x41ee   :  { %v6601_v29 = vsub.f32 %v6539_v44, %v6597_v48  ;;  %v8451_v48 = vld [vmem:[#allocation40] ss:$0 sm:$0xff] }
0x41f0   :  { %v6603_v6 = vmul.f32 1.442695, %v6601_v29 }
0x41f1   :  { %v6600_v38 = vpop.xlane.xlu1 %6599 }
0x41f2   :  { %9964 = vpow2.f32 %v6603_v6  ;;  %v6602_v1 = vsub.f32 %v6589_v37, %v6600_v38 }
0x41f4   :  { %v6605_v10 = vmul.f32 1.442695, %v6602_v1 }
0x41f5   :  { %v6620_v8 = vpop.permute.xlu1 %6619 }
0x41f6   :  { %9966 = vpow2.f32 %v6605_v10  ;;  %v6625_v9 = vsel %vm904_vm3, %v6620_v8, 0 }
0x41f7   :  { %9364 = vmatpush3.bf16.msra.mxu1 %v6625_v9 }
0x41f8   :  { %9375 = vmatprep.subr.bf16.mxu1 %v10856_v0 }
0x41f9   :  { %v9704_v32 = vpop.permute.xlu1 %9703 }
0x41fa   :  { %v9706_v35 = vunpack.i.h.bf16 %v9704_v32  ;;  %v9705_v36 = vunpack.i.l.bf16 %v9704_v32 }
0x41fc   :  { %v6740_v58 = vsel %vm779_vm2, %v12244_v2, %v9706_v35  ;;  %v6739_v60 = vsel %vm779_vm2, %v12242_v62, %v9705_v36  ;;  %v8441_v62 = vld [vmem:[#allocation31] ss:$0 sm:$0xff] }
0x41fd   :  { %v9709_v33 = vpop.permute.xlu1 %9708 }
0x41fe   :  { %v9711_v39 = vunpack.i.h.bf16 %v9709_v33  ;;  %v9710_v41 = vunpack.i.l.bf16 %v9709_v33 }
0x41ff   :  { %v9965_v13 = vpop.eup %9964 }
0x4200   :  { %v6607_v56 = vsel %vm779_vm2, %v9965_v13, 0.0  ;;  %v6742_v46 = vsel %vm1682_vm4, %v6740_v58, %v9711_v39  ;;  %v6741_v45 = vsel %vm1682_vm4, %v6739_v60, %v9710_v41 }
0x4201   :  { %6608 = vadd.xlane.f32.xlu0 %v6607_v56 }
0x4203   :  { %v9967_v4 = vpop.eup %9966 }
0x4204   :  { %v6610_v47 = vsel %vm779_vm2, %v9967_v4, 0.0 }
0x4205   :  { %6611 = vadd.xlane.f32.xlu0 %v6610_v47 }
0x421b   :  { %6667 = vrot.lane.b32.xlu0 %v12190_v19, %s10867_s10 }
0x428a   :  { %v6609_v11 = vpop.xlane.xlu0 %6608 }
0x428b   :  { %9968 = vrcp.f32 %v6609_v11 }
0x428e   :  { %v6612_v12 = vpop.xlane.xlu0 %6611 }
0x428f   :  { %9970 = vrcp.f32 %v6612_v12 }
0x4292   :  { %v6668_v15 = vpop.permute.xlu0 %6667 }
0x4293   :  { %v6673_v52 = vsel %vm904_vm3, %v6668_v15, 0 }
0x4294   :  { %9370 = vmatpush3.bf16.msra.mxu0 %v6673_v52 }
0x4295   :  { %9383 = vmatprep.subr.bf16.mxu0 %v10856_v0 }
0x4298   :  { %v9969_v16 = vpop.eup %9968 }
0x4299   :  { %v6614_v14 = vmul.f32 %v9969_v16, %v9965_v13 }
0x429b   :  { %v6617_v50 = vpack.c.bf16 %v6614_v14, %v6614_v14 }
0x429c   :  { %v9971_v53 = vpop.eup %9970 }
0x429d   :  { %v6616_v54 = vmul.f32 %v9971_v53, %v9967_v4  ;;  %9366 = vmatmul.mubr.msk.bf16.vlgmr.msra.gmra.mxu1 %vm779_vm2, %v6617_v50  ;;  %v9774_v50 = vld [vmem:[#allocation35 + $0x8] sm:$0xff]   ;;  %v9775_v53 = vld [vmem:[#allocation35] sm:$0xff]  }
0x429e   :  { %9379 = vmatprep.mubr.msk.bf16.mxu1 %vm10857_vm0, %v10856_v0  ;;  %9376 = vmatpush3.bf16.msra.mxu1 %v9770_v17 }
0x429f   :  { %v6618_v19 = vpack.c.bf16 %v6616_v54, %v6616_v54  ;;  %9377 = vmatprep.subr.bf16.mxu1 %v10856_v0 }
0x42a1   :  { %9372 = vmatmul.mubr.msk.bf16.vlgmr.msra.gmra.mxu0 %vm779_vm2, %v6618_v19 }
0x42a2   :  { %9387 = vmatprep.mubr.msk.bf16.mxu0 %vm10857_vm0, %v10856_v0  ;;  %9378 = vmatpush3.bf16.msra.mxu1 %v9771_v18 }
0x42a3   :  { %9391 = vmatprep.subr.bf16.mxu1 %v10856_v0  ;;  %9384 = vmatpush3.bf16.msra.mxu0 %v9774_v50 }
0x42a4   :  { %9385 = vmatprep.subr.bf16.mxu0 %v10856_v0 }
0x42a7   :  { %9386 = vmatpush3.bf16.msra.mxu0 %v9775_v53 }
0x42a8   :  { %9399 = vmatprep.subr.bf16.mxu0 %v10856_v0 }
0x435d   :  { %v6661_v20 = vpop.f32.mrf.mxu1 }
0x435f   :  { %v9367_v28 = vpop.f32.mrf.mxu1 }
0x4361   :  { %v6664_v5 = vpop.f32.mrf.mxu1  ;;  %v6709_v21 = vpop.f32.mrf.mxu0 }
0x4362   :  { %v9712_v22 = vpack.i.bf16 %v6709_v21, %v6661_v20 }
0x4363   :  { %v9368_v25 = vpop.f32.mrf.mxu1  ;;  %v9373_v26 = vpop.f32.mrf.mxu0 }
0x4364   :  { %9713 = vrot.lane.b32.xlu0 %v9712_v22, %s10870_s14  ;;  %v8445_v22 = vld [vmem:[#allocation32] ss:$0 sm:$0xff] }
0x4365   :  { %v6712_v27 = vpop.f32.mrf.mxu0 }
0x4367   :  { %v9374_v30 = vpop.f32.mrf.mxu0 }
0x4368   :  { %v8446_v30 = vld [vmem:[#allocation34] ss:$0 sm:$0xff] }
0x43d6   :  { %v9714_v49 = vpop.permute.xlu0 %9713 }
0x43d7   :  { %v9716_v43 = vunpack.i.h.bf16 %v9714_v49  ;;  %v9715_v57 = vunpack.i.l.bf16 %v9714_v49  ;;  %v8447_v49 = vld [vmem:[#allocation37] ss:$0 sm:$0xff] }
0x43d9   :  { %v6744_v44 = vsel %vm1685_vm5, %v6742_v46, %v9716_v43  ;;  %v6743_v55 = vsel %vm1685_vm5, %v6741_v45, %v9715_v57 }
0x43da   :  { %v6745_v63 = vpack.c.bf16 %v6744_v44, %v6743_v55 }
0x43dc   :  { %9380 = vmatmul.mubr.msk.bf16.vlgmr.msra.gmra.mxu1 %vm729_vm1, %v6745_v63 }
0x43dd   :  { %9392 = vmatpush3.bf16.msra.mxu1 %v9772_v3  ;;  %9395 = vmatprep.mubr.msk.bf16.mxu1 %vm10857_vm0, %v10856_v0 }
0x43de   :  { %9393 = vmatprep.subr.bf16.mxu1 %v10856_v0 }
0x43e1   :  { %9394 = vmatpush3.bf16.msra.mxu1 %v9773_v34 }
0x43e2   :  { %9405 = vmatprep.subr.bf16.mxu1 %v10856_v0 }
0x43e4   :  { %9396 = vmatmul.mubr.msk.bf16.vlgmr.msra.gmra.mxu1 %vm729_vm1, %v11953_v31 }
0x43e5   :  { %9407 = vmatprep.mubr.msk.bf16.mxu1 %vm10857_vm0, %v10856_v0 }
0x449c   :  { %v6801_v2 = vpop.f32.mrf.mxu1 }
0x449d   :  { %v6802_v37 = vadd.f32 %v8441_v62, %v6801_v2 }
0x449e   :  { %v9381_v7 = vpop.f32.mrf.mxu1 }
0x449f   :  { %v6808_v23 = vadd.f32 %v6802_v37, %v12177_v40 }
0x44a0   :  { %v6804_v42 = vpop.f32.mrf.mxu1 }
0x44a1   :  { %v6805_v61 = vadd.f32 %v8441_v62, %v6804_v42  ;;  %v6810_v59 = vsel %vm729_vm1, %v6808_v23, 0.0 }
0x44a2   :  { %6811 = vadd.xlane.f32.xlu1 %v6810_v59  ;;  %v9382_v51 = vpop.f32.mrf.mxu1 }
0x44a3   :  { %v6809_v29 = vadd.f32 %v6805_v61, %v12179_v24 }
0x44a4   :  { %v6967_v6 = vpop.f32.mrf.mxu1 }
0x44a5   :  { %v6968_v31 = vadd.f32 %v8451_v48, %v6967_v6  ;;  %v6813_v38 = vsel %vm729_vm1, %v6809_v29, 0.0 }
0x44a6   :  { %6814 = vadd.xlane.f32.xlu0 %v6813_v38  ;;  %v9397_v1 = vpop.f32.mrf.mxu1 }
0x44a7   :  { %v12382_v33 = vpack.c.bf16 %v6968_v31, %v6968_v31 }
0x44a8   :  { %v6970_v10 = vpop.f32.mrf.mxu1 }
0x44a9   :  { %v6971_v8 = vadd.f32 %v8451_v48, %v6970_v10  ;;  %v6982_v41 = vsel %vm779_vm2, %v12382_v33, 0 }
0x44aa   :  { %v9398_v9 = vpop.f32.mrf.mxu1 }
0x44ab   :  { %v12373_v13 = vpack.c.bf16 %v6971_v8, %v6971_v8 }
0x44ad   :  { %v7028_v40 = vsel %vm779_vm2, %v12373_v13, 0 }
0x44ae   :  { %9406 = vmatpush3.bf16.xpose.msra.mxu1 %v7028_v40 }
0x44af   :  { %9417 = vmatprep.subr.bf16.mxu1 %v10856_v0 }
0x452b   :  { %v6812_v56 = vpop.xlane.xlu1 %6811 }
0x452c   :  { %v6816_v4 = vmul.f32 0.03125, %v6812_v56 }
0x452e   :  { %v6818_v24 = vsub.f32 %v6808_v23, %v6816_v4 }
0x452f   :  { %v6815_v47 = vpop.xlane.xlu0 %6814 }
0x4530   :  { %v6817_v11 = vmul.f32 0.03125, %v6815_v47  ;;  %v6820_v12 = vmul.f32 %v6818_v24, %v6818_v24 }
0x4532   :  { %v6819_v15 = vsub.f32 %v6809_v29, %v6817_v11  ;;  %v6822_v52 = vsel %vm729_vm1, %v6820_v12, 0.0 }
0x4533   :  { %6823 = vadd.xlane.f32.xlu0 %v6822_v52 }
0x4534   :  { %v6821_v16 = vmul.f32 %v6819_v15, %v6819_v15 }
0x4536   :  { %v6825_v14 = vsel %vm729_vm1, %v6821_v16, 0.0 }
0x4537   :  { %6826 = vadd.xlane.f32.xlu1 %v6825_v14 }
0x45bc   :  { %v6824_v54 = vpop.xlane.xlu0 %6823 }
0x45bd   :  { %v6828_v19 = vmul.f32 0.03125, %v6824_v54 }
0x45bf   :  { %v6830_v17 = vadd.f32 1e-05, %v6828_v19 }
0x45c0   :  { %v6827_v18 = vpop.xlane.xlu1 %6826 }
0x45c1   :  { %9972 = vrsqrt.f32 %v6830_v17  ;;  %v6829_v20 = vmul.f32 0.03125, %v6827_v18 }
0x45c3   :  { %v6831_v28 = vadd.f32 1e-05, %v6829_v20 }
0x45c5   :  { %9974 = vrsqrt.f32 %v6831_v28 }
0x45ce   :  { %v9973_v5 = vpop.eup %9972 }
0x45cf   :  { %v6834_v21 = vmul.f32 %v9973_v5, %v6818_v24 }
0x45d1   :  { %v6842_v26 = vmul.f32 %v8445_v22, %v6834_v21 }
0x45d2   :  { %v9975_v25 = vpop.eup %9974 }
0x45d3   :  { %v6835_v27 = vmul.f32 %v9975_v25, %v6819_v15  ;;  %v12384_v35 = vadd.f32 %v8446_v30, %v6842_v26 }
0x45d5   :  { %v6843_v32 = vmul.f32 %v8445_v22, %v6835_v27 }
0x45d7   :  { %v12386_v36 = vadd.f32 %v8446_v30, %v6843_v32 }
0x45d9   :  { %v6852_v39 = vpack.c.bf16 %v12386_v36, %v12384_v35 }
0x45db   :  { %9388 = vmatmul.mubr.msk.bf16.vlgmr.msra.gmra.mxu0 %vm729_vm1, %v6852_v39 }
0x45dc   :  { %9400 = vmatpush3.bf16.xpose.msra.mxu0 %v6982_v41  ;;  %9401 = vmatprep.mubr.msk.bf16.mxu0 %vm10857_vm0, %v10856_v0 }
0x45dd   :  { %9411 = vmatprep.subr.bf16.mxu0 %v10856_v0 }
0x469b   :  { %v6908_v58 = vpop.f32.mrf.mxu0 }
0x469c   :  { %v6909_v60 = vadd.f32 %v8447_v49, %v6908_v58 }
0x469d   :  { %v9389_v43 = vpop.f32.mrf.mxu0 }
0x469e   :  { %v12396_v57 = vpack.c.bf16 %v6909_v60, %v6909_v60 }
0x469f   :  { %v6911_v46 = vpop.f32.mrf.mxu0 }
0x46a0   :  { %v6912_v45 = vadd.f32 %v8447_v49, %v6911_v46  ;;  %9402 = vmatmul.mubr.msk.bf16.vlgmr.msra.gmra.mxu0 %vm779_vm2, %v12396_v57 }
0x46a1   :  { %v9390_v44 = vpop.f32.mrf.mxu0  ;;  %9413 = vmatprep.mubr.msk.bf16.mxu0 %vm10857_vm0, %v10856_v0 }
0x46a2   :  { %v12402_v55 = vpack.c.bf16 %v6912_v45, %v6912_v45 }
0x46a4   :  { %9408 = vmatmul.mubr.msk.bf16.vlgmr.msra.gmra.mxu1 %vm779_vm2, %v12402_v55 }
0x46a5   :  { %9419 = vmatprep.mubr.msk.bf16.mxu1 %vm10857_vm0, %v10856_v0 }
0x4760   :  { %v7018_v3 = vpop.f32.mrf.mxu0 }
0x4761   :  { %v7070_v63 = vsel %vm779_vm2, %v7018_v3, -inf }
0x4762   :  { %7071 = vmax.xlane.f32.xlu0 %v7070_v63  ;;  %v9403_v34 = vpop.f32.mrf.mxu0 }
0x4764   :  { %v7021_v62 = vpop.f32.mrf.mxu0  ;;  %v7064_v2 = vpop.f32.mrf.mxu1 }
0x4765   :  { %v7073_v37 = vsel %vm779_vm2, %v7064_v2, -inf }
0x4766   :  { %v9404_v7 = vpop.f32.mrf.mxu0  ;;  %7074 = vmax.xlane.f32.xlu1 %v7073_v37  ;;  %v9409_v23 = vpop.f32.mrf.mxu1 }
0x4768   :  { %v7067_v42 = vpop.f32.mrf.mxu1 }
0x476a   :  { %v9410_v61 = vpop.f32.mrf.mxu1 }
0x4777   :  { %7144 = vrot.lane.b32.xlu1 %v12373_v13, %s10858_s23 }
0x4778   :  { %7095 = vrot.lane.b32.xlu0 %v12382_v33, %s10858_s23  ;;  %s12701_s23 = sld [smem:[#allocation123_spill]] }
0x47eb   :  { %v7072_v59 = vpop.xlane.xlu0 %7071 }
0x47ec   :  { %v7076_v51 = vsub.f32 %v7018_v3, %v7072_v59 }
0x47ee   :  { %v7078_v48 = vmul.f32 1.442695, %v7076_v51 }
0x47ef   :  { %v7096_v29 = vpop.permute.xlu0 %7095  ;;  %v7075_v6 = vpop.xlane.xlu1 %7074 }
0x47f0   :  { %9976 = vpow2.f32 %v7078_v48  ;;  %v7101_v31 = vsel %vm904_vm3, %v7096_v29, 0  ;;  %v7077_v38 = vsub.f32 %v7064_v2, %v7075_v6 }
0x47f1   :  { %9412 = vmatpush3.bf16.msra.mxu0 %v7101_v31 }
0x47f2   :  { %v7080_v1 = vmul.f32 1.442695, %v7077_v38  ;;  %9423 = vmatprep.subr.bf16.mxu0 %v10856_v0 }
0x47f3   :  { %v7145_v10 = vpop.permute.xlu1 %7144 }
0x47f4   :  { %9978 = vpow2.f32 %v7080_v1  ;;  %v7150_v8 = vsel %vm904_vm3, %v7145_v10, 0 }
0x47f5   :  { %9418 = vmatpush3.bf16.msra.mxu1 %v7150_v8 }
0x47f6   :  { %9429 = vmatprep.subr.bf16.mxu1 %v10856_v0 }
0x47fd   :  { %v9977_v9 = vpop.eup %9976 }
0x47fe   :  { %v7082_v40 = vsel %vm779_vm2, %v9977_v9, 0.0 }
0x47ff   :  { %7083 = vadd.xlane.f32.xlu0 %v7082_v40 }
0x4801   :  { %v9979_v56 = vpop.eup %9978 }
0x4802   :  { %v7085_v4 = vsel %vm779_vm2, %v9979_v56, 0.0 }
0x4803   :  { %7086 = vadd.xlane.f32.xlu1 %v7085_v4 }
0x4814   :  { %7195 = vrot.lane.b32.xlu1 %v12382_v33, %s10860_s30 }
0x4815   :  { %7246 = vrot.lane.b32.xlu0 %v12373_v13, %s10860_s30 }
0x4818   :  { %7193 = vrot.lane.b32.xlu1 %v12396_v57, %s10860_s30 }
0x4819   :  { %7244 = vrot.lane.b32.xlu0 %v12402_v55, %s10860_s30 }
0x4888   :  { %v7084_v24 = vpop.xlane.xlu0 %7083 }
0x4889   :  { %9980 = vrcp.f32 %v7084_v24 }
0x488c   :  { %v7087_v47 = vpop.xlane.xlu1 %7086  ;;  %v7247_v53 = vpop.permute.xlu0 %7246 }
0x488d   :  { %9982 = vrcp.f32 %v7087_v47  ;;  %v7252_v19 = vsel %vm779_vm2, %v7247_v53, 0 }
0x4890   :  { %v7196_v15 = vpop.permute.xlu1 %7195  ;;  %v7245_v18 = vpop.permute.xlu0 %7244 }
0x4891   :  { %v7201_v50 = vsel %vm779_vm2, %v7196_v15, 0 }
0x4894   :  { %v7194_v17 = vpop.permute.xlu1 %7193 }
0x4896   :  { %v9981_v11 = vpop.eup %9980 }
0x4897   :  { %v7089_v12 = vmul.f32 %v9981_v11, %v9977_v9 }
0x4899   :  { %v7092_v52 = vpack.c.bf16 %v7089_v12, %v7089_v12 }
0x489a   :  { %v9983_v16 = vpop.eup %9982 }
0x489b   :  { %v7091_v14 = vmul.f32 %v9983_v16, %v9979_v56  ;;  %9414 = vmatmul.mubr.msk.bf16.vlgmr.msra.gmra.mxu0 %vm779_vm2, %v7092_v52 }
0x489c   :  { %9424 = vmatpush3.bf16.xpose.msra.mxu0 %v7201_v50  ;;  %9425 = vmatprep.mubr.msk.bf16.mxu0 %vm10857_vm0, %v10856_v0 }
0x489d   :  { %v7093_v54 = vpack.c.bf16 %v7091_v14, %v7091_v14  ;;  %9435 = vmatprep.subr.bf16.mxu0 %v10856_v0 }
0x489f   :  { %9420 = vmatmul.mubr.msk.bf16.vlgmr.msra.gmra.mxu1 %vm779_vm2, %v7093_v54 }
0x48a0   :  { %9430 = vmatpush3.bf16.xpose.msra.mxu1 %v7252_v19  ;;  %9431 = vmatprep.mubr.msk.bf16.mxu1 %vm10857_vm0, %v10856_v0 }
0x48a1   :  { %9441 = vmatprep.subr.bf16.mxu1 %v10856_v0 }
0x48a3   :  { %9426 = vmatmul.mubr.msk.bf16.vlgmr.msra.gmra.mxu0 %vm779_vm2, %v7194_v17 }
0x48a4   :  { %9437 = vmatprep.mubr.msk.bf16.mxu0 %vm10857_vm0, %v10856_v0 }
0x48a7   :  { %9432 = vmatmul.mubr.msk.bf16.vlgmr.msra.gmra.mxu1 %vm779_vm2, %v7245_v18 }
0x48a8   :  { %9443 = vmatprep.mubr.msk.bf16.mxu1 %vm10857_vm0, %v10856_v0 }
0x495b   :  { %v12444_v20 = vpop.f32.mrf.mxu0 }
0x495d   :  { %v9415_v28 = vpop.f32.mrf.mxu0 }
0x495f   :  { %v7140_v5 = vpop.f32.mrf.mxu0  ;;  %v12446_v21 = vpop.f32.mrf.mxu1 }
0x4961   :  { %v9416_v22 = vpop.f32.mrf.mxu0  ;;  %v9421_v25 = vpop.f32.mrf.mxu1 }
0x4963   :  { %v7189_v26 = vpop.f32.mrf.mxu1  ;;  %v7237_v27 = vpop.f32.mrf.mxu0 }
0x4964   :  { %v7294_v30 = vsel %vm779_vm2, %v7237_v27, -inf }
0x4965   :  { %7295 = vmax.xlane.f32.xlu1 %v7294_v30  ;;  %v9422_v32 = vpop.f32.mrf.mxu1  ;;  %v9427_v39 = vpop.f32.mrf.mxu0 }
0x4967   :  { %v7240_v41 = vpop.f32.mrf.mxu0  ;;  %v7288_v49 = vpop.f32.mrf.mxu1 }
0x4968   :  { %v7297_v58 = vsel %vm779_vm2, %v7288_v49, -inf }
0x4969   :  { %v9428_v60 = vpop.f32.mrf.mxu0  ;;  %7298 = vmax.xlane.f32.xlu0 %v7297_v58  ;;  %v9433_v43 = vpop.f32.mrf.mxu1 }
0x496b   :  { %v7291_v46 = vpop.f32.mrf.mxu1 }
0x496d   :  { %v9434_v45 = vpop.f32.mrf.mxu1 }
0x4976   :  { %7366 = vrot.lane.b32.xlu1 %v12373_v13, %s10859_s26 }
0x497f   :  { %7318 = vrot.lane.b32.xlu0 %v12382_v33, %s10859_s26  ;;  %s10871_s26 = smov [#allocation55]  }
0x4980   :  { %s8182_s30 = sshll.u32 %s10871_s26, 4  ;;  %s8183_s30 = int_to_ptr.vmem [resolvable:$true] %s8182_s30 }
0x4981   :  { %s10696_s28 = scalar_lea.vmem %s8183_s30, 256  ;;  %p10701_p3 = scmp.lt.s32.totalorder %s8183_s30, %s8183_s30 }
0x4982   :  { %p10697_p2 = scmp.ne.s32.totalorder %s8183_s30, %s10696_s28  ;;  %p10702_p4 = scmp.lt.s32.totalorder %s10696_s28, %s10696_s28 }
0x4984   :  { %p10703_p5 = por %p10702_p4, %p10701_p3 }
0x4986   :  { %p10704_p6 = pnand %p10703_p5, %p10697_p2 }
0x49ee   :  { %v7296_v44 = vpop.xlane.xlu1 %7295 }
0x49ef   :  { %v7300_v3 = vsub.f32 %v7237_v27, %v7296_v44 }
0x49f1   :  { %v7302_v63 = vmul.f32 1.442695, %v7300_v3 }
0x49f2   :  { %v7367_v34 = vpop.permute.xlu1 %7366  ;;  %v7299_v62 = vpop.xlane.xlu0 %7298 }
0x49f3   :  { %9984 = vpow2.f32 %v7302_v63  ;;  %v7372_v2 = vsel %vm904_vm3, %v7367_v34, 0  ;;  %v7301_v37 = vsub.f32 %v7288_v49, %v7299_v62 }
0x49f4   :  { %9442 = vmatpush3.bf16.msra.mxu1 %v7372_v2 }
0x49f5   :  { %v7304_v7 = vmul.f32 1.442695, %v7301_v37  ;;  %9453 = vmatprep.subr.bf16.mxu1 %v10856_v0 }
0x49f6   :  { %v7319_v23 = vpop.permute.xlu0 %7318 }
0x49f7   :  { %9986 = vpow2.f32 %v7304_v7  ;;  %v7324_v42 = vsel %vm904_vm3, %v7319_v23, 0 }
0x49f8   :  { %9436 = vmatpush3.bf16.msra.mxu0 %v7324_v42 }
0x49f9   :  { %9447 = vmatprep.subr.bf16.mxu0 %v10856_v0 }
0x4a00   :  { %v9985_v61 = vpop.eup %9984 }
0x4a01   :  { %v7306_v59 = vsel %vm779_vm2, %v9985_v61, 0.0 }
0x4a02   :  { %7307 = vadd.xlane.f32.xlu0 %v7306_v59 }
0x4a04   :  { %v9987_v51 = vpop.eup %9986 }
0x4a05   :  { %v7309_v48 = vsel %vm779_vm2, %v9987_v51, 0.0 }
0x4a06   :  { %7310 = vadd.xlane.f32.xlu1 %v7309_v48 }
0x4a17   :  { %7416 = vrot.lane.b32.xlu1 %v12382_v33, %s10863_s21 }
0x4a18   :  { %7466 = vrot.lane.b32.xlu0 %v12373_v13, %s10863_s21 }
0x4a1b   :  { %7414 = vrot.lane.b32.xlu1 %v12396_v57, %s10863_s21 }
0x4a1c   :  { %7464 = vrot.lane.b32.xlu0 %v12402_v55, %s10863_s21 }
0x4a8b   :  { %v7308_v29 = vpop.xlane.xlu0 %7307 }
0x4a8c   :  { %9988 = vrcp.f32 %v7308_v29 }
0x4a8f   :  { %v7311_v6 = vpop.xlane.xlu1 %7310  ;;  %v7467_v56 = vpop.permute.xlu0 %7466 }
0x4a90   :  { %9990 = vrcp.f32 %v7311_v6  ;;  %v7472_v24 = vsel %vm779_vm2, %v7467_v56, 0 }
0x4a93   :  { %v7417_v1 = vpop.permute.xlu1 %7416  ;;  %v7465_v11 = vpop.permute.xlu0 %7464 }
0x4a94   :  { %v7422_v40 = vsel %vm779_vm2, %v7417_v1, 0 }
0x4a97   :  { %v7415_v47 = vpop.permute.xlu1 %7414 }
0x4a99   :  { %v9989_v31 = vpop.eup %9988 }
0x4a9a   :  { %v7313_v38 = vmul.f32 %v9989_v31, %v9985_v61 }
0x4a9c   :  { %v7316_v10 = vpack.c.bf16 %v7313_v38, %v7313_v38 }
0x4a9d   :  { %v9991_v8 = vpop.eup %9990 }
0x4a9e   :  { %v7315_v9 = vmul.f32 %v9991_v8, %v9987_v51  ;;  %9438 = vmatmul.mubr.msk.bf16.vlgmr.msra.gmra.mxu0 %vm779_vm2, %v7316_v10 }
0x4a9f   :  { %9448 = vmatpush3.bf16.xpose.msra.mxu0 %v7422_v40  ;;  %9449 = vmatprep.mubr.msk.bf16.mxu0 %vm10857_vm0, %v10856_v0 }
0x4aa0   :  { %v7317_v4 = vpack.c.bf16 %v7315_v9, %v7315_v9  ;;  %9459 = vmatprep.subr.bf16.mxu0 %v10856_v0 }
0x4aa2   :  { %9444 = vmatmul.mubr.msk.bf16.vlgmr.msra.gmra.mxu1 %vm779_vm2, %v7317_v4 }
0x4aa3   :  { %9454 = vmatpush3.bf16.xpose.msra.mxu1 %v7472_v24  ;;  %9455 = vmatprep.mubr.msk.bf16.mxu1 %vm10857_vm0, %v10856_v0 }
0x4aa4   :  { %9465 = vmatprep.subr.bf16.mxu1 %v10856_v0 }
0x4aa6   :  { %9450 = vmatmul.mubr.msk.bf16.vlgmr.msra.gmra.mxu0 %vm779_vm2, %v7415_v47 }
0x4aa7   :  { %9461 = vmatprep.mubr.msk.bf16.mxu0 %vm10857_vm0, %v10856_v0 }
0x4aaa   :  { %9456 = vmatmul.mubr.msk.bf16.vlgmr.msra.gmra.mxu1 %vm779_vm2, %v7465_v11 }
0x4aab   :  { %9467 = vmatprep.mubr.msk.bf16.mxu1 %vm10857_vm0, %v10856_v0 }
0x4b5e   :  { %v12484_v12 = vpop.f32.mrf.mxu0 }
0x4b60   :  { %v9439_v15 = vpop.f32.mrf.mxu0 }
0x4b62   :  { %v7363_v52 = vpop.f32.mrf.mxu0  ;;  %v12486_v16 = vpop.f32.mrf.mxu1 }
0x4b63   :  { %v9717_v14 = vpack.i.bf16 %v12486_v16, %v12484_v12 }
0x4b64   :  { %v9440_v50 = vpop.f32.mrf.mxu0  ;;  %v9445_v53 = vpop.f32.mrf.mxu1 }
0x4b66   :  { %v7411_v54 = vpop.f32.mrf.mxu1  ;;  %v7458_v19 = vpop.f32.mrf.mxu0 }
0x4b67   :  { %v7514_v17 = vsel %vm779_vm2, %v7458_v19, -inf }
0x4b68   :  { %7515 = vmax.xlane.f32.xlu1 %v7514_v17  ;;  %v9446_v18 = vpop.f32.mrf.mxu1  ;;  %v9451_v28 = vpop.f32.mrf.mxu0 }
0x4b6a   :  { %v7461_v5 = vpop.f32.mrf.mxu0  ;;  %v7508_v22 = vpop.f32.mrf.mxu1 }
0x4b6b   :  { %v7517_v25 = vsel %vm779_vm2, %v7508_v22, -inf }
0x4b6c   :  { %v9452_v26 = vpop.f32.mrf.mxu0  ;;  %7518 = vmax.xlane.f32.xlu0 %v7517_v25  ;;  %v9457_v27 = vpop.f32.mrf.mxu1 }
0x4b6e   :  { %v7511_v30 = vpop.f32.mrf.mxu1 }
0x4b70   :  { %v9458_v32 = vpop.f32.mrf.mxu1 }
0x4b79   :  { %7586 = vrot.lane.b32.xlu1 %v12373_v13, %s10862_s29 }
0x4b82   :  { %7538 = vrot.lane.b32.xlu0 %v12382_v33, %s10862_s29 }
0x4bf1   :  { %v7516_v39 = vpop.xlane.xlu1 %7515 }
0x4bf2   :  { %v7520_v41 = vsub.f32 %v7458_v19, %v7516_v39 }
0x4bf4   :  { %v7522_v49 = vmul.f32 1.442695, %v7520_v41 }
0x4bf5   :  { %v7587_v58 = vpop.permute.xlu1 %7586  ;;  %v7519_v60 = vpop.xlane.xlu0 %7518 }
0x4bf6   :  { %9992 = vpow2.f32 %v7522_v49  ;;  %v7592_v43 = vsel %vm904_vm3, %v7587_v58, 0  ;;  %v7521_v46 = vsub.f32 %v7508_v22, %v7519_v60 }
0x4bf7   :  { %9466 = vmatpush3.bf16.msra.mxu1 %v7592_v43 }
0x4bf8   :  { %v7524_v45 = vmul.f32 1.442695, %v7521_v46  ;;  %9477 = vmatprep.subr.bf16.mxu1 %v10856_v0 }
0x4bf9   :  { %v7539_v44 = vpop.permute.xlu0 %7538 }
0x4bfa   :  { %9994 = vpow2.f32 %v7524_v45  ;;  %v7544_v3 = vsel %vm904_vm3, %v7539_v44, 0 }
0x4bfb   :  { %9460 = vmatpush3.bf16.msra.mxu0 %v7544_v3 }
0x4bfc   :  { %9471 = vmatprep.subr.bf16.mxu0 %v10856_v0 }
0x4c03   :  { %v9993_v63 = vpop.eup %9992 }
0x4c04   :  { %v7526_v34 = vsel %vm779_vm2, %v9993_v63, 0.0 }
0x4c05   :  { %7527 = vadd.xlane.f32.xlu0 %v7526_v34  ;;  %v9777_v34 = vld [vmem:[#allocation41] sm:$0xff]  }
0x4c07   :  { %v9995_v62 = vpop.eup %9994 }
0x4c08   :  { %v7529_v2 = vsel %vm779_vm2, %v9995_v62, 0.0 }
0x4c09   :  { %7530 = vadd.xlane.f32.xlu1 %v7529_v2 }
0x4c1a   :  { %7636 = vrot.lane.b32.xlu1 %v12382_v33, %s10866_s7 }
0x4c1b   :  { %7686 = vrot.lane.b32.xlu0 %v12373_v13, %s10866_s7 }
0x4c1e   :  { %7634 = vrot.lane.b32.xlu1 %v12396_v57, %s10866_s7 }
0x4c1f   :  { %7684 = vrot.lane.b32.xlu0 %v12402_v55, %s10866_s7 }
0x4c8e   :  { %v7528_v37 = vpop.xlane.xlu0 %7527 }
0x4c8f   :  { %9996 = vrcp.f32 %v7528_v37 }
0x4c92   :  { %v7531_v7 = vpop.xlane.xlu1 %7530  ;;  %v7687_v6 = vpop.permute.xlu0 %7686 }
0x4c93   :  { %9998 = vrcp.f32 %v7531_v7  ;;  %v7692_v55 = vsel %vm779_vm2, %v7687_v6, 0 }
0x4c96   :  { %v7637_v61 = vpop.permute.xlu1 %7636  ;;  %v7685_v38 = vpop.permute.xlu0 %7684 }
0x4c97   :  { %v7642_v29 = vsel %vm779_vm2, %v7637_v61, 0 }
0x4c9a   :  { %v7635_v31 = vpop.permute.xlu1 %7634 }
0x4c9c   :  { %v9997_v23 = vpop.eup %9996 }
0x4c9d   :  { %v7533_v42 = vmul.f32 %v9997_v23, %v9993_v63  ;;  %v9776_v63 = vld [vmem:[#allocation41 + $0x8] sm:$0xff]  }
0x4c9f   :  { %v7536_v59 = vpack.c.bf16 %v7533_v42, %v7533_v42 }
0x4ca0   :  { %v9999_v51 = vpop.eup %9998 }
0x4ca1   :  { %v7535_v48 = vmul.f32 %v9999_v51, %v9995_v62  ;;  %9462 = vmatmul.mubr.msk.bf16.vlgmr.msra.gmra.mxu0 %vm779_vm2, %v7536_v59 }
0x4ca2   :  { %9472 = vmatpush3.bf16.xpose.msra.mxu0 %v7642_v29  ;;  %9473 = vmatprep.mubr.msk.bf16.mxu0 %vm10857_vm0, %v10856_v0 }
0x4ca3   :  { %v7537_v57 = vpack.c.bf16 %v7535_v48, %v7535_v48  ;;  %9483 = vmatprep.subr.bf16.mxu0 %v10856_v0 }
0x4ca5   :  { %9468 = vmatmul.mubr.msk.bf16.vlgmr.msra.gmra.mxu1 %vm779_vm2, %v7537_v57 }
0x4ca6   :  { %9478 = vmatpush3.bf16.xpose.msra.mxu1 %v7692_v55  ;;  %9479 = vmatprep.mubr.msk.bf16.mxu1 %vm10857_vm0, %v10856_v0 }
0x4ca7   :  { %9489 = vmatprep.subr.bf16.mxu1 %v10856_v0 }
0x4ca9   :  { %9474 = vmatmul.mubr.msk.bf16.vlgmr.msra.gmra.mxu0 %vm779_vm2, %v7635_v31 }
0x4caa   :  { %9485 = vmatprep.mubr.msk.bf16.mxu0 %vm10857_vm0, %v10856_v0 }
0x4cad   :  { %9480 = vmatmul.mubr.msk.bf16.vlgmr.msra.gmra.mxu1 %vm779_vm2, %v7685_v38 }
0x4cae   :  { %9491 = vmatprep.mubr.msk.bf16.mxu1 %vm10857_vm0, %v10856_v0 }
0x4d61   :  { %v7580_v1 = vpop.f32.mrf.mxu0 }
0x4d63   :  { %v9463_v10 = vpop.f32.mrf.mxu0 }
0x4d65   :  { %v7583_v8 = vpop.f32.mrf.mxu0  ;;  %v7628_v9 = vpop.f32.mrf.mxu1 }
0x4d66   :  { %v9722_v40 = vpack.i.bf16 %v7628_v9, %v7580_v1 }
0x4d67   :  { %v9464_v56 = vpop.f32.mrf.mxu0  ;;  %v9469_v4 = vpop.f32.mrf.mxu1 }
0x4d69   :  { %v7631_v24 = vpop.f32.mrf.mxu1  ;;  %v7678_v47 = vpop.f32.mrf.mxu0 }
0x4d6a   :  { %v7734_v11 = vsel %vm779_vm2, %v7678_v47, -inf }
0x4d6b   :  { %7735 = vmax.xlane.f32.xlu1 %v7734_v11  ;;  %v9470_v15 = vpop.f32.mrf.mxu1  ;;  %v9475_v52 = vpop.f32.mrf.mxu0 }
0x4d6d   :  { %v7681_v50 = vpop.f32.mrf.mxu0  ;;  %v7728_v53 = vpop.f32.mrf.mxu1 }
0x4d6e   :  { %v7737_v54 = vsel %vm779_vm2, %v7728_v53, -inf }
0x4d6f   :  { %v9476_v19 = vpop.f32.mrf.mxu0  ;;  %7738 = vmax.xlane.f32.xlu0 %v7737_v54  ;;  %v9481_v17 = vpop.f32.mrf.mxu1 }
0x4d71   :  { %v7731_v18 = vpop.f32.mrf.mxu1 }
0x4d73   :  { %v9482_v28 = vpop.f32.mrf.mxu1 }
0x4df4   :  { %v7736_v5 = vpop.xlane.xlu1 %7735 }
0x4df5   :  { %v7740_v22 = vsub.f32 %v7678_v47, %v7736_v5 }
0x4df7   :  { %v7742_v25 = vmul.f32 1.442695, %v7740_v22 }
0x4df8   :  { %v7739_v26 = vpop.xlane.xlu0 %7738 }
0x4df9   :  { %10000 = vpow2.f32 %v7742_v25  ;;  %v7741_v27 = vsub.f32 %v7728_v53, %v7739_v26 }
0x4dfb   :  { %v7744_v30 = vmul.f32 1.442695, %v7741_v27 }
0x4dfd   :  { %10002 = vpow2.f32 %v7744_v30 }
0x4e06   :  { %v10001_v32 = vpop.eup %10000 }
0x4e07   :  { %v7746_v39 = vsel %vm779_vm2, %v10001_v32, 0.0 }
0x4e08   :  { %7747 = vadd.xlane.f32.xlu0 %v7746_v39 }
0x4e0a   :  { %v10003_v41 = vpop.eup %10002 }
0x4e0b   :  { %v7749_v49 = vsel %vm779_vm2, %v10003_v41, 0.0 }
0x4e0c   :  { %7750 = vadd.xlane.f32.xlu1 %v7749_v49  ;;  %v9780_v49 = vld [vmem:[%s12701_s23 + $0x18] sm:$0xff]  }
0x4e1d   :  { %7806 = vrot.lane.b32.xlu1 %v12373_v13, %s10865_s2 }
0x4e1e   :  { %7758 = vrot.lane.b32.xlu0 %v12382_v33, %s10865_s2 }
0x4e21   :  { %9718 = vrot.lane.b32.xlu1 %v9717_v14, %s10868_s11 }
0x4e22   :  { %9723 = vrot.lane.b32.xlu0 %v9722_v40, %s10869_s24 }
0x4e91   :  { %v7748_v58 = vpop.xlane.xlu0 %7747 }
0x4e92   :  { %10004 = vrcp.f32 %v7748_v58 }
0x4e95   :  { %v7751_v60 = vpop.xlane.xlu1 %7750  ;;  %v7759_v43 = vpop.permute.xlu0 %7758 }
0x4e96   :  { %10006 = vrcp.f32 %v7751_v60  ;;  %v7764_v46 = vsel %vm904_vm3, %v7759_v43, 0 }
0x4e97   :  { %9484 = vmatpush3.bf16.msra.mxu0 %v7764_v46 }
0x4e98   :  { %9495 = vmatprep.subr.bf16.mxu0 %v10856_v0 }
0x4e99   :  { %v7807_v13 = vpop.permute.xlu1 %7806  ;;  %v9724_v57 = vpop.permute.xlu0 %9723 }
0x4e9a   :  { %v7812_v33 = vsel %vm904_vm3, %v7807_v13, 0  ;;  %v9726_v38 = vunpack.i.h.bf16 %v9724_v57  ;;  %v9725_v1 = vunpack.i.l.bf16 %v9724_v57 }
0x4e9b   :  { %9490 = vmatpush3.bf16.msra.mxu1 %v7812_v33 }
0x4e9c   :  { %9503 = vmatprep.subr.bf16.mxu1 %v10856_v0 }
0x4e9d   :  { %v9719_v48 = vpop.permute.xlu1 %9718 }
0x4e9e   :  { %v9721_v29 = vunpack.i.h.bf16 %v9719_v48  ;;  %v9720_v6 = vunpack.i.l.bf16 %v9719_v48 }
0x4e9f   :  { %v10005_v12 = vpop.eup %10004 }
0x4ea0   :  { %v7753_v16 = vmul.f32 %v10005_v12, %v10001_v32  ;;  %v7879_v55 = vsel %vm779_vm2, %v12446_v21, %v9721_v29  ;;  %v7878_v31 = vsel %vm779_vm2, %v12444_v20, %v9720_v6  ;;  %v8471_v20 = vld [vmem:[#allocation43] ss:$0 sm:$0xff] }
0x4ea1   :  { %v7880_v40 = vsel %vm1682_vm4, %v7878_v31, %v9725_v1  ;;  %v7881_v56 = vsel %vm1682_vm4, %v7879_v55, %v9726_v38  ;;  %v8481_v1 = vld [vmem:[#allocation50] ss:$0 sm:$0xff] }
0x4ea2   :  { %v7756_v14 = vpack.c.bf16 %v7753_v16, %v7753_v16 }
0x4ea3   :  { %v10007_v45 = vpop.eup %10006 }
0x4ea4   :  { %v7755_v44 = vmul.f32 %v10007_v45, %v10003_v41  ;;  %9486 = vmatmul.mubr.msk.bf16.vlgmr.msra.gmra.mxu0 %vm779_vm2, %v7756_v14  ;;  %v9778_v41 = vld [vmem:[#allocation47 + $0x8] sm:$0xff]   ;;  %v8475_v14 = vld [vmem:[#allocation44] ss:$0 sm:$0xff] }
0x4ea5   :  { %9499 = vmatprep.mubr.msk.bf16.mxu0 %vm10857_vm0, %v10856_v0  ;;  %9496 = vmatpush3.bf16.msra.mxu0 %v9776_v63  ;;  %v8476_v63 = vld [vmem:[#allocation46] ss:$0 sm:$0xff] }
0x4ea6   :  { %v7757_v3 = vpack.c.bf16 %v7755_v44, %v7755_v44  ;;  %9497 = vmatprep.subr.bf16.mxu0 %v10856_v0 }
0x4ea8   :  { %9492 = vmatmul.mubr.msk.bf16.vlgmr.msra.gmra.mxu1 %vm779_vm2, %v7757_v3 }
0x4ea9   :  { %9507 = vmatprep.mubr.msk.bf16.mxu1 %vm10857_vm0, %v10856_v0  ;;  %9498 = vmatpush3.bf16.msra.mxu0 %v9777_v34 }
0x4eaa   :  { %9511 = vmatprep.subr.bf16.mxu0 %v10856_v0  ;;  %9504 = vmatpush3.bf16.msra.mxu1 %v9778_v41 }
0x4eab   :  { %9505 = vmatprep.subr.bf16.mxu1 %v10856_v0 }
0x4f64   :  { %v7800_v62 = vpop.f32.mrf.mxu0 }
0x4f66   :  { %v9487_v2 = vpop.f32.mrf.mxu0 }
0x4f68   :  { %v7803_v37 = vpop.f32.mrf.mxu0  ;;  %v7848_v7 = vpop.f32.mrf.mxu1 }
0x4f69   :  { %v9727_v23 = vpack.i.bf16 %v7848_v7, %v7800_v62  ;;  %v9781_v7 = vld [vmem:[%s12701_s23 + $0x10] sm:$0xff]  }
0x4f6a   :  { %v9488_v42 = vpop.f32.mrf.mxu0  ;;  %v9493_v61 = vpop.f32.mrf.mxu1 }
0x4f6b   :  { %9728 = vrot.lane.b32.xlu1 %v9727_v23, %s10870_s14  ;;  %v9782_v23 = vld [vmem:[%s12701_s23 + $0x8] sm:$0xff]   ;;  %v9783_v42 = vld [vmem:[%s12701_s23] sm:$0xff]  }
0x4f6c   :  { %v7851_v59 = vpop.f32.mrf.mxu1  ;;  %v8477_v61 = vld [vmem:[#allocation49] ss:$0 sm:$0xff] }
0x4f6e   :  { %v9494_v51 = vpop.f32.mrf.mxu1 }
0x4fdd   :  { %v9729_v10 = vpop.permute.xlu1 %9728 }
0x4fde   :  { %v9731_v8 = vunpack.i.h.bf16 %v9729_v10  ;;  %v9730_v9 = vunpack.i.l.bf16 %v9729_v10 }
0x4fe0   :  { %v7883_v4 = vsel %vm1685_vm5, %v7881_v56, %v9731_v8  ;;  %v7882_v24 = vsel %vm1685_vm5, %v7880_v40, %v9730_v9 }
0x4fe1   :  { %v7884_v47 = vpack.c.bf16 %v7883_v4, %v7882_v24 }
0x4fe3   :  { %9500 = vmatmul.mubr.msk.bf16.vlgmr.msra.gmra.mxu0 %vm729_vm1, %v7884_v47 }
0x4fe4   :  { %9519 = vmatprep.mubr.msk.bf16.mxu0 %vm10857_vm0, %v10856_v0  ;;  %9512 = vmatpush3.bf16.msra.mxu0 %v9780_v49 }
0x4fe5   :  { %9513 = vmatprep.subr.bf16.mxu0 %v10856_v0 }
0x4fe8   :  { %9514 = vmatpush3.bf16.msra.mxu0 %v9781_v7 }
0x4fe9   :  { %9515 = vmatprep.subr.bf16.mxu0 %v10856_v0 }
0x4fec   :  { %9516 = vmatpush3.bf16.msra.mxu0 %v9782_v23 }
0x4fed   :  { %9517 = vmatprep.subr.bf16.mxu0 %v10856_v0 }
0x4ff0   :  { %9518 = vmatpush3.bf16.msra.mxu0 %v9783_v42 }
0x50a3   :  { %v7940_v21 = vpop.f32.mrf.mxu0 }
0x50a4   :  { %v7941_v11 = vadd.f32 %v8471_v20, %v7940_v21 }
0x50a5   :  { %v9501_v15 = vpop.f32.mrf.mxu0 }
0x50a6   :  { %v7947_v52 = vadd.f32 %v7941_v11, %v12384_v35 }
0x50a7   :  { %v7943_v50 = vpop.f32.mrf.mxu0 }
0x50a8   :  { %v7944_v53 = vadd.f32 %v8471_v20, %v7943_v50  ;;  %v7949_v54 = vsel %vm729_vm1, %v7947_v52, 0.0 }
0x50a9   :  { %7950 = vadd.xlane.f32.xlu0 %v7949_v54  ;;  %v9502_v19 = vpop.f32.mrf.mxu0 }
0x50aa   :  { %v7948_v17 = vadd.f32 %v7944_v53, %v12386_v36  ;;  %v9779_v36 = vld [vmem:[#allocation47] sm:$0xff]  }
0x50ab   :  { %9506 = vmatpush3.bf16.msra.mxu1 %v9779_v36 }
0x50ac   :  { %v7952_v18 = vsel %vm729_vm1, %v7948_v17, 0.0 }
0x50ad   :  { %7953 = vadd.xlane.f32.xlu1 %v7952_v18 }
0x5132   :  { %v7951_v28 = vpop.xlane.xlu0 %7950 }
0x5133   :  { %v7955_v5 = vmul.f32 0.03125, %v7951_v28 }
0x5135   :  { %v7957_v22 = vsub.f32 %v7947_v52, %v7955_v5 }
0x5136   :  { %v7954_v25 = vpop.xlane.xlu1 %7953 }
0x5137   :  { %v7956_v26 = vmul.f32 0.03125, %v7954_v25  ;;  %v7959_v27 = vmul.f32 %v7957_v22, %v7957_v22 }
0x5139   :  { %v7958_v30 = vsub.f32 %v7948_v17, %v7956_v26  ;;  %v7961_v35 = vsel %vm729_vm1, %v7959_v27, 0.0 }
0x513a   :  { %7962 = vadd.xlane.f32.xlu0 %v7961_v35  ;;  %v8487_v35 = vld [vmem:[#allocation52] ss:$0 sm:$0xff] }
0x513b   :  { %v7960_v32 = vmul.f32 %v7958_v30, %v7958_v30 }
0x513d   :  { %v7964_v39 = vsel %vm729_vm1, %v7960_v32, 0.0 }
0x513e   :  { %7965 = vadd.xlane.f32.xlu0 %v7964_v39  ;;  %v8488_v39 = vld [vmem:[#allocation53] ss:$0 sm:$0xff] }
0x51c3   :  { %v7963_v58 = vpop.xlane.xlu0 %7962 }
0x51c4   :  { %v7967_v60 = vmul.f32 0.03125, %v7963_v58 }
0x51c6   :  { %v7969_v43 = vadd.f32 1e-05, %v7967_v60 }
0x51c7   :  { %v7966_v46 = vpop.xlane.xlu0 %7965 }
0x51c8   :  { %10008 = vrsqrt.f32 %v7969_v43  ;;  %v7968_v13 = vmul.f32 0.03125, %v7966_v46 }
0x51ca   :  { %v7970_v33 = vadd.f32 1e-05, %v7968_v13 }
0x51cc   :  { %10010 = vrsqrt.f32 %v7970_v33 }
0x51d5   :  { %v10009_v12 = vpop.eup %10008 }
0x51d6   :  { %v7973_v16 = vmul.f32 %v10009_v12, %v7957_v22 }
0x51d8   :  { %v7981_v44 = vmul.f32 %v8475_v14, %v7973_v16 }
0x51d9   :  { %v10011_v45 = vpop.eup %10010 }
0x51da   :  { %v7974_v3 = vmul.f32 %v10011_v45, %v7958_v30  ;;  %v7989_v62 = vadd.f32 %v8476_v63, %v7981_v44 }
0x51dc   :  { %v7982_v34 = vmul.f32 %v8475_v14, %v7974_v3 }
0x51de   :  { %v7990_v2 = vadd.f32 %v8476_v63, %v7982_v34 }
0x51e0   :  { %v7991_v37 = vpack.c.bf16 %v7990_v2, %v7989_v62 }
0x51e2   :  { %9508 = vmatmul.mubr.msk.bf16.vlgmr.msra.gmra.mxu1 %vm729_vm1, %v7991_v37 }
0x52a2   :  { %v8047_v59 = vpop.f32.mrf.mxu1 }
0x52a3   :  { %v8048_v48 = vadd.f32 %v8477_v61, %v8047_v59 }
0x52a4   :  { %v9509_v51 = vpop.f32.mrf.mxu1 }
0x52a5   :  { %v8054_v55 = vmax.f32 %v8048_v48, 0.0 }
0x52a6   :  { %v8050_v29 = vpop.f32.mrf.mxu1 }
0x52a7   :  { %v8051_v6 = vadd.f32 %v8477_v61, %v8050_v29 }
0x52a8   :  { %v9510_v57 = vpop.f32.mrf.mxu1 }
0x52a9   :  { %v8055_v31 = vmax.f32 %v8051_v6, 0.0 }
0x52ab   :  { %v8056_v38 = vpack.c.bf16 %v8055_v31, %v8054_v55 }
0x52ad   :  { %9520 = vmatmul.mubr.msk.bf16.vlgmr.msra.gmra.mxu0 %vm1892_vm6, %v8056_v38 }
0x536d   :  { %v8124_v10 = vpop.f32.mrf.mxu0 }
0x536e   :  { %v8125_v8 = vadd.f32 %v8481_v1, %v8124_v10 }
0x536f   :  { %v9521_v9 = vpop.f32.mrf.mxu0 }
0x5370   :  { %v8131_v40 = vadd.f32 %v8125_v8, %v7989_v62 }
0x5371   :  { %v8127_v0 = vpop.f32.mrf.mxu0 }
0x5372   :  { %v8128_v56 = vadd.f32 %v8481_v1, %v8127_v0  ;;  %v8133_v4 = vsel %vm729_vm1, %v8131_v40, 0.0 }
0x5373   :  { %8134 = vadd.xlane.f32.xlu1 %v8133_v4  ;;  %v9522_v24 = vpop.f32.mrf.mxu0 }
0x5374   :  { %v8132_v47 = vadd.f32 %v8128_v56, %v7990_v2 }
0x5376   :  { %v8136_v20 = vsel %vm729_vm1, %v8132_v47, 0.0 }
0x5377   :  { %8137 = vadd.xlane.f32.xlu0 %v8136_v20 }
0x53fc   :  { %v8135_v21 = vpop.xlane.xlu1 %8134 }
0x53fd   :  { %v8139_v11 = vmul.f32 0.03125, %v8135_v21 }
0x53ff   :  { %v8141_v15 = vsub.f32 %v8131_v40, %v8139_v11 }
0x5400   :  { %v8138_v52 = vpop.xlane.xlu0 %8137 }
0x5401   :  { %v8140_v50 = vmul.f32 0.03125, %v8138_v52  ;;  %v8143_v53 = vmul.f32 %v8141_v15, %v8141_v15 }
0x5403   :  { %v8142_v54 = vsub.f32 %v8132_v47, %v8140_v50  ;;  %v8145_v19 = vsel %vm729_vm1, %v8143_v53, 0.0 }
0x5404   :  { %8146 = vadd.xlane.f32.xlu1 %v8145_v19 }
0x5405   :  { %v8144_v17 = vmul.f32 %v8142_v54, %v8142_v54 }
0x5407   :  { %v8148_v18 = vsel %vm729_vm1, %v8144_v17, 0.0 }
0x5408   :  { %8149 = vadd.xlane.f32.xlu0 %v8148_v18 }
0x548d   :  { %v8147_v28 = vpop.xlane.xlu1 %8146 }
0x548e   :  { %v8151_v5 = vmul.f32 0.03125, %v8147_v28 }
0x5490   :  { %v8153_v22 = vadd.f32 1e-05, %v8151_v5 }
0x5491   :  { %v8150_v25 = vpop.xlane.xlu0 %8149 }
0x5492   :  { %10012 = vrsqrt.f32 %v8153_v22  ;;  %v8152_v26 = vmul.f32 0.03125, %v8150_v25 }
0x5494   :  { %v8154_v27 = vadd.f32 1e-05, %v8152_v26 }
0x5496   :  { %10014 = vrsqrt.f32 %v8154_v27 }
0x549f   :  { %v10013_v30 = vpop.eup %10012 }
0x54a0   :  { %v8157_v32 = vmul.f32 %v10013_v30, %v8141_v15 }
0x54a2   :  { %v8165_v41 = vmul.f32 %v8487_v35, %v8157_v32 }
0x54a3   :  { %v10015_v36 = vpop.eup %10014 }
0x54a4   :  { %v8158_v49 = vmul.f32 %v10015_v36, %v8142_v54  ;;  %v8173_v58 = vadd.f32 %v8488_v39, %v8165_v41 }
0x54a6   :  { %v8166_v60 = vmul.f32 %v8487_v35, %v8158_v49  ;;  %8175 = vst.msk [vmem:[#allocation55] sm:$0xff] %vm729_vm1, %v8173_v58 }
0x54a8   :  { %v8174_v43 = vadd.f32 %v8488_v39, %v8166_v60 }
0x54aa   :  { %8176 = vst.msk [vmem:[#allocation55 + $0x8] sm:$0xff] %vm729_vm1, %v8174_v43 }
0x54ab   :  { %10707 = shalt.err (!%p10704_p6)
}
0x54ac   :  { %s10872_s29 = smov 128  }
0x54ad   :  { %8188 = dma.vmem_to_hbm [thread:$0]  %s8183_s30, 256, %s11211_s20, [#allocation4], %s10872_s29, %s10872_s29, %s10868_s11  }
0x54ae   :  { %10752 = dma.done.wait [#allocation4], 256  }
0x54af   :  { %10753 = vsyncadd [#allocation4], 4294967040 }
0x54b0   :  { %8192 = vsyncpa [#allocation3], 1 }
0x54b1   :  { %8193 = vsyncpa [#allocation6], 1 }
0x54b2   :  { %8194 = vsyncpa [#allocation9], 1 }
0x54b3   :  { %8195 = vsyncpa [#allocation12], 1 }
0x54b4   :  { %8196 = vsyncpa [#allocation15], 1 }
0x54b5   :  { %8197 = vsyncpa [#allocation18], 1 }
0x54b6   :  { %8198 = vsyncpa [#allocation21], 1 }
0x54b7   :  { %8199 = vsyncpa [#allocation24], 1 }
0x54b8   :  { %8200 = vsyncpa [#allocation27], 1 }
0x54b9   :  { %8201 = vsyncpa [#allocation30], 1 }
0x54ba   :  { %8202 = vsyncpa [#allocation33], 1 }
0x54bb   :  { %8203 = vsyncpa [#allocation36], 1 }
0x54bc   :  { %8204 = vsyncpa [#allocation39], 1 }
0x54bd   :  { %8205 = vsyncpa [#allocation42], 1 }
0x54be   :  { %8206 = vsyncpa [#allocation45], 1 }
0x54bf   :  { %8207 = vsyncpa [#allocation48], 1 }
0x54c0   :  { %8208 = vsyncpa [#allocation51], 1 }
0x54c1   :  { %8209 = vsyncpa [#allocation54], 1 }
0x54c2   :  { %8210 = vsyncpa [#allocation4], 1 }

</bundles_post_ra>
